<compile_context>
chip_gen: v6e
topology: v6e:2x2x1
jax: 0.10.0
libtpu: 0.0.40
codegen_flags: <defaults>
</compile_context>

<pallas_src>
import functools
from dataclasses import dataclass

import jax
import jax.numpy as jnp
from jax.experimental import pallas as pl
from jax.experimental.pallas import tpu as pltpu


def get_padding(kernel_size: int, dilation: int = 1) -> int:
    return (kernel_size - 1) * dilation // 2


# --------------------------- in-kernel helpers --------------------------------

def _leaky(x, slope):
    return jnp.where(x >= 0, x, slope * x)


def _pad_lanes(x, left, right):
    """Zero-pad a (C, T) tile along the lane (time) axis."""
    C = x.shape[0]
    parts = []
    if left:
        parts.append(jnp.zeros((C, left), jnp.float32))
    parts.append(x)
    if right:
        parts.append(jnp.zeros((C, right), jnp.float32))
    if len(parts) == 1:
        return x
    return jnp.concatenate(parts, axis=1)


def _im2col_dot(x_pad, w2, T_out, K, dilation):
    """x_pad: (Cin, T_pad) time-on-lanes.  w2: (Cout, K*Cin), col = k*Cin + c.
    One MXU matmul for the whole conv."""
    cols = [x_pad[:, k * dilation:k * dilation + T_out] for k in range(K)]
    xcol = cols[0] if K == 1 else jnp.concatenate(cols, axis=0)   # (K*Cin, T)
    return jnp.dot(w2, xcol, preferred_element_type=jnp.float32)  # (Cout, T)


def _conv_same(x, w2, b, K, dil):
    """'same' dilated conv on a (C, T) tile, zero-padding done in-kernel."""
    C, T = x.shape
    p = (K - 1) * dil // 2
    return _im2col_dot(_pad_lanes(x, p, p), w2, T, K, dil) + b


# ----------------------------- Pallas kernels ---------------------------------

def _pre_cond_kernel(z_ref, s_ref, wpre_ref, bpre_ref, wcond_ref, bcond_ref,
                     o_ref, *, K, T_out):
    """conv1d_pre(z) + cond(speaker) fused.  z_ref: (1, Cz, T_pad) pre-padded."""
    z = z_ref[0]
    y = _im2col_dot(z, wpre_ref[...], T_out, K, 1) + bpre_ref[...]
    c = jnp.dot(wcond_ref[...], s_ref[0],
                preferred_element_type=jnp.float32) + bcond_ref[...]   # (C, 1)
    o_ref[0] = y + c                                                   # bcast T


def _convT_poly_kernel(x_ref, w_ref, b_ref, o_ref, *, M, U, pre_leaky):
    """Polyphase ConvTranspose1d: one dot (stride*Cout, M*Cin) x (M*Cin, U).
    x_ref: (1, Cin, U+M-1) pre-padded; output is phase-major (stride*Cout, U)."""
    x = _leaky(x_ref[0], pre_leaky)            # leaky(0)==0, pad stays zero
    o_ref[0] = _im2col_dot(x, w_ref[...], U, M, 1) + b_ref[...]


def _mrf_kernel(*refs, kernel_sizes, dilation_sizes):
    """Fused multi-receptive-field stage: all resblocks of one upsample stage
    (leaky/conv_d/leaky/conv_1/residual x 3 per block), summed and averaged,
    with the activation kept in VMEM for the whole stage."""
    x_ref = refs[0]
    o_ref = refs[-1]
    wb = refs[1:-1]
    x = x_ref[0]                               # (C, T)
    idx = 0
    acc = None
    for ksz, dils in zip(kernel_sizes, dilation_sizes):
        h = x
        for d in dils:
            w1, b1, w2, b2 = wb[idx], wb[idx + 1], wb[idx + 2], wb[idx + 3]
            idx += 4
            t = _conv_same(_leaky(h, 0.1), w1[...], b1[...], ksz, d)
            t = _conv_same(_leaky(t, 0.1), w2[...], b2[...], ksz, 1)
            h = t + h
        acc = h if acc is None else acc + h
    o_ref[0] = acc * (1.0 / len(kernel_sizes))


def _conv1d_kernel(x_ref, w_ref, b_ref, o_ref, *, K, dilation, pre_leaky, T_out):
    """Generic conv (used for subband_conv_post).  x_ref pre-padded (1,Cin,Tp)."""
    x = x_ref[0]
    if pre_leaky is not None:
        x = _leaky(x, pre_leaky)
    o_ref[0] = _im2col_dot(x, w_ref[...], T_out, K, dilation) + b_ref[...]


def _istft_ola_kernel(xs_ref, xp_ref, basis_ref, invenv_ref, o_ref,
                      *, N, hop, T):
    """exp/sin/cos spectrum -> one stacked inverse-rDFT matmul (window folded
    into the basis) -> overlap-add -> envelope normalization, per stream.
    xs/xp: (1, F, T); basis: (N, 2F); invenv: (hop, T+R-1); out: (1, hop, T+R-1)."""
    mag = jnp.exp(xs_ref[0])
    ph = jnp.pi * jnp.sin(xp_ref[0])
    re = mag * jnp.cos(ph)
    im = mag * jnp.sin(ph)
    spec = jnp.concatenate([re, im], axis=0)                       # (2F, T)
    frames = jnp.dot(basis_ref[...], spec,
                     preferred_element_type=jnp.float32)           # (N, T)
    R = N // hop
    Tola = T + R - 1
    acc = jnp.zeros((hop, Tola), jnp.float32)
    for j in range(R):
        fr = frames[j * hop:(j + 1) * hop, :]                      # (hop, T)
        acc = acc + _pad_lanes(fr, j, R - 1 - j)
    o_ref[0] = acc * invenv_ref[...]


def _mspost_kernel(y_ref, w_ref, o_ref, *, M, L):
    """Polyphase multistream post FIR (updown identity x sb folded into W).
    y_ref: (1, sb, L+M-1); W: (sb_phases, M*sb); out: (1, sb_phases, L)."""
    o_ref[0] = _im2col_dot(y_ref[0], w_ref[...], L, M, 1)


# ----------------------------- pallas_call wrappers ---------------------------

_PAR = pltpu.CompilerParams(dimension_semantics=("parallel",))


def pre_cond(z, spk, wpre2, bpre2, wcond2, bcond2, *, K=7, padding=3):
    B, Cz, T = z.shape
    C = wpre2.shape[0]
    S = wcond2.shape[1]
    zp = jnp.pad(z, ((0, 0), (0, 0), (padding, padding)))
    T_pad = T + 2 * padding
    kern = functools.partial(_pre_cond_kernel, K=K, T_out=T)
    return pl.pallas_call(
        kern,
        out_shape=jax.ShapeDtypeStruct((B, C, T), jnp.float32),
        grid=(B,),
        in_specs=[
            pl.BlockSpec((1, Cz, T_pad), lambda b: (b, 0, 0)),
            pl.BlockSpec((1, S, 1), lambda b: (b, 0, 0)),
            pl.BlockSpec((C, K * Cz), lambda b: (0, 0)),
            pl.BlockSpec((C, 1), lambda b: (0, 0)),
            pl.BlockSpec((C, S), lambda b: (0, 0)),
            pl.BlockSpec((C, 1), lambda b: (0, 0)),
        ],
        out_specs=pl.BlockSpec((1, C, T), lambda b: (b, 0, 0)),
        compiler_params=_PAR,
    )(zp.astype(jnp.float32), spk.astype(jnp.float32),
      wpre2, bpre2, wcond2, bcond2)


def conv_transpose1d_poly(x, poly, *, pre_leaky=0.1):
    B, Cin, T = x.shape
    s, M = poly["stride"], poly["M"]
    W_all, b_all = poly["w"], poly["b"]
    sCout = W_all.shape[0]
    Cout = sCout // s
    U = T                                    # builder asserts (K - 2p) == stride
    pad_l, pad_r = poly["pad_left"], poly["pad_right"]
    xp = jnp.pad(x, ((0, 0), (0, 0), (pad_l, pad_r)))
    T_pad = T + pad_l + pad_r                # == U + M - 1
    kern = functools.partial(_convT_poly_kernel, M=M, U=U, pre_leaky=pre_leaky)
    yph = pl.pallas_call(
        kern,
        out_shape=jax.ShapeDtypeStruct((B, sCout, U), jnp.float32),
        grid=(B,),
        in_specs=[
            pl.BlockSpec((1, Cin, T_pad), lambda b: (b, 0, 0)),
            pl.BlockSpec((sCout, M * Cin), lambda b: (0, 0)),
            pl.BlockSpec((sCout, 1), lambda b: (0, 0)),
        ],
        out_specs=pl.BlockSpec((1, sCout, U), lambda b: (b, 0, 0)),
        compiler_params=_PAR,
    )(xp.astype(jnp.float32), W_all, b_all)
    # phase-major -> interleaved time axis (tiny XLA transpose in glue).
    y = yph.reshape(B, s, Cout, U)
    return jnp.transpose(y, (0, 2, 3, 1)).reshape(B, Cout, U * s)


def mrf_stage(x, rbs, kernel_sizes, dilation_sizes):
    B, C, T = x.shape
    flat = []
    for rb in rbs:
        for (w1, b1, w2, b2) in rb:
            flat += [w1, b1, w2, b2]
    kern = functools.partial(
        _mrf_kernel,
        kernel_sizes=tuple(kernel_sizes),
        dilation_sizes=tuple(tuple(d) for d in dilation_sizes))
    in_specs = [pl.BlockSpec((1, C, T), lambda b: (b, 0, 0))]
    for a in flat:
        in_specs.append(pl.BlockSpec(a.shape, lambda b: (0, 0)))
    # TODO(synk): for very long utterances add a halo-tiled T grid axis so the
    # stage pipelines over time and fits v7x's 64 MiB VMEM; unnecessary here.
    return pl.pallas_call(
        kern,
        out_shape=jax.ShapeDtypeStruct((B, C, T), jnp.float32),
        grid=(B,),
        in_specs=in_specs,
        out_specs=pl.BlockSpec((1, C, T), lambda b: (b, 0, 0)),
        compiler_params=_PAR,
    )(x.astype(jnp.float32), *flat)


def conv1d(x, w2, b2, *, K, dilation=1, padding=0, pre_leaky=None):
    B, Cin, T = x.shape
    Cout = w2.shape[0]
    xp = jnp.pad(x, ((0, 0), (0, 0), (padding, padding))) if padding else x
    T_pad = T + 2 * padding
    T_out = T_pad - dilation * (K - 1)
    kern = functools.partial(_conv1d_kernel, K=K, dilation=dilation,
                             pre_leaky=pre_leaky, T_out=T_out)
    return pl.pallas_call(
        kern,
        out_shape=jax.ShapeDtypeStruct((B, Cout, T_out), jnp.float32),
        grid=(B,),
        in_specs=[
            pl.BlockSpec((1, Cin, T_pad), lambda b: (b, 0, 0)),
            pl.BlockSpec((Cout, K * Cin), lambda b: (0, 0)),
            pl.BlockSpec((Cout, 1), lambda b: (0, 0)),
        ],
        out_specs=pl.BlockSpec((1, Cout, T_out), lambda b: (b, 0, 0)),
        compiler_params=_PAR,
    )(xp.astype(jnp.float32), w2, b2)


def istft_ola(xs, xp, *, n_fft, hop):
    """xs, xp: (BS, F, T) with F = n_fft//2+1, time on lanes.
    Returns (BS, (T-1)*hop), matching torch.istft(center=True, hann window)."""
    BS, F, T = xs.shape
    N = n_fft
    R = N // hop
    Tola = T + R - 1

    n = jnp.arange(N, dtype=jnp.float32)
    f = jnp.arange(F, dtype=jnp.float32)
    ang = 2.0 * jnp.pi * f[None, :] * n[:, None] / N               # (N, F)
    coef = jnp.where((f == 0) | (f == N // 2), 1.0, 2.0)[None, :] / N
    win = 0.5 - 0.5 * jnp.cos(2.0 * jnp.pi * n / N)
    cosb = win[:, None] * coef * jnp.cos(ang)
    sinb = win[:, None] * coef * jnp.sin(ang)
    basis = jnp.concatenate([cosb, -sinb], axis=1).astype(jnp.float32)  # (N, 2F)

    # Window-envelope reciprocal (data-independent constant).
    wsq = (win * win).reshape(R, hop)
    env = jnp.zeros((hop, Tola), jnp.float32)
    for j in range(R):
        env = env.at[:, j:j + T].add(jnp.broadcast_to(wsq[j][:, None], (hop, T)))
    inv_env = (1.0 / jnp.maximum(env, 1e-11)).astype(jnp.float32)

    kern = functools.partial(_istft_ola_kernel, N=N, hop=hop, T=T)
    ola = pl.pallas_call(
        kern,
        out_shape=jax.ShapeDtypeStruct((BS, hop, Tola), jnp.float32),
        grid=(BS,),
        in_specs=[
            pl.BlockSpec((1, F, T), lambda b: (b, 0, 0)),
            pl.BlockSpec((1, F, T), lambda b: (b, 0, 0)),
            pl.BlockSpec((N, 2 * F), lambda b: (0, 0)),
            pl.BlockSpec((hop, Tola), lambda b: (0, 0)),
        ],
        out_specs=pl.BlockSpec((1, hop, Tola), lambda b: (b, 0, 0)),
        compiler_params=_PAR,
    )(xs.astype(jnp.float32), xp.astype(jnp.float32), basis, inv_env)

    y = jnp.transpose(ola, (0, 2, 1)).reshape(BS, Tola * hop)
    return y[:, N // 2: N // 2 + (T - 1) * hop]      # center=True trimming


def multistream_post(y_mb, poly):
    """wav = multistream_conv_post(conv_transpose1d(y_mb, updown*sb, stride=sb)),
    computed in polyphase (no zero-stuffed intermediate feeds the FIR)."""
    B, sb, L = y_mb.shape
    M, pad_l, pad_r = poly["M"], poly["pad_left"], poly["pad_right"]
    W = poly["w"]
    yp = jnp.pad(y_mb, ((0, 0), (0, 0), (pad_l, pad_r)))
    Lp = L + pad_l + pad_r                           # = L + M - 1
    kern = functools.partial(_mspost_kernel, M=M, L=L)
    out = pl.pallas_call(
        kern,
        out_shape=jax.ShapeDtypeStruct((B, sb, L), jnp.float32),
        grid=(B,),
        in_specs=[
            pl.BlockSpec((1, sb, Lp), lambda b: (b, 0, 0)),
            pl.BlockSpec((sb, M * sb), lambda b: (0, 0)),
        ],
        out_specs=pl.BlockSpec((1, sb, L), lambda b: (b, 0, 0)),
        compiler_params=_PAR,
    )(yp.astype(jnp.float32), W)
    return jnp.transpose(out, (0, 2, 1)).reshape(B, 1, sb * L)


# ----------------------------- weight preparation ------------------------------

def _conv_w2(w_oik):
    Cout, Cin, K = w_oik.shape
    return jnp.transpose(w_oik, (0, 2, 1)).reshape(Cout, K * Cin).astype(jnp.float32)


def _bias2(b):
    return jnp.reshape(b, (-1, 1)).astype(jnp.float32)


def build_convT_poly(w_iok, bias, stride, padding):
    """Polyphase re-packing of a torch ConvTranspose1d weight (Cin, Cout, K)."""
    Cin, Cout, K = w_iok.shape
    s, p = stride, padding
    assert K - 2 * p == s, "polyphase builder assumes K - 2*pad == stride"
    rs = [(v + p) % s for v in range(s)]
    offs = [(v + p) // s for v in range(s)]
    Ms = [(K - r + s - 1) // s for r in rs]
    pad_left = max(Ms[v] - 1 - offs[v] for v in range(s))
    max_off = max(offs)
    M = pad_left + max_off + 1
    pad_right = max_off
    W = jnp.zeros((s * Cout, M * Cin), jnp.float32)
    for v in range(s):
        for m in range(Ms[v]):
            k = rs[v] + m * s
            mp = offs[v] + pad_left - m
            W = W.at[v * Cout:(v + 1) * Cout, mp * Cin:(mp + 1) * Cin].set(
                jnp.transpose(w_iok[:, :, k]).astype(jnp.float32))
    b_all = jnp.tile(jnp.reshape(bias, (1, Cout)), (s, 1)).reshape(s * Cout, 1)
    return {"w": W, "b": b_all.astype(jnp.float32), "stride": s, "M": M,
            "pad_left": pad_left, "pad_right": pad_right}


def build_mspost_poly(w_post, subbands):
    """Polyphase packing of multistream_conv_post (1, sb, Kp) applied to the
    sb-zero-stuffed, x sb scaled multiband signal (updown_filter is the
    registered identity buffer of the reference module)."""
    _, sb, Kp = w_post.shape
    p = get_padding(Kp, 1)
    rs = [(p - v) % sb for v in range(sb)]
    Ms = [(Kp - r + sb - 1) // sb for r in rs]
    c0 = [(v + rs[v] - p) // sb for v in range(sb)]
    assert all(c <= 0 for c in c0)
    pad_left = max(-c for c in c0)
    M = max(Ms[v] + c0[v] + pad_left for v in range(sb))
    pad_right = M - 1 - pad_left
    W = jnp.zeros((sb, M * sb), jnp.float32)
    for v in range(sb):
        for m in range(Ms[v]):
            k = rs[v] + m * sb
            mp = m + c0[v] + pad_left
            W = W.at[v, mp * sb:(mp + 1) * sb].set(
                subbands * w_post[0, :, k].astype(jnp.float32))
    return {"w": W, "M": M, "pad_left": pad_left, "pad_right": pad_right}


# ----------------------------- model ------------------------------------------

@dataclass(frozen=True)
class Config:
    z_channels: int = 32
    speaker_id_embedding_dim: int = 16
    upsample_initial_channel: int = 32
    upsample_rates: tuple = (4, 4)
    upsample_kernel_sizes: tuple = (8, 8)
    resblock_kernel_sizes: tuple = (3, 7)
    resblock_dilation_sizes: tuple = ((1, 3, 5), (1, 3, 5))
    gen_istft_n_fft: int = 16
    gen_istft_hop_size: int = 4
    subbands: int = 4


def init_params(key, cfg: Config):
    keys = iter(jax.random.split(key, 512))

    def w(shape, std=0.01):
        return std * jax.random.normal(next(keys), shape, jnp.float32)

    uic = cfg.upsample_initial_channel
    p = {
        "pre_w": w((uic, cfg.z_channels, 7), 0.02),
        "pre_b": w((uic,), 0.02),
        "cond_w": w((uic, cfg.speaker_id_embedding_dim, 1), 0.02),
        "cond_b": w((uic,), 0.02),
        "ups_w": [], "ups_b": [], "resblocks": [],
    }
    for i, (stride, K) in enumerate(zip(cfg.upsample_rates,
                                        cfg.upsample_kernel_sizes)):
        cin, cout = uic // 2 ** i, uic // 2 ** (i + 1)
        p["ups_w"].append(w((cin, cout, K)))          # torch ConvTranspose1d layout
        p["ups_b"].append(w((cout,)))
    ch = uic
    for i in range(len(cfg.upsample_rates)):
        ch = uic // 2 ** (i + 1)
        for ksz, dils in zip(cfg.resblock_kernel_sizes,
                             cfg.resblock_dilation_sizes):
            rb = {"c1": [], "c2": []}
            for _ in dils:
                rb["c1"].append((w((ch, ch, ksz)), w((ch,))))
                rb["c2"].append((w((ch, ch, ksz)), w((ch,))))
            p["resblocks"].append(rb)
    nfft = cfg.gen_istft_n_fft
    p["sub_w"] = w((cfg.subbands * (nfft + 2), ch, 7))
    p["sub_b"] = w((cfg.subbands * (nfft + 2),))
    p["ms_w"] = w((1, 4, 63))                         # multistream_conv_post, no bias
    return p


def prepare_params(params, cfg: Config):
    """Repack torch-layout weights into the kernel-ready (lane-dense) forms."""
    prep = {
        "pre_w": _conv_w2(params["pre_w"]), "pre_b": _bias2(params["pre_b"]),
        "cond_w": params["cond_w"][:, :, 0].astype(jnp.float32),
        "cond_b": _bias2(params["cond_b"]),
        "sub_w": _conv_w2(params["sub_w"]), "sub_b": _bias2(params["sub_b"]),
        "ups": [], "stages": [],
    }
    for i, (stride, K) in enumerate(zip(cfg.upsample_rates,
                                        cfg.upsample_kernel_sizes)):
        prep["ups"].append(build_convT_poly(params["ups_w"][i],
                                            params["ups_b"][i],
                                            stride, (K - stride) // 2))
    nk = len(cfg.resblock_kernel_sizes)
    for i in range(len(cfg.upsample_rates)):
        rbs = []
        for j in range(nk):
            rb = params["resblocks"][i * nk + j]
            blk = []
            for (w1, b1), (w2, b2) in zip(rb["c1"], rb["c2"]):
                blk.append((_conv_w2(w1), _bias2(b1), _conv_w2(w2), _bias2(b2)))
            rbs.append(blk)
        prep["stages"].append(rbs)
    prep["ms"] = build_mspost_poly(params["ms_w"], cfg.subbands)
    return prep


def decoder_forward(prep, z, speaker_id_embedded, cfg: Config):
    """z: (B, z_channels, T); speaker_id_embedded: (B, spk_dim, 1).
    Returns (wav_fake (B,1,Twav), wav_fake_mb (B,subbands,Twav))."""
    B = z.shape[0]
    nfft, hop, sb = cfg.gen_istft_n_fft, cfg.gen_istft_hop_size, cfg.subbands
    F = nfft // 2 + 1

    # conv1d_pre(z) + cond(speaker), fused in one kernel.
    x = pre_cond(z, speaker_id_embedded, prep["pre_w"], prep["pre_b"],
                 prep["cond_w"], prep["cond_b"], K=7, padding=3)

    for i in range(len(cfg.upsample_rates)):
        # leaky_relu(0.1) fused into the polyphase transposed conv.
        x = conv_transpose1d_poly(x, prep["ups"][i], pre_leaky=0.1)
        # whole MRF (both resblocks + average) in one fused kernel.
        x = mrf_stage(x, prep["stages"][i], cfg.resblock_kernel_sizes,
                      cfg.resblock_dilation_sizes)

    # leaky_relu (slope 0.01) fused into the next conv; ReflectionPad1d((1, 0)).
    x = jnp.concatenate([x[:, :, 1:2], x], axis=2)
    x = conv1d(x, prep["sub_w"], prep["sub_b"], K=7, dilation=1, padding=3,
               pre_leaky=0.01)                        # (B, sb*(nfft+2), T')

    Bq, _, Tq = x.shape
    xr = x.reshape(Bq, sb, nfft + 2, Tq)
    xs_mag = xr[:, :, :F, :].reshape(Bq * sb, F, Tq)   # log-magnitude input
    xp_ph = xr[:, :, F:, :].reshape(Bq * sb, F, Tq)    # phase input

    y_mb = istft_ola(xs_mag, xp_ph, n_fft=nfft, hop=hop)   # (B*sb, L)
    L = y_mb.shape[-1]
    y_mb = y_mb.reshape(Bq, sb, L)

    # wav_fake via polyphase post-filter (updown identity * sb folded in).
    wav_fake = multistream_post(y_mb, prep["ms"])          # (B, 1, sb*L)

    # The module returns the *upsampled* multiband signal
    # (F.conv_transpose1d with the identity updown_filter * subbands):
    # zero-stuff by sb and scale by sb.  Pure output materialization (glue).
    wav_fake_mb = jnp.zeros((Bq, sb, sb * L), jnp.float32)
    wav_fake_mb = wav_fake_mb.at[:, :, ::sb].set(sb * y_mb)
    return wav_fake, wav_fake_mb


# ----------------------------- demo --------------------------------------------

if __name__ == "__main__":
    cfg = Config()
    key = jax.random.PRNGKey(0)
    kp, kz, ks = jax.random.split(key, 3)

    params = init_params(kp, cfg)
    prep = prepare_params(params, cfg)

    B, T = 2, 8
    z = jax.random.normal(kz, (B, cfg.z_channels, T), jnp.float32)
    spk = jax.random.normal(ks, (B, cfg.speaker_id_embedding_dim, 1),
                            jnp.float32)

    run = jax.jit(lambda a, b: decoder_forward(prep, a, b, cfg))
    wav_fake, wav_fake_mb = run(z, spk)
    jax.block_until_ready((wav_fake, wav_fake_mb))

    up_total = 1
    for r in cfg.upsample_rates:
        up_total *= r
    n_frames = T * up_total + 1                       # +1 from reflection pad
    L_mb = (n_frames - 1) * cfg.gen_istft_hop_size
    Twav = L_mb * cfg.subbands
    assert wav_fake.shape == (B, 1, Twav), wav_fake.shape
    assert wav_fake_mb.shape == (B, cfg.subbands, Twav), wav_fake_mb.shape
    assert bool(jnp.all(jnp.isfinite(wav_fake)))
    assert bool(jnp.all(jnp.isfinite(wav_fake_mb)))
    print("KERNEL_OK")
</pallas_src>

<mosaic_0001>
module attributes {stable_mosaic.version = 11 : i64} {
  func.func @_pre_cond_kernel(%arg0: i32, %arg1: memref<1x32x14xf32, #tpu.memory_space<vmem>>, %arg2: memref<1x16x1xf32, #tpu.memory_space<vmem>>, %arg3: memref<32x224xf32, #tpu.memory_space<vmem>>, %arg4: memref<32x1xf32, #tpu.memory_space<vmem>>, %arg5: memref<32x16xf32, #tpu.memory_space<vmem>>, %arg6: memref<32x1xf32, #tpu.memory_space<vmem>>, %arg7: memref<1x32x8xf32, #tpu.memory_space<vmem>>) attributes {dimension_semantics = [#tpu.dimension_semantics<parallel>], iteration_bounds = array<i64: 2>, scalar_prefetch = 0 : i64, scratch_operands = 0 : i64, tpu.core_type = #tpu.core_type<tc>, window_params = [{transform_indices = @transform_0, window_bounds = array<i64: 1, 32, 14>}, {transform_indices = @transform_1, window_bounds = array<i64: 1, 16, 1>}, {pipeline_mode = #tpu.pipeline_mode<synchronous>, transform_indices = @transform_2, window_bounds = array<i64: 32, 224>}, {pipeline_mode = #tpu.pipeline_mode<synchronous>, transform_indices = @transform_3, window_bounds = array<i64: 32, 1>}, {pipeline_mode = #tpu.pipeline_mode<synchronous>, transform_indices = @transform_4, window_bounds = array<i64: 32, 16>}, {pipeline_mode = #tpu.pipeline_mode<synchronous>, transform_indices = @transform_5, window_bounds = array<i64: 32, 1>}, {transform_indices = @transform_6, window_bounds = array<i64: 1, 32, 8>}]} {
    %c0 = arith.constant 0 : index
    %c0_0 = arith.constant 0 : index
    %c0_1 = arith.constant 0 : index
    %0 = vector.load %arg1[%c0, %c0_0, %c0_1] : memref<1x32x14xf32, #tpu.memory_space<vmem>>, vector<1x32x14xf32>
    %1 = vector.shape_cast %0 : vector<1x32x14xf32> to vector<32x14xf32>
    %c0_2 = arith.constant 0 : index
    %c0_3 = arith.constant 0 : index
    %2 = vector.load %arg3[%c0_2, %c0_3] : memref<32x224xf32, #tpu.memory_space<vmem>>, vector<32x224xf32>
    %3 = vector.extract_strided_slice %1 {offsets = [0, 0], sizes = [32, 8], strides = [1, 1]} : vector<32x14xf32> to vector<32x8xf32>
    %4 = vector.extract_strided_slice %1 {offsets = [0, 1], sizes = [32, 8], strides = [1, 1]} : vector<32x14xf32> to vector<32x8xf32>
    %5 = vector.extract_strided_slice %1 {offsets = [0, 2], sizes = [32, 8], strides = [1, 1]} : vector<32x14xf32> to vector<32x8xf32>
    %6 = vector.extract_strided_slice %1 {offsets = [0, 3], sizes = [32, 8], strides = [1, 1]} : vector<32x14xf32> to vector<32x8xf32>
    %7 = vector.extract_strided_slice %1 {offsets = [0, 4], sizes = [32, 8], strides = [1, 1]} : vector<32x14xf32> to vector<32x8xf32>
    %8 = vector.extract_strided_slice %1 {offsets = [0, 5], sizes = [32, 8], strides = [1, 1]} : vector<32x14xf32> to vector<32x8xf32>
    %9 = vector.extract_strided_slice %1 {offsets = [0, 6], sizes = [32, 8], strides = [1, 1]} : vector<32x14xf32> to vector<32x8xf32>
    %10 = tpu.concatenate %3, %4, %5, %6, %7, %8, %9 in 0 : vector<32x8xf32>, vector<32x8xf32>, vector<32x8xf32>, vector<32x8xf32>, vector<32x8xf32>, vector<32x8xf32>, vector<32x8xf32> -> vector<224x8xf32>
    %cst = arith.constant dense<0.000000e+00> : vector<32x8xf32>
    %11 = tpu.matmul %2, %10, %cst {dimension_numbers = #tpu.dot_dimension_numbers<[1], [0], [0], [1], [0, 0, 1, 1], [], []>} : vector<32x224xf32>, vector<224x8xf32>, vector<32x8xf32> -> vector<32x8xf32>
    %c0_4 = arith.constant 0 : index
    %c0_5 = arith.constant 0 : index
    %12 = vector.load %arg4[%c0_4, %c0_5] : memref<32x1xf32, #tpu.memory_space<vmem>>, vector<32x1xf32>
    %13 = vector.broadcast %12 : vector<32x1xf32> to vector<32x8xf32>
    %14 = arith.addf %11, %13 : vector<32x8xf32>
    %c0_6 = arith.constant 0 : index
    %c0_7 = arith.constant 0 : index
    %15 = vector.load %arg5[%c0_6, %c0_7] : memref<32x16xf32, #tpu.memory_space<vmem>>, vector<32x16xf32>
    %c0_8 = arith.constant 0 : index
    %c0_9 = arith.constant 0 : index
    %c0_10 = arith.constant 0 : index
    %16 = vector.load %arg2[%c0_8, %c0_9, %c0_10] : memref<1x16x1xf32, #tpu.memory_space<vmem>>, vector<1x16x1xf32>
    %17 = vector.shape_cast %16 : vector<1x16x1xf32> to vector<16x1xf32>
    %cst_11 = arith.constant dense<0.000000e+00> : vector<32x1xf32>
    %18 = tpu.matmul %15, %17, %cst_11 {dimension_numbers = #tpu.dot_dimension_numbers<[1], [0], [0], [1], [0, 0, 1, 1], [], []>} : vector<32x16xf32>, vector<16x1xf32>, vector<32x1xf32> -> vector<32x1xf32>
    %c0_12 = arith.constant 0 : index
    %c0_13 = arith.constant 0 : index
    %19 = vector.load %arg6[%c0_12, %c0_13] : memref<32x1xf32, #tpu.memory_space<vmem>>, vector<32x1xf32>
    %20 = arith.addf %18, %19 : vector<32x1xf32>
    %21 = vector.broadcast %20 : vector<32x1xf32> to vector<32x8xf32>
    %22 = arith.addf %14, %21 : vector<32x8xf32>
    %c0_14 = arith.constant 0 : index
    %c0_15 = arith.constant 0 : index
    %c0_16 = arith.constant 0 : index
    %23 = vector.load %arg7[%c0_14, %c0_15, %c0_16] : memref<1x32x8xf32, #tpu.memory_space<vmem>>, vector<1x32x8xf32>
    %24 = vector.shape_cast %23 : vector<1x32x8xf32> to vector<32x8xf32>
    %25 = vector.shape_cast %22 : vector<32x8xf32> to vector<1x32x8xf32>
    tpu.vector_store %arg7[%c0_14, %c0_15, %c0_16], %25 {strides = array<i32>} : memref<1x32x8xf32, #tpu.memory_space<vmem>>, vector<1x32x8xf32>,
    return
  }
  func.func @transform_0(%arg0: i32) -> (i32, i32, i32) {
    %c0_i32 = arith.constant 0 : i32
    %c0_i32_0 = arith.constant 0 : i32
    %c0_i32_1 = arith.constant 0 : i32
    return %arg0, %c0_i32, %c0_i32_0 : i32, i32, i32
  }
  func.func @transform_1(%arg0: i32) -> (i32, i32, i32) {
    %c0_i32 = arith.constant 0 : i32
    %c0_i32_0 = arith.constant 0 : i32
    %c0_i32_1 = arith.constant 0 : i32
    return %arg0, %c0_i32, %c0_i32_0 : i32, i32, i32
  }
  func.func @transform_2(%arg0: i32) -> (i32, i32) {
    %c0_i32 = arith.constant 0 : i32
    %c0_i32_0 = arith.constant 0 : i32
    %c0_i32_1 = arith.constant 0 : i32
    return %c0_i32, %c0_i32_0 : i32, i32
  }
  func.func @transform_3(%arg0: i32) -> (i32, i32) {
    %c0_i32 = arith.constant 0 : i32
    %c0_i32_0 = arith.constant 0 : i32
    %c0_i32_1 = arith.constant 0 : i32
    return %c0_i32, %c0_i32_0 : i32, i32
  }
  func.func @transform_4(%arg0: i32) -> (i32, i32) {
    %c0_i32 = arith.constant 0 : i32
    %c0_i32_0 = arith.constant 0 : i32
    %c0_i32_1 = arith.constant 0 : i32
    return %c0_i32, %c0_i32_0 : i32, i32
  }
  func.func @transform_5(%arg0: i32) -> (i32, i32) {
    %c0_i32 = arith.constant 0 : i32
    %c0_i32_0 = arith.constant 0 : i32
    %c0_i32_1 = arith.constant 0 : i32
    return %c0_i32, %c0_i32_0 : i32, i32
  }
  func.func @transform_6(%arg0: i32) -> (i32, i32, i32) {
    %c0_i32 = arith.constant 0 : i32
    %c0_i32_0 = arith.constant 0 : i32
    %c0_i32_1 = arith.constant 0 : i32
    return %arg0, %c0_i32, %c0_i32_0 : i32, i32, i32
  }
}

module attributes {stable_mosaic.version = 11 : i64} {
  func.func @_convT_poly_kernel(%arg0: i32, %arg1: memref<1x32x10xf32, #tpu.memory_space<vmem>>, %arg2: memref<64x96xf32, #tpu.memory_space<vmem>>, %arg3: memref<64x1xf32, #tpu.memory_space<vmem>>, %arg4: memref<1x64x8xf32, #tpu.memory_space<vmem>>) attributes {dimension_semantics = [#tpu.dimension_semantics<parallel>], iteration_bounds = array<i64: 2>, scalar_prefetch = 0 : i64, scratch_operands = 0 : i64, tpu.core_type = #tpu.core_type<tc>, window_params = [{transform_indices = @transform_0, window_bounds = array<i64: 1, 32, 10>}, {pipeline_mode = #tpu.pipeline_mode<synchronous>, transform_indices = @transform_1, window_bounds = array<i64: 64, 96>}, {pipeline_mode = #tpu.pipeline_mode<synchronous>, transform_indices = @transform_2, window_bounds = array<i64: 64, 1>}, {transform_indices = @transform_3, window_bounds = array<i64: 1, 64, 8>}]} {
    %c0 = arith.constant 0 : index
    %c0_0 = arith.constant 0 : index
    %c0_1 = arith.constant 0 : index
    %0 = vector.load %arg1[%c0, %c0_0, %c0_1] : memref<1x32x10xf32, #tpu.memory_space<vmem>>, vector<1x32x10xf32>
    %1 = vector.shape_cast %0 : vector<1x32x10xf32> to vector<32x10xf32>
    %cst = arith.constant 0.000000e+00 : f32
    %2 = vector.broadcast %cst : f32 to vector<32x10xf32>
    %3 = arith.cmpf oge, %1, %2 : vector<32x10xf32>
    %cst_2 = arith.constant 1.000000e-01 : f32
    %4 = vector.broadcast %cst_2 : f32 to vector<32x10xf32>
    %5 = arith.mulf %4, %1 : vector<32x10xf32>
    %6 = arith.select %3, %1, %5 : vector<32x10xi1>, vector<32x10xf32>
    %c0_3 = arith.constant 0 : index
    %c0_4 = arith.constant 0 : index
    %7 = vector.load %arg2[%c0_3, %c0_4] : memref<64x96xf32, #tpu.memory_space<vmem>>, vector<64x96xf32>
    %8 = vector.extract_strided_slice %6 {offsets = [0, 0], sizes = [32, 8], strides = [1, 1]} : vector<32x10xf32> to vector<32x8xf32>
    %9 = vector.extract_strided_slice %6 {offsets = [0, 1], sizes = [32, 8], strides = [1, 1]} : vector<32x10xf32> to vector<32x8xf32>
    %10 = vector.extract_strided_slice %6 {offsets = [0, 2], sizes = [32, 8], strides = [1, 1]} : vector<32x10xf32> to vector<32x8xf32>
    %11 = tpu.concatenate %8, %9, %10 in 0 : vector<32x8xf32>, vector<32x8xf32>, vector<32x8xf32> -> vector<96x8xf32>
    %cst_5 = arith.constant dense<0.000000e+00> : vector<64x8xf32>
    %12 = tpu.matmul %7, %11, %cst_5 {dimension_numbers = #tpu.dot_dimension_numbers<[1], [0], [0], [1], [0, 0, 1, 1], [], []>} : vector<64x96xf32>, vector<96x8xf32>, vector<64x8xf32> -> vector<64x8xf32>
    %c0_6 = arith.constant 0 : index
    %c0_7 = arith.constant 0 : index
    %13 = vector.load %arg3[%c0_6, %c0_7] : memref<64x1xf32, #tpu.memory_space<vmem>>, vector<64x1xf32>
    %14 = vector.broadcast %13 : vector<64x1xf32> to vector<64x8xf32>
    %15 = arith.addf %12, %14 : vector<64x8xf32>
    %c0_8 = arith.constant 0 : index
    %c0_9 = arith.constant 0 : index
    %c0_10 = arith.constant 0 : index
    %16 = vector.load %arg4[%c0_8, %c0_9, %c0_10] : memref<1x64x8xf32, #tpu.memory_space<vmem>>, vector<1x64x8xf32>
    %17 = vector.shape_cast %16 : vector<1x64x8xf32> to vector<64x8xf32>
    %18 = vector.shape_cast %15 : vector<64x8xf32> to vector<1x64x8xf32>
    tpu.vector_store %arg4[%c0_8, %c0_9, %c0_10], %18 {strides = array<i32>} : memref<1x64x8xf32, #tpu.memory_space<vmem>>, vector<1x64x8xf32>,
    return
  }
  func.func @transform_0(%arg0: i32) -> (i32, i32, i32) {
    %c0_i32 = arith.constant 0 : i32
    %c0_i32_0 = arith.constant 0 : i32
    %c0_i32_1 = arith.constant 0 : i32
    return %arg0, %c0_i32, %c0_i32_0 : i32, i32, i32
  }
  func.func @transform_1(%arg0: i32) -> (i32, i32) {
    %c0_i32 = arith.constant 0 : i32
    %c0_i32_0 = arith.constant 0 : i32
    %c0_i32_1 = arith.constant 0 : i32
    return %c0_i32, %c0_i32_0 : i32, i32
  }
  func.func @transform_2(%arg0: i32) -> (i32, i32) {
    %c0_i32 = arith.constant 0 : i32
    %c0_i32_0 = arith.constant 0 : i32
    %c0_i32_1 = arith.constant 0 : i32
    return %c0_i32, %c0_i32_0 : i32, i32
  }
  func.func @transform_3(%arg0: i32) -> (i32, i32, i32) {
    %c0_i32 = arith.constant 0 : i32
    %c0_i32_0 = arith.constant 0 : i32
    %c0_i32_1 = arith.constant 0 : i32
    return %arg0, %c0_i32, %c0_i32_0 : i32, i32, i32
  }
}

module attributes {stable_mosaic.version = 11 : i64} {
  func.func @_mrf_kernel(%arg0: i32, %arg1: memref<1x16x32xf32, #tpu.memory_space<vmem>>, %arg2: memref<16x48xf32, #tpu.memory_space<vmem>>, %arg3: memref<16x1xf32, #tpu.memory_space<vmem>>, %arg4: memref<16x48xf32, #tpu.memory_space<vmem>>, %arg5: memref<16x1xf32, #tpu.memory_space<vmem>>, %arg6: memref<16x48xf32, #tpu.memory_space<vmem>>, %arg7: memref<16x1xf32, #tpu.memory_space<vmem>>, %arg8: memref<16x48xf32, #tpu.memory_space<vmem>>, %arg9: memref<16x1xf32, #tpu.memory_space<vmem>>, %arg10: memref<16x48xf32, #tpu.memory_space<vmem>>, %arg11: memref<16x1xf32, #tpu.memory_space<vmem>>, %arg12: memref<16x48xf32, #tpu.memory_space<vmem>>, %arg13: memref<16x1xf32, #tpu.memory_space<vmem>>, %arg14: memref<16x112xf32, #tpu.memory_space<vmem>>, %arg15: memref<16x1xf32, #tpu.memory_space<vmem>>, %arg16: memref<16x112xf32, #tpu.memory_space<vmem>>, %arg17: memref<16x1xf32, #tpu.memory_space<vmem>>, %arg18: memref<16x112xf32, #tpu.memory_space<vmem>>, %arg19: memref<16x1xf32, #tpu.memory_space<vmem>>, %arg20: memref<16x112xf32, #tpu.memory_space<vmem>>, %arg21: memref<16x1xf32, #tpu.memory_space<vmem>>, %arg22: memref<16x112xf32, #tpu.memory_space<vmem>>, %arg23: memref<16x1xf32, #tpu.memory_space<vmem>>, %arg24: memref<16x112xf32, #tpu.memory_space<vmem>>, %arg25: memref<16x1xf32, #tpu.memory_space<vmem>>, %arg26: memref<1x16x32xf32, #tpu.memory_space<vmem>>) attributes {dimension_semantics = [#tpu.dimension_semantics<parallel>], iteration_bounds = array<i64: 2>, scalar_prefetch = 0 : i64, scratch_operands = 0 : i64, tpu.core_type = #tpu.core_type<tc>, window_params = [{transform_indices = @transform_0, window_bounds = array<i64: 1, 16, 32>}, {pipeline_mode = #tpu.pipeline_mode<synchronous>, transform_indices = @transform_1, window_bounds = array<i64: 16, 48>}, {pipeline_mode = #tpu.pipeline_mode<synchronous>, transform_indices = @transform_2, window_bounds = array<i64: 16, 1>}, {pipeline_mode = #tpu.pipeline_mode<synchronous>, transform_indices = @transform_3, window_bounds = array<i64: 16, 48>}, {pipeline_mode = #tpu.pipeline_mode<synchronous>, transform_indices = @transform_4, window_bounds = array<i64: 16, 1>}, {pipeline_mode = #tpu.pipeline_mode<synchronous>, transform_indices = @transform_5, window_bounds = array<i64: 16, 48>}, {pipeline_mode = #tpu.pipeline_mode<synchronous>, transform_indices = @transform_6, window_bounds = array<i64: 16, 1>}, {pipeline_mode = #tpu.pipeline_mode<synchronous>, transform_indices = @transform_7, window_bounds = array<i64: 16, 48>}, {pipeline_mode = #tpu.pipeline_mode<synchronous>, transform_indices = @transform_8, window_bounds = array<i64: 16, 1>}, {pipeline_mode = #tpu.pipeline_mode<synchronous>, transform_indices = @transform_9, window_bounds = array<i64: 16, 48>}, {pipeline_mode = #tpu.pipeline_mode<synchronous>, transform_indices = @transform_10, window_bounds = array<i64: 16, 1>}, {pipeline_mode = #tpu.pipeline_mode<synchronous>, transform_indices = @transform_11, window_bounds = array<i64: 16, 48>}, {pipeline_mode = #tpu.pipeline_mode<synchronous>, transform_indices = @transform_12, window_bounds = array<i64: 16, 1>}, {pipeline_mode = #tpu.pipeline_mode<synchronous>, transform_indices = @transform_13, window_bounds = array<i64: 16, 112>}, {pipeline_mode = #tpu.pipeline_mode<synchronous>, transform_indices = @transform_14, window_bounds = array<i64: 16, 1>}, {pipeline_mode = #tpu.pipeline_mode<synchronous>, transform_indices = @transform_15, window_bounds = array<i64: 16, 112>}, {pipeline_mode = #tpu.pipeline_mode<synchronous>, transform_indices = @transform_16, window_bounds = array<i64: 16, 1>}, {pipeline_mode = #tpu.pipeline_mode<synchronous>, transform_indices = @transform_17, window_bounds = array<i64: 16, 112>}, {pipeline_mode = #tpu.pipeline_mode<synchronous>, transform_indices = @transform_18, window_bounds = array<i64: 16, 1>}, {pipeline_mode = #tpu.pipeline_mode<synchronous>, transform_indices = @transform_19, window_bounds = array<i64: 16, 112>}, {pipeline_mode = #tpu.pipeline_mode<synchronous>, transform_indices = @transform_20, window_bounds = array<i64: 16, 1>}, {pipeline_mode = #tpu.pipeline_mode<synchronous>, transform_indices = @transform_21, window_bounds = array<i64: 16, 112>}, {pipeline_mode = #tpu.pipeline_mode<synchronous>, transform_indices = @transform_22, window_bounds = array<i64: 16, 1>}, {pipeline_mode = #tpu.pipeline_mode<synchronous>, transform_indices = @transform_23, window_bounds = array<i64: 16, 112>}, {pipeline_mode = #tpu.pipeline_mode<synchronous>, transform_indices = @transform_24, window_bounds = array<i64: 16, 1>}, {transform_indices = @transform_25, window_bounds = array<i64: 1, 16, 32>}]} {
    %c0 = arith.constant 0 : index
    %c0_0 = arith.constant 0 : index
    %c0_1 = arith.constant 0 : index
    %0 = vector.load %arg1[%c0, %c0_0, %c0_1] : memref<1x16x32xf32, #tpu.memory_space<vmem>>, vector<1x16x32xf32>
    %1 = vector.shape_cast %0 : vector<1x16x32xf32> to vector<16x32xf32>
    %cst = arith.constant 0.000000e+00 : f32
    %2 = vector.broadcast %cst : f32 to vector<16x32xf32>
    %3 = arith.cmpf oge, %1, %2 : vector<16x32xf32>
    %cst_2 = arith.constant 1.000000e-01 : f32
    %4 = vector.broadcast %cst_2 : f32 to vector<16x32xf32>
    %5 = arith.mulf %4, %1 : vector<16x32xf32>
    %6 = arith.select %3, %1, %5 : vector<16x32xi1>, vector<16x32xf32>
    %c0_3 = arith.constant 0 : index
    %c0_4 = arith.constant 0 : index
    %7 = vector.load %arg2[%c0_3, %c0_4] : memref<16x48xf32, #tpu.memory_space<vmem>>, vector<16x48xf32>
    %c0_5 = arith.constant 0 : index
    %c0_6 = arith.constant 0 : index
    %8 = vector.load %arg3[%c0_5, %c0_6] : memref<16x1xf32, #tpu.memory_space<vmem>>, vector<16x1xf32>
    %cst_7 = arith.constant 0.000000e+00 : f32
    %9 = vector.broadcast %cst_7 : f32 to vector<16x1xf32>
    %cst_8 = arith.constant 0.000000e+00 : f32
    %10 = vector.broadcast %cst_8 : f32 to vector<16x1xf32>
    %11 = tpu.concatenate %9, %6, %10 in 1 : vector<16x1xf32>, vector<16x32xf32>, vector<16x1xf32> -> vector<16x34xf32>
    %12 = vector.extract_strided_slice %11 {offsets = [0, 0], sizes = [16, 32], strides = [1, 1]} : vector<16x34xf32> to vector<16x32xf32>
    %13 = vector.extract_strided_slice %11 {offsets = [0, 1], sizes = [16, 32], strides = [1, 1]} : vector<16x34xf32> to vector<16x32xf32>
    %14 = vector.extract_strided_slice %11 {offsets = [0, 2], sizes = [16, 32], strides = [1, 1]} : vector<16x34xf32> to vector<16x32xf32>
    %15 = tpu.concatenate %12, %13, %14 in 0 : vector<16x32xf32>, vector<16x32xf32>, vector<16x32xf32> -> vector<48x32xf32>
    %cst_9 = arith.constant dense<0.000000e+00> : vector<16x32xf32>
    %16 = tpu.matmul %7, %15, %cst_9 {dimension_numbers = #tpu.dot_dimension_numbers<[1], [0], [0], [1], [0, 0, 1, 1], [], []>} : vector<16x48xf32>, vector<48x32xf32>, vector<16x32xf32> -> vector<16x32xf32>
    %17 = vector.broadcast %8 : vector<16x1xf32> to vector<16x32xf32>
    %18 = arith.addf %16, %17 : vector<16x32xf32>
    %cst_10 = arith.constant 0.000000e+00 : f32
    %19 = vector.broadcast %cst_10 : f32 to vector<16x32xf32>
    %20 = arith.cmpf oge, %18, %19 : vector<16x32xf32>
    %cst_11 = arith.constant 1.000000e-01 : f32
    %21 = vector.broadcast %cst_11 : f32 to vector<16x32xf32>
    %22 = arith.mulf %21, %18 : vector<16x32xf32>
    %23 = arith.select %20, %18, %22 : vector<16x32xi1>, vector<16x32xf32>
    %c0_12 = arith.constant 0 : index
    %c0_13 = arith.constant 0 : index
    %24 = vector.load %arg4[%c0_12, %c0_13] : memref<16x48xf32, #tpu.memory_space<vmem>>, vector<16x48xf32>
    %c0_14 = arith.constant 0 : index
    %c0_15 = arith.constant 0 : index
    %25 = vector.load %arg5[%c0_14, %c0_15] : memref<16x1xf32, #tpu.memory_space<vmem>>, vector<16x1xf32>
    %cst_16 = arith.constant 0.000000e+00 : f32
    %26 = vector.broadcast %cst_16 : f32 to vector<16x1xf32>
    %cst_17 = arith.constant 0.000000e+00 : f32
    %27 = vector.broadcast %cst_17 : f32 to vector<16x1xf32>
    %28 = tpu.concatenate %26, %23, %27 in 1 : vector<16x1xf32>, vector<16x32xf32>, vector<16x1xf32> -> vector<16x34xf32>
    %29 = vector.extract_strided_slice %28 {offsets = [0, 0], sizes = [16, 32], strides = [1, 1]} : vector<16x34xf32> to vector<16x32xf32>
    %30 = vector.extract_strided_slice %28 {offsets = [0, 1], sizes = [16, 32], strides = [1, 1]} : vector<16x34xf32> to vector<16x32xf32>
    %31 = vector.extract_strided_slice %28 {offsets = [0, 2], sizes = [16, 32], strides = [1, 1]} : vector<16x34xf32> to vector<16x32xf32>
    %32 = tpu.concatenate %29, %30, %31 in 0 : vector<16x32xf32>, vector<16x32xf32>, vector<16x32xf32> -> vector<48x32xf32>
    %cst_18 = arith.constant dense<0.000000e+00> : vector<16x32xf32>
    %33 = tpu.matmul %24, %32, %cst_18 {dimension_numbers = #tpu.dot_dimension_numbers<[1], [0], [0], [1], [0, 0, 1, 1], [], []>} : vector<16x48xf32>, vector<48x32xf32>, vector<16x32xf32> -> vector<16x32xf32>
    %34 = vector.broadcast %25 : vector<16x1xf32> to vector<16x32xf32>
    %35 = arith.addf %33, %34 : vector<16x32xf32>
    %36 = arith.addf %35, %1 : vector<16x32xf32>
    %cst_19 = arith.constant 0.000000e+00 : f32
    %37 = vector.broadcast %cst_19 : f32 to vector<16x32xf32>
    %38 = arith.cmpf oge, %36, %37 : vector<16x32xf32>
    %cst_20 = arith.constant 1.000000e-01 : f32
    %39 = vector.broadcast %cst_20 : f32 to vector<16x32xf32>
    %40 = arith.mulf %39, %36 : vector<16x32xf32>
    %41 = arith.select %38, %36, %40 : vector<16x32xi1>, vector<16x32xf32>
    %c0_21 = arith.constant 0 : index
    %c0_22 = arith.constant 0 : index
    %42 = vector.load %arg6[%c0_21, %c0_22] : memref<16x48xf32, #tpu.memory_space<vmem>>, vector<16x48xf32>
    %c0_23 = arith.constant 0 : index
    %c0_24 = arith.constant 0 : index
    %43 = vector.load %arg7[%c0_23, %c0_24] : memref<16x1xf32, #tpu.memory_space<vmem>>, vector<16x1xf32>
    %cst_25 = arith.constant 0.000000e+00 : f32
    %44 = vector.broadcast %cst_25 : f32 to vector<16x3xf32>
    %cst_26 = arith.constant 0.000000e+00 : f32
    %45 = vector.broadcast %cst_26 : f32 to vector<16x3xf32>
    %46 = tpu.concatenate %44, %41, %45 in 1 : vector<16x3xf32>, vector<16x32xf32>, vector<16x3xf32> -> vector<16x38xf32>
    %47 = vector.extract_strided_slice %46 {offsets = [0, 0], sizes = [16, 32], strides = [1, 1]} : vector<16x38xf32> to vector<16x32xf32>
    %48 = vector.extract_strided_slice %46 {offsets = [0, 3], sizes = [16, 32], strides = [1, 1]} : vector<16x38xf32> to vector<16x32xf32>
    %49 = vector.extract_strided_slice %46 {offsets = [0, 6], sizes = [16, 32], strides = [1, 1]} : vector<16x38xf32> to vector<16x32xf32>
    %50 = tpu.concatenate %47, %48, %49 in 0 : vector<16x32xf32>, vector<16x32xf32>, vector<16x32xf32> -> vector<48x32xf32>
    %cst_27 = arith.constant dense<0.000000e+00> : vector<16x32xf32>
    %51 = tpu.matmul %42, %50, %cst_27 {dimension_numbers = #tpu.dot_dimension_numbers<[1], [0], [0], [1], [0, 0, 1, 1], [], []>} : vector<16x48xf32>, vector<48x32xf32>, vector<16x32xf32> -> vector<16x32xf32>
    %52 = vector.broadcast %43 : vector<16x1xf32> to vector<16x32xf32>
    %53 = arith.addf %51, %52 : vector<16x32xf32>
    %cst_28 = arith.constant 0.000000e+00 : f32
    %54 = vector.broadcast %cst_28 : f32 to vector<16x32xf32>
    %55 = arith.cmpf oge, %53, %54 : vector<16x32xf32>
    %cst_29 = arith.constant 1.000000e-01 : f32
    %56 = vector.broadcast %cst_29 : f32 to vector<16x32xf32>
    %57 = arith.mulf %56, %53 : vector<16x32xf32>
    %58 = arith.select %55, %53, %57 : vector<16x32xi1>, vector<16x32xf32>
    %c0_30 = arith.constant 0 : index
    %c0_31 = arith.constant 0 : index
    %59 = vector.load %arg8[%c0_30, %c0_31] : memref<16x48xf32, #tpu.memory_space<vmem>>, vector<16x48xf32>
    %c0_32 = arith.constant 0 : index
    %c0_33 = arith.constant 0 : index
    %60 = vector.load %arg9[%c0_32, %c0_33] : memref<16x1xf32, #tpu.memory_space<vmem>>, vector<16x1xf32>
    %cst_34 = arith.constant 0.000000e+00 : f32
    %61 = vector.broadcast %cst_34 : f32 to vector<16x1xf32>
    %cst_35 = arith.constant 0.000000e+00 : f32
    %62 = vector.broadcast %cst_35 : f32 to vector<16x1xf32>
    %63 = tpu.concatenate %61, %58, %62 in 1 : vector<16x1xf32>, vector<16x32xf32>, vector<16x1xf32> -> vector<16x34xf32>
    %64 = vector.extract_strided_slice %63 {offsets = [0, 0], sizes = [16, 32], strides = [1, 1]} : vector<16x34xf32> to vector<16x32xf32>
    %65 = vector.extract_strided_slice %63 {offsets = [0, 1], sizes = [16, 32], strides = [1, 1]} : vector<16x34xf32> to vector<16x32xf32>
    %66 = vector.extract_strided_slice %63 {offsets = [0, 2], sizes = [16, 32], strides = [1, 1]} : vector<16x34xf32> to vector<16x32xf32>
    %67 = tpu.concatenate %64, %65, %66 in 0 : vector<16x32xf32>, vector<16x32xf32>, vector<16x32xf32> -> vector<48x32xf32>
    %cst_36 = arith.constant dense<0.000000e+00> : vector<16x32xf32>
    %68 = tpu.matmul %59, %67, %cst_36 {dimension_numbers = #tpu.dot_dimension_numbers<[1], [0], [0], [1], [0, 0, 1, 1], [], []>} : vector<16x48xf32>, vector<48x32xf32>, vector<16x32xf32> -> vector<16x32xf32>
    %69 = vector.broadcast %60 : vector<16x1xf32> to vector<16x32xf32>
    %70 = arith.addf %68, %69 : vector<16x32xf32>
    %71 = arith.addf %70, %36 : vector<16x32xf32>
    %cst_37 = arith.constant 0.000000e+00 : f32
    %72 = vector.broadcast %cst_37 : f32 to vector<16x32xf32>
    %73 = arith.cmpf oge, %71, %72 : vector<16x32xf32>
    %cst_38 = arith.constant 1.000000e-01 : f32
    %74 = vector.broadcast %cst_38 : f32 to vector<16x32xf32>
    %75 = arith.mulf %74, %71 : vector<16x32xf32>
    %76 = arith.select %73, %71, %75 : vector<16x32xi1>, vector<16x32xf32>
    %c0_39 = arith.constant 0 : index
    %c0_40 = arith.constant 0 : index
    %77 = vector.load %arg10[%c0_39, %c0_40] : memref<16x48xf32, #tpu.memory_space<vmem>>, vector<16x48xf32>
    %c0_41 = arith.constant 0 : index
    %c0_42 = arith.constant 0 : index
    %78 = vector.load %arg11[%c0_41, %c0_42] : memref<16x1xf32, #tpu.memory_space<vmem>>, vector<16x1xf32>
    %cst_43 = arith.constant 0.000000e+00 : f32
    %79 = vector.broadcast %cst_43 : f32 to vector<16x5xf32>
    %cst_44 = arith.constant 0.000000e+00 : f32
    %80 = vector.broadcast %cst_44 : f32 to vector<16x5xf32>
    %81 = tpu.concatenate %79, %76, %80 in 1 : vector<16x5xf32>, vector<16x32xf32>, vector<16x5xf32> -> vector<16x42xf32>
    %82 = vector.extract_strided_slice %81 {offsets = [0, 0], sizes = [16, 32], strides = [1, 1]} : vector<16x42xf32> to vector<16x32xf32>
    %83 = vector.extract_strided_slice %81 {offsets = [0, 5], sizes = [16, 32], strides = [1, 1]} : vector<16x42xf32> to vector<16x32xf32>
    %84 = vector.extract_strided_slice %81 {offsets = [0, 10], sizes = [16, 32], strides = [1, 1]} : vector<16x42xf32> to vector<16x32xf32>
    %85 = tpu.concatenate %82, %83, %84 in 0 : vector<16x32xf32>, vector<16x32xf32>, vector<16x32xf32> -> vector<48x32xf32>
    %cst_45 = arith.constant dense<0.000000e+00> : vector<16x32xf32>
    %86 = tpu.matmul %77, %85, %cst_45 {dimension_numbers = #tpu.dot_dimension_numbers<[1], [0], [0], [1], [0, 0, 1, 1], [], []>} : vector<16x48xf32>, vector<48x32xf32>, vector<16x32xf32> -> vector<16x32xf32>
    %87 = vector.broadcast %78 : vector<16x1xf32> to vector<16x32xf32>
    %88 = arith.addf %86, %87 : vector<16x32xf32>
    %cst_46 = arith.constant 0.000000e+00 : f32
    %89 = vector.broadcast %cst_46 : f32 to vector<16x32xf32>
    %90 = arith.cmpf oge, %88, %89 : vector<16x32xf32>
    %cst_47 = arith.constant 1.000000e-01 : f32
    %91 = vector.broadcast %cst_47 : f32 to vector<16x32xf32>
    %92 = arith.mulf %91, %88 : vector<16x32xf32>
    %93 = arith.select %90, %88, %92 : vector<16x32xi1>, vector<16x32xf32>
    %c0_48 = arith.constant 0 : index
    %c0_49 = arith.constant 0 : index
    %94 = vector.load %arg12[%c0_48, %c0_49] : memref<16x48xf32, #tpu.memory_space<vmem>>, vector<16x48xf32>
    %c0_50 = arith.constant 0 : index
    %c0_51 = arith.constant 0 : index
    %95 = vector.load %arg13[%c0_50, %c0_51] : memref<16x1xf32, #tpu.memory_space<vmem>>, vector<16x1xf32>
    %cst_52 = arith.constant 0.000000e+00 : f32
    %96 = vector.broadcast %cst_52 : f32 to vector<16x1xf32>
    %cst_53 = arith.constant 0.000000e+00 : f32
    %97 = vector.broadcast %cst_53 : f32 to vector<16x1xf32>
    %98 = tpu.concatenate %96, %93, %97 in 1 : vector<16x1xf32>, vector<16x32xf32>, vector<16x1xf32> -> vector<16x34xf32>
    %99 = vector.extract_strided_slice %98 {offsets = [0, 0], sizes = [16, 32], strides = [1, 1]} : vector<16x34xf32> to vector<16x32xf32>
    %100 = vector.extract_strided_slice %98 {offsets = [0, 1], sizes = [16, 32], strides = [1, 1]} : vector<16x34xf32> to vector<16x32xf32>
    %101 = vector.extract_strided_slice %98 {offsets = [0, 2], sizes = [16, 32], strides = [1, 1]} : vector<16x34xf32> to vector<16x32xf32>
    %102 = tpu.concatenate %99, %100, %101 in 0 : vector<16x32xf32>, vector<16x32xf32>, vector<16x32xf32> -> vector<48x32xf32>
    %cst_54 = arith.constant dense<0.000000e+00> : vector<16x32xf32>
    %103 = tpu.matmul %94, %102, %cst_54 {dimension_numbers = #tpu.dot_dimension_numbers<[1], [0], [0], [1], [0, 0, 1, 1], [], []>} : vector<16x48xf32>, vector<48x32xf32>, vector<16x32xf32> -> vector<16x32xf32>
    %104 = vector.broadcast %95 : vector<16x1xf32> to vector<16x32xf32>
    %105 = arith.addf %103, %104 : vector<16x32xf32>
    %106 = arith.addf %105, %71 : vector<16x32xf32>
    %cst_55 = arith.constant 0.000000e+00 : f32
    %107 = vector.broadcast %cst_55 : f32 to vector<16x32xf32>
    %108 = arith.cmpf oge, %1, %107 : vector<16x32xf32>
    %cst_56 = arith.constant 1.000000e-01 : f32
    %109 = vector.broadcast %cst_56 : f32 to vector<16x32xf32>
    %110 = arith.mulf %109, %1 : vector<16x32xf32>
    %111 = arith.select %108, %1, %110 : vector<16x32xi1>, vector<16x32xf32>
    %c0_57 = arith.constant 0 : index
    %c0_58 = arith.constant 0 : index
    %112 = vector.load %arg14[%c0_57, %c0_58] : memref<16x112xf32, #tpu.memory_space<vmem>>, vector<16x112xf32>
    %c0_59 = arith.constant 0 : index
    %c0_60 = arith.constant 0 : index
    %113 = vector.load %arg15[%c0_59, %c0_60] : memref<16x1xf32, #tpu.memory_space<vmem>>, vector<16x1xf32>
    %cst_61 = arith.constant 0.000000e+00 : f32
    %114 = vector.broadcast %cst_61 : f32 to vector<16x3xf32>
    %cst_62 = arith.constant 0.000000e+00 : f32
    %115 = vector.broadcast %cst_62 : f32 to vector<16x3xf32>
    %116 = tpu.concatenate %114, %111, %115 in 1 : vector<16x3xf32>, vector<16x32xf32>, vector<16x3xf32> -> vector<16x38xf32>
    %117 = vector.extract_strided_slice %116 {offsets = [0, 0], sizes = [16, 32], strides = [1, 1]} : vector<16x38xf32> to vector<16x32xf32>
    %118 = vector.extract_strided_slice %116 {offsets = [0, 1], sizes = [16, 32], strides = [1, 1]} : vector<16x38xf32> to vector<16x32xf32>
    %119 = vector.extract_strided_slice %116 {offsets = [0, 2], sizes = [16, 32], strides = [1, 1]} : vector<16x38xf32> to vector<16x32xf32>
    %120 = vector.extract_strided_slice %116 {offsets = [0, 3], sizes = [16, 32], strides = [1, 1]} : vector<16x38xf32> to vector<16x32xf32>
    %121 = vector.extract_strided_slice %116 {offsets = [0, 4], sizes = [16, 32], strides = [1, 1]} : vector<16x38xf32> to vector<16x32xf32>
    %122 = vector.extract_strided_slice %116 {offsets = [0, 5], sizes = [16, 32], strides = [1, 1]} : vector<16x38xf32> to vector<16x32xf32>
    %123 = vector.extract_strided_slice %116 {offsets = [0, 6], sizes = [16, 32], strides = [1, 1]} : vector<16x38xf32> to vector<16x32xf32>
    %124 = tpu.concatenate %117, %118, %119, %120, %121, %122, %123 in 0 : vector<16x32xf32>, vector<16x32xf32>, vector<16x32xf32>, vector<16x32xf32>, vector<16x32xf32>, vector<16x32xf32>, vector<16x32xf32> -> vector<112x32xf32>
    %cst_63 = arith.constant dense<0.000000e+00> : vector<16x32xf32>
    %125 = tpu.matmul %112, %124, %cst_63 {dimension_numbers = #tpu.dot_dimension_numbers<[1], [0], [0], [1], [0, 0, 1, 1], [], []>} : vector<16x112xf32>, vector<112x32xf32>, vector<16x32xf32> -> vector<16x32xf32>
    %126 = vector.broadcast %113 : vector<16x1xf32> to vector<16x32xf32>
    %127 = arith.addf %125, %126 : vector<16x32xf32>
    %cst_64 = arith.constant 0.000000e+00 : f32
    %128 = vector.broadcast %cst_64 : f32 to vector<16x32xf32>
    %129 = arith.cmpf oge, %127, %128 : vector<16x32xf32>
    %cst_65 = arith.constant 1.000000e-01 : f32
    %130 = vector.broadcast %cst_65 : f32 to vector<16x32xf32>
    %131 = arith.mulf %130, %127 : vector<16x32xf32>
    %132 = arith.select %129, %127, %131 : vector<16x32xi1>, vector<16x32xf32>
    %c0_66 = arith.constant 0 : index
    %c0_67 = arith.constant 0 : index
    %133 = vector.load %arg16[%c0_66, %c0_67] : memref<16x112xf32, #tpu.memory_space<vmem>>, vector<16x112xf32>
    %c0_68 = arith.constant 0 : index
    %c0_69 = arith.constant 0 : index
    %134 = vector.load %arg17[%c0_68, %c0_69] : memref<16x1xf32, #tpu.memory_space<vmem>>, vector<16x1xf32>
    %cst_70 = arith.constant 0.000000e+00 : f32
    %135 = vector.broadcast %cst_70 : f32 to vector<16x3xf32>
    %cst_71 = arith.constant 0.000000e+00 : f32
    %136 = vector.broadcast %cst_71 : f32 to vector<16x3xf32>
    %137 = tpu.concatenate %135, %132, %136 in 1 : vector<16x3xf32>, vector<16x32xf32>, vector<16x3xf32> -> vector<16x38xf32>
    %138 = vector.extract_strided_slice %137 {offsets = [0, 0], sizes = [16, 32], strides = [1, 1]} : vector<16x38xf32> to vector<16x32xf32>
    %139 = vector.extract_strided_slice %137 {offsets = [0, 1], sizes = [16, 32], strides = [1, 1]} : vector<16x38xf32> to vector<16x32xf32>
    %140 = vector.extract_strided_slice %137 {offsets = [0, 2], sizes = [16, 32], strides = [1, 1]} : vector<16x38xf32> to vector<16x32xf32>
    %141 = vector.extract_strided_slice %137 {offsets = [0, 3], sizes = [16, 32], strides = [1, 1]} : vector<16x38xf32> to vector<16x32xf32>
    %142 = vector.extract_strided_slice %137 {offsets = [0, 4], sizes = [16, 32], strides = [1, 1]} : vector<16x38xf32> to vector<16x32xf32>
    %143 = vector.extract_strided_slice %137 {offsets = [0, 5], sizes = [16, 32], strides = [1, 1]} : vector<16x38xf32> to vector<16x32xf32>
    %144 = vector.extract_strided_slice %137 {offsets = [0, 6], sizes = [16, 32], strides = [1, 1]} : vector<16x38xf32> to vector<16x32xf32>
    %145 = tpu.concatenate %138, %139, %140, %141, %142, %143, %144 in 0 : vector<16x32xf32>, vector<16x32xf32>, vector<16x32xf32>, vector<16x32xf32>, vector<16x32xf32>, vector<16x32xf32>, vector<16x32xf32> -> vector<112x32xf32>
    %cst_72 = arith.constant dense<0.000000e+00> : vector<16x32xf32>
    %146 = tpu.matmul %133, %145, %cst_72 {dimension_numbers = #tpu.dot_dimension_numbers<[1], [0], [0], [1], [0, 0, 1, 1], [], []>} : vector<16x112xf32>, vector<112x32xf32>, vector<16x32xf32> -> vector<16x32xf32>
    %147 = vector.broadcast %134 : vector<16x1xf32> to vector<16x32xf32>
    %148 = arith.addf %146, %147 : vector<16x32xf32>
    %149 = arith.addf %148, %1 : vector<16x32xf32>
    %cst_73 = arith.constant 0.000000e+00 : f32
    %150 = vector.broadcast %cst_73 : f32 to vector<16x32xf32>
    %151 = arith.cmpf oge, %149, %150 : vector<16x32xf32>
    %cst_74 = arith.constant 1.000000e-01 : f32
    %152 = vector.broadcast %cst_74 : f32 to vector<16x32xf32>
    %153 = arith.mulf %152, %149 : vector<16x32xf32>
    %154 = arith.select %151, %149, %153 : vector<16x32xi1>, vector<16x32xf32>
    %c0_75 = arith.constant 0 : index
    %c0_76 = arith.constant 0 : index
    %155 = vector.load %arg18[%c0_75, %c0_76] : memref<16x112xf32, #tpu.memory_space<vmem>>, vector<16x112xf32>
    %c0_77 = arith.constant 0 : index
    %c0_78 = arith.constant 0 : index
    %156 = vector.load %arg19[%c0_77, %c0_78] : memref<16x1xf32, #tpu.memory_space<vmem>>, vector<16x1xf32>
    %cst_79 = arith.constant 0.000000e+00 : f32
    %157 = vector.broadcast %cst_79 : f32 to vector<16x9xf32>
    %cst_80 = arith.constant 0.000000e+00 : f32
    %158 = vector.broadcast %cst_80 : f32 to vector<16x9xf32>
    %159 = tpu.concatenate %157, %154, %158 in 1 : vector<16x9xf32>, vector<16x32xf32>, vector<16x9xf32> -> vector<16x50xf32>
    %160 = vector.extract_strided_slice %159 {offsets = [0, 0], sizes = [16, 32], strides = [1, 1]} : vector<16x50xf32> to vector<16x32xf32>
    %161 = vector.extract_strided_slice %159 {offsets = [0, 3], sizes = [16, 32], strides = [1, 1]} : vector<16x50xf32> to vector<16x32xf32>
    %162 = vector.extract_strided_slice %159 {offsets = [0, 6], sizes = [16, 32], strides = [1, 1]} : vector<16x50xf32> to vector<16x32xf32>
    %163 = vector.extract_strided_slice %159 {offsets = [0, 9], sizes = [16, 32], strides = [1, 1]} : vector<16x50xf32> to vector<16x32xf32>
    %164 = vector.extract_strided_slice %159 {offsets = [0, 12], sizes = [16, 32], strides = [1, 1]} : vector<16x50xf32> to vector<16x32xf32>
    %165 = vector.extract_strided_slice %159 {offsets = [0, 15], sizes = [16, 32], strides = [1, 1]} : vector<16x50xf32> to vector<16x32xf32>
    %166 = vector.extract_strided_slice %159 {offsets = [0, 18], sizes = [16, 32], strides = [1, 1]} : vector<16x50xf32> to vector<16x32xf32>
    %167 = tpu.concatenate %160, %161, %162, %163, %164, %165, %166 in 0 : vector<16x32xf32>, vector<16x32xf32>, vector<16x32xf32>, vector<16x32xf32>, vector<16x32xf32>, vector<16x32xf32>, vector<16x32xf32> -> vector<112x32xf32>
    %cst_81 = arith.constant dense<0.000000e+00> : vector<16x32xf32>
    %168 = tpu.matmul %155, %167, %cst_81 {dimension_numbers = #tpu.dot_dimension_numbers<[1], [0], [0], [1], [0, 0, 1, 1], [], []>} : vector<16x112xf32>, vector<112x32xf32>, vector<16x32xf32> -> vector<16x32xf32>
    %169 = vector.broadcast %156 : vector<16x1xf32> to vector<16x32xf32>
    %170 = arith.addf %168, %169 : vector<16x32xf32>
    %cst_82 = arith.constant 0.000000e+00 : f32
    %171 = vector.broadcast %cst_82 : f32 to vector<16x32xf32>
    %172 = arith.cmpf oge, %170, %171 : vector<16x32xf32>
    %cst_83 = arith.constant 1.000000e-01 : f32
    %173 = vector.broadcast %cst_83 : f32 to vector<16x32xf32>
    %174 = arith.mulf %173, %170 : vector<16x32xf32>
    %175 = arith.select %172, %170, %174 : vector<16x32xi1>, vector<16x32xf32>
    %c0_84 = arith.constant 0 : index
    %c0_85 = arith.constant 0 : index
    %176 = vector.load %arg20[%c0_84, %c0_85] : memref<16x112xf32, #tpu.memory_space<vmem>>, vector<16x112xf32>
    %c0_86 = arith.constant 0 : index
    %c0_87 = arith.constant 0 : index
    %177 = vector.load %arg21[%c0_86, %c0_87] : memref<16x1xf32, #tpu.memory_space<vmem>>, vector<16x1xf32>
    %cst_88 = arith.constant 0.000000e+00 : f32
    %178 = vector.broadcast %cst_88 : f32 to vector<16x3xf32>
    %cst_89 = arith.constant 0.000000e+00 : f32
    %179 = vector.broadcast %cst_89 : f32 to vector<16x3xf32>
    %180 = tpu.concatenate %178, %175, %179 in 1 : vector<16x3xf32>, vector<16x32xf32>, vector<16x3xf32> -> vector<16x38xf32>
    %181 = vector.extract_strided_slice %180 {offsets = [0, 0], sizes = [16, 32], strides = [1, 1]} : vector<16x38xf32> to vector<16x32xf32>
    %182 = vector.extract_strided_slice %180 {offsets = [0, 1], sizes = [16, 32], strides = [1, 1]} : vector<16x38xf32> to vector<16x32xf32>
    %183 = vector.extract_strided_slice %180 {offsets = [0, 2], sizes = [16, 32], strides = [1, 1]} : vector<16x38xf32> to vector<16x32xf32>
    %184 = vector.extract_strided_slice %180 {offsets = [0, 3], sizes = [16, 32], strides = [1, 1]} : vector<16x38xf32> to vector<16x32xf32>
    %185 = vector.extract_strided_slice %180 {offsets = [0, 4], sizes = [16, 32], strides = [1, 1]} : vector<16x38xf32> to vector<16x32xf32>
    %186 = vector.extract_strided_slice %180 {offsets = [0, 5], sizes = [16, 32], strides = [1, 1]} : vector<16x38xf32> to vector<16x32xf32>
    %187 = vector.extract_strided_slice %180 {offsets = [0, 6], sizes = [16, 32], strides = [1, 1]} : vector<16x38xf32> to vector<16x32xf32>
    %188 = tpu.concatenate %181, %182, %183, %184, %185, %186, %187 in 0 : vector<16x32xf32>, vector<16x32xf32>, vector<16x32xf32>, vector<16x32xf32>, vector<16x32xf32>, vector<16x32xf32>, vector<16x32xf32> -> vector<112x32xf32>
    %cst_90 = arith.constant dense<0.000000e+00> : vector<16x32xf32>
    %189 = tpu.matmul %176, %188, %cst_90 {dimension_numbers = #tpu.dot_dimension_numbers<[1], [0], [0], [1], [0, 0, 1, 1], [], []>} : vector<16x112xf32>, vector<112x32xf32>, vector<16x32xf32> -> vector<16x32xf32>
    %190 = vector.broadcast %177 : vector<16x1xf32> to vector<16x32xf32>
    %191 = arith.addf %189, %190 : vector<16x32xf32>
    %192 = arith.addf %191, %149 : vector<16x32xf32>
    %cst_91 = arith.constant 0.000000e+00 : f32
    %193 = vector.broadcast %cst_91 : f32 to vector<16x32xf32>
    %194 = arith.cmpf oge, %192, %193 : vector<16x32xf32>
    %cst_92 = arith.constant 1.000000e-01 : f32
    %195 = vector.broadcast %cst_92 : f32 to vector<16x32xf32>
    %196 = arith.mulf %195, %192 : vector<16x32xf32>
    %197 = arith.select %194, %192, %196 : vector<16x32xi1>, vector<16x32xf32>
    %c0_93 = arith.constant 0 : index
    %c0_94 = arith.constant 0 : index
    %198 = vector.load %arg22[%c0_93, %c0_94] : memref<16x112xf32, #tpu.memory_space<vmem>>, vector<16x112xf32>
    %c0_95 = arith.constant 0 : index
    %c0_96 = arith.constant 0 : index
    %199 = vector.load %arg23[%c0_95, %c0_96] : memref<16x1xf32, #tpu.memory_space<vmem>>, vector<16x1xf32>
    %cst_97 = arith.constant 0.000000e+00 : f32
    %200 = vector.broadcast %cst_97 : f32 to vector<16x15xf32>
    %cst_98 = arith.constant 0.000000e+00 : f32
    %201 = vector.broadcast %cst_98 : f32 to vector<16x15xf32>
    %202 = tpu.concatenate %200, %197, %201 in 1 : vector<16x15xf32>, vector<16x32xf32>, vector<16x15xf32> -> vector<16x62xf32>
    %203 = vector.extract_strided_slice %202 {offsets = [0, 0], sizes = [16, 32], strides = [1, 1]} : vector<16x62xf32> to vector<16x32xf32>
    %204 = vector.extract_strided_slice %202 {offsets = [0, 5], sizes = [16, 32], strides = [1, 1]} : vector<16x62xf32> to vector<16x32xf32>
    %205 = vector.extract_strided_slice %202 {offsets = [0, 10], sizes = [16, 32], strides = [1, 1]} : vector<16x62xf32> to vector<16x32xf32>
    %206 = vector.extract_strided_slice %202 {offsets = [0, 15], sizes = [16, 32], strides = [1, 1]} : vector<16x62xf32> to vector<16x32xf32>
    %207 = vector.extract_strided_slice %202 {offsets = [0, 20], sizes = [16, 32], strides = [1, 1]} : vector<16x62xf32> to vector<16x32xf32>
    %208 = vector.extract_strided_slice %202 {offsets = [0, 25], sizes = [16, 32], strides = [1, 1]} : vector<16x62xf32> to vector<16x32xf32>
    %209 = vector.extract_strided_slice %202 {offsets = [0, 30], sizes = [16, 32], strides = [1, 1]} : vector<16x62xf32> to vector<16x32xf32>
    %210 = tpu.concatenate %203, %204, %205, %206, %207, %208, %209 in 0 : vector<16x32xf32>, vector<16x32xf32>, vector<16x32xf32>, vector<16x32xf32>, vector<16x32xf32>, vector<16x32xf32>, vector<16x32xf32> -> vector<112x32xf32>
    %cst_99 = arith.constant dense<0.000000e+00> : vector<16x32xf32>
    %211 = tpu.matmul %198, %210, %cst_99 {dimension_numbers = #tpu.dot_dimension_numbers<[1], [0], [0], [1], [0, 0, 1, 1], [], []>} : vector<16x112xf32>, vector<112x32xf32>, vector<16x32xf32> -> vector<16x32xf32>
    %212 = vector.broadcast %199 : vector<16x1xf32> to vector<16x32xf32>
    %213 = arith.addf %211, %212 : vector<16x32xf32>
    %cst_100 = arith.constant 0.000000e+00 : f32
    %214 = vector.broadcast %cst_100 : f32 to vector<16x32xf32>
    %215 = arith.cmpf oge, %213, %214 : vector<16x32xf32>
    %cst_101 = arith.constant 1.000000e-01 : f32
    %216 = vector.broadcast %cst_101 : f32 to vector<16x32xf32>
    %217 = arith.mulf %216, %213 : vector<16x32xf32>
    %218 = arith.select %215, %213, %217 : vector<16x32xi1>, vector<16x32xf32>
    %c0_102 = arith.constant 0 : index
    %c0_103 = arith.constant 0 : index
    %219 = vector.load %arg24[%c0_102, %c0_103] : memref<16x112xf32, #tpu.memory_space<vmem>>, vector<16x112xf32>
    %c0_104 = arith.constant 0 : index
    %c0_105 = arith.constant 0 : index
    %220 = vector.load %arg25[%c0_104, %c0_105] : memref<16x1xf32, #tpu.memory_space<vmem>>, vector<16x1xf32>
    %cst_106 = arith.constant 0.000000e+00 : f32
    %221 = vector.broadcast %cst_106 : f32 to vector<16x3xf32>
    %cst_107 = arith.constant 0.000000e+00 : f32
    %222 = vector.broadcast %cst_107 : f32 to vector<16x3xf32>
    %223 = tpu.concatenate %221, %218, %222 in 1 : vector<16x3xf32>, vector<16x32xf32>, vector<16x3xf32> -> vector<16x38xf32>
    %224 = vector.extract_strided_slice %223 {offsets = [0, 0], sizes = [16, 32], strides = [1, 1]} : vector<16x38xf32> to vector<16x32xf32>
    %225 = vector.extract_strided_slice %223 {offsets = [0, 1], sizes = [16, 32], strides = [1, 1]} : vector<16x38xf32> to vector<16x32xf32>
    %226 = vector.extract_strided_slice %223 {offsets = [0, 2], sizes = [16, 32], strides = [1, 1]} : vector<16x38xf32> to vector<16x32xf32>
    %227 = vector.extract_strided_slice %223 {offsets = [0, 3], sizes = [16, 32], strides = [1, 1]} : vector<16x38xf32> to vector<16x32xf32>
    %228 = vector.extract_strided_slice %223 {offsets = [0, 4], sizes = [16, 32], strides = [1, 1]} : vector<16x38xf32> to vector<16x32xf32>
    %229 = vector.extract_strided_slice %223 {offsets = [0, 5], sizes = [16, 32], strides = [1, 1]} : vector<16x38xf32> to vector<16x32xf32>
    %230 = vector.extract_strided_slice %223 {offsets = [0, 6], sizes = [16, 32], strides = [1, 1]} : vector<16x38xf32> to vector<16x32xf32>
    %231 = tpu.concatenate %224, %225, %226, %227, %228, %229, %230 in 0 : vector<16x32xf32>, vector<16x32xf32>, vector<16x32xf32>, vector<16x32xf32>, vector<16x32xf32>, vector<16x32xf32>, vector<16x32xf32> -> vector<112x32xf32>
    %cst_108 = arith.constant dense<0.000000e+00> : vector<16x32xf32>
    %232 = tpu.matmul %219, %231, %cst_108 {dimension_numbers = #tpu.dot_dimension_numbers<[1], [0], [0], [1], [0, 0, 1, 1], [], []>} : vector<16x112xf32>, vector<112x32xf32>, vector<16x32xf32> -> vector<16x32xf32>
    %233 = vector.broadcast %220 : vector<16x1xf32> to vector<16x32xf32>
    %234 = arith.addf %232, %233 : vector<16x32xf32>
    %235 = arith.addf %234, %192 : vector<16x32xf32>
    %236 = arith.addf %106, %235 : vector<16x32xf32>
    %cst_109 = arith.constant 5.000000e-01 : f32
    %237 = vector.broadcast %cst_109 : f32 to vector<16x32xf32>
    %238 = arith.mulf %236, %237 : vector<16x32xf32>
    %c0_110 = arith.constant 0 : index
    %c0_111 = arith.constant 0 : index
    %c0_112 = arith.constant 0 : index
    %239 = vector.load %arg26[%c0_110, %c0_111, %c0_112] : memref<1x16x32xf32, #tpu.memory_space<vmem>>, vector<1x16x32xf32>
    %240 = vector.shape_cast %239 : vector<1x16x32xf32> to vector<16x32xf32>
    %241 = vector.shape_cast %238 : vector<16x32xf32> to vector<1x16x32xf32>
    tpu.vector_store %arg26[%c0_110, %c0_111, %c0_112], %241 {strides = array<i32>} : memref<1x16x32xf32, #tpu.memory_space<vmem>>, vector<1x16x32xf32>,
    return
  }
  func.func @transform_0(%arg0: i32) -> (i32, i32, i32) {
    %c0_i32 = arith.constant 0 : i32
    %c0_i32_0 = arith.constant 0 : i32
    %c0_i32_1 = arith.constant 0 : i32
    return %arg0, %c0_i32, %c0_i32_0 : i32, i32, i32
  }
  func.func @transform_1(%arg0: i32) -> (i32, i32) {
    %c0_i32 = arith.constant 0 : i32
    %c0_i32_0 = arith.constant 0 : i32
    %c0_i32_1 = arith.constant 0 : i32
    return %c0_i32, %c0_i32_0 : i32, i32
  }
  func.func @transform_2(%arg0: i32) -> (i32, i32) {
    %c0_i32 = arith.constant 0 : i32
    %c0_i32_0 = arith.constant 0 : i32
    %c0_i32_1 = arith.constant 0 : i32
    return %c0_i32, %c0_i32_0 : i32, i32
  }
  func.func @transform_3(%arg0: i32) -> (i32, i32) {
    %c0_i32 = arith.constant 0 : i32
    %c0_i32_0 = arith.constant 0 : i32
    %c0_i32_1 = arith.constant 0 : i32
    return %c0_i32, %c0_i32_0 : i32, i32
  }
  func.func @transform_4(%arg0: i32) -> (i32, i32) {
    %c0_i32 = arith.constant 0 : i32
    %c0_i32_0 = arith.constant 0 : i32
    %c0_i32_1 = arith.constant 0 : i32
    return %c0_i32, %c0_i32_0 : i32, i32
  }
  func.func @transform_5(%arg0: i32) -> (i32, i32) {
    %c0_i32 = arith.constant 0 : i32
    %c0_i32_0 = arith.constant 0 : i32
    %c0_i32_1 = arith.constant 0 : i32
    return %c0_i32, %c0_i32_0 : i32, i32
  }
  func.func @transform_6(%arg0: i32) -> (i32, i32) {
    %c0_i32 = arith.constant 0 : i32
    %c0_i32_0 = arith.constant 0 : i32
    %c0_i32_1 = arith.constant 0 : i32
    return %c0_i32, %c0_i32_0 : i32, i32
  }
  func.func @transform_7(%arg0: i32) -> (i32, i32) {
    %c0_i32 = arith.constant 0 : i32
    %c0_i32_0 = arith.constant 0 : i32
    %c0_i32_1 = arith.constant 0 : i32
    return %c0_i32, %c0_i32_0 : i32, i32
  }
  func.func @transform_8(%arg0: i32) -> (i32, i32) {
    %c0_i32 = arith.constant 0 : i32
    %c0_i32_0 = arith.constant 0 : i32
    %c0_i32_1 = arith.constant 0 : i32
    return %c0_i32, %c0_i32_0 : i32, i32
  }
  func.func @transform_9(%arg0: i32) -> (i32, i32) {
    %c0_i32 = arith.constant 0 : i32
    %c0_i32_0 = arith.constant 0 : i32
    %c0_i32_1 = arith.constant 0 : i32
    return %c0_i32, %c0_i32_0 : i32, i32
  }
  func.func @transform_10(%arg0: i32) -> (i32, i32) {
    %c0_i32 = arith.constant 0 : i32
    %c0_i32_0 = arith.constant 0 : i32
    %c0_i32_1 = arith.constant 0 : i32
    return %c0_i32, %c0_i32_0 : i32, i32
  }
  func.func @transform_11(%arg0: i32) -> (i32, i32) {
    %c0_i32 = arith.constant 0 : i32
    %c0_i32_0 = arith.constant 0 : i32
    %c0_i32_1 = arith.constant 0 : i32
    return %c0_i32, %c0_i32_0 : i32, i32
  }
  func.func @transform_12(%arg0: i32) -> (i32, i32) {
    %c0_i32 = arith.constant 0 : i32
    %c0_i32_0 = arith.constant 0 : i32
    %c0_i32_1 = arith.constant 0 : i32
    return %c0_i32, %c0_i32_0 : i32, i32
  }
  func.func @transform_13(%arg0: i32) -> (i32, i32) {
    %c0_i32 = arith.constant 0 : i32
    %c0_i32_0 = arith.constant 0 : i32
    %c0_i32_1 = arith.constant 0 : i32
    return %c0_i32, %c0_i32_0 : i32, i32
  }
  func.func @transform_14(%arg0: i32) -> (i32, i32) {
    %c0_i32 = arith.constant 0 : i32
    %c0_i32_0 = arith.constant 0 : i32
    %c0_i32_1 = arith.constant 0 : i32
    return %c0_i32, %c0_i32_0 : i32, i32
  }
  func.func @transform_15(%arg0: i32) -> (i32, i32) {
    %c0_i32 = arith.constant 0 : i32
    %c0_i32_0 = arith.constant 0 : i32
    %c0_i32_1 = arith.constant 0 : i32
    return %c0_i32, %c0_i32_0 : i32, i32
  }
  func.func @transform_16(%arg0: i32) -> (i32, i32) {
    %c0_i32 = arith.constant 0 : i32
    %c0_i32_0 = arith.constant 0 : i32
    %c0_i32_1 = arith.constant 0 : i32
    return %c0_i32, %c0_i32_0 : i32, i32
  }
  func.func @transform_17(%arg0: i32) -> (i32, i32) {
    %c0_i32 = arith.constant 0 : i32
    %c0_i32_0 = arith.constant 0 : i32
    %c0_i32_1 = arith.constant 0 : i32
    return %c0_i32, %c0_i32_0 : i32, i32
  }
  func.func @transform_18(%arg0: i32) -> (i32, i32) {
    %c0_i32 = arith.constant 0 : i32
    %c0_i32_0 = arith.constant 0 : i32
    %c0_i32_1 = arith.constant 0 : i32
    return %c0_i32, %c0_i32_0 : i32, i32
  }
  func.func @transform_19(%arg0: i32) -> (i32, i32) {
    %c0_i32 = arith.constant 0 : i32
    %c0_i32_0 = arith.constant 0 : i32
    %c0_i32_1 = arith.constant 0 : i32
    return %c0_i32, %c0_i32_0 : i32, i32
  }
  func.func @transform_20(%arg0: i32) -> (i32, i32) {
    %c0_i32 = arith.constant 0 : i32
    %c0_i32_0 = arith.constant 0 : i32
    %c0_i32_1 = arith.constant 0 : i32
    return %c0_i32, %c0_i32_0 : i32, i32
  }
  func.func @transform_21(%arg0: i32) -> (i32, i32) {
    %c0_i32 = arith.constant 0 : i32
    %c0_i32_0 = arith.constant 0 : i32
    %c0_i32_1 = arith.constant 0 : i32
    return %c0_i32, %c0_i32_0 : i32, i32
  }
  func.func @transform_22(%arg0: i32) -> (i32, i32) {
    %c0_i32 = arith.constant 0 : i32
    %c0_i32_0 = arith.constant 0 : i32
    %c0_i32_1 = arith.constant 0 : i32
    return %c0_i32, %c0_i32_0 : i32, i32
  }
  func.func @transform_23(%arg0: i32) -> (i32, i32) {
    %c0_i32 = arith.constant 0 : i32
    %c0_i32_0 = arith.constant 0 : i32
    %c0_i32_1 = arith.constant 0 : i32
    return %c0_i32, %c0_i32_0 : i32, i32
  }
  func.func @transform_24(%arg0: i32) -> (i32, i32) {
    %c0_i32 = arith.constant 0 : i32
    %c0_i32_0 = arith.constant 0 : i32
    %c0_i32_1 = arith.constant 0 : i32
    return %c0_i32, %c0_i32_0 : i32, i32
  }
  func.func @transform_25(%arg0: i32) -> (i32, i32, i32) {
    %c0_i32 = arith.constant 0 : i32
    %c0_i32_0 = arith.constant 0 : i32
    %c0_i32_1 = arith.constant 0 : i32
    return %arg0, %c0_i32, %c0_i32_0 : i32, i32, i32
  }
}

module attributes {stable_mosaic.version = 11 : i64} {
  func.func @_convT_poly_kernel(%arg0: i32, %arg1: memref<1x16x34xf32, #tpu.memory_space<vmem>>, %arg2: memref<32x48xf32, #tpu.memory_space<vmem>>, %arg3: memref<32x1xf32, #tpu.memory_space<vmem>>, %arg4: memref<1x32x32xf32, #tpu.memory_space<vmem>>) attributes {dimension_semantics = [#tpu.dimension_semantics<parallel>], iteration_bounds = array<i64: 2>, scalar_prefetch = 0 : i64, scratch_operands = 0 : i64, tpu.core_type = #tpu.core_type<tc>, window_params = [{transform_indices = @transform_0, window_bounds = array<i64: 1, 16, 34>}, {pipeline_mode = #tpu.pipeline_mode<synchronous>, transform_indices = @transform_1, window_bounds = array<i64: 32, 48>}, {pipeline_mode = #tpu.pipeline_mode<synchronous>, transform_indices = @transform_2, window_bounds = array<i64: 32, 1>}, {transform_indices = @transform_3, window_bounds = array<i64: 1, 32, 32>}]} {
    %c0 = arith.constant 0 : index
    %c0_0 = arith.constant 0 : index
    %c0_1 = arith.constant 0 : index
    %0 = vector.load %arg1[%c0, %c0_0, %c0_1] : memref<1x16x34xf32, #tpu.memory_space<vmem>>, vector<1x16x34xf32>
    %1 = vector.shape_cast %0 : vector<1x16x34xf32> to vector<16x34xf32>
    %cst = arith.constant 0.000000e+00 : f32
    %2 = vector.broadcast %cst : f32 to vector<16x34xf32>
    %3 = arith.cmpf oge, %1, %2 : vector<16x34xf32>
    %cst_2 = arith.constant 1.000000e-01 : f32
    %4 = vector.broadcast %cst_2 : f32 to vector<16x34xf32>
    %5 = arith.mulf %4, %1 : vector<16x34xf32>
    %6 = arith.select %3, %1, %5 : vector<16x34xi1>, vector<16x34xf32>
    %c0_3 = arith.constant 0 : index
    %c0_4 = arith.constant 0 : index
    %7 = vector.load %arg2[%c0_3, %c0_4] : memref<32x48xf32, #tpu.memory_space<vmem>>, vector<32x48xf32>
    %8 = vector.extract_strided_slice %6 {offsets = [0, 0], sizes = [16, 32], strides = [1, 1]} : vector<16x34xf32> to vector<16x32xf32>
    %9 = vector.extract_strided_slice %6 {offsets = [0, 1], sizes = [16, 32], strides = [1, 1]} : vector<16x34xf32> to vector<16x32xf32>
    %10 = vector.extract_strided_slice %6 {offsets = [0, 2], sizes = [16, 32], strides = [1, 1]} : vector<16x34xf32> to vector<16x32xf32>
    %11 = tpu.concatenate %8, %9, %10 in 0 : vector<16x32xf32>, vector<16x32xf32>, vector<16x32xf32> -> vector<48x32xf32>
    %cst_5 = arith.constant dense<0.000000e+00> : vector<32x32xf32>
    %12 = tpu.matmul %7, %11, %cst_5 {dimension_numbers = #tpu.dot_dimension_numbers<[1], [0], [0], [1], [0, 0, 1, 1], [], []>} : vector<32x48xf32>, vector<48x32xf32>, vector<32x32xf32> -> vector<32x32xf32>
    %c0_6 = arith.constant 0 : index
    %c0_7 = arith.constant 0 : index
    %13 = vector.load %arg3[%c0_6, %c0_7] : memref<32x1xf32, #tpu.memory_space<vmem>>, vector<32x1xf32>
    %14 = vector.broadcast %13 : vector<32x1xf32> to vector<32x32xf32>
    %15 = arith.addf %12, %14 : vector<32x32xf32>
    %c0_8 = arith.constant 0 : index
    %c0_9 = arith.constant 0 : index
    %c0_10 = arith.constant 0 : index
    %16 = vector.load %arg4[%c0_8, %c0_9, %c0_10] : memref<1x32x32xf32, #tpu.memory_space<vmem>>, vector<1x32x32xf32>
    %17 = vector.shape_cast %16 : vector<1x32x32xf32> to vector<32x32xf32>
    %18 = vector.shape_cast %15 : vector<32x32xf32> to vector<1x32x32xf32>
    tpu.vector_store %arg4[%c0_8, %c0_9, %c0_10], %18 {strides = array<i32>} : memref<1x32x32xf32, #tpu.memory_space<vmem>>, vector<1x32x32xf32>,
    return
  }
  func.func @transform_0(%arg0: i32) -> (i32, i32, i32) {
    %c0_i32 = arith.constant 0 : i32
    %c0_i32_0 = arith.constant 0 : i32
    %c0_i32_1 = arith.constant 0 : i32
    return %arg0, %c0_i32, %c0_i32_0 : i32, i32, i32
  }
  func.func @transform_1(%arg0: i32) -> (i32, i32) {
    %c0_i32 = arith.constant 0 : i32
    %c0_i32_0 = arith.constant 0 : i32
    %c0_i32_1 = arith.constant 0 : i32
    return %c0_i32, %c0_i32_0 : i32, i32
  }
  func.func @transform_2(%arg0: i32) -> (i32, i32) {
    %c0_i32 = arith.constant 0 : i32
    %c0_i32_0 = arith.constant 0 : i32
    %c0_i32_1 = arith.constant 0 : i32
    return %c0_i32, %c0_i32_0 : i32, i32
  }
  func.func @transform_3(%arg0: i32) -> (i32, i32, i32) {
    %c0_i32 = arith.constant 0 : i32
    %c0_i32_0 = arith.constant 0 : i32
    %c0_i32_1 = arith.constant 0 : i32
    return %arg0, %c0_i32, %c0_i32_0 : i32, i32, i32
  }
}

module attributes {stable_mosaic.version = 11 : i64} {
  func.func @_conv1d_kernel(%arg0: i32, %arg1: memref<1x8x135xf32, #tpu.memory_space<vmem>>, %arg2: memref<72x56xf32, #tpu.memory_space<vmem>>, %arg3: memref<72x1xf32, #tpu.memory_space<vmem>>, %arg4: memref<1x72x129xf32, #tpu.memory_space<vmem>>) attributes {dimension_semantics = [#tpu.dimension_semantics<parallel>], iteration_bounds = array<i64: 2>, scalar_prefetch = 0 : i64, scratch_operands = 0 : i64, tpu.core_type = #tpu.core_type<tc>, window_params = [{transform_indices = @transform_0, window_bounds = array<i64: 1, 8, 135>}, {pipeline_mode = #tpu.pipeline_mode<synchronous>, transform_indices = @transform_1, window_bounds = array<i64: 72, 56>}, {pipeline_mode = #tpu.pipeline_mode<synchronous>, transform_indices = @transform_2, window_bounds = array<i64: 72, 1>}, {transform_indices = @transform_3, window_bounds = array<i64: 1, 72, 129>}]} {
    %c0 = arith.constant 0 : index
    %c0_0 = arith.constant 0 : index
    %c0_1 = arith.constant 0 : index
    %0 = vector.load %arg1[%c0, %c0_0, %c0_1] : memref<1x8x135xf32, #tpu.memory_space<vmem>>, vector<1x8x135xf32>
    %1 = vector.shape_cast %0 : vector<1x8x135xf32> to vector<8x135xf32>
    %cst = arith.constant 0.000000e+00 : f32
    %2 = vector.broadcast %cst : f32 to vector<8x135xf32>
    %3 = arith.cmpf oge, %1, %2 : vector<8x135xf32>
    %cst_2 = arith.constant 0.00999999977 : f32
    %4 = vector.broadcast %cst_2 : f32 to vector<8x135xf32>
    %5 = arith.mulf %4, %1 : vector<8x135xf32>
    %6 = arith.select %3, %1, %5 : vector<8x135xi1>, vector<8x135xf32>
    %c0_3 = arith.constant 0 : index
    %c0_4 = arith.constant 0 : index
    %7 = vector.load %arg2[%c0_3, %c0_4] : memref<72x56xf32, #tpu.memory_space<vmem>>, vector<72x56xf32>
    %8 = vector.extract_strided_slice %6 {offsets = [0, 0], sizes = [8, 129], strides = [1, 1]} : vector<8x135xf32> to vector<8x129xf32>
    %9 = vector.extract_strided_slice %6 {offsets = [0, 1], sizes = [8, 129], strides = [1, 1]} : vector<8x135xf32> to vector<8x129xf32>
    %10 = vector.extract_strided_slice %6 {offsets = [0, 2], sizes = [8, 129], strides = [1, 1]} : vector<8x135xf32> to vector<8x129xf32>
    %11 = vector.extract_strided_slice %6 {offsets = [0, 3], sizes = [8, 129], strides = [1, 1]} : vector<8x135xf32> to vector<8x129xf32>
    %12 = vector.extract_strided_slice %6 {offsets = [0, 4], sizes = [8, 129], strides = [1, 1]} : vector<8x135xf32> to vector<8x129xf32>
    %13 = vector.extract_strided_slice %6 {offsets = [0, 5], sizes = [8, 129], strides = [1, 1]} : vector<8x135xf32> to vector<8x129xf32>
    %14 = vector.extract_strided_slice %6 {offsets = [0, 6], sizes = [8, 129], strides = [1, 1]} : vector<8x135xf32> to vector<8x129xf32>
    %15 = tpu.concatenate %8, %9, %10, %11, %12, %13, %14 in 0 : vector<8x129xf32>, vector<8x129xf32>, vector<8x129xf32>, vector<8x129xf32>, vector<8x129xf32>, vector<8x129xf32>, vector<8x129xf32> -> vector<56x129xf32>
    %cst_5 = arith.constant dense<0.000000e+00> : vector<72x129xf32>
    %16 = tpu.matmul %7, %15, %cst_5 {dimension_numbers = #tpu.dot_dimension_numbers<[1], [0], [0], [1], [0, 0, 1, 1], [], []>} : vector<72x56xf32>, vector<56x129xf32>, vector<72x129xf32> -> vector<72x129xf32>
    %c0_6 = arith.constant 0 : index
    %c0_7 = arith.constant 0 : index
    %17 = vector.load %arg3[%c0_6, %c0_7] : memref<72x1xf32, #tpu.memory_space<vmem>>, vector<72x1xf32>
    %18 = vector.broadcast %17 : vector<72x1xf32> to vector<72x129xf32>
    %19 = arith.addf %16, %18 : vector<72x129xf32>
    %c0_8 = arith.constant 0 : index
    %c0_9 = arith.constant 0 : index
    %c0_10 = arith.constant 0 : index
    %20 = vector.load %arg4[%c0_8, %c0_9, %c0_10] : memref<1x72x129xf32, #tpu.memory_space<vmem>>, vector<1x72x129xf32>
    %21 = vector.shape_cast %20 : vector<1x72x129xf32> to vector<72x129xf32>
    %22 = vector.shape_cast %19 : vector<72x129xf32> to vector<1x72x129xf32>
    tpu.vector_store %arg4[%c0_8, %c0_9, %c0_10], %22 {strides = array<i32>} : memref<1x72x129xf32, #tpu.memory_space<vmem>>, vector<1x72x129xf32>,
    return
  }
  func.func @transform_0(%arg0: i32) -> (i32, i32, i32) {
    %c0_i32 = arith.constant 0 : i32
    %c0_i32_0 = arith.constant 0 : i32
    %c0_i32_1 = arith.constant 0 : i32
    return %arg0, %c0_i32, %c0_i32_0 : i32, i32, i32
  }
  func.func @transform_1(%arg0: i32) -> (i32, i32) {
    %c0_i32 = arith.constant 0 : i32
    %c0_i32_0 = arith.constant 0 : i32
    %c0_i32_1 = arith.constant 0 : i32
    return %c0_i32, %c0_i32_0 : i32, i32
  }
  func.func @transform_2(%arg0: i32) -> (i32, i32) {
    %c0_i32 = arith.constant 0 : i32
    %c0_i32_0 = arith.constant 0 : i32
    %c0_i32_1 = arith.constant 0 : i32
    return %c0_i32, %c0_i32_0 : i32, i32
  }
  func.func @transform_3(%arg0: i32) -> (i32, i32, i32) {
    %c0_i32 = arith.constant 0 : i32
    %c0_i32_0 = arith.constant 0 : i32
    %c0_i32_1 = arith.constant 0 : i32
    return %arg0, %c0_i32, %c0_i32_0 : i32, i32, i32
  }
}

module attributes {stable_mosaic.version = 11 : i64} {
  func.func @_mrf_kernel(%arg0: i32, %arg1: memref<1x8x128xf32, #tpu.memory_space<vmem>>, %arg2: memref<8x24xf32, #tpu.memory_space<vmem>>, %arg3: memref<8x1xf32, #tpu.memory_space<vmem>>, %arg4: memref<8x24xf32, #tpu.memory_space<vmem>>, %arg5: memref<8x1xf32, #tpu.memory_space<vmem>>, %arg6: memref<8x24xf32, #tpu.memory_space<vmem>>, %arg7: memref<8x1xf32, #tpu.memory_space<vmem>>, %arg8: memref<8x24xf32, #tpu.memory_space<vmem>>, %arg9: memref<8x1xf32, #tpu.memory_space<vmem>>, %arg10: memref<8x24xf32, #tpu.memory_space<vmem>>, %arg11: memref<8x1xf32, #tpu.memory_space<vmem>>, %arg12: memref<8x24xf32, #tpu.memory_space<vmem>>, %arg13: memref<8x1xf32, #tpu.memory_space<vmem>>, %arg14: memref<8x56xf32, #tpu.memory_space<vmem>>, %arg15: memref<8x1xf32, #tpu.memory_space<vmem>>, %arg16: memref<8x56xf32, #tpu.memory_space<vmem>>, %arg17: memref<8x1xf32, #tpu.memory_space<vmem>>, %arg18: memref<8x56xf32, #tpu.memory_space<vmem>>, %arg19: memref<8x1xf32, #tpu.memory_space<vmem>>, %arg20: memref<8x56xf32, #tpu.memory_space<vmem>>, %arg21: memref<8x1xf32, #tpu.memory_space<vmem>>, %arg22: memref<8x56xf32, #tpu.memory_space<vmem>>, %arg23: memref<8x1xf32, #tpu.memory_space<vmem>>, %arg24: memref<8x56xf32, #tpu.memory_space<vmem>>, %arg25: memref<8x1xf32, #tpu.memory_space<vmem>>, %arg26: memref<1x8x128xf32, #tpu.memory_space<vmem>>) attributes {dimension_semantics = [#tpu.dimension_semantics<parallel>], iteration_bounds = array<i64: 2>, scalar_prefetch = 0 : i64, scratch_operands = 0 : i64, tpu.core_type = #tpu.core_type<tc>, window_params = [{transform_indices = @transform_0, window_bounds = array<i64: 1, 8, 128>}, {pipeline_mode = #tpu.pipeline_mode<synchronous>, transform_indices = @transform_1, window_bounds = array<i64: 8, 24>}, {pipeline_mode = #tpu.pipeline_mode<synchronous>, transform_indices = @transform_2, window_bounds = array<i64: 8, 1>}, {pipeline_mode = #tpu.pipeline_mode<synchronous>, transform_indices = @transform_3, window_bounds = array<i64: 8, 24>}, {pipeline_mode = #tpu.pipeline_mode<synchronous>, transform_indices = @transform_4, window_bounds = array<i64: 8, 1>}, {pipeline_mode = #tpu.pipeline_mode<synchronous>, transform_indices = @transform_5, window_bounds = array<i64: 8, 24>}, {pipeline_mode = #tpu.pipeline_mode<synchronous>, transform_indices = @transform_6, window_bounds = array<i64: 8, 1>}, {pipeline_mode = #tpu.pipeline_mode<synchronous>, transform_indices = @transform_7, window_bounds = array<i64: 8, 24>}, {pipeline_mode = #tpu.pipeline_mode<synchronous>, transform_indices = @transform_8, window_bounds = array<i64: 8, 1>}, {pipeline_mode = #tpu.pipeline_mode<synchronous>, transform_indices = @transform_9, window_bounds = array<i64: 8, 24>}, {pipeline_mode = #tpu.pipeline_mode<synchronous>, transform_indices = @transform_10, window_bounds = array<i64: 8, 1>}, {pipeline_mode = #tpu.pipeline_mode<synchronous>, transform_indices = @transform_11, window_bounds = array<i64: 8, 24>}, {pipeline_mode = #tpu.pipeline_mode<synchronous>, transform_indices = @transform_12, window_bounds = array<i64: 8, 1>}, {pipeline_mode = #tpu.pipeline_mode<synchronous>, transform_indices = @transform_13, window_bounds = array<i64: 8, 56>}, {pipeline_mode = #tpu.pipeline_mode<synchronous>, transform_indices = @transform_14, window_bounds = array<i64: 8, 1>}, {pipeline_mode = #tpu.pipeline_mode<synchronous>, transform_indices = @transform_15, window_bounds = array<i64: 8, 56>}, {pipeline_mode = #tpu.pipeline_mode<synchronous>, transform_indices = @transform_16, window_bounds = array<i64: 8, 1>}, {pipeline_mode = #tpu.pipeline_mode<synchronous>, transform_indices = @transform_17, window_bounds = array<i64: 8, 56>}, {pipeline_mode = #tpu.pipeline_mode<synchronous>, transform_indices = @transform_18, window_bounds = array<i64: 8, 1>}, {pipeline_mode = #tpu.pipeline_mode<synchronous>, transform_indices = @transform_19, window_bounds = array<i64: 8, 56>}, {pipeline_mode = #tpu.pipeline_mode<synchronous>, transform_indices = @transform_20, window_bounds = array<i64: 8, 1>}, {pipeline_mode = #tpu.pipeline_mode<synchronous>, transform_indices = @transform_21, window_bounds = array<i64: 8, 56>}, {pipeline_mode = #tpu.pipeline_mode<synchronous>, transform_indices = @transform_22, window_bounds = array<i64: 8, 1>}, {pipeline_mode = #tpu.pipeline_mode<synchronous>, transform_indices = @transform_23, window_bounds = array<i64: 8, 56>}, {pipeline_mode = #tpu.pipeline_mode<synchronous>, transform_indices = @transform_24, window_bounds = array<i64: 8, 1>}, {transform_indices = @transform_25, window_bounds = array<i64: 1, 8, 128>}]} {
    %c0 = arith.constant 0 : index
    %c0_0 = arith.constant 0 : index
    %c0_1 = arith.constant 0 : index
    %0 = vector.load %arg1[%c0, %c0_0, %c0_1] : memref<1x8x128xf32, #tpu.memory_space<vmem>>, vector<1x8x128xf32>
    %1 = vector.shape_cast %0 : vector<1x8x128xf32> to vector<8x128xf32>
    %cst = arith.constant 0.000000e+00 : f32
    %2 = vector.broadcast %cst : f32 to vector<8x128xf32>
    %3 = arith.cmpf oge, %1, %2 : vector<8x128xf32>
    %cst_2 = arith.constant 1.000000e-01 : f32
    %4 = vector.broadcast %cst_2 : f32 to vector<8x128xf32>
    %5 = arith.mulf %4, %1 : vector<8x128xf32>
    %6 = arith.select %3, %1, %5 : vector<8x128xi1>, vector<8x128xf32>
    %c0_3 = arith.constant 0 : index
    %c0_4 = arith.constant 0 : index
    %7 = vector.load %arg2[%c0_3, %c0_4] : memref<8x24xf32, #tpu.memory_space<vmem>>, vector<8x24xf32>
    %c0_5 = arith.constant 0 : index
    %c0_6 = arith.constant 0 : index
    %8 = vector.load %arg3[%c0_5, %c0_6] : memref<8x1xf32, #tpu.memory_space<vmem>>, vector<8x1xf32>
    %cst_7 = arith.constant 0.000000e+00 : f32
    %9 = vector.broadcast %cst_7 : f32 to vector<8x1xf32>
    %cst_8 = arith.constant 0.000000e+00 : f32
    %10 = vector.broadcast %cst_8 : f32 to vector<8x1xf32>
    %11 = tpu.concatenate %9, %6, %10 in 1 : vector<8x1xf32>, vector<8x128xf32>, vector<8x1xf32> -> vector<8x130xf32>
    %12 = vector.extract_strided_slice %11 {offsets = [0, 0], sizes = [8, 128], strides = [1, 1]} : vector<8x130xf32> to vector<8x128xf32>
    %13 = vector.extract_strided_slice %11 {offsets = [0, 1], sizes = [8, 128], strides = [1, 1]} : vector<8x130xf32> to vector<8x128xf32>
    %14 = vector.extract_strided_slice %11 {offsets = [0, 2], sizes = [8, 128], strides = [1, 1]} : vector<8x130xf32> to vector<8x128xf32>
    %15 = tpu.concatenate %12, %13, %14 in 0 : vector<8x128xf32>, vector<8x128xf32>, vector<8x128xf32> -> vector<24x128xf32>
    %cst_9 = arith.constant dense<0.000000e+00> : vector<8x128xf32>
    %16 = tpu.matmul %7, %15, %cst_9 {dimension_numbers = #tpu.dot_dimension_numbers<[1], [0], [0], [1], [0, 0, 1, 1], [], []>} : vector<8x24xf32>, vector<24x128xf32>, vector<8x128xf32> -> vector<8x128xf32>
    %17 = vector.broadcast %8 : vector<8x1xf32> to vector<8x128xf32>
    %18 = arith.addf %16, %17 : vector<8x128xf32>
    %cst_10 = arith.constant 0.000000e+00 : f32
    %19 = vector.broadcast %cst_10 : f32 to vector<8x128xf32>
    %20 = arith.cmpf oge, %18, %19 : vector<8x128xf32>
    %cst_11 = arith.constant 1.000000e-01 : f32
    %21 = vector.broadcast %cst_11 : f32 to vector<8x128xf32>
    %22 = arith.mulf %21, %18 : vector<8x128xf32>
    %23 = arith.select %20, %18, %22 : vector<8x128xi1>, vector<8x128xf32>
    %c0_12 = arith.constant 0 : index
    %c0_13 = arith.constant 0 : index
    %24 = vector.load %arg4[%c0_12, %c0_13] : memref<8x24xf32, #tpu.memory_space<vmem>>, vector<8x24xf32>
    %c0_14 = arith.constant 0 : index
    %c0_15 = arith.constant 0 : index
    %25 = vector.load %arg5[%c0_14, %c0_15] : memref<8x1xf32, #tpu.memory_space<vmem>>, vector<8x1xf32>
    %cst_16 = arith.constant 0.000000e+00 : f32
    %26 = vector.broadcast %cst_16 : f32 to vector<8x1xf32>
    %cst_17 = arith.constant 0.000000e+00 : f32
    %27 = vector.broadcast %cst_17 : f32 to vector<8x1xf32>
    %28 = tpu.concatenate %26, %23, %27 in 1 : vector<8x1xf32>, vector<8x128xf32>, vector<8x1xf32> -> vector<8x130xf32>
    %29 = vector.extract_strided_slice %28 {offsets = [0, 0], sizes = [8, 128], strides = [1, 1]} : vector<8x130xf32> to vector<8x128xf32>
    %30 = vector.extract_strided_slice %28 {offsets = [0, 1], sizes = [8, 128], strides = [1, 1]} : vector<8x130xf32> to vector<8x128xf32>
    %31 = vector.extract_strided_slice %28 {offsets = [0, 2], sizes = [8, 128], strides = [1, 1]} : vector<8x130xf32> to vector<8x128xf32>
    %32 = tpu.concatenate %29, %30, %31 in 0 : vector<8x128xf32>, vector<8x128xf32>, vector<8x128xf32> -> vector<24x128xf32>
    %cst_18 = arith.constant dense<0.000000e+00> : vector<8x128xf32>
    %33 = tpu.matmul %24, %32, %cst_18 {dimension_numbers = #tpu.dot_dimension_numbers<[1], [0], [0], [1], [0, 0, 1, 1], [], []>} : vector<8x24xf32>, vector<24x128xf32>, vector<8x128xf32> -> vector<8x128xf32>
    %34 = vector.broadcast %25 : vector<8x1xf32> to vector<8x128xf32>
    %35 = arith.addf %33, %34 : vector<8x128xf32>
    %36 = arith.addf %35, %1 : vector<8x128xf32>
    %cst_19 = arith.constant 0.000000e+00 : f32
    %37 = vector.broadcast %cst_19 : f32 to vector<8x128xf32>
    %38 = arith.cmpf oge, %36, %37 : vector<8x128xf32>
    %cst_20 = arith.constant 1.000000e-01 : f32
    %39 = vector.broadcast %cst_20 : f32 to vector<8x128xf32>
    %40 = arith.mulf %39, %36 : vector<8x128xf32>
    %41 = arith.select %38, %36, %40 : vector<8x128xi1>, vector<8x128xf32>
    %c0_21 = arith.constant 0 : index
    %c0_22 = arith.constant 0 : index
    %42 = vector.load %arg6[%c0_21, %c0_22] : memref<8x24xf32, #tpu.memory_space<vmem>>, vector<8x24xf32>
    %c0_23 = arith.constant 0 : index
    %c0_24 = arith.constant 0 : index
    %43 = vector.load %arg7[%c0_23, %c0_24] : memref<8x1xf32, #tpu.memory_space<vmem>>, vector<8x1xf32>
    %cst_25 = arith.constant 0.000000e+00 : f32
    %44 = vector.broadcast %cst_25 : f32 to vector<8x3xf32>
    %cst_26 = arith.constant 0.000000e+00 : f32
    %45 = vector.broadcast %cst_26 : f32 to vector<8x3xf32>
    %46 = tpu.concatenate %44, %41, %45 in 1 : vector<8x3xf32>, vector<8x128xf32>, vector<8x3xf32> -> vector<8x134xf32>
    %47 = vector.extract_strided_slice %46 {offsets = [0, 0], sizes = [8, 128], strides = [1, 1]} : vector<8x134xf32> to vector<8x128xf32>
    %48 = vector.extract_strided_slice %46 {offsets = [0, 3], sizes = [8, 128], strides = [1, 1]} : vector<8x134xf32> to vector<8x128xf32>
    %49 = vector.extract_strided_slice %46 {offsets = [0, 6], sizes = [8, 128], strides = [1, 1]} : vector<8x134xf32> to vector<8x128xf32>
    %50 = tpu.concatenate %47, %48, %49 in 0 : vector<8x128xf32>, vector<8x128xf32>, vector<8x128xf32> -> vector<24x128xf32>
    %cst_27 = arith.constant dense<0.000000e+00> : vector<8x128xf32>
    %51 = tpu.matmul %42, %50, %cst_27 {dimension_numbers = #tpu.dot_dimension_numbers<[1], [0], [0], [1], [0, 0, 1, 1], [], []>} : vector<8x24xf32>, vector<24x128xf32>, vector<8x128xf32> -> vector<8x128xf32>
    %52 = vector.broadcast %43 : vector<8x1xf32> to vector<8x128xf32>
    %53 = arith.addf %51, %52 : vector<8x128xf32>
    %cst_28 = arith.constant 0.000000e+00 : f32
    %54 = vector.broadcast %cst_28 : f32 to vector<8x128xf32>
    %55 = arith.cmpf oge, %53, %54 : vector<8x128xf32>
    %cst_29 = arith.constant 1.000000e-01 : f32
    %56 = vector.broadcast %cst_29 : f32 to vector<8x128xf32>
    %57 = arith.mulf %56, %53 : vector<8x128xf32>
    %58 = arith.select %55, %53, %57 : vector<8x128xi1>, vector<8x128xf32>
    %c0_30 = arith.constant 0 : index
    %c0_31 = arith.constant 0 : index
    %59 = vector.load %arg8[%c0_30, %c0_31] : memref<8x24xf32, #tpu.memory_space<vmem>>, vector<8x24xf32>
    %c0_32 = arith.constant 0 : index
    %c0_33 = arith.constant 0 : index
    %60 = vector.load %arg9[%c0_32, %c0_33] : memref<8x1xf32, #tpu.memory_space<vmem>>, vector<8x1xf32>
    %cst_34 = arith.constant 0.000000e+00 : f32
    %61 = vector.broadcast %cst_34 : f32 to vector<8x1xf32>
    %cst_35 = arith.constant 0.000000e+00 : f32
    %62 = vector.broadcast %cst_35 : f32 to vector<8x1xf32>
    %63 = tpu.concatenate %61, %58, %62 in 1 : vector<8x1xf32>, vector<8x128xf32>, vector<8x1xf32> -> vector<8x130xf32>
    %64 = vector.extract_strided_slice %63 {offsets = [0, 0], sizes = [8, 128], strides = [1, 1]} : vector<8x130xf32> to vector<8x128xf32>
    %65 = vector.extract_strided_slice %63 {offsets = [0, 1], sizes = [8, 128], strides = [1, 1]} : vector<8x130xf32> to vector<8x128xf32>
    %66 = vector.extract_strided_slice %63 {offsets = [0, 2], sizes = [8, 128], strides = [1, 1]} : vector<8x130xf32> to vector<8x128xf32>
    %67 = tpu.concatenate %64, %65, %66 in 0 : vector<8x128xf32>, vector<8x128xf32>, vector<8x128xf32> -> vector<24x128xf32>
    %cst_36 = arith.constant dense<0.000000e+00> : vector<8x128xf32>
    %68 = tpu.matmul %59, %67, %cst_36 {dimension_numbers = #tpu.dot_dimension_numbers<[1], [0], [0], [1], [0, 0, 1, 1], [], []>} : vector<8x24xf32>, vector<24x128xf32>, vector<8x128xf32> -> vector<8x128xf32>
    %69 = vector.broadcast %60 : vector<8x1xf32> to vector<8x128xf32>
    %70 = arith.addf %68, %69 : vector<8x128xf32>
    %71 = arith.addf %70, %36 : vector<8x128xf32>
    %cst_37 = arith.constant 0.000000e+00 : f32
    %72 = vector.broadcast %cst_37 : f32 to vector<8x128xf32>
    %73 = arith.cmpf oge, %71, %72 : vector<8x128xf32>
    %cst_38 = arith.constant 1.000000e-01 : f32
    %74 = vector.broadcast %cst_38 : f32 to vector<8x128xf32>
    %75 = arith.mulf %74, %71 : vector<8x128xf32>
    %76 = arith.select %73, %71, %75 : vector<8x128xi1>, vector<8x128xf32>
    %c0_39 = arith.constant 0 : index
    %c0_40 = arith.constant 0 : index
    %77 = vector.load %arg10[%c0_39, %c0_40] : memref<8x24xf32, #tpu.memory_space<vmem>>, vector<8x24xf32>
    %c0_41 = arith.constant 0 : index
    %c0_42 = arith.constant 0 : index
    %78 = vector.load %arg11[%c0_41, %c0_42] : memref<8x1xf32, #tpu.memory_space<vmem>>, vector<8x1xf32>
    %cst_43 = arith.constant 0.000000e+00 : f32
    %79 = vector.broadcast %cst_43 : f32 to vector<8x5xf32>
    %cst_44 = arith.constant 0.000000e+00 : f32
    %80 = vector.broadcast %cst_44 : f32 to vector<8x5xf32>
    %81 = tpu.concatenate %79, %76, %80 in 1 : vector<8x5xf32>, vector<8x128xf32>, vector<8x5xf32> -> vector<8x138xf32>
    %82 = vector.extract_strided_slice %81 {offsets = [0, 0], sizes = [8, 128], strides = [1, 1]} : vector<8x138xf32> to vector<8x128xf32>
    %83 = vector.extract_strided_slice %81 {offsets = [0, 5], sizes = [8, 128], strides = [1, 1]} : vector<8x138xf32> to vector<8x128xf32>
    %84 = vector.extract_strided_slice %81 {offsets = [0, 10], sizes = [8, 128], strides = [1, 1]} : vector<8x138xf32> to vector<8x128xf32>
    %85 = tpu.concatenate %82, %83, %84 in 0 : vector<8x128xf32>, vector<8x128xf32>, vector<8x128xf32> -> vector<24x128xf32>
    %cst_45 = arith.constant dense<0.000000e+00> : vector<8x128xf32>
    %86 = tpu.matmul %77, %85, %cst_45 {dimension_numbers = #tpu.dot_dimension_numbers<[1], [0], [0], [1], [0, 0, 1, 1], [], []>} : vector<8x24xf32>, vector<24x128xf32>, vector<8x128xf32> -> vector<8x128xf32>
    %87 = vector.broadcast %78 : vector<8x1xf32> to vector<8x128xf32>
    %88 = arith.addf %86, %87 : vector<8x128xf32>
    %cst_46 = arith.constant 0.000000e+00 : f32
    %89 = vector.broadcast %cst_46 : f32 to vector<8x128xf32>
    %90 = arith.cmpf oge, %88, %89 : vector<8x128xf32>
    %cst_47 = arith.constant 1.000000e-01 : f32
    %91 = vector.broadcast %cst_47 : f32 to vector<8x128xf32>
    %92 = arith.mulf %91, %88 : vector<8x128xf32>
    %93 = arith.select %90, %88, %92 : vector<8x128xi1>, vector<8x128xf32>
    %c0_48 = arith.constant 0 : index
    %c0_49 = arith.constant 0 : index
    %94 = vector.load %arg12[%c0_48, %c0_49] : memref<8x24xf32, #tpu.memory_space<vmem>>, vector<8x24xf32>
    %c0_50 = arith.constant 0 : index
    %c0_51 = arith.constant 0 : index
    %95 = vector.load %arg13[%c0_50, %c0_51] : memref<8x1xf32, #tpu.memory_space<vmem>>, vector<8x1xf32>
    %cst_52 = arith.constant 0.000000e+00 : f32
    %96 = vector.broadcast %cst_52 : f32 to vector<8x1xf32>
    %cst_53 = arith.constant 0.000000e+00 : f32
    %97 = vector.broadcast %cst_53 : f32 to vector<8x1xf32>
    %98 = tpu.concatenate %96, %93, %97 in 1 : vector<8x1xf32>, vector<8x128xf32>, vector<8x1xf32> -> vector<8x130xf32>
    %99 = vector.extract_strided_slice %98 {offsets = [0, 0], sizes = [8, 128], strides = [1, 1]} : vector<8x130xf32> to vector<8x128xf32>
    %100 = vector.extract_strided_slice %98 {offsets = [0, 1], sizes = [8, 128], strides = [1, 1]} : vector<8x130xf32> to vector<8x128xf32>
    %101 = vector.extract_strided_slice %98 {offsets = [0, 2], sizes = [8, 128], strides = [1, 1]} : vector<8x130xf32> to vector<8x128xf32>
    %102 = tpu.concatenate %99, %100, %101 in 0 : vector<8x128xf32>, vector<8x128xf32>, vector<8x128xf32> -> vector<24x128xf32>
    %cst_54 = arith.constant dense<0.000000e+00> : vector<8x128xf32>
    %103 = tpu.matmul %94, %102, %cst_54 {dimension_numbers = #tpu.dot_dimension_numbers<[1], [0], [0], [1], [0, 0, 1, 1], [], []>} : vector<8x24xf32>, vector<24x128xf32>, vector<8x128xf32> -> vector<8x128xf32>
    %104 = vector.broadcast %95 : vector<8x1xf32> to vector<8x128xf32>
    %105 = arith.addf %103, %104 : vector<8x128xf32>
    %106 = arith.addf %105, %71 : vector<8x128xf32>
    %cst_55 = arith.constant 0.000000e+00 : f32
    %107 = vector.broadcast %cst_55 : f32 to vector<8x128xf32>
    %108 = arith.cmpf oge, %1, %107 : vector<8x128xf32>
    %cst_56 = arith.constant 1.000000e-01 : f32
    %109 = vector.broadcast %cst_56 : f32 to vector<8x128xf32>
    %110 = arith.mulf %109, %1 : vector<8x128xf32>
    %111 = arith.select %108, %1, %110 : vector<8x128xi1>, vector<8x128xf32>
    %c0_57 = arith.constant 0 : index
    %c0_58 = arith.constant 0 : index
    %112 = vector.load %arg14[%c0_57, %c0_58] : memref<8x56xf32, #tpu.memory_space<vmem>>, vector<8x56xf32>
    %c0_59 = arith.constant 0 : index
    %c0_60 = arith.constant 0 : index
    %113 = vector.load %arg15[%c0_59, %c0_60] : memref<8x1xf32, #tpu.memory_space<vmem>>, vector<8x1xf32>
    %cst_61 = arith.constant 0.000000e+00 : f32
    %114 = vector.broadcast %cst_61 : f32 to vector<8x3xf32>
    %cst_62 = arith.constant 0.000000e+00 : f32
    %115 = vector.broadcast %cst_62 : f32 to vector<8x3xf32>
    %116 = tpu.concatenate %114, %111, %115 in 1 : vector<8x3xf32>, vector<8x128xf32>, vector<8x3xf32> -> vector<8x134xf32>
    %117 = vector.extract_strided_slice %116 {offsets = [0, 0], sizes = [8, 128], strides = [1, 1]} : vector<8x134xf32> to vector<8x128xf32>
    %118 = vector.extract_strided_slice %116 {offsets = [0, 1], sizes = [8, 128], strides = [1, 1]} : vector<8x134xf32> to vector<8x128xf32>
    %119 = vector.extract_strided_slice %116 {offsets = [0, 2], sizes = [8, 128], strides = [1, 1]} : vector<8x134xf32> to vector<8x128xf32>
    %120 = vector.extract_strided_slice %116 {offsets = [0, 3], sizes = [8, 128], strides = [1, 1]} : vector<8x134xf32> to vector<8x128xf32>
    %121 = vector.extract_strided_slice %116 {offsets = [0, 4], sizes = [8, 128], strides = [1, 1]} : vector<8x134xf32> to vector<8x128xf32>
    %122 = vector.extract_strided_slice %116 {offsets = [0, 5], sizes = [8, 128], strides = [1, 1]} : vector<8x134xf32> to vector<8x128xf32>
    %123 = vector.extract_strided_slice %116 {offsets = [0, 6], sizes = [8, 128], strides = [1, 1]} : vector<8x134xf32> to vector<8x128xf32>
    %124 = tpu.concatenate %117, %118, %119, %120, %121, %122, %123 in 0 : vector<8x128xf32>, vector<8x128xf32>, vector<8x128xf32>, vector<8x128xf32>, vector<8x128xf32>, vector<8x128xf32>, vector<8x128xf32> -> vector<56x128xf32>
    %cst_63 = arith.constant dense<0.000000e+00> : vector<8x128xf32>
    %125 = tpu.matmul %112, %124, %cst_63 {dimension_numbers = #tpu.dot_dimension_numbers<[1], [0], [0], [1], [0, 0, 1, 1], [], []>} : vector<8x56xf32>, vector<56x128xf32>, vector<8x128xf32> -> vector<8x128xf32>
    %126 = vector.broadcast %113 : vector<8x1xf32> to vector<8x128xf32>
    %127 = arith.addf %125, %126 : vector<8x128xf32>
    %cst_64 = arith.constant 0.000000e+00 : f32
    %128 = vector.broadcast %cst_64 : f32 to vector<8x128xf32>
    %129 = arith.cmpf oge, %127, %128 : vector<8x128xf32>
    %cst_65 = arith.constant 1.000000e-01 : f32
    %130 = vector.broadcast %cst_65 : f32 to vector<8x128xf32>
    %131 = arith.mulf %130, %127 : vector<8x128xf32>
    %132 = arith.select %129, %127, %131 : vector<8x128xi1>, vector<8x128xf32>
    %c0_66 = arith.constant 0 : index
    %c0_67 = arith.constant 0 : index
    %133 = vector.load %arg16[%c0_66, %c0_67] : memref<8x56xf32, #tpu.memory_space<vmem>>, vector<8x56xf32>
    %c0_68 = arith.constant 0 : index
    %c0_69 = arith.constant 0 : index
    %134 = vector.load %arg17[%c0_68, %c0_69] : memref<8x1xf32, #tpu.memory_space<vmem>>, vector<8x1xf32>
    %cst_70 = arith.constant 0.000000e+00 : f32
    %135 = vector.broadcast %cst_70 : f32 to vector<8x3xf32>
    %cst_71 = arith.constant 0.000000e+00 : f32
    %136 = vector.broadcast %cst_71 : f32 to vector<8x3xf32>
    %137 = tpu.concatenate %135, %132, %136 in 1 : vector<8x3xf32>, vector<8x128xf32>, vector<8x3xf32> -> vector<8x134xf32>
    %138 = vector.extract_strided_slice %137 {offsets = [0, 0], sizes = [8, 128], strides = [1, 1]} : vector<8x134xf32> to vector<8x128xf32>
    %139 = vector.extract_strided_slice %137 {offsets = [0, 1], sizes = [8, 128], strides = [1, 1]} : vector<8x134xf32> to vector<8x128xf32>
    %140 = vector.extract_strided_slice %137 {offsets = [0, 2], sizes = [8, 128], strides = [1, 1]} : vector<8x134xf32> to vector<8x128xf32>
    %141 = vector.extract_strided_slice %137 {offsets = [0, 3], sizes = [8, 128], strides = [1, 1]} : vector<8x134xf32> to vector<8x128xf32>
    %142 = vector.extract_strided_slice %137 {offsets = [0, 4], sizes = [8, 128], strides = [1, 1]} : vector<8x134xf32> to vector<8x128xf32>
    %143 = vector.extract_strided_slice %137 {offsets = [0, 5], sizes = [8, 128], strides = [1, 1]} : vector<8x134xf32> to vector<8x128xf32>
    %144 = vector.extract_strided_slice %137 {offsets = [0, 6], sizes = [8, 128], strides = [1, 1]} : vector<8x134xf32> to vector<8x128xf32>
    %145 = tpu.concatenate %138, %139, %140, %141, %142, %143, %144 in 0 : vector<8x128xf32>, vector<8x128xf32>, vector<8x128xf32>, vector<8x128xf32>, vector<8x128xf32>, vector<8x128xf32>, vector<8x128xf32> -> vector<56x128xf32>
    %cst_72 = arith.constant dense<0.000000e+00> : vector<8x128xf32>
    %146 = tpu.matmul %133, %145, %cst_72 {dimension_numbers = #tpu.dot_dimension_numbers<[1], [0], [0], [1], [0, 0, 1, 1], [], []>} : vector<8x56xf32>, vector<56x128xf32>, vector<8x128xf32> -> vector<8x128xf32>
    %147 = vector.broadcast %134 : vector<8x1xf32> to vector<8x128xf32>
    %148 = arith.addf %146, %147 : vector<8x128xf32>
    %149 = arith.addf %148, %1 : vector<8x128xf32>
    %cst_73 = arith.constant 0.000000e+00 : f32
    %150 = vector.broadcast %cst_73 : f32 to vector<8x128xf32>
    %151 = arith.cmpf oge, %149, %150 : vector<8x128xf32>
    %cst_74 = arith.constant 1.000000e-01 : f32
    %152 = vector.broadcast %cst_74 : f32 to vector<8x128xf32>
    %153 = arith.mulf %152, %149 : vector<8x128xf32>
    %154 = arith.select %151, %149, %153 : vector<8x128xi1>, vector<8x128xf32>
    %c0_75 = arith.constant 0 : index
    %c0_76 = arith.constant 0 : index
    %155 = vector.load %arg18[%c0_75, %c0_76] : memref<8x56xf32, #tpu.memory_space<vmem>>, vector<8x56xf32>
    %c0_77 = arith.constant 0 : index
    %c0_78 = arith.constant 0 : index
    %156 = vector.load %arg19[%c0_77, %c0_78] : memref<8x1xf32, #tpu.memory_space<vmem>>, vector<8x1xf32>
    %cst_79 = arith.constant 0.000000e+00 : f32
    %157 = vector.broadcast %cst_79 : f32 to vector<8x9xf32>
    %cst_80 = arith.constant 0.000000e+00 : f32
    %158 = vector.broadcast %cst_80 : f32 to vector<8x9xf32>
    %159 = tpu.concatenate %157, %154, %158 in 1 : vector<8x9xf32>, vector<8x128xf32>, vector<8x9xf32> -> vector<8x146xf32>
    %160 = vector.extract_strided_slice %159 {offsets = [0, 0], sizes = [8, 128], strides = [1, 1]} : vector<8x146xf32> to vector<8x128xf32>
    %161 = vector.extract_strided_slice %159 {offsets = [0, 3], sizes = [8, 128], strides = [1, 1]} : vector<8x146xf32> to vector<8x128xf32>
    %162 = vector.extract_strided_slice %159 {offsets = [0, 6], sizes = [8, 128], strides = [1, 1]} : vector<8x146xf32> to vector<8x128xf32>
    %163 = vector.extract_strided_slice %159 {offsets = [0, 9], sizes = [8, 128], strides = [1, 1]} : vector<8x146xf32> to vector<8x128xf32>
    %164 = vector.extract_strided_slice %159 {offsets = [0, 12], sizes = [8, 128], strides = [1, 1]} : vector<8x146xf32> to vector<8x128xf32>
    %165 = vector.extract_strided_slice %159 {offsets = [0, 15], sizes = [8, 128], strides = [1, 1]} : vector<8x146xf32> to vector<8x128xf32>
    %166 = vector.extract_strided_slice %159 {offsets = [0, 18], sizes = [8, 128], strides = [1, 1]} : vector<8x146xf32> to vector<8x128xf32>
    %167 = tpu.concatenate %160, %161, %162, %163, %164, %165, %166 in 0 : vector<8x128xf32>, vector<8x128xf32>, vector<8x128xf32>, vector<8x128xf32>, vector<8x128xf32>, vector<8x128xf32>, vector<8x128xf32> -> vector<56x128xf32>
    %cst_81 = arith.constant dense<0.000000e+00> : vector<8x128xf32>
    %168 = tpu.matmul %155, %167, %cst_81 {dimension_numbers = #tpu.dot_dimension_numbers<[1], [0], [0], [1], [0, 0, 1, 1], [], []>} : vector<8x56xf32>, vector<56x128xf32>, vector<8x128xf32> -> vector<8x128xf32>
    %169 = vector.broadcast %156 : vector<8x1xf32> to vector<8x128xf32>
    %170 = arith.addf %168, %169 : vector<8x128xf32>
    %cst_82 = arith.constant 0.000000e+00 : f32
    %171 = vector.broadcast %cst_82 : f32 to vector<8x128xf32>
    %172 = arith.cmpf oge, %170, %171 : vector<8x128xf32>
    %cst_83 = arith.constant 1.000000e-01 : f32
    %173 = vector.broadcast %cst_83 : f32 to vector<8x128xf32>
    %174 = arith.mulf %173, %170 : vector<8x128xf32>
    %175 = arith.select %172, %170, %174 : vector<8x128xi1>, vector<8x128xf32>
    %c0_84 = arith.constant 0 : index
    %c0_85 = arith.constant 0 : index
    %176 = vector.load %arg20[%c0_84, %c0_85] : memref<8x56xf32, #tpu.memory_space<vmem>>, vector<8x56xf32>
    %c0_86 = arith.constant 0 : index
    %c0_87 = arith.constant 0 : index
    %177 = vector.load %arg21[%c0_86, %c0_87] : memref<8x1xf32, #tpu.memory_space<vmem>>, vector<8x1xf32>
    %cst_88 = arith.constant 0.000000e+00 : f32
    %178 = vector.broadcast %cst_88 : f32 to vector<8x3xf32>
    %cst_89 = arith.constant 0.000000e+00 : f32
    %179 = vector.broadcast %cst_89 : f32 to vector<8x3xf32>
    %180 = tpu.concatenate %178, %175, %179 in 1 : vector<8x3xf32>, vector<8x128xf32>, vector<8x3xf32> -> vector<8x134xf32>
    %181 = vector.extract_strided_slice %180 {offsets = [0, 0], sizes = [8, 128], strides = [1, 1]} : vector<8x134xf32> to vector<8x128xf32>
    %182 = vector.extract_strided_slice %180 {offsets = [0, 1], sizes = [8, 128], strides = [1, 1]} : vector<8x134xf32> to vector<8x128xf32>
    %183 = vector.extract_strided_slice %180 {offsets = [0, 2], sizes = [8, 128], strides = [1, 1]} : vector<8x134xf32> to vector<8x128xf32>
    %184 = vector.extract_strided_slice %180 {offsets = [0, 3], sizes = [8, 128], strides = [1, 1]} : vector<8x134xf32> to vector<8x128xf32>
    %185 = vector.extract_strided_slice %180 {offsets = [0, 4], sizes = [8, 128], strides = [1, 1]} : vector<8x134xf32> to vector<8x128xf32>
    %186 = vector.extract_strided_slice %180 {offsets = [0, 5], sizes = [8, 128], strides = [1, 1]} : vector<8x134xf32> to vector<8x128xf32>
    %187 = vector.extract_strided_slice %180 {offsets = [0, 6], sizes = [8, 128], strides = [1, 1]} : vector<8x134xf32> to vector<8x128xf32>
    %188 = tpu.concatenate %181, %182, %183, %184, %185, %186, %187 in 0 : vector<8x128xf32>, vector<8x128xf32>, vector<8x128xf32>, vector<8x128xf32>, vector<8x128xf32>, vector<8x128xf32>, vector<8x128xf32> -> vector<56x128xf32>
    %cst_90 = arith.constant dense<0.000000e+00> : vector<8x128xf32>
    %189 = tpu.matmul %176, %188, %cst_90 {dimension_numbers = #tpu.dot_dimension_numbers<[1], [0], [0], [1], [0, 0, 1, 1], [], []>} : vector<8x56xf32>, vector<56x128xf32>, vector<8x128xf32> -> vector<8x128xf32>
    %190 = vector.broadcast %177 : vector<8x1xf32> to vector<8x128xf32>
    %191 = arith.addf %189, %190 : vector<8x128xf32>
    %192 = arith.addf %191, %149 : vector<8x128xf32>
    %cst_91 = arith.constant 0.000000e+00 : f32
    %193 = vector.broadcast %cst_91 : f32 to vector<8x128xf32>
    %194 = arith.cmpf oge, %192, %193 : vector<8x128xf32>
    %cst_92 = arith.constant 1.000000e-01 : f32
    %195 = vector.broadcast %cst_92 : f32 to vector<8x128xf32>
    %196 = arith.mulf %195, %192 : vector<8x128xf32>
    %197 = arith.select %194, %192, %196 : vector<8x128xi1>, vector<8x128xf32>
    %c0_93 = arith.constant 0 : index
    %c0_94 = arith.constant 0 : index
    %198 = vector.load %arg22[%c0_93, %c0_94] : memref<8x56xf32, #tpu.memory_space<vmem>>, vector<8x56xf32>
    %c0_95 = arith.constant 0 : index
    %c0_96 = arith.constant 0 : index
    %199 = vector.load %arg23[%c0_95, %c0_96] : memref<8x1xf32, #tpu.memory_space<vmem>>, vector<8x1xf32>
    %cst_97 = arith.constant 0.000000e+00 : f32
    %200 = vector.broadcast %cst_97 : f32 to vector<8x15xf32>
    %cst_98 = arith.constant 0.000000e+00 : f32
    %201 = vector.broadcast %cst_98 : f32 to vector<8x15xf32>
    %202 = tpu.concatenate %200, %197, %201 in 1 : vector<8x15xf32>, vector<8x128xf32>, vector<8x15xf32> -> vector<8x158xf32>
    %203 = vector.extract_strided_slice %202 {offsets = [0, 0], sizes = [8, 128], strides = [1, 1]} : vector<8x158xf32> to vector<8x128xf32>
    %204 = vector.extract_strided_slice %202 {offsets = [0, 5], sizes = [8, 128], strides = [1, 1]} : vector<8x158xf32> to vector<8x128xf32>
    %205 = vector.extract_strided_slice %202 {offsets = [0, 10], sizes = [8, 128], strides = [1, 1]} : vector<8x158xf32> to vector<8x128xf32>
    %206 = vector.extract_strided_slice %202 {offsets = [0, 15], sizes = [8, 128], strides = [1, 1]} : vector<8x158xf32> to vector<8x128xf32>
    %207 = vector.extract_strided_slice %202 {offsets = [0, 20], sizes = [8, 128], strides = [1, 1]} : vector<8x158xf32> to vector<8x128xf32>
    %208 = vector.extract_strided_slice %202 {offsets = [0, 25], sizes = [8, 128], strides = [1, 1]} : vector<8x158xf32> to vector<8x128xf32>
    %209 = vector.extract_strided_slice %202 {offsets = [0, 30], sizes = [8, 128], strides = [1, 1]} : vector<8x158xf32> to vector<8x128xf32>
    %210 = tpu.concatenate %203, %204, %205, %206, %207, %208, %209 in 0 : vector<8x128xf32>, vector<8x128xf32>, vector<8x128xf32>, vector<8x128xf32>, vector<8x128xf32>, vector<8x128xf32>, vector<8x128xf32> -> vector<56x128xf32>
    %cst_99 = arith.constant dense<0.000000e+00> : vector<8x128xf32>
    %211 = tpu.matmul %198, %210, %cst_99 {dimension_numbers = #tpu.dot_dimension_numbers<[1], [0], [0], [1], [0, 0, 1, 1], [], []>} : vector<8x56xf32>, vector<56x128xf32>, vector<8x128xf32> -> vector<8x128xf32>
    %212 = vector.broadcast %199 : vector<8x1xf32> to vector<8x128xf32>
    %213 = arith.addf %211, %212 : vector<8x128xf32>
    %cst_100 = arith.constant 0.000000e+00 : f32
    %214 = vector.broadcast %cst_100 : f32 to vector<8x128xf32>
    %215 = arith.cmpf oge, %213, %214 : vector<8x128xf32>
    %cst_101 = arith.constant 1.000000e-01 : f32
    %216 = vector.broadcast %cst_101 : f32 to vector<8x128xf32>
    %217 = arith.mulf %216, %213 : vector<8x128xf32>
    %218 = arith.select %215, %213, %217 : vector<8x128xi1>, vector<8x128xf32>
    %c0_102 = arith.constant 0 : index
    %c0_103 = arith.constant 0 : index
    %219 = vector.load %arg24[%c0_102, %c0_103] : memref<8x56xf32, #tpu.memory_space<vmem>>, vector<8x56xf32>
    %c0_104 = arith.constant 0 : index
    %c0_105 = arith.constant 0 : index
    %220 = vector.load %arg25[%c0_104, %c0_105] : memref<8x1xf32, #tpu.memory_space<vmem>>, vector<8x1xf32>
    %cst_106 = arith.constant 0.000000e+00 : f32
    %221 = vector.broadcast %cst_106 : f32 to vector<8x3xf32>
    %cst_107 = arith.constant 0.000000e+00 : f32
    %222 = vector.broadcast %cst_107 : f32 to vector<8x3xf32>
    %223 = tpu.concatenate %221, %218, %222 in 1 : vector<8x3xf32>, vector<8x128xf32>, vector<8x3xf32> -> vector<8x134xf32>
    %224 = vector.extract_strided_slice %223 {offsets = [0, 0], sizes = [8, 128], strides = [1, 1]} : vector<8x134xf32> to vector<8x128xf32>
    %225 = vector.extract_strided_slice %223 {offsets = [0, 1], sizes = [8, 128], strides = [1, 1]} : vector<8x134xf32> to vector<8x128xf32>
    %226 = vector.extract_strided_slice %223 {offsets = [0, 2], sizes = [8, 128], strides = [1, 1]} : vector<8x134xf32> to vector<8x128xf32>
    %227 = vector.extract_strided_slice %223 {offsets = [0, 3], sizes = [8, 128], strides = [1, 1]} : vector<8x134xf32> to vector<8x128xf32>
    %228 = vector.extract_strided_slice %223 {offsets = [0, 4], sizes = [8, 128], strides = [1, 1]} : vector<8x134xf32> to vector<8x128xf32>
    %229 = vector.extract_strided_slice %223 {offsets = [0, 5], sizes = [8, 128], strides = [1, 1]} : vector<8x134xf32> to vector<8x128xf32>
    %230 = vector.extract_strided_slice %223 {offsets = [0, 6], sizes = [8, 128], strides = [1, 1]} : vector<8x134xf32> to vector<8x128xf32>
    %231 = tpu.concatenate %224, %225, %226, %227, %228, %229, %230 in 0 : vector<8x128xf32>, vector<8x128xf32>, vector<8x128xf32>, vector<8x128xf32>, vector<8x128xf32>, vector<8x128xf32>, vector<8x128xf32> -> vector<56x128xf32>
    %cst_108 = arith.constant dense<0.000000e+00> : vector<8x128xf32>
    %232 = tpu.matmul %219, %231, %cst_108 {dimension_numbers = #tpu.dot_dimension_numbers<[1], [0], [0], [1], [0, 0, 1, 1], [], []>} : vector<8x56xf32>, vector<56x128xf32>, vector<8x128xf32> -> vector<8x128xf32>
    %233 = vector.broadcast %220 : vector<8x1xf32> to vector<8x128xf32>
    %234 = arith.addf %232, %233 : vector<8x128xf32>
    %235 = arith.addf %234, %192 : vector<8x128xf32>
    %236 = arith.addf %106, %235 : vector<8x128xf32>
    %cst_109 = arith.constant 5.000000e-01 : f32
    %237 = vector.broadcast %cst_109 : f32 to vector<8x128xf32>
    %238 = arith.mulf %236, %237 : vector<8x128xf32>
    %c0_110 = arith.constant 0 : index
    %c0_111 = arith.constant 0 : index
    %c0_112 = arith.constant 0 : index
    %239 = vector.load %arg26[%c0_110, %c0_111, %c0_112] : memref<1x8x128xf32, #tpu.memory_space<vmem>>, vector<1x8x128xf32>
    %240 = vector.shape_cast %239 : vector<1x8x128xf32> to vector<8x128xf32>
    %241 = vector.shape_cast %238 : vector<8x128xf32> to vector<1x8x128xf32>
    tpu.vector_store %arg26[%c0_110, %c0_111, %c0_112], %241 {strides = array<i32>} : memref<1x8x128xf32, #tpu.memory_space<vmem>>, vector<1x8x128xf32>,
    return
  }
  func.func @transform_0(%arg0: i32) -> (i32, i32, i32) {
    %c0_i32 = arith.constant 0 : i32
    %c0_i32_0 = arith.constant 0 : i32
    %c0_i32_1 = arith.constant 0 : i32
    return %arg0, %c0_i32, %c0_i32_0 : i32, i32, i32
  }
  func.func @transform_1(%arg0: i32) -> (i32, i32) {
    %c0_i32 = arith.constant 0 : i32
    %c0_i32_0 = arith.constant 0 : i32
    %c0_i32_1 = arith.constant 0 : i32
    return %c0_i32, %c0_i32_0 : i32, i32
  }
  func.func @transform_2(%arg0: i32) -> (i32, i32) {
    %c0_i32 = arith.constant 0 : i32
    %c0_i32_0 = arith.constant 0 : i32
    %c0_i32_1 = arith.constant 0 : i32
    return %c0_i32, %c0_i32_0 : i32, i32
  }
  func.func @transform_3(%arg0: i32) -> (i32, i32) {
    %c0_i32 = arith.constant 0 : i32
    %c0_i32_0 = arith.constant 0 : i32
    %c0_i32_1 = arith.constant 0 : i32
    return %c0_i32, %c0_i32_0 : i32, i32
  }
  func.func @transform_4(%arg0: i32) -> (i32, i32) {
    %c0_i32 = arith.constant 0 : i32
    %c0_i32_0 = arith.constant 0 : i32
    %c0_i32_1 = arith.constant 0 : i32
    return %c0_i32, %c0_i32_0 : i32, i32
  }
  func.func @transform_5(%arg0: i32) -> (i32, i32) {
    %c0_i32 = arith.constant 0 : i32
    %c0_i32_0 = arith.constant 0 : i32
    %c0_i32_1 = arith.constant 0 : i32
    return %c0_i32, %c0_i32_0 : i32, i32
  }
  func.func @transform_6(%arg0: i32) -> (i32, i32) {
    %c0_i32 = arith.constant 0 : i32
    %c0_i32_0 = arith.constant 0 : i32
    %c0_i32_1 = arith.constant 0 : i32
    return %c0_i32, %c0_i32_0 : i32, i32
  }
  func.func @transform_7(%arg0: i32) -> (i32, i32) {
    %c0_i32 = arith.constant 0 : i32
    %c0_i32_0 = arith.constant 0 : i32
    %c0_i32_1 = arith.constant 0 : i32
    return %c0_i32, %c0_i32_0 : i32, i32
  }
  func.func @transform_8(%arg0: i32) -> (i32, i32) {
    %c0_i32 = arith.constant 0 : i32
    %c0_i32_0 = arith.constant 0 : i32
    %c0_i32_1 = arith.constant 0 : i32
    return %c0_i32, %c0_i32_0 : i32, i32
  }
  func.func @transform_9(%arg0: i32) -> (i32, i32) {
    %c0_i32 = arith.constant 0 : i32
    %c0_i32_0 = arith.constant 0 : i32
    %c0_i32_1 = arith.constant 0 : i32
    return %c0_i32, %c0_i32_0 : i32, i32
  }
  func.func @transform_10(%arg0: i32) -> (i32, i32) {
    %c0_i32 = arith.constant 0 : i32
    %c0_i32_0 = arith.constant 0 : i32
    %c0_i32_1 = arith.constant 0 : i32
    return %c0_i32, %c0_i32_0 : i32, i32
  }
  func.func @transform_11(%arg0: i32) -> (i32, i32) {
    %c0_i32 = arith.constant 0 : i32
    %c0_i32_0 = arith.constant 0 : i32
    %c0_i32_1 = arith.constant 0 : i32
    return %c0_i32, %c0_i32_0 : i32, i32
  }
  func.func @transform_12(%arg0: i32) -> (i32, i32) {
    %c0_i32 = arith.constant 0 : i32
    %c0_i32_0 = arith.constant 0 : i32
    %c0_i32_1 = arith.constant 0 : i32
    return %c0_i32, %c0_i32_0 : i32, i32
  }
  func.func @transform_13(%arg0: i32) -> (i32, i32) {
    %c0_i32 = arith.constant 0 : i32
    %c0_i32_0 = arith.constant 0 : i32
    %c0_i32_1 = arith.constant 0 : i32
    return %c0_i32, %c0_i32_0 : i32, i32
  }
  func.func @transform_14(%arg0: i32) -> (i32, i32) {
    %c0_i32 = arith.constant 0 : i32
    %c0_i32_0 = arith.constant 0 : i32
    %c0_i32_1 = arith.constant 0 : i32
    return %c0_i32, %c0_i32_0 : i32, i32
  }
  func.func @transform_15(%arg0: i32) -> (i32, i32) {
    %c0_i32 = arith.constant 0 : i32
    %c0_i32_0 = arith.constant 0 : i32
    %c0_i32_1 = arith.constant 0 : i32
    return %c0_i32, %c0_i32_0 : i32, i32
  }
  func.func @transform_16(%arg0: i32) -> (i32, i32) {
    %c0_i32 = arith.constant 0 : i32
    %c0_i32_0 = arith.constant 0 : i32
    %c0_i32_1 = arith.constant 0 : i32
    return %c0_i32, %c0_i32_0 : i32, i32
  }
  func.func @transform_17(%arg0: i32) -> (i32, i32) {
    %c0_i32 = arith.constant 0 : i32
    %c0_i32_0 = arith.constant 0 : i32
    %c0_i32_1 = arith.constant 0 : i32
    return %c0_i32, %c0_i32_0 : i32, i32
  }
  func.func @transform_18(%arg0: i32) -> (i32, i32) {
    %c0_i32 = arith.constant 0 : i32
    %c0_i32_0 = arith.constant 0 : i32
    %c0_i32_1 = arith.constant 0 : i32
    return %c0_i32, %c0_i32_0 : i32, i32
  }
  func.func @transform_19(%arg0: i32) -> (i32, i32) {
    %c0_i32 = arith.constant 0 : i32
    %c0_i32_0 = arith.constant 0 : i32
    %c0_i32_1 = arith.constant 0 : i32
    return %c0_i32, %c0_i32_0 : i32, i32
  }
  func.func @transform_20(%arg0: i32) -> (i32, i32) {
    %c0_i32 = arith.constant 0 : i32
    %c0_i32_0 = arith.constant 0 : i32
    %c0_i32_1 = arith.constant 0 : i32
    return %c0_i32, %c0_i32_0 : i32, i32
  }
  func.func @transform_21(%arg0: i32) -> (i32, i32) {
    %c0_i32 = arith.constant 0 : i32
    %c0_i32_0 = arith.constant 0 : i32
    %c0_i32_1 = arith.constant 0 : i32
    return %c0_i32, %c0_i32_0 : i32, i32
  }
  func.func @transform_22(%arg0: i32) -> (i32, i32) {
    %c0_i32 = arith.constant 0 : i32
    %c0_i32_0 = arith.constant 0 : i32
    %c0_i32_1 = arith.constant 0 : i32
    return %c0_i32, %c0_i32_0 : i32, i32
  }
  func.func @transform_23(%arg0: i32) -> (i32, i32) {
    %c0_i32 = arith.constant 0 : i32
    %c0_i32_0 = arith.constant 0 : i32
    %c0_i32_1 = arith.constant 0 : i32
    return %c0_i32, %c0_i32_0 : i32, i32
  }
  func.func @transform_24(%arg0: i32) -> (i32, i32) {
    %c0_i32 = arith.constant 0 : i32
    %c0_i32_0 = arith.constant 0 : i32
    %c0_i32_1 = arith.constant 0 : i32
    return %c0_i32, %c0_i32_0 : i32, i32
  }
  func.func @transform_25(%arg0: i32) -> (i32, i32, i32) {
    %c0_i32 = arith.constant 0 : i32
    %c0_i32_0 = arith.constant 0 : i32
    %c0_i32_1 = arith.constant 0 : i32
    return %arg0, %c0_i32, %c0_i32_0 : i32, i32, i32
  }
}

module attributes {stable_mosaic.version = 11 : i64} {
  func.func @_istft_ola_kernel(%arg0: i32, %arg1: memref<1x9x129xf32, #tpu.memory_space<vmem>>, %arg2: memref<1x9x129xf32, #tpu.memory_space<vmem>>, %arg3: memref<16x18xf32, #tpu.memory_space<vmem>>, %arg4: memref<4x132xf32, #tpu.memory_space<vmem>>, %arg5: memref<1x4x132xf32, #tpu.memory_space<vmem>>) attributes {dimension_semantics = [#tpu.dimension_semantics<parallel>], iteration_bounds = array<i64: 8>, scalar_prefetch = 0 : i64, scratch_operands = 0 : i64, tpu.core_type = #tpu.core_type<tc>, window_params = [{transform_indices = @transform_0, window_bounds = array<i64: 1, 9, 129>}, {transform_indices = @transform_1, window_bounds = array<i64: 1, 9, 129>}, {pipeline_mode = #tpu.pipeline_mode<synchronous>, transform_indices = @transform_2, window_bounds = array<i64: 16, 18>}, {pipeline_mode = #tpu.pipeline_mode<synchronous>, transform_indices = @transform_3, window_bounds = array<i64: 4, 132>}, {transform_indices = @transform_4, window_bounds = array<i64: 1, 4, 132>}]} {
    %c0 = arith.constant 0 : index
    %c0_0 = arith.constant 0 : index
    %c0_1 = arith.constant 0 : index
    %0 = vector.load %arg1[%c0, %c0_0, %c0_1] : memref<1x9x129xf32, #tpu.memory_space<vmem>>, vector<1x9x129xf32>
    %1 = vector.shape_cast %0 : vector<1x9x129xf32> to vector<9x129xf32>
    %2 = math.exp %1 : vector<9x129xf32>
    %c0_2 = arith.constant 0 : index
    %c0_3 = arith.constant 0 : index
    %c0_4 = arith.constant 0 : index
    %3 = vector.load %arg2[%c0_2, %c0_3, %c0_4] : memref<1x9x129xf32, #tpu.memory_space<vmem>>, vector<1x9x129xf32>
    %4 = vector.shape_cast %3 : vector<1x9x129xf32> to vector<9x129xf32>
    %5 = math.sin %4 : vector<9x129xf32>
    %cst = arith.constant 3.14159274 : f32
    %6 = vector.broadcast %cst : f32 to vector<9x129xf32>
    %7 = arith.mulf %6, %5 : vector<9x129xf32>
    %8 = math.cos %7 : vector<9x129xf32>
    %9 = arith.mulf %2, %8 : vector<9x129xf32>
    %10 = math.sin %7 : vector<9x129xf32>
    %11 = arith.mulf %2, %10 : vector<9x129xf32>
    %12 = tpu.concatenate %9, %11 in 0 : vector<9x129xf32>, vector<9x129xf32> -> vector<18x129xf32>
    %c0_5 = arith.constant 0 : index
    %c0_6 = arith.constant 0 : index
    %13 = vector.load %arg3[%c0_5, %c0_6] : memref<16x18xf32, #tpu.memory_space<vmem>>, vector<16x18xf32>
    %cst_7 = arith.constant dense<0.000000e+00> : vector<16x129xf32>
    %14 = tpu.matmul %13, %12, %cst_7 {dimension_numbers = #tpu.dot_dimension_numbers<[1], [0], [0], [1], [0, 0, 1, 1], [], []>} : vector<16x18xf32>, vector<18x129xf32>, vector<16x129xf32> -> vector<16x129xf32>
    %cst_8 = arith.constant 0.000000e+00 : f32
    %15 = vector.broadcast %cst_8 : f32 to vector<4x132xf32>
    %16 = vector.extract_strided_slice %14 {offsets = [0, 0], sizes = [4, 129], strides = [1, 1]} : vector<16x129xf32> to vector<4x129xf32>
    %cst_9 = arith.constant 0.000000e+00 : f32
    %17 = vector.broadcast %cst_9 : f32 to vector<4x3xf32>
    %18 = tpu.concatenate %16, %17 in 1 : vector<4x129xf32>, vector<4x3xf32> -> vector<4x132xf32>
    %19 = arith.addf %15, %18 : vector<4x132xf32>
    %20 = vector.extract_strided_slice %14 {offsets = [4, 0], sizes = [4, 129], strides = [1, 1]} : vector<16x129xf32> to vector<4x129xf32>
    %cst_10 = arith.constant 0.000000e+00 : f32
    %21 = vector.broadcast %cst_10 : f32 to vector<4x1xf32>
    %cst_11 = arith.constant 0.000000e+00 : f32
    %22 = vector.broadcast %cst_11 : f32 to vector<4x2xf32>
    %23 = tpu.concatenate %21, %20, %22 in 1 : vector<4x1xf32>, vector<4x129xf32>, vector<4x2xf32> -> vector<4x132xf32>
    %24 = arith.addf %19, %23 : vector<4x132xf32>
    %25 = vector.extract_strided_slice %14 {offsets = [8, 0], sizes = [4, 129], strides = [1, 1]} : vector<16x129xf32> to vector<4x129xf32>
    %cst_12 = arith.constant 0.000000e+00 : f32
    %26 = vector.broadcast %cst_12 : f32 to vector<4x2xf32>
    %cst_13 = arith.constant 0.000000e+00 : f32
    %27 = vector.broadcast %cst_13 : f32 to vector<4x1xf32>
    %28 = tpu.concatenate %26, %25, %27 in 1 : vector<4x2xf32>, vector<4x129xf32>, vector<4x1xf32> -> vector<4x132xf32>
    %29 = arith.addf %24, %28 : vector<4x132xf32>
    %30 = vector.extract_strided_slice %14 {offsets = [12, 0], sizes = [4, 129], strides = [1, 1]} : vector<16x129xf32> to vector<4x129xf32>
    %cst_14 = arith.constant 0.000000e+00 : f32
    %31 = vector.broadcast %cst_14 : f32 to vector<4x3xf32>
    %32 = tpu.concatenate %31, %30 in 1 : vector<4x3xf32>, vector<4x129xf32> -> vector<4x132xf32>
    %33 = arith.addf %29, %32 : vector<4x132xf32>
    %c0_15 = arith.constant 0 : index
    %c0_16 = arith.constant 0 : index
    %34 = vector.load %arg4[%c0_15, %c0_16] : memref<4x132xf32, #tpu.memory_space<vmem>>, vector<4x132xf32>
    %35 = arith.mulf %33, %34 : vector<4x132xf32>
    %c0_17 = arith.constant 0 : index
    %c0_18 = arith.constant 0 : index
    %c0_19 = arith.constant 0 : index
    %36 = vector.load %arg5[%c0_17, %c0_18, %c0_19] : memref<1x4x132xf32, #tpu.memory_space<vmem>>, vector<1x4x132xf32>
    %37 = vector.shape_cast %36 : vector<1x4x132xf32> to vector<4x132xf32>
    %38 = vector.shape_cast %35 : vector<4x132xf32> to vector<1x4x132xf32>
    tpu.vector_store %arg5[%c0_17, %c0_18, %c0_19], %38 {strides = array<i32>} : memref<1x4x132xf32, #tpu.memory_space<vmem>>, vector<1x4x132xf32>,
    return
  }
  func.func @transform_0(%arg0: i32) -> (i32, i32, i32) {
    %c0_i32 = arith.constant 0 : i32
    %c0_i32_0 = arith.constant 0 : i32
    %c0_i32_1 = arith.constant 0 : i32
    return %arg0, %c0_i32, %c0_i32_0 : i32, i32, i32
  }
  func.func @transform_1(%arg0: i32) -> (i32, i32, i32) {
    %c0_i32 = arith.constant 0 : i32
    %c0_i32_0 = arith.constant 0 : i32
    %c0_i32_1 = arith.constant 0 : i32
    return %arg0, %c0_i32, %c0_i32_0 : i32, i32, i32
  }
  func.func @transform_2(%arg0: i32) -> (i32, i32) {
    %c0_i32 = arith.constant 0 : i32
    %c0_i32_0 = arith.constant 0 : i32
    %c0_i32_1 = arith.constant 0 : i32
    return %c0_i32, %c0_i32_0 : i32, i32
  }
  func.func @transform_3(%arg0: i32) -> (i32, i32) {
    %c0_i32 = arith.constant 0 : i32
    %c0_i32_0 = arith.constant 0 : i32
    %c0_i32_1 = arith.constant 0 : i32
    return %c0_i32, %c0_i32_0 : i32, i32
  }
  func.func @transform_4(%arg0: i32) -> (i32, i32, i32) {
    %c0_i32 = arith.constant 0 : i32
    %c0_i32_0 = arith.constant 0 : i32
    %c0_i32_1 = arith.constant 0 : i32
    return %arg0, %c0_i32, %c0_i32_0 : i32, i32, i32
  }
}

module attributes {stable_mosaic.version = 11 : i64} {
  func.func @_mspost_kernel(%arg0: i32, %arg1: memref<1x4x527xf32, #tpu.memory_space<vmem>>, %arg2: memref<4x64xf32, #tpu.memory_space<vmem>>, %arg3: memref<1x4x512xf32, #tpu.memory_space<vmem>>) attributes {dimension_semantics = [#tpu.dimension_semantics<parallel>], iteration_bounds = array<i64: 2>, scalar_prefetch = 0 : i64, scratch_operands = 0 : i64, tpu.core_type = #tpu.core_type<tc>, window_params = [{transform_indices = @transform_0, window_bounds = array<i64: 1, 4, 527>}, {pipeline_mode = #tpu.pipeline_mode<synchronous>, transform_indices = @transform_1, window_bounds = array<i64: 4, 64>}, {transform_indices = @transform_2, window_bounds = array<i64: 1, 4, 512>}]} {
    %c0 = arith.constant 0 : index
    %c0_0 = arith.constant 0 : index
    %c0_1 = arith.constant 0 : index
    %0 = vector.load %arg1[%c0, %c0_0, %c0_1] : memref<1x4x527xf32, #tpu.memory_space<vmem>>, vector<1x4x527xf32>
    %1 = vector.shape_cast %0 : vector<1x4x527xf32> to vector<4x527xf32>
    %c0_2 = arith.constant 0 : index
    %c0_3 = arith.constant 0 : index
    %2 = vector.load %arg2[%c0_2, %c0_3] : memref<4x64xf32, #tpu.memory_space<vmem>>, vector<4x64xf32>
    %3 = vector.extract_strided_slice %1 {offsets = [0, 0], sizes = [4, 512], strides = [1, 1]} : vector<4x527xf32> to vector<4x512xf32>
    %4 = vector.extract_strided_slice %1 {offsets = [0, 1], sizes = [4, 512], strides = [1, 1]} : vector<4x527xf32> to vector<4x512xf32>
    %5 = vector.extract_strided_slice %1 {offsets = [0, 2], sizes = [4, 512], strides = [1, 1]} : vector<4x527xf32> to vector<4x512xf32>
    %6 = vector.extract_strided_slice %1 {offsets = [0, 3], sizes = [4, 512], strides = [1, 1]} : vector<4x527xf32> to vector<4x512xf32>
    %7 = vector.extract_strided_slice %1 {offsets = [0, 4], sizes = [4, 512], strides = [1, 1]} : vector<4x527xf32> to vector<4x512xf32>
    %8 = vector.extract_strided_slice %1 {offsets = [0, 5], sizes = [4, 512], strides = [1, 1]} : vector<4x527xf32> to vector<4x512xf32>
    %9 = vector.extract_strided_slice %1 {offsets = [0, 6], sizes = [4, 512], strides = [1, 1]} : vector<4x527xf32> to vector<4x512xf32>
    %10 = vector.extract_strided_slice %1 {offsets = [0, 7], sizes = [4, 512], strides = [1, 1]} : vector<4x527xf32> to vector<4x512xf32>
    %11 = vector.extract_strided_slice %1 {offsets = [0, 8], sizes = [4, 512], strides = [1, 1]} : vector<4x527xf32> to vector<4x512xf32>
    %12 = vector.extract_strided_slice %1 {offsets = [0, 9], sizes = [4, 512], strides = [1, 1]} : vector<4x527xf32> to vector<4x512xf32>
    %13 = vector.extract_strided_slice %1 {offsets = [0, 10], sizes = [4, 512], strides = [1, 1]} : vector<4x527xf32> to vector<4x512xf32>
    %14 = vector.extract_strided_slice %1 {offsets = [0, 11], sizes = [4, 512], strides = [1, 1]} : vector<4x527xf32> to vector<4x512xf32>
    %15 = vector.extract_strided_slice %1 {offsets = [0, 12], sizes = [4, 512], strides = [1, 1]} : vector<4x527xf32> to vector<4x512xf32>
    %16 = vector.extract_strided_slice %1 {offsets = [0, 13], sizes = [4, 512], strides = [1, 1]} : vector<4x527xf32> to vector<4x512xf32>
    %17 = vector.extract_strided_slice %1 {offsets = [0, 14], sizes = [4, 512], strides = [1, 1]} : vector<4x527xf32> to vector<4x512xf32>
    %18 = vector.extract_strided_slice %1 {offsets = [0, 15], sizes = [4, 512], strides = [1, 1]} : vector<4x527xf32> to vector<4x512xf32>
    %19 = tpu.concatenate %3, %4, %5, %6, %7, %8, %9, %10, %11, %12, %13, %14, %15, %16, %17, %18 in 0 : vector<4x512xf32>, vector<4x512xf32>, vector<4x512xf32>, vector<4x512xf32>, vector<4x512xf32>, vector<4x512xf32>, vector<4x512xf32>, vector<4x512xf32>, vector<4x512xf32>, vector<4x512xf32>, vector<4x512xf32>, vector<4x512xf32>, vector<4x512xf32>, vector<4x512xf32>, vector<4x512xf32>, vector<4x512xf32> -> vector<64x512xf32>
    %cst = arith.constant dense<0.000000e+00> : vector<4x512xf32>
    %20 = tpu.matmul %2, %19, %cst {dimension_numbers = #tpu.dot_dimension_numbers<[1], [0], [0], [1], [0, 0, 1, 1], [], []>} : vector<4x64xf32>, vector<64x512xf32>, vector<4x512xf32> -> vector<4x512xf32>
    %c0_4 = arith.constant 0 : index
    %c0_5 = arith.constant 0 : index
    %c0_6 = arith.constant 0 : index
    %21 = vector.load %arg3[%c0_4, %c0_5, %c0_6] : memref<1x4x512xf32, #tpu.memory_space<vmem>>, vector<1x4x512xf32>
    %22 = vector.shape_cast %21 : vector<1x4x512xf32> to vector<4x512xf32>
    %23 = vector.shape_cast %20 : vector<4x512xf32> to vector<1x4x512xf32>
    tpu.vector_store %arg3[%c0_4, %c0_5, %c0_6], %23 {strides = array<i32>} : memref<1x4x512xf32, #tpu.memory_space<vmem>>, vector<1x4x512xf32>,
    return
  }
  func.func @transform_0(%arg0: i32) -> (i32, i32, i32) {
    %c0_i32 = arith.constant 0 : i32
    %c0_i32_0 = arith.constant 0 : i32
    %c0_i32_1 = arith.constant 0 : i32
    return %arg0, %c0_i32, %c0_i32_0 : i32, i32, i32
  }
  func.func @transform_1(%arg0: i32) -> (i32, i32) {
    %c0_i32 = arith.constant 0 : i32
    %c0_i32_0 = arith.constant 0 : i32
    %c0_i32_1 = arith.constant 0 : i32
    return %c0_i32, %c0_i32_0 : i32, i32
  }
  func.func @transform_2(%arg0: i32) -> (i32, i32, i32) {
    %c0_i32 = arith.constant 0 : i32
    %c0_i32_0 = arith.constant 0 : i32
    %c0_i32_1 = arith.constant 0 : i32
    return %arg0, %c0_i32, %c0_i32_0 : i32, i32, i32
  }
}

</mosaic_0001>

<bundles_post_ra>
// kernel: _lambda_.11
= control target key start
LH: loop header
LB: loop body
LE: loop exit
PB: predicated region body
PF: predicated region fallthrough
CT: control target
= control target key end

     0   :  { %8 = vsyncpa [#allocation3], 0  ;;  %s693_s0 = inlined_call_operand.vmem [shape: f32[2,16,34], index: 0, kind: input, shape index: {}]   ;;  %s694_s1 = inlined_call_operand.hbm [shape: f32[32,48], index: 1, kind: input, shape index: {}]   ;;  %s695_s2 = inlined_call_operand.hbm [shape: f32[32,1], index: 2, kind: input, shape index: {}]   ;;  %s696_s3 = inlined_call_operand.vmem [shape: f32[2,32,32], index: 3, kind: output, shape index: {}]  }
   0x1   :  { %9 = vsyncpa [#allocation5], 0  ;;  %s623_s12 = smov 0  }
   0x2 LB: > { %s629_s13 = sadd.s32 4294967295, %s594_s12   ;;  %p433_p0 = scmp.ge.s32.totalorder %s594_s12, 1  ;;  %s594_s12 = sphi %s623_s12, %s15_s12  }
   0x3   : > { %p114_p1 = scmp.lt.s32.totalorder %s594_s12, 3  ;;  %s596_s14 = smov [#allocation2]  }
   0x4   : > { %s126_s15 = sshll.u32 %s596_s14, 4  ;;  %p507_p3 = scmp.eq.s32.totalorder %s629_s13, 0  ;;  %s127_s15 = int_to_ptr.vmem [resolvable:$true] %s126_s15 }
   0x5   : > { %p633_p2 = pnand %p433_p0, %p114_p1  ;;  %s597_s17 = smov [#allocation4]  }
   0x6   : > { %s139_s18 = sshll.u32 %s597_s17, 4  ;;  %s539_s20 = scalar_lea.vmem %s127_s15, 512  ;;  %s140_s18 = int_to_ptr.vmem [resolvable:$true] %s139_s18 }
   0x7   : > { %p500_p4 = pneg %p633_p2  ;;  %p540_p7 = scmp.ne.s32.totalorder %s127_s15, %s539_s20 }
   0x8   : > { %p547_p10 = scmp.lt.s32.totalorder %s127_s15, %s127_s15  ;;  %p548_p11 = scmp.lt.s32.totalorder %s539_s20, %s539_s20 }
   0x9   : > { %p642_p5 = pnand %p507_p3, %p500_p4 }
   0xa   : > { %p549_p12 = por %p548_p11, %p547_p10 }
   0xb   : > { %p530_p6 = pneg %p642_p5 }
   0xd   : > { %p542_p8 = pnand %p540_p7, %p530_p6 }
   0xf   : > { %p543_p9 = pneg %p542_p8 }
  0x11   : > { %p550_p13 = pnand %p549_p12, %p543_p9 }
  0x13   : > { %553 = shalt.err (!%p550_p13)
}
  0x14   : > { %s598_s21 = smov 128   ;;  %s599_s22 = smov 8  }
  0x15   : > { %503 = dma.hbm_to_vmem [thread:$0]  (!%p642_p5), %s694_s1, 512, %s127_s15, [#allocation3], %s598_s21, %s598_s21, %s599_s22  }
  0x16   : > { %s565_s25 = scalar_lea.vmem %s140_s18, 512  ;;  %p573_p7 = scmp.lt.s32.totalorder %s140_s18, %s140_s18 }
  0x17   : > { %p566_p0 = scmp.ne.s32.totalorder %s140_s18, %s565_s25  ;;  %p574_p8 = scmp.lt.s32.totalorder %s565_s25, %s565_s25 }
  0x19   : > { %p568_p1 = pnand %p566_p0, %p530_p6  ;;  %p575_p10 = por %p574_p8, %p573_p7 }
  0x1b   : > { %p569_p4 = pneg %p568_p1 }
  0x1d   : > { %p576_p9 = pnand %p575_p10, %p569_p4 }
  0x1f   : > { %579 = shalt.err (!%p576_p9)
}
  0x20   : > { %506 = dma.hbm_to_vmem [thread:$0]  (!%p642_p5), %s695_s2, 512, %s140_s18, [#allocation5], %s598_s21, %s598_s21, %s599_s22  }
  0x21   : > { %163 = sbr.rel (%p633_p2) target bundleno = 377 (0x179), region = 32 }
  0x26   : > { %585 = dma.done.wait (%p507_p3), [#allocation3], 512  }
  0x27   : > { %587 = vsyncadd (%p507_p3), [#allocation3], 4294966784 }
  0x28   : > { %589 = dma.done.wait (%p507_p3), [#allocation5], 512  }
  0x29   : > { %591 = vsyncadd (%p507_p3), [#allocation5], 4294966784  ;;  %p191_p6 = scmp.lt.s32.totalorder %s629_s13, 1  ;;  %v209_v5 = vld [vmem:[#allocation2] sm:$0xff]  ;;  %vm251_vm2 = vcmask 392192   ;;  %v211_v6 = vld [vmem:[#allocation2 + $0x10] sm:$0xff] }
  0x2a   : > { %s600_s5 = smov 126   ;;  %s601_s6 = smov 127   ;;  %474 = vmatprep.mubr.msk.f32.mxu0 %vm251_vm2, %v209_v5  ;;  %477 = vmatprep.mubr.msk.f32.mxu1 %vm251_vm2, %v211_v6  ;;  %v602_v8 = vmov 0   ;;  %v228_v9 = vld [vmem:[#allocation4 + $0x8] sm:$0xff]  ;;  %v227_v10 = vld [vmem:[#allocation4] sm:$0xff]  ;;  %v229_v11 = vld [vmem:[#allocation4 + $0x10] sm:$0xff] }
  0x2b   : > { %s700_s13 = smov (!%p191_p6, %s629_s13), 1  ;;  %527 = vset.pattern.permute.xlu1 %v602_v8  ;;  %526 = vset.pattern.permute.xlu0 %v602_v8  ;;  %v230_v12 = vld [vmem:[#allocation4 + $0x18] sm:$0xff]  ;;  %v210_v17 = vld [vmem:[#allocation2 + $0x8] sm:$0xff]  ;;  %vm349_vm3 = vcmask 261120  }
  0x2c   : > { %s450_s28 = sshll.u32 %s700_s13, 4  ;;  %v212_v18 = vld [vmem:[#allocation2 + $0x18] sm:$0xff]  ;;  %s451_s7 = sshll.u32 %s700_s13, 5 }
  0x2d   : > { %s195_s4 = scalar_lea.vmem %s693_s0, %s450_s28  ;;  %s200_s10 = scalar_lea.vmem %s696_s3, %s451_s7 }
  0x2e   : > { %v202_v0 = vld [vmem:[%s195_s4 + $0x8] sm:$0xff]  ;;  %v201_v1 = vld [vmem:[%s195_s4] sm:$0xff] }
  0x2f   : > { %vm204_vm0 = vcmp.ge.f32.partialorder %v202_v0, 0.0  ;;  %v206_v2 = vmul.f32 0.1, %v202_v0  ;;  %v205_v3 = vmul.f32 0.1, %v201_v1  ;;  %vm203_vm1 = vcmp.ge.f32.partialorder %v201_v1, 0.0 }
  0x31   : > { %v208_v4 = vsel %vm204_vm0, %v202_v0, %v206_v2  ;;  %v207_v7 = vsel %vm203_vm1, %v201_v1, %v205_v3 }
  0x32   : > { %223 = vrot.lane.b32.xlu0 %v208_v4, %s600_s5  ;;  %217 = vrot.lane.b32.xlu1 %v208_v4, %s601_s6 }
  0x36   : > { %221 = vrot.lane.b32.xlu0 %v207_v7, %s600_s5  ;;  %215 = vrot.lane.b32.xlu1 %v207_v7, %s601_s6 }
  0x3a   : > { %238 = vperm.xlu1 %527, %v228_v9   ;;  %233 = vperm.xlu0 %526, %v227_v10  }
  0x3e   : > { %243 = vperm.xlu1 %527, %v229_v11   ;;  %248 = vperm.xlu0 %526, %v230_v12  }
  0xa4   : > { %v224_v13 = vpop.permute.xlu0 %223  ;;  %v218_v14 = vpop.permute.xlu1 %217 }
  0xa5   : > { %462 = vmatprep.subr.mxu0 %v224_v13  ;;  %480 = vmatprep.subr.mxu1 %v224_v13 }
  0xa6   : > { %463 = vmatpush3.msra.mxu0 %v224_v13  ;;  %486 = vmatpush3.msra.mxu1 %v224_v13 }
  0xa8   : > { %v222_v15 = vpop.permute.xlu0 %221  ;;  %v216_v16 = vpop.permute.xlu1 %215 }
  0xa9   : > { %464 = vmatprep.subr.mxu0 %v222_v15  ;;  %481 = vmatprep.subr.mxu1 %v222_v15 }
  0xaa   : > { %465 = vmatpush3.msra.mxu0 %v222_v15  ;;  %487 = vmatpush3.msra.mxu1 %v222_v15 }
  0xab   : > { %466 = vmatprep.subr.mxu0 %v218_v14  ;;  %482 = vmatprep.subr.mxu1 %v218_v14 }
  0xac   : > { %467 = vmatpush3.msra.mxu0 %v218_v14  ;;  %488 = vmatpush3.msra.mxu1 %v218_v14 }
  0xad   : > { %468 = vmatprep.subr.mxu0 %v216_v16  ;;  %483 = vmatprep.subr.mxu1 %v216_v16 }
  0xae   : > { %469 = vmatpush3.msra.mxu0 %v216_v16  ;;  %489 = vmatpush3.msra.mxu1 %v216_v16 }
  0xaf   : > { %470 = vmatprep.subr.mxu0 %v208_v4  ;;  %484 = vmatprep.subr.mxu1 %v208_v4 }
  0xb0   : > { %471 = vmatpush3.msra.mxu0 %v208_v4  ;;  %490 = vmatpush3.msra.mxu1 %v208_v4 }
  0xb1   : > { %472 = vmatprep.subr.mxu0 %v207_v7  ;;  %485 = vmatprep.subr.mxu1 %v207_v7 }
  0xb2   : > { %473 = vmatpush3.msra.mxu0 %v207_v7  ;;  %491 = vmatpush3.msra.mxu1 %v207_v7 }
  0xb3   : > { %475 = vmatmul.mubr.msk.f32.vlgmr.msra.gmra.mxu0 %vm251_vm2, %v210_v17  ;;  %478 = vmatmul.mubr.msk.f32.vlgmr.msra.gmra.mxu1 %vm251_vm2, %v212_v18 }
  0xb5   : > { %v234_v19 = vpop.permute.xlu0 %233  ;;  %v239_v20 = vpop.permute.xlu1 %238 }
  0xb9   : > { %v249_v21 = vpop.permute.xlu0 %248  ;;  %v244_v24 = vpop.permute.xlu1 %243 }
 0x173   : > { %v476_v22 = vpop.f32.mrf.mxu0  ;;  %v479_v23 = vpop.f32.mrf.mxu1 }
 0x174   : > { %v336_v25 = vadd.f32 %v476_v22, %v239_v20  ;;  %v346_v26 = vadd.f32 %v479_v23, %v249_v21 }
 0x175   : > { %v330_v27 = vpop.f32.mrf.mxu0  ;;  %v340_v28 = vpop.f32.mrf.mxu1 }
 0x176   : > { %351 = vst.msk [vmem:[%s200_s10 + $0x8] sm:$0xff] %vm349_vm3, %v336_v25  ;;  %353 = vst.msk [vmem:[%s200_s10 + $0x18] sm:$0xff] %vm349_vm3, %v346_v26  ;;  %v331_v29 = vadd.f32 %v330_v27, %v234_v19  ;;  %v341_v30 = vadd.f32 %v340_v28, %v244_v24 }
 0x178   : > { %350 = vst.msk [vmem:[%s200_s10] sm:$0xff] %vm349_vm3, %v331_v29  ;;  %352 = vst.msk [vmem:[%s200_s10 + $0x10] sm:$0xff] %vm349_vm3, %v341_v30 }
 0x179 PF: > { %s15_s12 = sadd.s32 1, %s594_s12  }
 0x17a   : > { %p12_p2 = scmp.ge.s32.totalorder %s15_s12, 4  }
 0x17c   :  { %14 = sbr.rel (!%p12_p2) target bundleno = 2 (0x2), region = 71 }
 0x181   :  { %375 = vsyncpa [#allocation3], 1 }
 0x182   :  { %377 = vsyncpa [#allocation3 + $0x1], 1 }
 0x183   :  { %378 = vsyncpa [#allocation5], 1 }

// kernel: _lambda_.9
= control target key start
LH: loop header
LB: loop body
LE: loop exit
PB: predicated region body
PF: predicated region fallthrough
CT: control target
= control target key end

     0   :  { %8 = vsyncpa [#allocation3], 0  ;;  %s867_s0 = inlined_call_operand.vmem [shape: f32[2,32,10], index: 0, kind: input, shape index: {}]   ;;  %s868_s1 = inlined_call_operand.hbm [shape: f32[64,96], index: 1, kind: input, shape index: {}]   ;;  %s869_s2 = inlined_call_operand.hbm [shape: f32[64,1], index: 2, kind: input, shape index: {}]   ;;  %s870_s3 = inlined_call_operand.vmem [shape: f32[2,64,8], index: 3, kind: output, shape index: {}]  }
   0x1   :  { %9 = vsyncpa [#allocation5], 0  ;;  %s753_s12 = smov 0  }
   0x2 LB: > { %s759_s13 = sadd.s32 4294967295, %s724_s12   ;;  %p519_p0 = scmp.ge.s32.totalorder %s724_s12, 1  ;;  %s724_s12 = sphi %s753_s12, %s15_s12  }
   0x3   : > { %p114_p1 = scmp.lt.s32.totalorder %s724_s12, 3  ;;  %s726_s14 = smov [#allocation2]  }
   0x4   : > { %s126_s15 = sshll.u32 %s726_s14, 4  ;;  %p637_p3 = scmp.eq.s32.totalorder %s759_s13, 0  ;;  %s127_s15 = int_to_ptr.vmem [resolvable:$true] %s126_s15 }
   0x5   : > { %p763_p2 = pnand %p519_p0, %p114_p1  ;;  %s727_s17 = smov [#allocation4]  }
   0x6   : > { %s139_s18 = sshll.u32 %s727_s17, 4  ;;  %s669_s20 = scalar_lea.vmem %s127_s15, 1024  ;;  %s140_s18 = int_to_ptr.vmem [resolvable:$true] %s139_s18 }
   0x7   : > { %p630_p4 = pneg %p763_p2  ;;  %p670_p7 = scmp.ne.s32.totalorder %s127_s15, %s669_s20 }
   0x8   : > { %p677_p10 = scmp.lt.s32.totalorder %s127_s15, %s127_s15  ;;  %p678_p11 = scmp.lt.s32.totalorder %s669_s20, %s669_s20 }
   0x9   : > { %p772_p5 = pnand %p637_p3, %p630_p4 }
   0xa   : > { %p679_p12 = por %p678_p11, %p677_p10 }
   0xb   : > { %p660_p6 = pneg %p772_p5 }
   0xd   : > { %p672_p8 = pnand %p670_p7, %p660_p6 }
   0xf   : > { %p673_p9 = pneg %p672_p8 }
  0x11   : > { %p680_p13 = pnand %p679_p12, %p673_p9 }
  0x13   : > { %683 = shalt.err (!%p680_p13)
}
  0x14   : > { %s728_s21 = smov 128   ;;  %s729_s22 = smov 8  }
  0x15   : > { %633 = dma.hbm_to_vmem [thread:$0]  (!%p772_p5), %s868_s1, 1024, %s127_s15, [#allocation3], %s728_s21, %s728_s21, %s729_s22  }
  0x16   : > { %s695_s25 = scalar_lea.vmem %s140_s18, 1024  ;;  %p703_p7 = scmp.lt.s32.totalorder %s140_s18, %s140_s18 }
  0x17   : > { %p696_p0 = scmp.ne.s32.totalorder %s140_s18, %s695_s25  ;;  %p704_p8 = scmp.lt.s32.totalorder %s695_s25, %s695_s25 }
  0x19   : > { %p698_p1 = pnand %p696_p0, %p660_p6  ;;  %p705_p10 = por %p704_p8, %p703_p7 }
  0x1b   : > { %p699_p4 = pneg %p698_p1 }
  0x1d   : > { %p706_p9 = pnand %p705_p10, %p699_p4 }
  0x1f   : > { %709 = shalt.err (!%p706_p9)
}
  0x20   : > { %636 = dma.hbm_to_vmem [thread:$0]  (!%p772_p5), %s869_s2, 1024, %s140_s18, [#allocation5], %s728_s21, %s728_s21, %s729_s22  }
  0x21   : > { %163 = sbr.rel (%p763_p2) target bundleno = 393 (0x189), region = 32 }
  0x26   : > { %715 = dma.done.wait (%p637_p3), [#allocation3], 1024  }
  0x27   : > { %717 = vsyncadd (%p637_p3), [#allocation3], 4294966272 }
  0x28   : > { %719 = dma.done.wait (%p637_p3), [#allocation5], 1024  }
  0x29   : > { %721 = vsyncadd (%p637_p3), [#allocation5], 4294966272  ;;  %p191_p6 = scmp.lt.s32.totalorder %s759_s13, 1  ;;  %s730_s5 = smov 126   ;;  %v217_v12 = vld [vmem:[#allocation2] sm:$0xff]  ;;  %vm301_vm4 = vcmask 785408  }
  0x2a   : > { %s731_s6 = smov 127   ;;  %v221_v13 = vld [vmem:[#allocation2 + $0x20] sm:$0xff]  ;;  %586 = vmatprep.mubr.msk.f32.mxu0 %vm301_vm4, %v217_v12  ;;  %v254_v15 = vld [vmem:[#allocation4 + $0x8] sm:$0xff]  ;;  %v732_v16 = vmov 0   ;;  %v256_v17 = vld [vmem:[#allocation4 + $0x18] sm:$0xff]  ;;  %vm431_vm5 = vcmask 64512  }
  0x2b   : > { %s874_s13 = smov (!%p191_p6, %s759_s13), 1  ;;  %592 = vmatprep.mubr.msk.f32.mxu1 %vm301_vm4, %v221_v13  ;;  %v253_v14 = vld [vmem:[#allocation4] sm:$0xff]  ;;  %657 = vset.pattern.permute.xlu1 %v732_v16  ;;  %v255_v18 = vld [vmem:[#allocation4 + $0x10] sm:$0xff]  ;;  %v258_v19 = vld [vmem:[#allocation4 + $0x28] sm:$0xff] }
  0x2c   : > { %s540_s28 = sshll.u32 %s874_s13, 5  ;;  %656 = vset.pattern.permute.xlu0 %v732_v16  ;;  %v257_v20 = vld [vmem:[#allocation4 + $0x20] sm:$0xff]  ;;  %v260_v21 = vld [vmem:[#allocation4 + $0x38] sm:$0xff]  ;;  %v259_v22 = vld [vmem:[#allocation4 + $0x30] sm:$0xff]  ;;  %s541_s7 = sshll.u32 %s874_s13, 6 }
  0x2d   : > { %s195_s4 = scalar_lea.vmem %s867_s0, %s540_s28  ;;  %v218_v31 = vld [vmem:[#allocation2 + $0x8] sm:$0xff]  ;;  %v219_v33 = vld [vmem:[#allocation2 + $0x10] sm:$0xff]  ;;  %v220_v35 = vld [vmem:[#allocation2 + $0x18] sm:$0xff]  ;;  %s200_s10 = scalar_lea.vmem %s870_s3, %s541_s7 }
  0x2e   : > { %v204_v0 = vld [vmem:[%s195_s4 + $0x18] sm:$0xff]  ;;  %v203_v1 = vld [vmem:[%s195_s4 + $0x10] sm:$0xff]  ;;  %v202_v2 = vld [vmem:[%s195_s4 + $0x8] sm:$0xff] }
  0x2f   : > { %vm208_vm0 = vcmp.ge.f32.partialorder %v204_v0, 0.0  ;;  %v212_v3 = vmul.f32 0.1, %v204_v0  ;;  %v211_v4 = vmul.f32 0.1, %v203_v1  ;;  %vm207_vm1 = vcmp.ge.f32.partialorder %v203_v1, 0.0 }
  0x30   : > { %vm206_vm2 = vcmp.ge.f32.partialorder %v202_v2, 0.0  ;;  %v210_v5 = vmul.f32 0.1, %v202_v2  ;;  %v201_v6 = vld [vmem:[%s195_s4] sm:$0xff]  ;;  %v222_v32 = vld [vmem:[#allocation2 + $0x28] sm:$0xff]  ;;  %v223_v34 = vld [vmem:[#allocation2 + $0x30] sm:$0xff] }
  0x31   : > { %v812_v7 = vsel %vm208_vm0, %v204_v0, %v212_v3  ;;  %vm205_vm3 = vcmp.ge.f32.partialorder %v201_v6, 0.0  ;;  %v209_v8 = vmul.f32 0.1, %v201_v6  ;;  %v817_v10 = vsel %vm207_vm1, %v203_v1, %v211_v4  ;;  %v224_v36 = vld [vmem:[#allocation2 + $0x38] sm:$0xff] }
  0x32   : > { %247 = vrot.lane.b32.xlu0 %v812_v7, %s730_s5  ;;  %v815_v9 = vsel %vm206_vm2, %v202_v2, %v210_v5 }
  0x33   : > { %243 = vrot.lane.b32.xlu1 %v815_v9, %s730_s5  ;;  %v820_v11 = vsel %vm205_vm3, %v201_v6, %v209_v8 }
  0x36   : > { %245 = vrot.lane.b32.xlu0 %v817_v10, %s730_s5 }
  0x37   : > { %241 = vrot.lane.b32.xlu1 %v820_v11, %s730_s5 }
  0x3a   : > { %235 = vrot.lane.b32.xlu0 %v812_v7, %s731_s6 }
  0x3b   : > { %233 = vrot.lane.b32.xlu1 %v817_v10, %s731_s6 }
  0x3e   : > { %231 = vrot.lane.b32.xlu0 %v815_v9, %s731_s6 }
  0x3f   : > { %229 = vrot.lane.b32.xlu1 %v820_v11, %s731_s6 }
  0x42   : > { %263 = vperm.xlu0 %656, %v253_v14  }
  0x43   : > { %268 = vperm.xlu1 %657, %v254_v15  }
  0x46   : > { %278 = vperm.xlu0 %656, %v256_v17  }
  0x47   : > { %273 = vperm.xlu1 %657, %v255_v18  }
  0x4a   : > { %288 = vperm.xlu0 %656, %v258_v19  }
  0x4b   : > { %283 = vperm.xlu1 %657, %v257_v20  }
  0x4e   : > { %298 = vperm.xlu0 %656, %v260_v21  }
  0x4f   : > { %293 = vperm.xlu1 %657, %v259_v22  }
  0xa4   : > { %v248_v23 = vpop.permute.xlu0 %247 }
  0xa5   : > { %562 = vmatprep.subr.mxu0 %v248_v23  ;;  %598 = vmatprep.subr.mxu1 %v248_v23  ;;  %v244_v24 = vpop.permute.xlu1 %243 }
  0xa6   : > { %563 = vmatpush3.msra.mxu0 %v248_v23  ;;  %610 = vmatpush3.msra.mxu1 %v248_v23 }
  0xa8   : > { %v246_v25 = vpop.permute.xlu0 %245 }
  0xa9   : > { %564 = vmatprep.subr.mxu0 %v246_v25  ;;  %599 = vmatprep.subr.mxu1 %v246_v25  ;;  %v242_v26 = vpop.permute.xlu1 %241 }
  0xaa   : > { %565 = vmatpush3.msra.mxu0 %v246_v25  ;;  %611 = vmatpush3.msra.mxu1 %v246_v25 }
  0xab   : > { %566 = vmatprep.subr.mxu0 %v244_v24  ;;  %600 = vmatprep.subr.mxu1 %v244_v24 }
  0xac   : > { %567 = vmatpush3.msra.mxu0 %v244_v24  ;;  %612 = vmatpush3.msra.mxu1 %v244_v24  ;;  %v236_v27 = vpop.permute.xlu0 %235 }
  0xad   : > { %568 = vmatprep.subr.mxu0 %v242_v26  ;;  %601 = vmatprep.subr.mxu1 %v242_v26  ;;  %v234_v28 = vpop.permute.xlu1 %233 }
  0xae   : > { %569 = vmatpush3.msra.mxu0 %v242_v26  ;;  %613 = vmatpush3.msra.mxu1 %v242_v26 }
  0xaf   : > { %570 = vmatprep.subr.mxu0 %v236_v27  ;;  %602 = vmatprep.subr.mxu1 %v236_v27 }
  0xb0   : > { %571 = vmatpush3.msra.mxu0 %v236_v27  ;;  %614 = vmatpush3.msra.mxu1 %v236_v27  ;;  %v232_v29 = vpop.permute.xlu0 %231 }
  0xb1   : > { %572 = vmatprep.subr.mxu0 %v234_v28  ;;  %603 = vmatprep.subr.mxu1 %v234_v28  ;;  %v230_v30 = vpop.permute.xlu1 %229 }
  0xb2   : > { %573 = vmatpush3.msra.mxu0 %v234_v28  ;;  %615 = vmatpush3.msra.mxu1 %v234_v28 }
  0xb3   : > { %574 = vmatprep.subr.mxu0 %v232_v29  ;;  %604 = vmatprep.subr.mxu1 %v232_v29 }
  0xb4   : > { %575 = vmatpush3.msra.mxu0 %v232_v29  ;;  %616 = vmatpush3.msra.mxu1 %v232_v29 }
  0xb5   : > { %576 = vmatprep.subr.mxu0 %v230_v30  ;;  %605 = vmatprep.subr.mxu1 %v230_v30 }
  0xb6   : > { %577 = vmatpush3.msra.mxu0 %v230_v30  ;;  %617 = vmatpush3.msra.mxu1 %v230_v30 }
  0xb7   : > { %578 = vmatprep.subr.mxu0 %v812_v7  ;;  %606 = vmatprep.subr.mxu1 %v812_v7 }
  0xb8   : > { %579 = vmatpush3.msra.mxu0 %v812_v7  ;;  %618 = vmatpush3.msra.mxu1 %v812_v7 }
  0xb9   : > { %580 = vmatprep.subr.mxu0 %v817_v10  ;;  %607 = vmatprep.subr.mxu1 %v817_v10 }
  0xba   : > { %581 = vmatpush3.msra.mxu0 %v817_v10  ;;  %619 = vmatpush3.msra.mxu1 %v817_v10 }
  0xbb   : > { %582 = vmatprep.subr.mxu0 %v815_v9  ;;  %608 = vmatprep.subr.mxu1 %v815_v9 }
  0xbc   : > { %583 = vmatpush3.msra.mxu0 %v815_v9  ;;  %620 = vmatpush3.msra.mxu1 %v815_v9 }
  0xbd   : > { %584 = vmatprep.subr.mxu0 %v820_v11  ;;  %609 = vmatprep.subr.mxu1 %v820_v11  ;;  %v264_v37 = vpop.permute.xlu0 %263 }
  0xbe   : > { %585 = vmatpush3.msra.mxu0 %v820_v11  ;;  %621 = vmatpush3.msra.mxu1 %v820_v11  ;;  %v269_v38 = vpop.permute.xlu1 %268 }
  0xbf   : > { %587 = vmatmul.mubr.msk.f32.vlgmr.msra.gmra.mxu0 %vm301_vm4, %v218_v31  ;;  %593 = vmatmul.mubr.msk.f32.vlgmr.msra.gmra.mxu1 %vm301_vm4, %v222_v32 }
  0xc0   : > { %589 = vmatprep.mubr.msk.f32.mxu0 %vm301_vm4, %v219_v33  ;;  %595 = vmatprep.mubr.msk.f32.mxu1 %vm301_vm4, %v223_v34 }
  0xc1   : > { %v279_v39 = vpop.permute.xlu0 %278 }
  0xc2   : > { %v274_v40 = vpop.permute.xlu1 %273 }
  0xc3   : > { %590 = vmatmul.mubr.msk.f32.gmra.mxu0 %vm301_vm4, %v220_v35  ;;  %596 = vmatmul.mubr.msk.f32.gmra.mxu1 %vm301_vm4, %v224_v36 }
  0xc5   : > { %v289_v41 = vpop.permute.xlu0 %288 }
  0xc6   : > { %v284_v42 = vpop.permute.xlu1 %283 }
  0xc9   : > { %v299_v49 = vpop.permute.xlu0 %298 }
  0xca   : > { %v294_v54 = vpop.permute.xlu1 %293 }
 0x17f   : > { %v588_v43 = vpop.f32.mrf.mxu0  ;;  %v594_v44 = vpop.f32.mrf.mxu1 }
 0x180   : > { %v398_v45 = vadd.f32 %v588_v43, %v269_v38  ;;  %v418_v46 = vadd.f32 %v594_v44, %v289_v41 }
 0x181   : > { %v392_v47 = vpop.f32.mrf.mxu0  ;;  %v412_v48 = vpop.f32.mrf.mxu1 }
 0x182   : > { %433 = vst.msk [vmem:[%s200_s10 + $0x8] sm:$0xff] %vm431_vm5, %v398_v45  ;;  %437 = vst.msk [vmem:[%s200_s10 + $0x28] sm:$0xff] %vm431_vm5, %v418_v46  ;;  %v393_v50 = vadd.f32 %v392_v47, %v264_v37  ;;  %v413_v51 = vadd.f32 %v412_v48, %v284_v42 }
 0x183   : > { %v591_v52 = vpop.f32.mrf.mxu0  ;;  %v597_v53 = vpop.f32.mrf.mxu1 }
 0x184   : > { %432 = vst.msk [vmem:[%s200_s10] sm:$0xff] %vm431_vm5, %v393_v50  ;;  %436 = vst.msk [vmem:[%s200_s10 + $0x20] sm:$0xff] %vm431_vm5, %v413_v51  ;;  %v408_v55 = vadd.f32 %v591_v52, %v279_v39  ;;  %v428_v56 = vadd.f32 %v597_v53, %v299_v49 }
 0x185   : > { %v402_v57 = vpop.f32.mrf.mxu0  ;;  %v422_v58 = vpop.f32.mrf.mxu1 }
 0x186   : > { %435 = vst.msk [vmem:[%s200_s10 + $0x18] sm:$0xff] %vm431_vm5, %v408_v55  ;;  %439 = vst.msk [vmem:[%s200_s10 + $0x38] sm:$0xff] %vm431_vm5, %v428_v56  ;;  %v403_v59 = vadd.f32 %v402_v57, %v274_v40  ;;  %v423_v60 = vadd.f32 %v422_v58, %v294_v54 }
 0x188   : > { %434 = vst.msk [vmem:[%s200_s10 + $0x10] sm:$0xff] %vm431_vm5, %v403_v59  ;;  %438 = vst.msk [vmem:[%s200_s10 + $0x30] sm:$0xff] %vm431_vm5, %v423_v60 }
 0x189 PF: > { %s15_s12 = sadd.s32 1, %s724_s12  }
 0x18a   : > { %p12_p2 = scmp.ge.s32.totalorder %s15_s12, 4  }
 0x18c   :  { %14 = sbr.rel (!%p12_p2) target bundleno = 2 (0x2), region = 71 }
 0x191   :  { %461 = vsyncpa [#allocation3], 1 }
 0x192   :  { %463 = vsyncpa [#allocation3 + $0x1], 1 }
 0x193   :  { %464 = vsyncpa [#allocation5], 1 }

// kernel: _lambda_.8
= control target key start
LH: loop header
LB: loop body
LE: loop exit
PB: predicated region body
PF: predicated region fallthrough
CT: control target
= control target key end

     0   :  { %11 = vsyncpa [#allocation3], 0  ;;  %s1344_s0 = inlined_call_operand.vmem [shape: f32[2,32,14], index: 0, kind: input, shape index: {}]   ;;  %s1345_s1 = inlined_call_operand.vmem [shape: f32[2,16,1], index: 1, kind: input, shape index: {}]   ;;  %s1346_s2 = inlined_call_operand.hbm [shape: f32[32,224], index: 2, kind: input, shape index: {}]   ;;  %s1347_s3 = inlined_call_operand.hbm [shape: f32[32,1], index: 3, kind: input, shape index: {}]   ;;  %s1348_s4 = inlined_call_operand.hbm [shape: f32[32,16], index: 4, kind: input, shape index: {}]   ;;  %s1349_s5 = inlined_call_operand.hbm [shape: f32[32,1], index: 5, kind: input, shape index: {}]   ;;  %s1350_s6 = inlined_call_operand.vmem [shape: f32[2,32,8], index: 6, kind: output, shape index: {}]  }
   0x1   :  { %12 = vsyncpa [#allocation5], 0 }
   0x2   :  { %13 = vsyncpa [#allocation8], 0  ;;  %s1128_s21 = smov 0  }
   0x3 LB: > { %s1077_s22 = smov [#allocation4]   ;;  %s1134_s24 = sadd.s32 4294967295, %s1075_s21   ;;  %s1075_s21 = sphi %s1128_s21, %s19_s21  }
   0x4   : > { %s211_s23 = sshll.u32 %s1077_s22, 4  ;;  %p788_p0 = scmp.ge.s32.totalorder %s1075_s21, 1  ;;  %s212_s23 = int_to_ptr.vmem [resolvable:$true] %s211_s23 }
   0x5   : > { %p186_p1 = scmp.lt.s32.totalorder %s1075_s21, 3  ;;  %p919_p2 = scmp.eq.s32.totalorder %s1134_s24, 0 }
   0x6   : > { %s1078_s26 = smov [#allocation2]   ;;  %s1079_s29 = smov [#allocation6]  }
   0x7   : > { %p1139_p3 = pnand %p788_p0, %p186_p1  ;;  %s198_s27 = sshll.u32 %s1078_s26, 4  ;;  %s1145_s27 = int_to_ptr.vmem [resolvable:$true] %s198_s27 }
   0x8   : > { %s1153_s30 = sshll.u32 %s1079_s29, 4  ;;  %s964_s7 = scalar_lea.vmem %s212_s23, 512  ;;  %s225_s30 = int_to_ptr.vmem [resolvable:$true] %s1153_s30 }
   0x9   : > { %p906_p4 = pneg %p1139_p3  ;;  %p965_p7 = scmp.ne.s32.totalorder %s212_s23, %s964_s7 }
   0xa   : > { %p972_p10 = scmp.lt.s32.totalorder %s212_s23, %s212_s23  ;;  %p973_p11 = scmp.lt.s32.totalorder %s964_s7, %s964_s7 }
   0xb   : > { %p1149_p5 = pnand %p919_p2, %p906_p4 }
   0xc   : > { %p974_p12 = por %p973_p11, %p972_p10 }
   0xd   : > { %p955_p6 = pneg %p1149_p5 }
   0xf   : > { %p967_p8 = pnand %p965_p7, %p955_p6 }
  0x11   : > { %p968_p9 = pneg %p967_p8 }
  0x13   : > { %p975_p13 = pnand %p974_p12, %p968_p9 }
  0x15   : > { %978 = shalt.err (!%p975_p13)
}
  0x16   : > { %s1080_s8 = smov 128   ;;  %s1081_s9 = smov 8  }
  0x17   : > { %912 = dma.hbm_to_vmem [thread:$0]  (!%p1149_p5), %s1347_s3, 512, %s212_s23, [#allocation5], %s1080_s8, %s1080_s8, %s1081_s9  }
  0x18   : > { %s990_s12 = scalar_lea.vmem %s1145_s27, 1024  ;;  %p998_p7 = scmp.lt.s32.totalorder %s1145_s27, %s1145_s27 }
  0x19   : > { %p991_p0 = scmp.ne.s32.totalorder %s1145_s27, %s990_s12  ;;  %p999_p8 = scmp.lt.s32.totalorder %s990_s12, %s990_s12 }
  0x1b   : > { %p993_p1 = pnand %p991_p0, %p955_p6  ;;  %p1000_p9 = por %p999_p8, %p998_p7 }
  0x1d   : > { %p994_p4 = pneg %p993_p1 }
  0x1f   : > { %p1001_p10 = pnand %p1000_p9, %p994_p4 }
  0x21   : > { %1004 = shalt.err (!%p1001_p10)
}
  0x22   : > { %s1082_s13 = smov 256   ;;  %s1083_s14 = smov 16  }
  0x23   : > { %909 = dma.hbm_to_vmem [thread:$0]  (!%p1149_p5), %s1346_s2, 1024, %s1145_s27, [#allocation3], %s1082_s13, %s1082_s13, %s1083_s14  }
  0x24   : > { %s1084_s17 = smov [#allocation7]   ;;  %s1016_s19 = scalar_lea.vmem %s225_s30, 512 }
  0x25   : > { %s237_s18 = sshll.u32 %s1084_s17, 4  ;;  %p1017_p11 = scmp.ne.s32.totalorder %s225_s30, %s1016_s19  ;;  %s238_s18 = int_to_ptr.vmem [resolvable:$true] %s237_s18 }
  0x26   : > { %p1024_p0 = scmp.lt.s32.totalorder %s225_s30, %s225_s30  ;;  %p1025_p1 = scmp.lt.s32.totalorder %s1016_s19, %s1016_s19 }
  0x27   : > { %p1019_p12 = pnand %p1017_p11, %p955_p6 }
  0x28   : > { %p1026_p4 = por %p1025_p1, %p1024_p0 }
  0x29   : > { %p1020_p13 = pneg %p1019_p12 }
  0x2b   : > { %p1027_p7 = pnand %p1026_p4, %p1020_p13 }
  0x2d   : > { %1030 = shalt.err (!%p1027_p7)
}
  0x2e   : > { %915 = dma.hbm_to_vmem [thread:$0]  (!%p1149_p5), %s1348_s4, 512, %s225_s30, [#allocation5], %s1080_s8, %s1080_s8, %s1081_s9  }
  0x2f   : > { %s1042_s23 = scalar_lea.vmem %s238_s18, 512  ;;  %p1050_p11 = scmp.lt.s32.totalorder %s238_s18, %s238_s18 }
  0x30   : > { %p1043_p8 = scmp.ne.s32.totalorder %s238_s18, %s1042_s23  ;;  %p1051_p12 = scmp.lt.s32.totalorder %s1042_s23, %s1042_s23 }
  0x32   : > { %p1045_p9 = pnand %p1043_p8, %p955_p6  ;;  %p1052_p13 = por %p1051_p12, %p1050_p11 }
  0x34   : > { %p1046_p10 = pneg %p1045_p9 }
  0x36   : > { %p1053_p0 = pnand %p1052_p13, %p1046_p10 }
  0x38   : > { %1056 = shalt.err (!%p1053_p0)
}
  0x39   : > { %918 = dma.hbm_to_vmem [thread:$0]  (!%p1149_p5), %s1349_s5, 512, %s238_s18, [#allocation8], %s1080_s8, %s1080_s8, %s1081_s9  }
  0x3a   : > { %269 = sbr.rel (%p1139_p3) target bundleno = 578 (0x242), region = 44 }
  0x3f   : > { %1062 = dma.done.wait (%p919_p2), [#allocation3], 1024  }
  0x40   : > { %1064 = vsyncadd (%p919_p2), [#allocation3], 4294966272 }
  0x41   : > { %1066 = dma.done.wait (%p919_p2), [#allocation5], 1024  }
  0x42   : > { %1068 = vsyncadd (%p919_p2), [#allocation5], 4294966272 }
  0x43   : > { %1070 = dma.done.wait (%p919_p2), [#allocation8], 512  }
  0x44   : > { %1072 = vsyncadd (%p919_p2), [#allocation8], 4294966784  ;;  %p316_p3 = scmp.lt.s32.totalorder %s1134_s24, 1  ;;  %v1085_v0 = vmov 0.0   ;;  %s1086_s7 = smov 125   ;;  %v342_v5 = vld [vmem:[#allocation2 + $0x38] sm:$0xff] }
  0x45   : > { %456 = vmatprep.subr.mxu0 %v1085_v0  ;;  %834 = vmatprep.subr.mxu1 %v1085_v0  ;;  %s1087_s8 = smov 126   ;;  %s1088_s9 = smov 127   ;;  %vm443_vm0 = vcmask 785408   ;;  %v419_v6 = vld [vmem:[#allocation4] sm:$0xff]  ;;  %v336_v7 = vld [vmem:[#allocation2 + $0x8] sm:$0xff]  ;;  %v1092_v8 = vmov 0  }
  0x46   : > { %s1354_s24 = smov (!%p316_p3, %s1134_s24), 1  ;;  %s1089_s10 = smov 122   ;;  %808 = vmatprep.mubr.msk.f32.mxu1 %vm443_vm0, %v342_v5  ;;  %951 = vset.pattern.permute.xlu0 %v1092_v8  ;;  %v420_v9 = vld [vmem:[#allocation4 + $0x8] sm:$0xff]  ;;  %v422_v10 = vld [vmem:[#allocation4 + $0x18] sm:$0xff]  ;;  %v341_v35 = vld [vmem:[#allocation2 + $0x30] sm:$0xff]  ;;  %vm551_vm1 = vcmask 130048  }
  0x47   : > { %s815_s25 = sshll.u32 %s1354_s24, 5  ;;  %s1090_s11 = smov 123   ;;  %805 = vmatprep.mubr.msk.f32.mxu0 %vm443_vm0, %v336_v7  ;;  %952 = vset.pattern.permute.xlu1 %v1092_v8  ;;  %v541_v37 = vld [vmem:[#allocation6] sm:$0xff]  ;;  %v338_v40 = vld [vmem:[#allocation2 + $0x18] sm:$0xff]  ;;  %v542_v41 = vld [vmem:[#allocation6 + $0x8] sm:$0xff]  ;;  %vm673_vm2 = vcmask 64512  }
  0x48   : > { %s320_s30 = scalar_lea.vmem %s1344_s0, %s815_s25  ;;  %s1091_s12 = smov 124   ;;  %v335_v39 = vld [vmem:[#allocation2] sm:$0xff]  ;;  %v543_v42 = vld [vmem:[#allocation6 + $0x10] sm:$0xff]  ;;  %v340_v44 = vld [vmem:[#allocation2 + $0x28] sm:$0xff] }
  0x49   : > { %v1230_v1 = vld [vmem:[%s320_s30 + $0x18] sm:$0xff]  ;;  %v1232_v2 = vld [vmem:[%s320_s30 + $0x8] sm:$0xff]  ;;  %v1236_v3 = vld [vmem:[%s320_s30 + $0x10] sm:$0xff]  ;;  %s816_s13 = sshll.u32 %s1354_s24, 4  ;;  %s330_s19 = scalar_lea.vmem %s1350_s6, %s815_s25 }
  0x4a   : > { %377 = vrot.lane.b32.xlu0 %v1230_v1, %s1086_s7  ;;  %373 = vrot.lane.b32.xlu1 %v1232_v2, %s1086_s7  ;;  %v1238_v4 = vld [vmem:[%s320_s30] sm:$0xff]  ;;  %s325_s16 = scalar_lea.vmem %s1345_s1, %s816_s13  ;;  %v337_v43 = vld [vmem:[#allocation2 + $0x10] sm:$0xff]  ;;  %v544_v45 = vld [vmem:[#allocation6 + $0x18] sm:$0xff] }
  0x4b   : > { %v546_v36 = vld [vmem:[%s325_s16 + $0x8] sm:$0xff]  ;;  %v545_v38 = vld [vmem:[%s325_s16] sm:$0xff]  ;;  %v421_v47 = vld [vmem:[#allocation4 + $0x10] sm:$0xff] }
  0x4c   : > { %v339_v46 = vld [vmem:[#allocation2 + $0x20] sm:$0xff]  ;;  %v548_v50 = vld [vmem:[#allocation7 + $0x8] sm:$0xff]  ;;  %v550_v57 = vld [vmem:[#allocation7 + $0x18] sm:$0xff] }
  0x4d   : > { %v547_v53 = vld [vmem:[#allocation7] sm:$0xff]  ;;  %v549_v61 = vld [vmem:[#allocation7 + $0x10] sm:$0xff] }
  0x4e   : > { %375 = vrot.lane.b32.xlu0 %v1236_v3, %s1086_s7  ;;  %371 = vrot.lane.b32.xlu1 %v1238_v4, %s1086_s7 }
  0x52   : > { %365 = vrot.lane.b32.xlu0 %v1230_v1, %s1087_s8  ;;  %363 = vrot.lane.b32.xlu1 %v1236_v3, %s1087_s8 }
  0x56   : > { %361 = vrot.lane.b32.xlu0 %v1232_v2, %s1087_s8  ;;  %359 = vrot.lane.b32.xlu1 %v1238_v4, %s1087_s8 }
  0x5a   : > { %353 = vrot.lane.b32.xlu0 %v1230_v1, %s1088_s9  ;;  %351 = vrot.lane.b32.xlu1 %v1236_v3, %s1088_s9 }
  0x5e   : > { %349 = vrot.lane.b32.xlu0 %v1232_v2, %s1088_s9  ;;  %347 = vrot.lane.b32.xlu1 %v1238_v4, %s1088_s9 }
  0x62   : > { %413 = vrot.lane.b32.xlu0 %v1230_v1, %s1089_s10  ;;  %411 = vrot.lane.b32.xlu1 %v1236_v3, %s1089_s10 }
  0x66   : > { %409 = vrot.lane.b32.xlu0 %v1232_v2, %s1089_s10  ;;  %407 = vrot.lane.b32.xlu1 %v1238_v4, %s1089_s10 }
  0x6a   : > { %401 = vrot.lane.b32.xlu0 %v1230_v1, %s1090_s11  ;;  %399 = vrot.lane.b32.xlu1 %v1236_v3, %s1090_s11 }
  0x6e   : > { %397 = vrot.lane.b32.xlu0 %v1232_v2, %s1090_s11  ;;  %395 = vrot.lane.b32.xlu1 %v1238_v4, %s1090_s11 }
  0x72   : > { %389 = vrot.lane.b32.xlu0 %v1230_v1, %s1091_s12  ;;  %387 = vrot.lane.b32.xlu1 %v1236_v3, %s1091_s12 }
  0x76   : > { %385 = vrot.lane.b32.xlu0 %v1232_v2, %s1091_s12  ;;  %383 = vrot.lane.b32.xlu1 %v1238_v4, %s1091_s12 }
  0x7a   : > { %425 = vperm.xlu0 %951, %v419_v6   ;;  %430 = vperm.xlu1 %952, %v420_v9  }
  0x7e   : > { %440 = vperm.xlu0 %951, %v422_v10   ;;  %435 = vperm.xlu1 %952, %v421_v47  }
  0xbc   : > { %v378_v11 = vpop.permute.xlu0 %377  ;;  %v374_v12 = vpop.permute.xlu1 %373 }
  0xbd   : > { %457 = vmatpush1.msra.mxu0 %v378_v11  ;;  %862 = vmatpush1.msra.mxu1 %v378_v11 }
  0xbe   : > { %458 = vmatprep.subr.mxu0 %v1085_v0  ;;  %835 = vmatprep.subr.mxu1 %v1085_v0 }
  0xc0   : > { %v376_v13 = vpop.permute.xlu0 %375  ;;  %v372_v14 = vpop.permute.xlu1 %371 }
  0xc1   : > { %459 = vmatpush1.msra.mxu0 %v376_v13  ;;  %863 = vmatpush1.msra.mxu1 %v376_v13 }
  0xc2   : > { %460 = vmatprep.subr.mxu0 %v1085_v0  ;;  %836 = vmatprep.subr.mxu1 %v1085_v0 }
  0xc3   : > { %461 = vmatpush1.msra.mxu0 %v374_v12  ;;  %864 = vmatpush1.msra.mxu1 %v374_v12 }
  0xc4   : > { %462 = vmatprep.subr.mxu0 %v1085_v0  ;;  %837 = vmatprep.subr.mxu1 %v1085_v0  ;;  %v366_v15 = vpop.permute.xlu0 %365  ;;  %v364_v16 = vpop.permute.xlu1 %363 }
  0xc5   : > { %463 = vmatpush1.msra.mxu0 %v372_v14  ;;  %865 = vmatpush1.msra.mxu1 %v372_v14 }
  0xc6   : > { %464 = vmatprep.subr.mxu0 %v1085_v0  ;;  %838 = vmatprep.subr.mxu1 %v1085_v0 }
  0xc7   : > { %465 = vmatpush1.msra.mxu0 %v366_v15  ;;  %866 = vmatpush1.msra.mxu1 %v366_v15 }
  0xc8   : > { %466 = vmatprep.subr.mxu0 %v1085_v0  ;;  %839 = vmatprep.subr.mxu1 %v1085_v0  ;;  %v362_v17 = vpop.permute.xlu0 %361  ;;  %v360_v18 = vpop.permute.xlu1 %359 }
  0xc9   : > { %467 = vmatpush1.msra.mxu0 %v364_v16  ;;  %867 = vmatpush1.msra.mxu1 %v364_v16 }
  0xca   : > { %468 = vmatprep.subr.mxu0 %v1085_v0  ;;  %840 = vmatprep.subr.mxu1 %v1085_v0 }
  0xcb   : > { %469 = vmatpush1.msra.mxu0 %v362_v17  ;;  %868 = vmatpush1.msra.mxu1 %v362_v17 }
  0xcc   : > { %470 = vmatprep.subr.mxu0 %v1085_v0  ;;  %841 = vmatprep.subr.mxu1 %v1085_v0  ;;  %v354_v19 = vpop.permute.xlu0 %353  ;;  %v352_v20 = vpop.permute.xlu1 %351 }
  0xcd   : > { %471 = vmatpush1.msra.mxu0 %v360_v18  ;;  %869 = vmatpush1.msra.mxu1 %v360_v18 }
  0xce   : > { %472 = vmatprep.subr.mxu0 %v1085_v0  ;;  %842 = vmatprep.subr.mxu1 %v1085_v0 }
  0xcf   : > { %473 = vmatpush1.msra.mxu0 %v354_v19  ;;  %870 = vmatpush1.msra.mxu1 %v354_v19 }
  0xd0   : > { %474 = vmatprep.subr.mxu0 %v1085_v0  ;;  %843 = vmatprep.subr.mxu1 %v1085_v0  ;;  %v350_v21 = vpop.permute.xlu0 %349  ;;  %v348_v22 = vpop.permute.xlu1 %347 }
  0xd1   : > { %475 = vmatpush1.msra.mxu0 %v352_v20  ;;  %871 = vmatpush1.msra.mxu1 %v352_v20 }
  0xd2   : > { %476 = vmatprep.subr.mxu0 %v1085_v0  ;;  %844 = vmatprep.subr.mxu1 %v1085_v0 }
  0xd3   : > { %477 = vmatpush1.msra.mxu0 %v350_v21  ;;  %872 = vmatpush1.msra.mxu1 %v350_v21 }
  0xd4   : > { %478 = vmatprep.subr.mxu0 %v1085_v0  ;;  %845 = vmatprep.subr.mxu1 %v1085_v0  ;;  %v414_v23 = vpop.permute.xlu0 %413  ;;  %v412_v24 = vpop.permute.xlu1 %411 }
  0xd5   : > { %479 = vmatpush1.msra.mxu0 %v348_v22  ;;  %873 = vmatpush1.msra.mxu1 %v348_v22 }
  0xd6   : > { %480 = vmatprep.subr.mxu0 %v1085_v0  ;;  %846 = vmatprep.subr.mxu1 %v1085_v0 }
  0xd7   : > { %481 = vmatpush1.msra.mxu0 %v1230_v1  ;;  %874 = vmatpush1.msra.mxu1 %v1230_v1 }
  0xd8   : > { %482 = vmatprep.subr.mxu0 %v1085_v0  ;;  %847 = vmatprep.subr.mxu1 %v1085_v0  ;;  %v410_v25 = vpop.permute.xlu0 %409  ;;  %v408_v26 = vpop.permute.xlu1 %407 }
  0xd9   : > { %483 = vmatpush1.msra.mxu0 %v1236_v3  ;;  %875 = vmatpush1.msra.mxu1 %v1236_v3 }
  0xda   : > { %484 = vmatprep.subr.mxu0 %v1085_v0  ;;  %848 = vmatprep.subr.mxu1 %v1085_v0 }
  0xdb   : > { %485 = vmatpush1.msra.mxu0 %v1232_v2  ;;  %876 = vmatpush1.msra.mxu1 %v1232_v2 }
  0xdc   : > { %486 = vmatprep.subr.mxu0 %v1085_v0  ;;  %849 = vmatprep.subr.mxu1 %v1085_v0  ;;  %v402_v27 = vpop.permute.xlu0 %401  ;;  %v400_v28 = vpop.permute.xlu1 %399 }
  0xdd   : > { %487 = vmatpush1.msra.mxu0 %v1238_v4  ;;  %877 = vmatpush1.msra.mxu1 %v1238_v4 }
  0xde   : > { %496 = vmatprep.subr.mxu0 %v1085_v0  ;;  %850 = vmatprep.subr.mxu1 %v1085_v0 }
  0xdf   : > { %497 = vmatpush2.msra.mxu0 %v414_v23  ;;  %878 = vmatpush2.msra.mxu1 %v414_v23 }
  0xe0   : > { %498 = vmatprep.subr.mxu0 %v1085_v0  ;;  %851 = vmatprep.subr.mxu1 %v1085_v0  ;;  %v398_v29 = vpop.permute.xlu0 %397  ;;  %v396_v30 = vpop.permute.xlu1 %395 }
  0xe1   : > { %499 = vmatpush2.msra.mxu0 %v412_v24  ;;  %879 = vmatpush2.msra.mxu1 %v412_v24 }
  0xe2   : > { %500 = vmatprep.subr.mxu0 %v1085_v0  ;;  %852 = vmatprep.subr.mxu1 %v1085_v0 }
  0xe3   : > { %501 = vmatpush2.msra.mxu0 %v410_v25  ;;  %880 = vmatpush2.msra.mxu1 %v410_v25 }
  0xe4   : > { %502 = vmatprep.subr.mxu0 %v1085_v0  ;;  %853 = vmatprep.subr.mxu1 %v1085_v0  ;;  %v390_v31 = vpop.permute.xlu0 %389  ;;  %v388_v32 = vpop.permute.xlu1 %387 }
  0xe5   : > { %503 = vmatpush2.msra.mxu0 %v408_v26  ;;  %881 = vmatpush2.msra.mxu1 %v408_v26 }
  0xe6   : > { %504 = vmatprep.subr.mxu0 %v1085_v0  ;;  %854 = vmatprep.subr.mxu1 %v1085_v0 }
  0xe7   : > { %505 = vmatpush2.msra.mxu0 %v402_v27  ;;  %882 = vmatpush2.msra.mxu1 %v402_v27 }
  0xe8   : > { %506 = vmatprep.subr.mxu0 %v1085_v0  ;;  %855 = vmatprep.subr.mxu1 %v1085_v0  ;;  %v386_v33 = vpop.permute.xlu0 %385  ;;  %v384_v34 = vpop.permute.xlu1 %383 }
  0xe9   : > { %507 = vmatpush2.msra.mxu0 %v400_v28  ;;  %883 = vmatpush2.msra.mxu1 %v400_v28 }
  0xea   : > { %508 = vmatprep.subr.mxu0 %v1085_v0  ;;  %856 = vmatprep.subr.mxu1 %v1085_v0 }
  0xeb   : > { %509 = vmatpush2.msra.mxu0 %v398_v29  ;;  %884 = vmatpush2.msra.mxu1 %v398_v29 }
  0xec   : > { %510 = vmatprep.subr.mxu0 %v1085_v0  ;;  %857 = vmatprep.subr.mxu1 %v1085_v0 }
  0xed   : > { %511 = vmatpush2.msra.mxu0 %v396_v30  ;;  %885 = vmatpush2.msra.mxu1 %v396_v30 }
  0xee   : > { %512 = vmatprep.subr.mxu0 %v1085_v0  ;;  %858 = vmatprep.subr.mxu1 %v1085_v0 }
  0xef   : > { %513 = vmatpush2.msra.mxu0 %v390_v31  ;;  %886 = vmatpush2.msra.mxu1 %v390_v31 }
  0xf0   : > { %514 = vmatprep.subr.mxu0 %v1085_v0  ;;  %859 = vmatprep.subr.mxu1 %v1085_v0 }
  0xf1   : > { %515 = vmatpush2.msra.mxu0 %v388_v32  ;;  %887 = vmatpush2.msra.mxu1 %v388_v32 }
  0xf2   : > { %516 = vmatprep.subr.mxu0 %v1085_v0  ;;  %860 = vmatprep.subr.mxu1 %v1085_v0 }
  0xf3   : > { %517 = vmatpush2.msra.mxu0 %v386_v33  ;;  %888 = vmatpush2.msra.mxu1 %v386_v33 }
  0xf4   : > { %518 = vmatprep.subr.mxu0 %v1085_v0  ;;  %861 = vmatprep.subr.mxu1 %v1085_v0 }
  0xf5   : > { %519 = vmatpush2.msra.mxu0 %v384_v34  ;;  %889 = vmatpush2.msra.mxu1 %v384_v34  ;;  %v426_v4 = vpop.permute.xlu0 %425  ;;  %v431_v5 = vpop.permute.xlu1 %430 }
  0xf6   : > { %536 = vmatmul.mubr.f32.vlgmr.msra.gmra.mxu1 %v341_v35  ;;  %824 = vmatprep.subr.mxu1 %v546_v36 }
  0xf7   : > { %825 = vmatpush3.msra.mxu1 %v546_v36  ;;  %828 = vmatprep.mubr.msk.f32.mxu1 %vm551_vm1, %v541_v37 }
  0xf8   : > { %826 = vmatprep.subr.mxu1 %v545_v38  ;;  %521 = vmatmul.mubr.f32.vlgmr.msra.gmra.mxu0 %v335_v39 }
  0xf9   : > { %827 = vmatpush3.msra.mxu1 %v545_v38  ;;  %806 = vmatprep.mubr.msk.f32.mxu0 %vm443_vm0, %v338_v40  ;;  %v441_v6 = vpop.permute.xlu0 %440  ;;  %v436_v7 = vpop.permute.xlu1 %435 }
  0xfa   : > { %829 = vmatmul.mubr.msk.f32.vlgmr.msra.gmra.mxu1 %vm551_vm1, %v542_v41 }
  0xfb   : > { %831 = vmatprep.mubr.msk.f32.mxu1 %vm551_vm1, %v543_v42 }
  0xfc   : > { %526 = vmatmul.mubr.f32.gmra.mxu0 %v337_v43 }
  0xfd   : > { %807 = vmatprep.mubr.msk.f32.mxu0 %vm443_vm0, %v340_v44 }
  0xfe   : > { %832 = vmatmul.mubr.msk.f32.gmra.mxu1 %vm551_vm1, %v544_v45 }
 0x100   : > { %531 = vmatmul.mubr.f32.gmra.mxu0 %v339_v46 }
 0x1b6   : > { %v537_v48 = vpop.f32.mrf.mxu1 }
 0x1b7   : > { %v538_v13 = vadd.f32 %v537_v48, %v441_v6 }
 0x1b8   : > { %v539_v49 = vpop.f32.mrf.mxu1  ;;  %v522_v51 = vpop.f32.mrf.mxu0 }
 0x1b9   : > { %v523_v10 = vadd.f32 %v522_v51, %v426_v4 }
 0x1ba   : > { %v830_v52 = vpop.f32.mrf.mxu1  ;;  %v524_v54 = vpop.f32.mrf.mxu0 }
 0x1bb   : > { %v636_v55 = vadd.f32 %v830_v52, %v548_v50 }
 0x1bc   : > { %v630_v56 = vpop.f32.mrf.mxu1  ;;  %v527_v58 = vpop.f32.mrf.mxu0 }
 0x1bd   : > { %v631_v59 = vadd.f32 %v630_v56, %v547_v53  ;;  %656 = vperm.xlu0 %951, %v636_v55   ;;  %v528_v8 = vadd.f32 %v527_v58, %v431_v5 }
 0x1be   : > { %v833_v60 = vpop.f32.mrf.mxu1  ;;  %v529_v62 = vpop.f32.mrf.mxu0 }
 0x1bf   : > { %v646_v63 = vadd.f32 %v833_v60, %v550_v57  ;;  %651 = vperm.xlu1 %952, %v631_v59  }
 0x1c0   : > { %v640_v0 = vpop.f32.mrf.mxu1  ;;  %v532_v1 = vpop.f32.mrf.mxu0 }
 0x1c1   : > { %v641_v2 = vadd.f32 %v640_v0, %v549_v61  ;;  %666 = vperm.xlu0 %951, %v646_v63   ;;  %v533_v16 = vadd.f32 %v532_v1, %v436_v7 }
 0x1c2   : > { %v534_v3 = vpop.f32.mrf.mxu0 }
 0x1c3   : > { %661 = vperm.xlu1 %952, %v641_v2  }
 0x238   : > { %v657_v9 = vpop.permute.xlu0 %656 }
 0x239   : > { %v670_v11 = vadd.f32 %v657_v9, %v528_v8 }
 0x23a   : > { %v652_v12 = vpop.permute.xlu1 %651 }
 0x23b   : > { %675 = vst.msk [vmem:[%s330_s19 + $0x8] sm:$0xff] %vm673_vm2, %v670_v11  ;;  %v669_v14 = vadd.f32 %v652_v12, %v523_v10 }
 0x23c   : > { %v667_v15 = vpop.permute.xlu0 %666 }
 0x23d   : > { %674 = vst.msk [vmem:[%s330_s19] sm:$0xff] %vm673_vm2, %v669_v14  ;;  %v672_v17 = vadd.f32 %v667_v15, %v538_v13 }
 0x23e   : > { %v662_v18 = vpop.permute.xlu1 %661 }
 0x23f   : > { %677 = vst.msk [vmem:[%s330_s19 + $0x18] sm:$0xff] %vm673_vm2, %v672_v17  ;;  %v671_v19 = vadd.f32 %v662_v18, %v533_v16 }
 0x241   : > { %676 = vst.msk [vmem:[%s330_s19 + $0x10] sm:$0xff] %vm673_vm2, %v671_v19 }
 0x242 PF: > { %s19_s21 = sadd.s32 1, %s1075_s21  }
 0x243   : > { %p16_p2 = scmp.ge.s32.totalorder %s19_s21, 4  }
 0x245   :  { %18 = sbr.rel (!%p16_p2) target bundleno = 3 (0x3), region = 94 }
 0x24a   :  { %699 = vsyncpa [#allocation3], 1 }
 0x24b   :  { %701 = vsyncpa [#allocation3 + $0x1], 1 }
 0x24c   :  { %702 = vsyncpa [#allocation5], 1 }
 0x24d   :  { %703 = vsyncpa [#allocation8], 1 }

// kernel: _lambda_.10
= control target key start
LH: loop header
LB: loop body
LE: loop exit
PB: predicated region body
PF: predicated region fallthrough
CT: control target
= control target key end

     0   :  { %s5455_s0 = inlined_call_operand.vmem [shape: f32[2,16,32], index: 0, kind: input, shape index: {}]   ;;  %s5456_s1 = inlined_call_operand.hbm [shape: f32[16,48], index: 1, kind: input, shape index: {}]   ;;  %s5457_s2 = inlined_call_operand.hbm [shape: f32[16,1], index: 2, kind: input, shape index: {}]   ;;  %s5458_s3 = inlined_call_operand.hbm [shape: f32[16,48], index: 3, kind: input, shape index: {}]   ;;  %s5459_s4 = inlined_call_operand.hbm [shape: f32[16,1], index: 4, kind: input, shape index: {}]   ;;  %s5460_s5 = inlined_call_operand.hbm [shape: f32[16,48], index: 5, kind: input, shape index: {}]   ;;  %s5461_s6 = inlined_call_operand.hbm [shape: f32[16,1], index: 6, kind: input, shape index: {}]   ;;  %s5462_s7 = inlined_call_operand.hbm [shape: f32[16,48], index: 7, kind: input, shape index: {}]   ;;  %s5463_s8 = inlined_call_operand.hbm [shape: f32[16,1], index: 8, kind: input, shape index: {}]   ;;  %s5464_s9 = inlined_call_operand.hbm [shape: f32[16,48], index: 9, kind: input, shape index: {}]   ;;  %s5465_s10 = inlined_call_operand.hbm [shape: f32[16,1], index: 10, kind: input, shape index: {}]   ;;  %s5466_s11 = inlined_call_operand.hbm [shape: f32[16,48], index: 11, kind: input, shape index: {}]   ;;  %s5467_s12 = inlined_call_operand.hbm [shape: f32[16,1], index: 12, kind: input, shape index: {}]   ;;  %s5468_s13 = inlined_call_operand.hbm [shape: f32[16,112], index: 13, kind: input, shape index: {}]   ;;  %s5469_s14 = inlined_call_operand.hbm [shape: f32[16,1], index: 14, kind: input, shape index: {}]   ;;  %s5470_s15 = inlined_call_operand.hbm [shape: f32[16,112], index: 15, kind: input, shape index: {}]   ;;  %s5471_s16 = inlined_call_operand.hbm [shape: f32[16,1], index: 16, kind: input, shape index: {}]   ;;  %s5472_s17 = inlined_call_operand.hbm [shape: f32[16,112], index: 17, kind: input, shape index: {}]   ;;  %s5473_s18 = inlined_call_operand.hbm [shape: f32[16,1], index: 18, kind: input, shape index: {}]   ;;  %s5474_s19 = inlined_call_operand.hbm [shape: f32[16,112], index: 19, kind: input, shape index: {}]   ;;  %s5475_s20 = inlined_call_operand.hbm [shape: f32[16,1], index: 20, kind: input, shape index: {}]   ;;  %s5476_s21 = inlined_call_operand.hbm [shape: f32[16,112], index: 21, kind: input, shape index: {}]   ;;  %s5477_s22 = inlined_call_operand.hbm [shape: f32[16,1], index: 22, kind: input, shape index: {}]   ;;  %s5478_s23 = inlined_call_operand.hbm [shape: f32[16,112], index: 23, kind: input, shape index: {}]   ;;  %s5479_s24 = inlined_call_operand.hbm [shape: f32[16,1], index: 24, kind: input, shape index: {}]   ;;  %s5480_s25 = inlined_call_operand.vmem [shape: f32[2,16,32], index: 25, kind: output, shape index: {}]  }
   0x1   :  { %5482 = sst [smem:[#allocation53_spill]] %s5455_s0 }
   0x2   :  { %5483 = sst [smem:[#allocation54_spill]] %s5456_s1 }
   0x3   :  { %5484 = sst [smem:[#allocation55_spill]] %s5457_s2 }
   0x4   :  { %5485 = sst [smem:[#allocation56_spill]] %s5458_s3 }
   0x5   :  { %5486 = sst [smem:[#allocation57_spill]] %s5459_s4 }
   0x6   :  { %5487 = sst [smem:[#allocation58_spill]] %s5460_s5 }
   0x7   :  { %5488 = sst [smem:[#allocation59_spill]] %s5461_s6 }
   0x8   :  { %5489 = sst [smem:[#allocation60_spill]] %s5462_s7 }
   0x9   :  { %5490 = sst [smem:[#allocation61_spill]] %s5463_s8 }
   0xa   :  { %5491 = sst [smem:[#allocation62_spill]] %s5464_s9 }
   0xb   :  { %5492 = sst [smem:[#allocation63_spill]] %s5480_s25 }
   0xc   :  { %30 = vsyncpa [#allocation3], 0 }
   0xd   :  { %31 = vsyncpa [#allocation5], 0 }
   0xe   :  { %32 = vsyncpa [#allocation8], 0 }
   0xf   :  { %33 = vsyncpa [#allocation11], 0 }
  0x10   :  { %34 = vsyncpa [#allocation14], 0 }
  0x11   :  { %35 = vsyncpa [#allocation17], 0 }
  0x12   :  { %36 = vsyncpa [#allocation20], 0 }
  0x13   :  { %37 = vsyncpa [#allocation23], 0 }
  0x14   :  { %38 = vsyncpa [#allocation26], 0 }
  0x15   :  { %39 = vsyncpa [#allocation29], 0 }
  0x16   :  { %40 = vsyncpa [#allocation32], 0 }
  0x17   :  { %41 = vsyncpa [#allocation35], 0 }
  0x18   :  { %42 = vsyncpa [#allocation38], 0  ;;  %s4755_s29 = smov 0  }
  0x19 LB: > { %5493 = sst [smem:[#allocation52_spill]] %s4577_s29  ;;  %s4761_s2 = sadd.s32 4294967295, %s4577_s29   ;;  %s4577_s29 = sphi %s4755_s29, %s48_s29  }
  0x1a   : > { %p3095_p0 = scmp.ge.s32.totalorder %s4577_s29, 1  ;;  %p609_p1 = scmp.lt.s32.totalorder %s4577_s29, 3 }
  0x1b   : > { %p3791_p2 = scmp.eq.s32.totalorder %s4761_s2, 0  ;;  %s4579_s30 = smov [#allocation4]  }
  0x1c   : > { %p4766_p3 = pnand %p3095_p0, %p609_p1  ;;  %s634_s7 = sshll.u32 %s4579_s30, 4  ;;  %s635_s7 = int_to_ptr.vmem [resolvable:$true] %s634_s7 }
  0x1d   : > { %s4580_s3 = smov [#allocation7]   ;;  %s4581_s8 = smov [#allocation10]  }
  0x1e   : > { %p3718_p4 = pneg %p4766_p3  ;;  %s660_s26 = sshll.u32 %s4580_s3, 4  ;;  %s4772_s26 = int_to_ptr.vmem [resolvable:$true] %s660_s26 }
  0x1f   : > { %s686_s27 = sshll.u32 %s4581_s8, 4  ;;  %s4582_s4 = smov [#allocation13]   ;;  %s4780_s27 = int_to_ptr.vmem [resolvable:$true] %s686_s27 }
  0x20   : > { %p4776_p5 = pnand %p3791_p2, %p3718_p4  ;;  %s4782_s28 = sshll.u32 %s4582_s4, 4  ;;  %s713_s28 = int_to_ptr.vmem [resolvable:$true] %s4782_s28 }
  0x21   : > { %s3906_s5 = scalar_lea.vmem %s635_s7, 256  ;;  %p3914_p10 = scmp.lt.s32.totalorder %s635_s7, %s635_s7 }
  0x22   : > { %p4786_p6 = pneg %p4776_p5  ;;  %p3907_p7 = scmp.ne.s32.totalorder %s635_s7, %s3906_s5 }
  0x23   : > { %p3915_p11 = scmp.lt.s32.totalorder %s3906_s5, %s3906_s5 }
  0x24   : > { %p3909_p8 = pnand %p3907_p7, %p4786_p6 }
  0x25   : > { %p3916_p12 = por %p3915_p11, %p3914_p10 }
  0x26   : > { %p3910_p9 = pneg %p3909_p8 }
  0x28   : > { %p3917_p13 = pnand %p3916_p12, %p3910_p9 }
  0x2a   : > { %3920 = shalt.err (!%p3917_p13)
}
  0x2b   : > { %s4583_s0 = smov 128   ;;  %s4584_s30 = smov 8  }
  0x2c   : > { %s5497_s4 = sld [smem:[#allocation55_spill]]  ;;  %s3932_s29 = scalar_lea.vmem %s4772_s26, 256 }
  0x2d   : > { %p3933_p0 = scmp.ne.s32.totalorder %s4772_s26, %s3932_s29  ;;  %p3940_p7 = scmp.lt.s32.totalorder %s4772_s26, %s4772_s26 }
  0x2e   : > { %p3941_p8 = scmp.lt.s32.totalorder %s3932_s29, %s3932_s29 }
  0x2f   : > { %p3935_p1 = pnand %p3933_p0, %p4786_p6 }
  0x30   : > { %p3942_p9 = por %p3941_p8, %p3940_p7 }
  0x31   : > { %p3936_p4 = pneg %p3935_p1 }
  0x32   : > { %3724 = dma.hbm_to_vmem [thread:$0]  (!%p4776_p5), %s5497_s4, 256, %s635_s7, [#allocation5], %s4583_s0, %s4583_s0, %s4584_s30  }
  0x33   : > { %p3943_p10 = pnand %p3942_p9, %p3936_p4 }
  0x35   : > { %3946 = shalt.err (!%p3943_p10)
}
  0x36   : > { %s5498_s7 = sld [smem:[#allocation57_spill]]  ;;  %s3958_s8 = scalar_lea.vmem %s4780_s27, 256 }
  0x37   : > { %p3959_p11 = scmp.ne.s32.totalorder %s4780_s27, %s3958_s8  ;;  %p3966_p0 = scmp.lt.s32.totalorder %s4780_s27, %s4780_s27 }
  0x38   : > { %p3967_p1 = scmp.lt.s32.totalorder %s3958_s8, %s3958_s8 }
  0x39   : > { %p3961_p12 = pnand %p3959_p11, %p4786_p6 }
  0x3a   : > { %p3968_p4 = por %p3967_p1, %p3966_p0 }
  0x3b   : > { %p3962_p13 = pneg %p3961_p12 }
  0x3c   : > { %3730 = dma.hbm_to_vmem [thread:$0]  (!%p4776_p5), %s5498_s7, 256, %s4772_s26, [#allocation8], %s4583_s0, %s4583_s0, %s4584_s30  }
  0x3d   : > { %p3969_p7 = pnand %p3968_p4, %p3962_p13 }
  0x3f   : > { %3972 = shalt.err (!%p3969_p7)
}
  0x40   : > { %s5499_s26 = sld [smem:[#allocation59_spill]]  ;;  %s3984_s5 = scalar_lea.vmem %s713_s28, 256 }
  0x41   : > { %p3985_p8 = scmp.ne.s32.totalorder %s713_s28, %s3984_s5  ;;  %p3992_p11 = scmp.lt.s32.totalorder %s713_s28, %s713_s28 }
  0x42   : > { %p3993_p12 = scmp.lt.s32.totalorder %s3984_s5, %s3984_s5 }
  0x43   : > { %p3987_p9 = pnand %p3985_p8, %p4786_p6 }
  0x44   : > { %p3994_p13 = por %p3993_p12, %p3992_p11 }
  0x45   : > { %p3988_p10 = pneg %p3987_p9 }
  0x46   : > { %3736 = dma.hbm_to_vmem [thread:$0]  (!%p4776_p5), %s5499_s26, 256, %s4780_s27, [#allocation11], %s4583_s0, %s4583_s0, %s4584_s30  }
  0x47   : > { %p3995_p0 = pnand %p3994_p13, %p3988_p10 }
  0x49   : > { %3998 = shalt.err (!%p3995_p0)
}
  0x4a   : > { %s5500_s8 = sld [smem:[#allocation61_spill]]  ;;  %s4585_s27 = smov [#allocation16]  }
  0x4b   : > { %s738_s29 = sshll.u32 %s4585_s27, 4  ;;  %s4586_s4 = smov [#allocation19]   ;;  %s739_s29 = int_to_ptr.vmem [resolvable:$true] %s738_s29 }
  0x4c   : > { %s764_s26 = sshll.u32 %s4586_s4, 4  ;;  %s4010_s25 = scalar_lea.vmem %s739_s29, 256  ;;  %s765_s26 = int_to_ptr.vmem [resolvable:$true] %s764_s26 }
  0x4d   : > { %p4011_p1 = scmp.ne.s32.totalorder %s739_s29, %s4010_s25  ;;  %p4018_p8 = scmp.lt.s32.totalorder %s739_s29, %s739_s29 }
  0x4e   : > { %p4019_p9 = scmp.lt.s32.totalorder %s4010_s25, %s4010_s25 }
  0x4f   : > { %p4013_p4 = pnand %p4011_p1, %p4786_p6 }
  0x50   : > { %3742 = dma.hbm_to_vmem [thread:$0]  (!%p4776_p5), %s5500_s8, 256, %s713_s28, [#allocation14], %s4583_s0, %s4583_s0, %s4584_s30  }
  0x51   : > { %p4014_p7 = pneg %p4013_p4  ;;  %p4020_p10 = por %p4019_p9, %p4018_p8 }
  0x53   : > { %p4021_p11 = pnand %p4020_p10, %p4014_p7 }
  0x55   : > { %4024 = shalt.err (!%p4021_p11)
}
  0x56   : > { %3748 = dma.hbm_to_vmem [thread:$0]  (!%p4776_p5), %s5465_s10, 256, %s739_s29, [#allocation17], %s4583_s0, %s4583_s0, %s4584_s30  }
  0x57   : > { %s4036_s3 = scalar_lea.vmem %s765_s26, 256  ;;  %p4044_p1 = scmp.lt.s32.totalorder %s765_s26, %s765_s26 }
  0x58   : > { %p4037_p12 = scmp.ne.s32.totalorder %s765_s26, %s4036_s3  ;;  %p4045_p4 = scmp.lt.s32.totalorder %s4036_s3, %s4036_s3 }
  0x5a   : > { %p4039_p13 = pnand %p4037_p12, %p4786_p6  ;;  %p4046_p7 = por %p4045_p4, %p4044_p1 }
  0x5c   : > { %p4040_p0 = pneg %p4039_p13 }
  0x5e   : > { %p4047_p8 = pnand %p4046_p7, %p4040_p0 }
  0x60   : > { %4050 = shalt.err (!%p4047_p8)
}
  0x61   : > { %3754 = dma.hbm_to_vmem [thread:$0]  (!%p4776_p5), %s5467_s12, 256, %s765_s26, [#allocation20], %s4583_s0, %s4583_s0, %s4584_s30  }
  0x62   : > { %s4587_s8 = smov [#allocation22]   ;;  %s4588_s29 = smov [#allocation25]  }
  0x63   : > { %s790_s27 = sshll.u32 %s4587_s8, 4  ;;  %s816_s4 = sshll.u32 %s4588_s29, 4  ;;  %s791_s27 = int_to_ptr.vmem [resolvable:$true] %s790_s27  ;;  %s817_s4 = int_to_ptr.vmem [resolvable:$true] %s816_s4 }
  0x64   : > { %s4062_s28 = scalar_lea.vmem %s791_s27, 256  ;;  %p4070_p12 = scmp.lt.s32.totalorder %s791_s27, %s791_s27 }
  0x65   : > { %p4063_p9 = scmp.ne.s32.totalorder %s791_s27, %s4062_s28  ;;  %p4071_p13 = scmp.lt.s32.totalorder %s4062_s28, %s4062_s28 }
  0x67   : > { %p4065_p10 = pnand %p4063_p9, %p4786_p6  ;;  %p4072_p0 = por %p4071_p13, %p4070_p12 }
  0x69   : > { %p4066_p11 = pneg %p4065_p10 }
  0x6b   : > { %p4073_p1 = pnand %p4072_p0, %p4066_p11 }
  0x6d   : > { %4076 = shalt.err (!%p4073_p1)
}
  0x6e   : > { %3760 = dma.hbm_to_vmem [thread:$0]  (!%p4776_p5), %s5469_s14, 256, %s791_s27, [#allocation23], %s4583_s0, %s4583_s0, %s4584_s30  }
  0x6f   : > { %s4088_s3 = scalar_lea.vmem %s817_s4, 256  ;;  %p4096_p9 = scmp.lt.s32.totalorder %s817_s4, %s817_s4 }
  0x70   : > { %p4089_p4 = scmp.ne.s32.totalorder %s817_s4, %s4088_s3  ;;  %p4097_p10 = scmp.lt.s32.totalorder %s4088_s3, %s4088_s3 }
  0x72   : > { %p4091_p7 = pnand %p4089_p4, %p4786_p6  ;;  %p4098_p11 = por %p4097_p10, %p4096_p9 }
  0x74   : > { %p4092_p8 = pneg %p4091_p7 }
  0x76   : > { %p4099_p12 = pnand %p4098_p11, %p4092_p8 }
  0x78   : > { %4102 = shalt.err (!%p4099_p12)
}
  0x79   : > { %3766 = dma.hbm_to_vmem [thread:$0]  (!%p4776_p5), %s5471_s16, 256, %s817_s4, [#allocation26], %s4583_s0, %s4583_s0, %s4584_s30  }
  0x7a   : > { %s4589_s8 = smov [#allocation28]   ;;  %s4590_s29 = smov [#allocation31]  }
  0x7b   : > { %s842_s27 = sshll.u32 %s4589_s8, 4  ;;  %s868_s28 = sshll.u32 %s4590_s29, 4  ;;  %s843_s27 = int_to_ptr.vmem [resolvable:$true] %s842_s27  ;;  %s869_s28 = int_to_ptr.vmem [resolvable:$true] %s868_s28 }
  0x7c   : > { %s4114_s26 = scalar_lea.vmem %s843_s27, 256  ;;  %p4122_p4 = scmp.lt.s32.totalorder %s843_s27, %s843_s27 }
  0x7d   : > { %p4115_p13 = scmp.ne.s32.totalorder %s843_s27, %s4114_s26  ;;  %p4123_p7 = scmp.lt.s32.totalorder %s4114_s26, %s4114_s26 }
  0x7f   : > { %p4117_p0 = pnand %p4115_p13, %p4786_p6  ;;  %p4124_p8 = por %p4123_p7, %p4122_p4 }
  0x81   : > { %p4118_p1 = pneg %p4117_p0 }
  0x83   : > { %p4125_p9 = pnand %p4124_p8, %p4118_p1 }
  0x85   : > { %4128 = shalt.err (!%p4125_p9)
}
  0x86   : > { %3772 = dma.hbm_to_vmem [thread:$0]  (!%p4776_p5), %s5473_s18, 256, %s843_s27, [#allocation29], %s4583_s0, %s4583_s0, %s4584_s30  }
  0x87   : > { %s4140_s3 = scalar_lea.vmem %s869_s28, 256  ;;  %p4148_p13 = scmp.lt.s32.totalorder %s869_s28, %s869_s28 }
  0x88   : > { %p4141_p10 = scmp.ne.s32.totalorder %s869_s28, %s4140_s3  ;;  %p4149_p0 = scmp.lt.s32.totalorder %s4140_s3, %s4140_s3 }
  0x8a   : > { %p4143_p11 = pnand %p4141_p10, %p4786_p6  ;;  %p4150_p1 = por %p4149_p0, %p4148_p13 }
  0x8c   : > { %p4144_p12 = pneg %p4143_p11 }
  0x8e   : > { %p4151_p4 = pnand %p4150_p1, %p4144_p12 }
  0x90   : > { %4154 = shalt.err (!%p4151_p4)
}
  0x91   : > { %3778 = dma.hbm_to_vmem [thread:$0]  (!%p4776_p5), %s5475_s20, 256, %s869_s28, [#allocation32], %s4583_s0, %s4583_s0, %s4584_s30  }
  0x92   : > { %s4591_s8 = smov [#allocation34]   ;;  %s4592_s29 = smov [#allocation2]  }
  0x93   : > { %s894_s27 = sshll.u32 %s4591_s8, 4  ;;  %s621_s26 = sshll.u32 %s4592_s29, 4  ;;  %s895_s27 = int_to_ptr.vmem [resolvable:$true] %s894_s27  ;;  %s622_s26 = int_to_ptr.vmem [resolvable:$true] %s621_s26 }
  0x94   : > { %s4166_s4 = scalar_lea.vmem %s895_s27, 256  ;;  %p4174_p10 = scmp.lt.s32.totalorder %s895_s27, %s895_s27 }
  0x95   : > { %p4167_p7 = scmp.ne.s32.totalorder %s895_s27, %s4166_s4  ;;  %p4175_p11 = scmp.lt.s32.totalorder %s4166_s4, %s4166_s4 }
  0x97   : > { %p4169_p8 = pnand %p4167_p7, %p4786_p6  ;;  %p4176_p12 = por %p4175_p11, %p4174_p10 }
  0x99   : > { %p4170_p9 = pneg %p4169_p8 }
  0x9b   : > { %p4177_p13 = pnand %p4176_p12, %p4170_p9 }
  0x9d   : > { %4180 = shalt.err (!%p4177_p13)
}
  0x9e   : > { %3784 = dma.hbm_to_vmem [thread:$0]  (!%p4776_p5), %s5477_s22, 256, %s895_s27, [#allocation35], %s4583_s0, %s4583_s0, %s4584_s30  }
  0x9f   : > { %s4192_s3 = scalar_lea.vmem %s622_s26, 256  ;;  %p4200_p7 = scmp.lt.s32.totalorder %s622_s26, %s622_s26 }
  0xa0   : > { %p4193_p0 = scmp.ne.s32.totalorder %s622_s26, %s4192_s3  ;;  %p4201_p8 = scmp.lt.s32.totalorder %s4192_s3, %s4192_s3 }
  0xa2   : > { %p4195_p1 = pnand %p4193_p0, %p4786_p6  ;;  %p4202_p9 = por %p4201_p8, %p4200_p7 }
  0xa4   : > { %p4196_p4 = pneg %p4195_p1 }
  0xa6   : > { %p4203_p10 = pnand %p4202_p9, %p4196_p4 }
  0xa8   : > { %4206 = shalt.err (!%p4203_p10)
}
  0xa9   : > { %s5501_s8 = sld [smem:[#allocation54_spill]]  ;;  %s4593_s27 = smov [#allocation6]  }
  0xaa   : > { %s647_s29 = sshll.u32 %s4593_s27, 4  ;;  %s4594_s4 = smov [#allocation9]   ;;  %s648_s29 = int_to_ptr.vmem [resolvable:$true] %s647_s29 }
  0xab   : > { %s673_s28 = sshll.u32 %s4594_s4, 4  ;;  %s4218_s5 = scalar_lea.vmem %s648_s29, 256  ;;  %s674_s28 = int_to_ptr.vmem [resolvable:$true] %s673_s28 }
  0xac   : > { %p4219_p11 = scmp.ne.s32.totalorder %s648_s29, %s4218_s5  ;;  %p4226_p0 = scmp.lt.s32.totalorder %s648_s29, %s648_s29 }
  0xad   : > { %p4227_p1 = scmp.lt.s32.totalorder %s4218_s5, %s4218_s5 }
  0xae   : > { %p4221_p12 = pnand %p4219_p11, %p4786_p6 }
  0xaf   : > { %3721 = dma.hbm_to_vmem [thread:$0]  (!%p4776_p5), %s5501_s8, 256, %s622_s26, [#allocation3], %s4583_s0, %s4583_s0, %s4584_s30  }
  0xb0   : > { %p4222_p13 = pneg %p4221_p12  ;;  %p4228_p4 = por %p4227_p1, %p4226_p0 }
  0xb2   : > { %p4229_p7 = pnand %p4228_p4, %p4222_p13 }
  0xb4   : > { %4232 = shalt.err (!%p4229_p7)
}
  0xb5   : > { %s5502_s25 = sld [smem:[#allocation56_spill]]  ;;  %s4244_s7 = scalar_lea.vmem %s674_s28, 256 }
  0xb6   : > { %p4245_p8 = scmp.ne.s32.totalorder %s674_s28, %s4244_s7  ;;  %p4252_p11 = scmp.lt.s32.totalorder %s674_s28, %s674_s28 }
  0xb7   : > { %p4253_p12 = scmp.lt.s32.totalorder %s4244_s7, %s4244_s7 }
  0xb8   : > { %p4247_p9 = pnand %p4245_p8, %p4786_p6 }
  0xb9   : > { %p4254_p13 = por %p4253_p12, %p4252_p11 }
  0xba   : > { %p4248_p10 = pneg %p4247_p9 }
  0xbb   : > { %3727 = dma.hbm_to_vmem [thread:$0]  (!%p4776_p5), %s5502_s25, 256, %s648_s29, [#allocation5], %s4583_s0, %s4583_s0, %s4584_s30  }
  0xbc   : > { %p4255_p0 = pnand %p4254_p13, %p4248_p10 }
  0xbe   : > { %4258 = shalt.err (!%p4255_p0)
}
  0xbf   : > { %s5503_s4 = sld [smem:[#allocation58_spill]]  ;;  %s4595_s29 = smov [#allocation12]  }
  0xc0   : > { %s699_s5 = sshll.u32 %s4595_s29, 4  ;;  %s4596_s26 = smov [#allocation15]   ;;  %s700_s5 = int_to_ptr.vmem [resolvable:$true] %s699_s5 }
  0xc1   : > { %s725_s3 = sshll.u32 %s4596_s26, 4  ;;  %s4270_s25 = scalar_lea.vmem %s700_s5, 256  ;;  %s726_s3 = int_to_ptr.vmem [resolvable:$true] %s725_s3 }
  0xc2   : > { %p4271_p1 = scmp.ne.s32.totalorder %s700_s5, %s4270_s25  ;;  %p4278_p8 = scmp.lt.s32.totalorder %s700_s5, %s700_s5 }
  0xc3   : > { %p4279_p9 = scmp.lt.s32.totalorder %s4270_s25, %s4270_s25 }
  0xc4   : > { %p4273_p4 = pnand %p4271_p1, %p4786_p6 }
  0xc5   : > { %3733 = dma.hbm_to_vmem [thread:$0]  (!%p4776_p5), %s5503_s4, 256, %s674_s28, [#allocation8], %s4583_s0, %s4583_s0, %s4584_s30  }
  0xc6   : > { %p4274_p7 = pneg %p4273_p4  ;;  %p4280_p10 = por %p4279_p9, %p4278_p8 }
  0xc8   : > { %p4281_p11 = pnand %p4280_p10, %p4274_p7 }
  0xca   : > { %4284 = shalt.err (!%p4281_p11)
}
  0xcb   : > { %s5504_s8 = sld [smem:[#allocation60_spill]]  ;;  %s4296_s27 = scalar_lea.vmem %s726_s3, 256 }
  0xcc   : > { %p4297_p12 = scmp.ne.s32.totalorder %s726_s3, %s4296_s27  ;;  %p4304_p1 = scmp.lt.s32.totalorder %s726_s3, %s726_s3 }
  0xcd   : > { %p4305_p4 = scmp.lt.s32.totalorder %s4296_s27, %s4296_s27 }
  0xce   : > { %p4299_p13 = pnand %p4297_p12, %p4786_p6 }
  0xcf   : > { %p4306_p7 = por %p4305_p4, %p4304_p1 }
  0xd0   : > { %p4300_p0 = pneg %p4299_p13 }
  0xd1   : > { %3739 = dma.hbm_to_vmem [thread:$0]  (!%p4776_p5), %s5504_s8, 256, %s700_s5, [#allocation11], %s4583_s0, %s4583_s0, %s4584_s30  }
  0xd2   : > { %p4307_p8 = pnand %p4306_p7, %p4300_p0 }
  0xd4   : > { %4310 = shalt.err (!%p4307_p8)
}
  0xd5   : > { %s5505_s26 = sld [smem:[#allocation62_spill]]  ;;  %s4597_s5 = smov [#allocation18]  }
  0xd6   : > { %s751_s25 = sshll.u32 %s4597_s5, 4  ;;  %s4598_s28 = smov [#allocation21]   ;;  %s752_s25 = int_to_ptr.vmem [resolvable:$true] %s751_s25 }
  0xd7   : > { %s777_s7 = sshll.u32 %s4598_s28, 4  ;;  %s4322_s8 = scalar_lea.vmem %s752_s25, 256  ;;  %s778_s7 = int_to_ptr.vmem [resolvable:$true] %s777_s7 }
  0xd8   : > { %p4323_p9 = scmp.ne.s32.totalorder %s752_s25, %s4322_s8  ;;  %p4330_p12 = scmp.lt.s32.totalorder %s752_s25, %s752_s25 }
  0xd9   : > { %p4331_p13 = scmp.lt.s32.totalorder %s4322_s8, %s4322_s8 }
  0xda   : > { %p4325_p10 = pnand %p4323_p9, %p4786_p6 }
  0xdb   : > { %3745 = dma.hbm_to_vmem [thread:$0]  (!%p4776_p5), %s5505_s26, 256, %s726_s3, [#allocation14], %s4583_s0, %s4583_s0, %s4584_s30  }
  0xdc   : > { %p4326_p11 = pneg %p4325_p10  ;;  %p4332_p0 = por %p4331_p13, %p4330_p12 }
  0xde   : > { %p4333_p1 = pnand %p4332_p0, %p4326_p11 }
  0xe0   : > { %4336 = shalt.err (!%p4333_p1)
}
  0xe1   : > { %3751 = dma.hbm_to_vmem [thread:$0]  (!%p4776_p5), %s5466_s11, 256, %s752_s25, [#allocation17], %s4583_s0, %s4583_s0, %s4584_s30  }
  0xe2   : > { %s4348_s4 = scalar_lea.vmem %s778_s7, 256  ;;  %p4356_p9 = scmp.lt.s32.totalorder %s778_s7, %s778_s7 }
  0xe3   : > { %p4349_p4 = scmp.ne.s32.totalorder %s778_s7, %s4348_s4  ;;  %p4357_p10 = scmp.lt.s32.totalorder %s4348_s4, %s4348_s4 }
  0xe5   : > { %p4351_p7 = pnand %p4349_p4, %p4786_p6  ;;  %p4358_p11 = por %p4357_p10, %p4356_p9 }
  0xe7   : > { %p4352_p8 = pneg %p4351_p7 }
  0xe9   : > { %p4359_p12 = pnand %p4358_p11, %p4352_p8 }
  0xeb   : > { %4362 = shalt.err (!%p4359_p12)
}
  0xec   : > { %3757 = dma.hbm_to_vmem [thread:$0]  (!%p4776_p5), %s5468_s13, 256, %s778_s7, [#allocation20], %s4583_s0, %s4583_s0, %s4584_s30  }
  0xed   : > { %s4599_s5 = smov [#allocation24]   ;;  %s4600_s28 = smov [#allocation27]  }
  0xee   : > { %s803_s25 = sshll.u32 %s4599_s5, 4  ;;  %s829_s8 = sshll.u32 %s4600_s28, 4  ;;  %s804_s25 = int_to_ptr.vmem [resolvable:$true] %s803_s25  ;;  %s830_s8 = int_to_ptr.vmem [resolvable:$true] %s829_s8 }
  0xef   : > { %s4374_s3 = scalar_lea.vmem %s804_s25, 256  ;;  %p4382_p4 = scmp.lt.s32.totalorder %s804_s25, %s804_s25 }
  0xf0   : > { %p4375_p13 = scmp.ne.s32.totalorder %s804_s25, %s4374_s3  ;;  %p4383_p7 = scmp.lt.s32.totalorder %s4374_s3, %s4374_s3 }
  0xf2   : > { %p4377_p0 = pnand %p4375_p13, %p4786_p6  ;;  %p4384_p8 = por %p4383_p7, %p4382_p4 }
  0xf4   : > { %p4378_p1 = pneg %p4377_p0 }
  0xf6   : > { %p4385_p9 = pnand %p4384_p8, %p4378_p1 }
  0xf8   : > { %4388 = shalt.err (!%p4385_p9)
}
  0xf9   : > { %3763 = dma.hbm_to_vmem [thread:$0]  (!%p4776_p5), %s5470_s15, 256, %s804_s25, [#allocation23], %s4583_s0, %s4583_s0, %s4584_s30  }
  0xfa   : > { %s4400_s4 = scalar_lea.vmem %s830_s8, 256  ;;  %p4408_p13 = scmp.lt.s32.totalorder %s830_s8, %s830_s8 }
  0xfb   : > { %p4401_p10 = scmp.ne.s32.totalorder %s830_s8, %s4400_s4  ;;  %p4409_p0 = scmp.lt.s32.totalorder %s4400_s4, %s4400_s4 }
  0xfd   : > { %p4403_p11 = pnand %p4401_p10, %p4786_p6  ;;  %p4410_p1 = por %p4409_p0, %p4408_p13 }
  0xff   : > { %p4404_p12 = pneg %p4403_p11 }
 0x101   : > { %p4411_p4 = pnand %p4410_p1, %p4404_p12 }
 0x103   : > { %4414 = shalt.err (!%p4411_p4)
}
 0x104   : > { %3769 = dma.hbm_to_vmem [thread:$0]  (!%p4776_p5), %s5472_s17, 256, %s830_s8, [#allocation26], %s4583_s0, %s4583_s0, %s4584_s30  }
 0x105   : > { %s4601_s5 = smov [#allocation30]   ;;  %s4602_s28 = smov [#allocation33]  }
 0x106   : > { %s855_s25 = sshll.u32 %s4601_s5, 4  ;;  %s881_s3 = sshll.u32 %s4602_s28, 4  ;;  %s856_s25 = int_to_ptr.vmem [resolvable:$true] %s855_s25  ;;  %s882_s3 = int_to_ptr.vmem [resolvable:$true] %s881_s3 }
 0x107   : > { %s4426_s7 = scalar_lea.vmem %s856_s25, 256  ;;  %p4434_p10 = scmp.lt.s32.totalorder %s856_s25, %s856_s25 }
 0x108   : > { %p4427_p7 = scmp.ne.s32.totalorder %s856_s25, %s4426_s7  ;;  %p4435_p11 = scmp.lt.s32.totalorder %s4426_s7, %s4426_s7 }
 0x10a   : > { %p4429_p8 = pnand %p4427_p7, %p4786_p6  ;;  %p4436_p12 = por %p4435_p11, %p4434_p10 }
 0x10c   : > { %p4430_p9 = pneg %p4429_p8 }
 0x10e   : > { %p4437_p13 = pnand %p4436_p12, %p4430_p9 }
 0x110   : > { %4440 = shalt.err (!%p4437_p13)
}
 0x111   : > { %3775 = dma.hbm_to_vmem [thread:$0]  (!%p4776_p5), %s5474_s19, 256, %s856_s25, [#allocation29], %s4583_s0, %s4583_s0, %s4584_s30  }
 0x112   : > { %s4452_s4 = scalar_lea.vmem %s882_s3, 256  ;;  %p4460_p7 = scmp.lt.s32.totalorder %s882_s3, %s882_s3 }
 0x113   : > { %p4453_p0 = scmp.ne.s32.totalorder %s882_s3, %s4452_s4  ;;  %p4461_p8 = scmp.lt.s32.totalorder %s4452_s4, %s4452_s4 }
 0x115   : > { %p4455_p1 = pnand %p4453_p0, %p4786_p6  ;;  %p4462_p9 = por %p4461_p8, %p4460_p7 }
 0x117   : > { %p4456_p4 = pneg %p4455_p1 }
 0x119   : > { %p4463_p10 = pnand %p4462_p9, %p4456_p4 }
 0x11b   : > { %4466 = shalt.err (!%p4463_p10)
}
 0x11c   : > { %3781 = dma.hbm_to_vmem [thread:$0]  (!%p4776_p5), %s5476_s21, 256, %s882_s3, [#allocation32], %s4583_s0, %s4583_s0, %s4584_s30  }
 0x11d   : > { %s4603_s5 = smov [#allocation36]   ;;  %s4604_s28 = smov [#allocation37]  }
 0x11e   : > { %s907_s25 = sshll.u32 %s4603_s5, 4  ;;  %s920_s7 = sshll.u32 %s4604_s28, 4  ;;  %s908_s25 = int_to_ptr.vmem [resolvable:$true] %s907_s25  ;;  %s921_s7 = int_to_ptr.vmem [resolvable:$true] %s920_s7 }
 0x11f   : > { %s4478_s8 = scalar_lea.vmem %s908_s25, 256  ;;  %p4486_p0 = scmp.lt.s32.totalorder %s908_s25, %s908_s25 }
 0x120   : > { %p4479_p11 = scmp.ne.s32.totalorder %s908_s25, %s4478_s8  ;;  %p4487_p1 = scmp.lt.s32.totalorder %s4478_s8, %s4478_s8 }
 0x122   : > { %p4481_p12 = pnand %p4479_p11, %p4786_p6  ;;  %p4488_p4 = por %p4487_p1, %p4486_p0 }
 0x124   : > { %p4482_p13 = pneg %p4481_p12 }
 0x126   : > { %p4489_p7 = pnand %p4488_p4, %p4482_p13 }
 0x128   : > { %4492 = shalt.err (!%p4489_p7)
}
 0x129   : > { %3787 = dma.hbm_to_vmem [thread:$0]  (!%p4776_p5), %s5478_s23, 256, %s908_s25, [#allocation35], %s4583_s0, %s4583_s0, %s4584_s30  }
 0x12a   : > { %s4504_s4 = scalar_lea.vmem %s921_s7, 256  ;;  %p4512_p11 = scmp.lt.s32.totalorder %s921_s7, %s921_s7 }
 0x12b   : > { %p4505_p8 = scmp.ne.s32.totalorder %s921_s7, %s4504_s4  ;;  %p4513_p12 = scmp.lt.s32.totalorder %s4504_s4, %s4504_s4 }
 0x12d   : > { %p4507_p9 = pnand %p4505_p8, %p4786_p6  ;;  %p4514_p13 = por %p4513_p12, %p4512_p11 }
 0x12f   : > { %p4508_p10 = pneg %p4507_p9 }
 0x131   : > { %p4515_p0 = pnand %p4514_p13, %p4508_p10 }
 0x133   : > { %4518 = shalt.err (!%p4515_p0)
}
 0x134   : > { %3790 = dma.hbm_to_vmem [thread:$0]  (!%p4776_p5), %s5479_s24, 256, %s921_s7, [#allocation38], %s4583_s0, %s4583_s0, %s4584_s30  }
 0x135   : > { %944 = sbr.rel (%p4766_p3) target bundleno = 4894 (0x131e), region = 120 }
 0x13a   : > { %4524 = dma.done.wait (%p3791_p2), [#allocation3], 256  }
 0x13b   : > { %4526 = vsyncadd (%p3791_p2), [#allocation3], 4294967040 }
 0x13c   : > { %4528 = dma.done.wait (%p3791_p2), [#allocation5], 512  }
 0x13d   : > { %4530 = vsyncadd (%p3791_p2), [#allocation5], 4294966784 }
 0x13e   : > { %4532 = dma.done.wait (%p3791_p2), [#allocation8], 512  }
 0x13f   : > { %4534 = vsyncadd (%p3791_p2), [#allocation8], 4294966784 }
 0x140   : > { %4536 = dma.done.wait (%p3791_p2), [#allocation11], 512  }
 0x141   : > { %4538 = vsyncadd (%p3791_p2), [#allocation11], 4294966784 }
 0x142   : > { %4540 = dma.done.wait (%p3791_p2), [#allocation14], 512  }
 0x143   : > { %4542 = vsyncadd (%p3791_p2), [#allocation14], 4294966784 }
 0x144   : > { %4544 = dma.done.wait (%p3791_p2), [#allocation17], 512  }
 0x145   : > { %4546 = vsyncadd (%p3791_p2), [#allocation17], 4294966784 }
 0x146   : > { %4548 = dma.done.wait (%p3791_p2), [#allocation20], 512  }
 0x147   : > { %4550 = vsyncadd (%p3791_p2), [#allocation20], 4294966784 }
 0x148   : > { %4552 = dma.done.wait (%p3791_p2), [#allocation23], 512  }
 0x149   : > { %4554 = vsyncadd (%p3791_p2), [#allocation23], 4294966784 }
 0x14a   : > { %4556 = dma.done.wait (%p3791_p2), [#allocation26], 512  }
 0x14b   : > { %4558 = vsyncadd (%p3791_p2), [#allocation26], 4294966784 }
 0x14c   : > { %4560 = dma.done.wait (%p3791_p2), [#allocation29], 512  }
 0x14d   : > { %4562 = vsyncadd (%p3791_p2), [#allocation29], 4294966784 }
 0x14e   : > { %4564 = dma.done.wait (%p3791_p2), [#allocation32], 512  }
 0x14f   : > { %4566 = vsyncadd (%p3791_p2), [#allocation32], 4294966784 }
 0x150   : > { %4568 = dma.done.wait (%p3791_p2), [#allocation35], 512  }
 0x151   : > { %4570 = vsyncadd (%p3791_p2), [#allocation35], 4294966784 }
 0x152   : > { %4572 = dma.done.wait (%p3791_p2), [#allocation38], 256  }
 0x153   : > { %4574 = vsyncadd (%p3791_p2), [#allocation38], 4294967040  ;;  %p1104_p3 = scmp.lt.s32.totalorder %s4761_s2, 1  ;;  %s5506_s0 = sld [smem:[#allocation53_spill]]  ;;  %vm1134_vm2 = vcmask 7168   ;;  %vm1137_vm3 = vcmask 269312  }
 0x154   : > { %s4605_s5 = smov 1   ;;  %v1122_v9 = vld [vmem:[#allocation2] sm:$0xff]  ;;  %vm1164_vm4 = vcmask 392192   ;;  %s4606_s25 = smov 126   ;;  %v1125_v11 = vld [vmem:[#allocation4 + $0x8] sm:$0xff]  ;;  %v4608_v13 = vmov 0  }
 0x155   : > { %s5510_s2 = smov (!%p1104_p3, %s4761_s2), 1  ;;  %s4607_s28 = smov 127   ;;  %3358 = vmatprep.mubr.msk.f32.mxu0 %vm1164_vm4, %v1122_v9  ;;  %3893 = vset.pattern.permute.xlu0 %v4608_v13  ;;  %v1124_v15 = vld [vmem:[#allocation4] sm:$0xff]  ;;  %v1123_v20 = vld [vmem:[#allocation2 + $0x8] sm:$0xff]  ;;  %v1252_v32 = vld [vmem:[#allocation6] sm:$0xff]  ;;  %vm1393_vm9 = vcmask 23552  }
 0x156   : > { %s3200_s6 = sshll.u32 %s5510_s2, 4  ;;  %3894 = vset.pattern.permute.xlu1 %v4608_v13  ;;  %3373 = vmatprep.mubr.msk.f32.mxu1 %vm1164_vm4, %v1252_v32  ;;  %v1255_v38 = vld [vmem:[#allocation7 + $0x8] sm:$0xff]  ;;  %v1254_v39 = vld [vmem:[#allocation7] sm:$0xff]  ;;  %v1253_v44 = vld [vmem:[#allocation6 + $0x8] sm:$0xff]  ;;  %s4609_s7 = smov 3   ;;  %vm1396_vm10 = vcmask 285696  }
 0x157   : > { %v1381_v58 = vld [vmem:[#allocation9] sm:$0xff]  ;;  %s4610_s8 = smov 122   ;;  %s4611_s3 = smov 125   ;;  %vm1651_vm15 = vcmask 39936  }
 0x158   : > { %s4612_s27 = smov 5   ;;  %s4613_s4 = smov 118  }
 0x159   : > { %s1108_s30 = scalar_lea.vmem %s5506_s0, %s3200_s6  ;;  %s4614_s29 = smov 123  }
 0x15a   : > { %v5105_v0 = vld [vmem:[%s1108_s30 + $0x8] sm:$0xff]  ;;  %v5107_v1 = vld [vmem:[%s1108_s30] sm:$0xff]  ;;  %s4615_s26 = smov 124   ;;  %s4616_s1 = smov 9  }
 0x15b   : > { %vm1117_vm0 = vcmp.ge.f32.partialorder %v5105_v0, 0.0  ;;  %v1119_v2 = vmul.f32 0.1, %v5105_v0  ;;  %v1118_v3 = vmul.f32 0.1, %v5107_v1  ;;  %vm1116_vm1 = vcmp.ge.f32.partialorder %v5107_v1, 0.0 }
 0x15c   : > { %s4617_s9 = smov 110   ;;  %s4618_s0 = smov 113  }
 0x15d   : > { %v5114_v4 = vsel %vm1117_vm0, %v5105_v0, %v1119_v2  ;;  %v5119_v5 = vsel %vm1116_vm1, %v5107_v1, %v1118_v3  ;;  %v1384_v2 = vld [vmem:[#allocation10 + $0x8] sm:$0xff]  ;;  %v1383_v3 = vld [vmem:[#allocation10] sm:$0xff]  ;;  %vm1654_vm0 = vcmask 302080   ;;  %vm1953_vm1 = vcmask 916480   ;;  %s4619_s30 = smov 116  }
 0x15e   : > { %1130 = vrot.lane.b32.xlu0 %v5114_v4, %s4605_s5 }
 0x162   : > { %1128 = vrot.lane.b32.xlu0 %v5119_v5, %s4605_s5 }
 0x1d0   : > { %v1131_v6 = vpop.permute.xlu0 %1130 }
 0x1d1   : > { %v1136_v7 = vsel %vm1134_vm2, 0.0, %v1131_v6 }
 0x1d2   : > { %v1139_v8 = vsel %vm1137_vm3, %v1136_v7, 0.0 }
 0x1d3   : > { %1150 = vrot.lane.b32.xlu1 %v1139_v8, %s4606_s25  ;;  %1144 = vrot.lane.b32.xlu0 %v1139_v8, %s4607_s28 }
 0x1d4   : > { %v1129_v10 = vpop.permute.xlu0 %1128 }
 0x1d5   : > { %v1135_v12 = vsel %vm1134_vm2, 0.0, %v1129_v10  ;;  %v1382_v10 = vld [vmem:[#allocation9 + $0x8] sm:$0xff] }
 0x1d6   : > { %v1138_v14 = vsel %vm1137_vm3, %v1135_v12, 0.0 }
 0x1d7   : > { %1148 = vrot.lane.b32.xlu1 %v1138_v14, %s4606_s25  ;;  %1161 = vperm.xlu0 %3893, %v1125_v11  }
 0x1db   : > { %1142 = vrot.lane.b32.xlu1 %v1138_v14, %s4607_s28 }
 0x1df   : > { %1156 = vperm.xlu1 %3894, %v1124_v15  }
 0x245   : > { %v1151_v16 = vpop.permute.xlu1 %1150  ;;  %v1145_v18 = vpop.permute.xlu0 %1144 }
 0x246   : > { %3346 = vmatprep.subr.mxu0 %v1151_v16 }
 0x247   : > { %3347 = vmatpush3.msra.mxu0 %v1151_v16 }
 0x249   : > { %v1149_v17 = vpop.permute.xlu1 %1148 }
 0x24a   : > { %3348 = vmatprep.subr.mxu0 %v1149_v17 }
 0x24b   : > { %3349 = vmatpush3.msra.mxu0 %v1149_v17 }
 0x24c   : > { %3350 = vmatprep.subr.mxu0 %v1145_v18 }
 0x24d   : > { %v1143_v19 = vpop.permute.xlu1 %1142  ;;  %3351 = vmatpush3.msra.mxu0 %v1145_v18 }
 0x24e   : > { %3352 = vmatprep.subr.mxu0 %v1143_v19 }
 0x24f   : > { %3353 = vmatpush3.msra.mxu0 %v1143_v19 }
 0x250   : > { %3354 = vmatprep.subr.msk.mxu0 %vm1137_vm3, %v1136_v7 }
 0x251   : > { %3355 = vmatpush3.msk.msra.mxu0 %vm1137_vm3, %v1136_v7 }
 0x252   : > { %3356 = vmatprep.subr.msk.mxu0 %vm1137_vm3, %v1135_v12  ;;  %v1162_v21 = vpop.permute.xlu0 %1161 }
 0x253   : > { %3357 = vmatpush3.msk.msra.mxu0 %vm1137_vm3, %v1135_v12 }
 0x254   : > { %3359 = vmatmul.mubr.msk.f32.vlgmr.msra.gmra.mxu0 %vm1164_vm4, %v1123_v20 }
 0x255   : > { %3388 = vmatprep.mubr.msk.f32.mxu0 %vm1164_vm4, %v1381_v58  ;;  %v1642_v58 = vld [vmem:[#allocation16 + $0x8] sm:$0xff] }
 0x25a   : > { %v1157_v23 = vpop.permute.xlu1 %1156 }
 0x314   : > { %v3360_v22 = vpop.f32.mrf.mxu0 }
 0x315   : > { %v1243_v24 = vadd.f32 %v3360_v22, %v1162_v21  ;;  %v1510_v22 = vld [vmem:[#allocation12] sm:$0xff] }
 0x316   : > { %v1237_v25 = vpop.f32.mrf.mxu0 }
 0x317   : > { %v1238_v26 = vadd.f32 %v1237_v25, %v1157_v23  ;;  %vm1247_vm5 = vcmp.ge.f32.partialorder %v1243_v24, 0.0  ;;  %v1249_v27 = vmul.f32 0.1, %v1243_v24 }
 0x319   : > { %v1248_v28 = vmul.f32 0.1, %v1238_v26  ;;  %v1251_v29 = vsel %vm1247_vm5, %v1243_v24, %v1249_v27  ;;  %vm1246_vm6 = vcmp.ge.f32.partialorder %v1238_v26, 0.0 }
 0x31a   : > { %1260 = vrot.lane.b32.xlu1 %v1251_v29, %s4605_s5  ;;  %v1512_v29 = vld [vmem:[#allocation13] sm:$0xff] }
 0x31b   : > { %v1250_v30 = vsel %vm1246_vm6, %v1238_v26, %v1248_v28  ;;  %v1513_v28 = vld [vmem:[#allocation13 + $0x8] sm:$0xff] }
 0x31c   : > { %1258 = vrot.lane.b32.xlu0 %v1250_v30, %s4605_s5 }
 0x38c   : > { %v1261_v31 = vpop.permute.xlu1 %1260 }
 0x38d   : > { %v1265_v33 = vsel %vm1134_vm2, 0.0, %v1261_v31 }
 0x38e   : > { %v1259_v34 = vpop.permute.xlu0 %1258  ;;  %v1267_v35 = vsel %vm1137_vm3, %v1265_v33, 0.0 }
 0x38f   : > { %v1264_v36 = vsel %vm1134_vm2, 0.0, %v1259_v34  ;;  %1278 = vrot.lane.b32.xlu1 %v1267_v35, %s4606_s25  ;;  %v1511_v34 = vld [vmem:[#allocation12 + $0x8] sm:$0xff] }
 0x390   : > { %v1266_v37 = vsel %vm1137_vm3, %v1264_v36, 0.0 }
 0x391   : > { %1276 = vrot.lane.b32.xlu0 %v1266_v37, %s4606_s25 }
 0x393   : > { %1272 = vrot.lane.b32.xlu1 %v1267_v35, %s4607_s28 }
 0x395   : > { %1270 = vrot.lane.b32.xlu0 %v1266_v37, %s4607_s28 }
 0x397   : > { %1289 = vperm.xlu1 %3894, %v1255_v38  }
 0x399   : > { %1284 = vperm.xlu0 %3893, %v1254_v39  }
 0x401   : > { %v1279_v40 = vpop.permute.xlu1 %1278 }
 0x402   : > { %3361 = vmatprep.subr.mxu1 %v1279_v40 }
 0x403   : > { %3362 = vmatpush3.msra.mxu1 %v1279_v40  ;;  %v1277_v41 = vpop.permute.xlu0 %1276 }
 0x404   : > { %3363 = vmatprep.subr.mxu1 %v1277_v41 }
 0x405   : > { %v1273_v42 = vpop.permute.xlu1 %1272  ;;  %3364 = vmatpush3.msra.mxu1 %v1277_v41 }
 0x406   : > { %3365 = vmatprep.subr.mxu1 %v1273_v42 }
 0x407   : > { %3366 = vmatpush3.msra.mxu1 %v1273_v42  ;;  %v1271_v43 = vpop.permute.xlu0 %1270 }
 0x408   : > { %3367 = vmatprep.subr.mxu1 %v1271_v43 }
 0x409   : > { %3368 = vmatpush3.msra.mxu1 %v1271_v43 }
 0x40a   : > { %3369 = vmatprep.subr.msk.mxu1 %vm1137_vm3, %v1265_v33 }
 0x40b   : > { %3370 = vmatpush3.msk.msra.mxu1 %vm1137_vm3, %v1265_v33 }
 0x40c   : > { %3371 = vmatprep.subr.msk.mxu1 %vm1137_vm3, %v1264_v36 }
 0x40d   : > { %3372 = vmatpush3.msk.msra.mxu1 %vm1137_vm3, %v1264_v36 }
 0x40e   : > { %3374 = vmatmul.mubr.msk.f32.vlgmr.msra.gmra.mxu1 %vm1164_vm4, %v1253_v44 }
 0x40f   : > { %3403 = vmatprep.mubr.msk.f32.mxu1 %vm1164_vm4, %v1510_v22 }
 0x412   : > { %v1290_v45 = vpop.permute.xlu1 %1289 }
 0x414   : > { %v1285_v48 = vpop.permute.xlu0 %1284 }
 0x4ce   : > { %v3375_v46 = vpop.f32.mrf.mxu1 }
 0x4cf   : > { %v1370_v47 = vadd.f32 %v3375_v46, %v1290_v45 }
 0x4d0   : > { %v1364_v49 = vpop.f32.mrf.mxu1 }
 0x4d1   : > { %v5154_v50 = vadd.f32 %v1370_v47, %v5105_v0  ;;  %v1365_v51 = vadd.f32 %v1364_v49, %v1285_v48  ;;  %v1639_v48 = vld [vmem:[#allocation15] sm:$0xff] }
 0x4d3   : > { %v5157_v52 = vadd.f32 %v1365_v51, %v5107_v1  ;;  %vm1376_vm7 = vcmp.ge.f32.partialorder %v5154_v50, 0.0  ;;  %v1378_v53 = vmul.f32 0.1, %v5154_v50 }
 0x4d5   : > { %v1380_v54 = vsel %vm1376_vm7, %v5154_v50, %v1378_v53  ;;  %vm1375_vm8 = vcmp.ge.f32.partialorder %v5157_v52, 0.0  ;;  %v1377_v55 = vmul.f32 0.1, %v5157_v52 }
 0x4d6   : > { %1389 = vrot.lane.b32.xlu1 %v1380_v54, %s4609_s7 }
 0x4d7   : > { %v1379_v56 = vsel %vm1375_vm8, %v5157_v52, %v1377_v55 }
 0x4d8   : > { %1387 = vrot.lane.b32.xlu0 %v1379_v56, %s4609_s7 }
 0x548   : > { %v1390_v57 = vpop.permute.xlu1 %1389 }
 0x549   : > { %v1395_v59 = vsel %vm1393_vm9, 0.0, %v1390_v57 }
 0x54a   : > { %v1388_v60 = vpop.permute.xlu0 %1387  ;;  %v1398_v61 = vsel %vm1396_vm10, %v1395_v59, 0.0 }
 0x54b   : > { %v1394_v62 = vsel %vm1393_vm9, 0.0, %v1388_v60  ;;  %1409 = vrot.lane.b32.xlu1 %v1398_v61, %s4610_s8  ;;  %v1894_v60 = vld [vmem:[#allocation22 + $0x8] sm:$0xff] }
 0x54c   : > { %v1397_v63 = vsel %vm1396_vm10, %v1394_v62, 0.0 }
 0x54d   : > { %1407 = vrot.lane.b32.xlu0 %v1397_v63, %s4610_s8 }
 0x54f   : > { %1403 = vrot.lane.b32.xlu1 %v1398_v61, %s4611_s3  ;;  %v1893_v61 = vld [vmem:[#allocation22] sm:$0xff] }
 0x551   : > { %1401 = vrot.lane.b32.xlu0 %v1397_v63, %s4611_s3 }
 0x553   : > { %1420 = vperm.xlu1 %3894, %v1384_v2  }
 0x555   : > { %1415 = vperm.xlu0 %3893, %v1383_v3  }
 0x5bd   : > { %v1410_v6 = vpop.permute.xlu1 %1409 }
 0x5be   : > { %3376 = vmatprep.subr.mxu0 %v1410_v6 }
 0x5bf   : > { %3377 = vmatpush3.msra.mxu0 %v1410_v6  ;;  %v1408_v7 = vpop.permute.xlu0 %1407 }
 0x5c0   : > { %3378 = vmatprep.subr.mxu0 %v1408_v7 }
 0x5c1   : > { %v1404_v8 = vpop.permute.xlu1 %1403  ;;  %3379 = vmatpush3.msra.mxu0 %v1408_v7 }
 0x5c2   : > { %3380 = vmatprep.subr.mxu0 %v1404_v8 }
 0x5c3   : > { %3381 = vmatpush3.msra.mxu0 %v1404_v8  ;;  %v1402_v9 = vpop.permute.xlu0 %1401  ;;  %v1640_v8 = vld [vmem:[#allocation15 + $0x8] sm:$0xff] }
 0x5c4   : > { %3382 = vmatprep.subr.mxu0 %v1402_v9 }
 0x5c5   : > { %3383 = vmatpush3.msra.mxu0 %v1402_v9  ;;  %v1891_v9 = vld [vmem:[#allocation21] sm:$0xff] }
 0x5c6   : > { %3384 = vmatprep.subr.msk.mxu0 %vm1396_vm10, %v1395_v59 }
 0x5c7   : > { %3385 = vmatpush3.msk.msra.mxu0 %vm1396_vm10, %v1395_v59  ;;  %v1641_v59 = vld [vmem:[#allocation16] sm:$0xff] }
 0x5c8   : > { %3386 = vmatprep.subr.msk.mxu0 %vm1396_vm10, %v1394_v62 }
 0x5c9   : > { %3387 = vmatpush3.msk.msra.mxu0 %vm1396_vm10, %v1394_v62 }
 0x5ca   : > { %3389 = vmatmul.mubr.msk.f32.vlgmr.msra.gmra.mxu0 %vm1164_vm4, %v1382_v10 }
 0x5cb   : > { %3418 = vmatprep.mubr.msk.f32.mxu0 %vm1164_vm4, %v1639_v48 }
 0x5ce   : > { %v1421_v11 = vpop.permute.xlu1 %1420 }
 0x5d0   : > { %v1416_v14 = vpop.permute.xlu0 %1415 }
 0x68a   : > { %v3390_v12 = vpop.f32.mrf.mxu0 }
 0x68b   : > { %v1501_v13 = vadd.f32 %v3390_v12, %v1421_v11 }
 0x68c   : > { %v1495_v15 = vpop.f32.mrf.mxu0 }
 0x68d   : > { %v1507_v16 = vmul.f32 0.1, %v1501_v13  ;;  %v1496_v17 = vadd.f32 %v1495_v15, %v1416_v14  ;;  %vm1505_vm11 = vcmp.ge.f32.partialorder %v1501_v13, 0.0 }
 0x68f   : > { %v1506_v18 = vmul.f32 0.1, %v1496_v17  ;;  %v1509_v19 = vsel %vm1505_vm11, %v1501_v13, %v1507_v16  ;;  %vm1504_vm12 = vcmp.ge.f32.partialorder %v1496_v17, 0.0  ;;  %vm2209_vm11 = vcmask 334848  }
 0x690   : > { %1518 = vrot.lane.b32.xlu1 %v1509_v19, %s4605_s5 }
 0x691   : > { %v1508_v20 = vsel %vm1504_vm12, %v1496_v17, %v1506_v18 }
 0x692   : > { %1516 = vrot.lane.b32.xlu0 %v1508_v20, %s4605_s5  ;;  %v1892_v20 = vld [vmem:[#allocation21 + $0x8] sm:$0xff] }
 0x702   : > { %v1519_v21 = vpop.permute.xlu1 %1518 }
 0x703   : > { %v1523_v23 = vsel %vm1134_vm2, 0.0, %v1519_v21 }
 0x704   : > { %v1517_v24 = vpop.permute.xlu0 %1516  ;;  %v1525_v25 = vsel %vm1137_vm3, %v1523_v23, 0.0 }
 0x705   : > { %v1522_v26 = vsel %vm1134_vm2, 0.0, %v1517_v24  ;;  %1536 = vrot.lane.b32.xlu1 %v1525_v25, %s4606_s25 }
 0x706   : > { %v1524_v27 = vsel %vm1137_vm3, %v1522_v26, 0.0 }
 0x707   : > { %1534 = vrot.lane.b32.xlu0 %v1524_v27, %s4606_s25 }
 0x709   : > { %1530 = vrot.lane.b32.xlu1 %v1525_v25, %s4607_s28 }
 0x70b   : > { %1528 = vrot.lane.b32.xlu0 %v1524_v27, %s4607_s28 }
 0x70d   : > { %1547 = vperm.xlu1 %3894, %v1513_v28  }
 0x70f   : > { %1542 = vperm.xlu0 %3893, %v1512_v29  }
 0x777   : > { %v1537_v30 = vpop.permute.xlu1 %1536 }
 0x778   : > { %3391 = vmatprep.subr.mxu1 %v1537_v30 }
 0x779   : > { %3392 = vmatpush3.msra.mxu1 %v1537_v30  ;;  %v1535_v31 = vpop.permute.xlu0 %1534 }
 0x77a   : > { %3393 = vmatprep.subr.mxu1 %v1535_v31 }
 0x77b   : > { %v1531_v32 = vpop.permute.xlu1 %1530  ;;  %3394 = vmatpush3.msra.mxu1 %v1535_v31 }
 0x77c   : > { %3395 = vmatprep.subr.mxu1 %v1531_v32 }
 0x77d   : > { %3396 = vmatpush3.msra.mxu1 %v1531_v32  ;;  %v1529_v33 = vpop.permute.xlu0 %1528 }
 0x77e   : > { %3397 = vmatprep.subr.mxu1 %v1529_v33 }
 0x77f   : > { %3398 = vmatpush3.msra.mxu1 %v1529_v33 }
 0x780   : > { %3399 = vmatprep.subr.msk.mxu1 %vm1137_vm3, %v1523_v23 }
 0x781   : > { %3400 = vmatpush3.msk.msra.mxu1 %vm1137_vm3, %v1523_v23 }
 0x782   : > { %3401 = vmatprep.subr.msk.mxu1 %vm1137_vm3, %v1522_v26 }
 0x783   : > { %3402 = vmatpush3.msk.msra.mxu1 %vm1137_vm3, %v1522_v26 }
 0x784   : > { %3404 = vmatmul.mubr.msk.f32.vlgmr.msra.gmra.mxu1 %vm1164_vm4, %v1511_v34 }
 0x788   : > { %v1548_v35 = vpop.permute.xlu1 %1547 }
 0x78a   : > { %v1543_v38 = vpop.permute.xlu0 %1542 }
 0x844   : > { %v3405_v36 = vpop.f32.mrf.mxu1 }
 0x845   : > { %v1628_v37 = vadd.f32 %v3405_v36, %v1548_v35 }
 0x846   : > { %v1622_v39 = vpop.f32.mrf.mxu1 }
 0x847   : > { %v5198_v40 = vadd.f32 %v1628_v37, %v5154_v50  ;;  %v1623_v41 = vadd.f32 %v1622_v39, %v1543_v38 }
 0x849   : > { %v5201_v42 = vadd.f32 %v1623_v41, %v5157_v52  ;;  %vm1634_vm13 = vcmp.ge.f32.partialorder %v5198_v40, 0.0  ;;  %v1636_v43 = vmul.f32 0.1, %v5198_v40 }
 0x84b   : > { %v1638_v44 = vsel %vm1634_vm13, %v5198_v40, %v1636_v43  ;;  %vm1633_vm14 = vcmp.ge.f32.partialorder %v5201_v42, 0.0  ;;  %v1635_v45 = vmul.f32 0.1, %v5201_v42 }
 0x84c   : > { %1647 = vrot.lane.b32.xlu1 %v1638_v44, %s4612_s27 }
 0x84d   : > { %v1637_v46 = vsel %vm1633_vm14, %v5201_v42, %v1635_v45  ;;  %v1768_v45 = vld [vmem:[#allocation18] sm:$0xff] }
 0x84e   : > { %1645 = vrot.lane.b32.xlu0 %v1637_v46, %s4612_s27  ;;  %3433 = vmatprep.mubr.msk.f32.mxu1 %vm1164_vm4, %v1768_v45  ;;  %s4621_s27 = smov 15  }
 0x850   : > { %1897 = vrot.lane.b32.xlu1 %v5114_v4, %s4609_s7 }
 0x852   : > { %1895 = vrot.lane.b32.xlu0 %v5119_v5, %s4609_s7 }
 0x8be   : > { %v1648_v47 = vpop.permute.xlu1 %1647 }
 0x8bf   : > { %v1653_v49 = vsel %vm1651_vm15, 0.0, %v1648_v47 }
 0x8c0   : > { %v1646_v50 = vpop.permute.xlu0 %1645  ;;  %v1656_v51 = vsel %vm1654_vm0, %v1653_v49, 0.0 }
 0x8c1   : > { %v1652_v52 = vsel %vm1651_vm15, 0.0, %v1646_v50  ;;  %1667 = vrot.lane.b32.xlu1 %v1656_v51, %s4613_s4 }
 0x8c2   : > { %v1655_v53 = vsel %vm1654_vm0, %v1652_v52, 0.0  ;;  %v1898_v4 = vpop.permute.xlu1 %1897 }
 0x8c3   : > { %1665 = vrot.lane.b32.xlu0 %v1655_v53, %s4613_s4  ;;  %v5219_v5 = vsel %vm1393_vm9, 0.0, %v1898_v4 }
 0x8c4   : > { %v1896_v54 = vpop.permute.xlu0 %1895  ;;  %v1904_v56 = vsel %vm1396_vm10, %v5219_v5, 0.0 }
 0x8c5   : > { %1661 = vrot.lane.b32.xlu1 %v1656_v51, %s4614_s29  ;;  %v5223_v55 = vsel %vm1393_vm9, 0.0, %v1896_v54  ;;  %v2044_v54 = vld [vmem:[#allocation25 + $0x8] sm:$0xff] }
 0x8c6   : > { %v1903_v57 = vsel %vm1396_vm10, %v5223_v55, 0.0 }
 0x8c7   : > { %1659 = vrot.lane.b32.xlu0 %v1655_v53, %s4614_s29 }
 0x8c9   : > { %1939 = vrot.lane.b32.xlu1 %v1904_v56, %s4610_s8 }
 0x8cb   : > { %1937 = vrot.lane.b32.xlu0 %v1903_v57, %s4610_s8 }
 0x8cd   : > { %1933 = vrot.lane.b32.xlu1 %v1904_v56, %s4614_s29 }
 0x8cf   : > { %1931 = vrot.lane.b32.xlu0 %v1903_v57, %s4614_s29 }
 0x8d1   : > { %1927 = vrot.lane.b32.xlu1 %v1904_v56, %s4615_s26 }
 0x8d3   : > { %1925 = vrot.lane.b32.xlu0 %v1903_v57, %s4615_s26 }
 0x8d5   : > { %1921 = vrot.lane.b32.xlu1 %v1904_v56, %s4611_s3 }
 0x8d7   : > { %1919 = vrot.lane.b32.xlu0 %v1903_v57, %s4611_s3 }
 0x8d9   : > { %1915 = vrot.lane.b32.xlu1 %v1904_v56, %s4606_s25 }
 0x8db   : > { %1913 = vrot.lane.b32.xlu0 %v1903_v57, %s4606_s25 }
 0x8dd   : > { %1909 = vrot.lane.b32.xlu1 %v1904_v56, %s4607_s28 }
 0x8df   : > { %1907 = vrot.lane.b32.xlu0 %v1903_v57, %s4607_s28 }
 0x8e1   : > { %1678 = vperm.xlu1 %3894, %v1642_v58  }
 0x8e3   : > { %1673 = vperm.xlu0 %3893, %v1641_v59  }
 0x8e5   : > { %1950 = vperm.xlu1 %3894, %v1894_v60   ;;  %v1769_v60 = vld [vmem:[#allocation18 + $0x8] sm:$0xff] }
 0x8e7   : > { %1945 = vperm.xlu0 %3893, %v1893_v61   ;;  %v2041_v61 = vld [vmem:[#allocation24] sm:$0xff] }
 0x933   : > { %v1668_v62 = vpop.permute.xlu1 %1667 }
 0x934   : > { %3406 = vmatprep.subr.mxu0 %v1668_v62 }
 0x935   : > { %3407 = vmatpush3.msra.mxu0 %v1668_v62  ;;  %v1666_v63 = vpop.permute.xlu0 %1665 }
 0x936   : > { %3408 = vmatprep.subr.mxu0 %v1666_v63 }
 0x937   : > { %v1662_v2 = vpop.permute.xlu1 %1661  ;;  %3409 = vmatpush3.msra.mxu0 %v1666_v63 }
 0x938   : > { %3410 = vmatprep.subr.mxu0 %v1662_v2 }
 0x939   : > { %3411 = vmatpush3.msra.mxu0 %v1662_v2  ;;  %v1660_v3 = vpop.permute.xlu0 %1659 }
 0x93a   : > { %3412 = vmatprep.subr.mxu0 %v1660_v3 }
 0x93b   : > { %v1940_v6 = vpop.permute.xlu1 %1939  ;;  %3413 = vmatpush3.msra.mxu0 %v1660_v3 }
 0x93c   : > { %3414 = vmatprep.subr.msk.mxu0 %vm1654_vm0, %v1653_v49 }
 0x93d   : > { %3415 = vmatpush3.msk.msra.mxu0 %vm1654_vm0, %v1653_v49  ;;  %v1938_v7 = vpop.permute.xlu0 %1937 }
 0x93e   : > { %3416 = vmatprep.subr.msk.mxu0 %vm1654_vm0, %v1652_v52 }
 0x93f   : > { %v1934_v10 = vpop.permute.xlu1 %1933  ;;  %3417 = vmatpush3.msk.msra.mxu0 %vm1654_vm0, %v1652_v52  ;;  %vm2512_vm0 = vcmask 121856  }
 0x940   : > { %3419 = vmatmul.mubr.msk.f32.vlgmr.msra.gmra.mxu0 %vm1164_vm4, %v1640_v8  ;;  %3436 = vmatprep.subr.mxu0 %v1940_v6 }
 0x941   : > { %3437 = vmatpush3.msra.mxu0 %v1940_v6  ;;  %v1932_v11 = vpop.permute.xlu0 %1931  ;;  %3464 = vmatprep.mubr.msk.f32.mxu0 %vm1953_vm1, %v1891_v9 }
 0x942   : > { %3438 = vmatprep.subr.mxu0 %v1938_v7 }
 0x943   : > { %v1928_v12 = vpop.permute.xlu1 %1927  ;;  %3439 = vmatpush3.msra.mxu0 %v1938_v7 }
 0x944   : > { %3440 = vmatprep.subr.mxu0 %v1934_v10 }
 0x945   : > { %3441 = vmatpush3.msra.mxu0 %v1934_v10  ;;  %v1926_v13 = vpop.permute.xlu0 %1925 }
 0x946   : > { %3442 = vmatprep.subr.mxu0 %v1932_v11 }
 0x947   : > { %v1922_v14 = vpop.permute.xlu1 %1921  ;;  %3443 = vmatpush3.msra.mxu0 %v1932_v11 }
 0x948   : > { %3444 = vmatprep.subr.mxu0 %v1928_v12 }
 0x949   : > { %3445 = vmatpush3.msra.mxu0 %v1928_v12  ;;  %v1920_v15 = vpop.permute.xlu0 %1919 }
 0x94a   : > { %3446 = vmatprep.subr.mxu0 %v1926_v13 }
 0x94b   : > { %3447 = vmatpush3.msra.mxu0 %v1926_v13  ;;  %v1916_v16 = vpop.permute.xlu1 %1915 }
 0x94c   : > { %3448 = vmatprep.subr.mxu0 %v1922_v14 }
 0x94d   : > { %3449 = vmatpush3.msra.mxu0 %v1922_v14  ;;  %v1914_v17 = vpop.permute.xlu0 %1913  ;;  %v2042_v14 = vld [vmem:[#allocation24 + $0x8] sm:$0xff] }
 0x94e   : > { %3450 = vmatprep.subr.mxu0 %v1920_v15 }
 0x94f   : > { %3451 = vmatpush3.msra.mxu0 %v1920_v15  ;;  %v1910_v18 = vpop.permute.xlu1 %1909 }
 0x950   : > { %3452 = vmatprep.subr.mxu0 %v1916_v16 }
 0x951   : > { %3453 = vmatpush3.msra.mxu0 %v1916_v16  ;;  %v1908_v19 = vpop.permute.xlu0 %1907 }
 0x952   : > { %3454 = vmatprep.subr.mxu0 %v1914_v17 }
 0x953   : > { %3455 = vmatpush3.msra.mxu0 %v1914_v17 }
 0x954   : > { %3456 = vmatprep.subr.mxu0 %v1910_v18 }
 0x955   : > { %3457 = vmatpush3.msra.mxu0 %v1910_v18 }
 0x956   : > { %3458 = vmatprep.subr.mxu0 %v1908_v19 }
 0x957   : > { %3459 = vmatpush3.msra.mxu0 %v1908_v19 }
 0x958   : > { %3460 = vmatprep.subr.msk.mxu0 %vm1396_vm10, %v5219_v5 }
 0x959   : > { %3461 = vmatpush3.msk.msra.mxu0 %vm1396_vm10, %v5219_v5 }
 0x95a   : > { %3462 = vmatprep.subr.msk.mxu0 %vm1396_vm10, %v5223_v55 }
 0x95b   : > { %3463 = vmatpush3.msk.msra.mxu0 %vm1396_vm10, %v5223_v55  ;;  %v2043_v55 = vld [vmem:[#allocation25] sm:$0xff] }
 0x95c   : > { %3465 = vmatmul.mubr.msk.f32.vlgmr.msra.gmra.mxu0 %vm1953_vm1, %v1892_v20  ;;  %v1679_v21 = vpop.permute.xlu1 %1678 }
 0x95e   : > { %v1674_v24 = vpop.permute.xlu0 %1673 }
 0x960   : > { %v1951_v31 = vpop.permute.xlu1 %1950 }
 0x962   : > { %v1946_v34 = vpop.permute.xlu0 %1945 }
 0xa00   : > { %v3420_v22 = vpop.f32.mrf.mxu0 }
 0xa01   : > { %v1759_v23 = vadd.f32 %v3420_v22, %v1679_v21 }
 0xa02   : > { %v1753_v25 = vpop.f32.mrf.mxu0 }
 0xa03   : > { %v1765_v26 = vmul.f32 0.1, %v1759_v23  ;;  %v1754_v27 = vadd.f32 %v1753_v25, %v1674_v24  ;;  %vm1763_vm5 = vcmp.ge.f32.partialorder %v1759_v23, 0.0 }
 0xa05   : > { %v1764_v28 = vmul.f32 0.1, %v1754_v27  ;;  %v1767_v29 = vsel %vm1763_vm5, %v1759_v23, %v1765_v26  ;;  %vm1762_vm6 = vcmp.ge.f32.partialorder %v1754_v27, 0.0  ;;  %vm2515_vm5 = vcmask 384000  }
 0xa06   : > { %1776 = vrot.lane.b32.xlu1 %v1767_v29, %s4605_s5 }
 0xa07   : > { %v1766_v30 = vsel %vm1762_vm6, %v1754_v27, %v1764_v28 }
 0xa08   : > { %1774 = vrot.lane.b32.xlu0 %v1766_v30, %s4605_s5  ;;  %s4620_s5 = smov 119  }
 0xa1c   : > { %v3466_v32 = vpop.f32.mrf.mxu0 }
 0xa1d   : > { %v2032_v33 = vadd.f32 %v3466_v32, %v1951_v31 }
 0xa1e   : > { %v2026_v35 = vpop.f32.mrf.mxu0 }
 0xa1f   : > { %v2038_v36 = vmul.f32 0.1, %v2032_v33  ;;  %v2027_v37 = vadd.f32 %v2026_v35, %v1946_v34  ;;  %vm2036_vm7 = vcmp.ge.f32.partialorder %v2032_v33, 0.0  ;;  %v2197_v34 = vld [vmem:[#allocation28 + $0x8] sm:$0xff]  ;;  %v2196_v35 = vld [vmem:[#allocation28] sm:$0xff] }
 0xa21   : > { %v2037_v38 = vmul.f32 0.1, %v2027_v37  ;;  %v2040_v39 = vsel %vm2036_vm7, %v2032_v33, %v2038_v36  ;;  %vm2035_vm8 = vcmp.ge.f32.partialorder %v2027_v37, 0.0  ;;  %v2194_v33 = vld [vmem:[#allocation27] sm:$0xff] }
 0xa22   : > { %2049 = vrot.lane.b32.xlu1 %v2040_v39, %s4609_s7  ;;  %3526 = vmatprep.mubr.msk.f32.mxu0 %vm1953_vm1, %v2194_v33 }
 0xa23   : > { %v2039_v41 = vsel %vm2035_vm8, %v2027_v37, %v2037_v38 }
 0xa24   : > { %2047 = vrot.lane.b32.xlu0 %v2039_v41, %s4609_s7 }
 0xa78   : > { %v1777_v43 = vpop.permute.xlu1 %1776 }
 0xa79   : > { %v1781_v44 = vsel %vm1134_vm2, 0.0, %v1777_v43 }
 0xa7a   : > { %v1775_v46 = vpop.permute.xlu0 %1774  ;;  %v1783_v47 = vsel %vm1137_vm3, %v1781_v44, 0.0 }
 0xa7b   : > { %v1780_v48 = vsel %vm1134_vm2, 0.0, %v1775_v46  ;;  %1794 = vrot.lane.b32.xlu1 %v1783_v47, %s4606_s25 }
 0xa7c   : > { %v1782_v49 = vsel %vm1137_vm3, %v1780_v48, 0.0 }
 0xa7d   : > { %1792 = vrot.lane.b32.xlu0 %v1782_v49, %s4606_s25 }
 0xa7f   : > { %1788 = vrot.lane.b32.xlu1 %v1783_v47, %s4607_s28 }
 0xa81   : > { %1786 = vrot.lane.b32.xlu0 %v1782_v49, %s4607_s28 }
 0xa94   : > { %v2050_v50 = vpop.permute.xlu1 %2049 }
 0xa95   : > { %v5271_v51 = vsel %vm1393_vm9, 0.0, %v2050_v50  ;;  %v2195_v50 = vld [vmem:[#allocation27 + $0x8] sm:$0xff] }
 0xa96   : > { %v2056_v52 = vsel %vm1396_vm10, %v5271_v51, 0.0  ;;  %v2048_v53 = vpop.permute.xlu0 %2047 }
 0xa97   : > { %v5276_v4 = vsel %vm1393_vm9, 0.0, %v2048_v53  ;;  %2091 = vrot.lane.b32.xlu1 %v2056_v52, %s4610_s8 }
 0xa98   : > { %v2055_v5 = vsel %vm1396_vm10, %v5276_v4, 0.0 }
 0xa99   : > { %2089 = vrot.lane.b32.xlu0 %v2055_v5, %s4610_s8 }
 0xa9b   : > { %2085 = vrot.lane.b32.xlu1 %v2056_v52, %s4614_s29 }
 0xa9d   : > { %2083 = vrot.lane.b32.xlu0 %v2055_v5, %s4614_s29 }
 0xa9f   : > { %2079 = vrot.lane.b32.xlu1 %v2056_v52, %s4615_s26 }
 0xaa1   : > { %2077 = vrot.lane.b32.xlu0 %v2055_v5, %s4615_s26 }
 0xaa3   : > { %2073 = vrot.lane.b32.xlu1 %v2056_v52, %s4611_s3 }
 0xaa5   : > { %2071 = vrot.lane.b32.xlu0 %v2055_v5, %s4611_s3 }
 0xaa7   : > { %2067 = vrot.lane.b32.xlu1 %v2056_v52, %s4606_s25 }
 0xaa9   : > { %2065 = vrot.lane.b32.xlu0 %v2055_v5, %s4606_s25 }
 0xaab   : > { %2061 = vrot.lane.b32.xlu1 %v2056_v52, %s4607_s28 }
 0xaad   : > { %2059 = vrot.lane.b32.xlu0 %v2055_v5, %s4607_s28 }
 0xaaf   : > { %2102 = vperm.xlu1 %3894, %v2044_v54  }
 0xab1   : > { %2097 = vperm.xlu0 %3893, %v2043_v55  }
 0xaed   : > { %v1795_v56 = vpop.permute.xlu1 %1794 }
 0xaee   : > { %3421 = vmatprep.subr.mxu1 %v1795_v56 }
 0xaef   : > { %3422 = vmatpush3.msra.mxu1 %v1795_v56  ;;  %v1793_v57 = vpop.permute.xlu0 %1792 }
 0xaf0   : > { %3423 = vmatprep.subr.mxu1 %v1793_v57 }
 0xaf1   : > { %v1789_v58 = vpop.permute.xlu1 %1788  ;;  %3424 = vmatpush3.msra.mxu1 %v1793_v57 }
 0xaf2   : > { %3425 = vmatprep.subr.mxu1 %v1789_v58 }
 0xaf3   : > { %3426 = vmatpush3.msra.mxu1 %v1789_v58  ;;  %v1787_v59 = vpop.permute.xlu0 %1786 }
 0xaf4   : > { %3427 = vmatprep.subr.mxu1 %v1787_v59 }
 0xaf5   : > { %3428 = vmatpush3.msra.mxu1 %v1787_v59 }
 0xaf6   : > { %3429 = vmatprep.subr.msk.mxu1 %vm1137_vm3, %v1781_v44 }
 0xaf7   : > { %3430 = vmatpush3.msk.msra.mxu1 %vm1137_vm3, %v1781_v44 }
 0xaf8   : > { %3431 = vmatprep.subr.msk.mxu1 %vm1137_vm3, %v1780_v48 }
 0xaf9   : > { %3432 = vmatpush3.msk.msra.mxu1 %vm1137_vm3, %v1780_v48 }
 0xafa   : > { %3434 = vmatmul.mubr.msk.f32.vlgmr.msra.gmra.mxu1 %vm1164_vm4, %v1769_v60  ;;  %vm2206_vm4 = vcmask 72704  }
 0xafb   : > { %3495 = vmatprep.mubr.msk.f32.mxu1 %vm1953_vm1, %v2041_v61 }
 0xb09   : > { %v2092_v62 = vpop.permute.xlu1 %2091 }
 0xb0a   : > { %3467 = vmatprep.subr.mxu1 %v2092_v62 }
 0xb0b   : > { %3468 = vmatpush3.msra.mxu1 %v2092_v62  ;;  %v2090_v63 = vpop.permute.xlu0 %2089 }
 0xb0c   : > { %3469 = vmatprep.subr.mxu1 %v2090_v63 }
 0xb0d   : > { %v2086_v2 = vpop.permute.xlu1 %2085  ;;  %3470 = vmatpush3.msra.mxu1 %v2090_v63 }
 0xb0e   : > { %3471 = vmatprep.subr.mxu1 %v2086_v2 }
 0xb0f   : > { %3472 = vmatpush3.msra.mxu1 %v2086_v2  ;;  %v2084_v3 = vpop.permute.xlu0 %2083 }
 0xb10   : > { %3473 = vmatprep.subr.mxu1 %v2084_v3 }
 0xb11   : > { %v2080_v6 = vpop.permute.xlu1 %2079  ;;  %3474 = vmatpush3.msra.mxu1 %v2084_v3  ;;  %v2347_v3 = vld [vmem:[#allocation30] sm:$0xff] }
 0xb12   : > { %3475 = vmatprep.subr.mxu1 %v2080_v6 }
 0xb13   : > { %3476 = vmatpush3.msra.mxu1 %v2080_v6  ;;  %v2078_v7 = vpop.permute.xlu0 %2077  ;;  %v2350_v6 = vld [vmem:[#allocation31 + $0x8] sm:$0xff] }
 0xb14   : > { %3477 = vmatprep.subr.mxu1 %v2078_v7 }
 0xb15   : > { %v2074_v8 = vpop.permute.xlu1 %2073  ;;  %3478 = vmatpush3.msra.mxu1 %v2078_v7  ;;  %v2349_v7 = vld [vmem:[#allocation31] sm:$0xff] }
 0xb16   : > { %3479 = vmatprep.subr.mxu1 %v2074_v8 }
 0xb17   : > { %3480 = vmatpush3.msra.mxu1 %v2074_v8  ;;  %v2072_v9 = vpop.permute.xlu0 %2071 }
 0xb18   : > { %3481 = vmatprep.subr.mxu1 %v2072_v9 }
 0xb19   : > { %v2068_v10 = vpop.permute.xlu1 %2067  ;;  %3482 = vmatpush3.msra.mxu1 %v2072_v9 }
 0xb1a   : > { %3483 = vmatprep.subr.mxu1 %v2068_v10 }
 0xb1b   : > { %3484 = vmatpush3.msra.mxu1 %v2068_v10  ;;  %v2066_v11 = vpop.permute.xlu0 %2065 }
 0xb1c   : > { %3485 = vmatprep.subr.mxu1 %v2066_v11 }
 0xb1d   : > { %v2062_v12 = vpop.permute.xlu1 %2061  ;;  %3486 = vmatpush3.msra.mxu1 %v2066_v11 }
 0xb1e   : > { %3487 = vmatprep.subr.mxu1 %v2062_v12 }
 0xb1f   : > { %3488 = vmatpush3.msra.mxu1 %v2062_v12  ;;  %v2060_v13 = vpop.permute.xlu0 %2059 }
 0xb20   : > { %3489 = vmatprep.subr.mxu1 %v2060_v13 }
 0xb21   : > { %3490 = vmatpush3.msra.mxu1 %v2060_v13 }
 0xb22   : > { %3491 = vmatprep.subr.msk.mxu1 %vm1396_vm10, %v5271_v51 }
 0xb23   : > { %3492 = vmatpush3.msk.msra.mxu1 %vm1396_vm10, %v5271_v51 }
 0xb24   : > { %3493 = vmatprep.subr.msk.mxu1 %vm1396_vm10, %v5276_v4 }
 0xb25   : > { %3494 = vmatpush3.msk.msra.mxu1 %vm1396_vm10, %v5276_v4 }
 0xb26   : > { %3496 = vmatmul.mubr.msk.f32.vlgmr.msra.gmra.mxu1 %vm1953_vm1, %v2042_v14 }
 0xb27   : > { %3557 = vmatprep.mubr.msk.f32.mxu1 %vm1953_vm1, %v2347_v3 }
 0xb2a   : > { %v2103_v17 = vpop.permute.xlu1 %2102 }
 0xb2c   : > { %v2098_v20 = vpop.permute.xlu0 %2097 }
 0xbba   : > { %v5307_v15 = vpop.f32.mrf.mxu1 }
 0xbbc   : > { %v5309_v16 = vpop.f32.mrf.mxu1 }
 0xbe6   : > { %v3497_v18 = vpop.f32.mrf.mxu1 }
 0xbe7   : > { %v2183_v19 = vadd.f32 %v3497_v18, %v2103_v17 }
 0xbe8   : > { %v2177_v21 = vpop.f32.mrf.mxu1 }
 0xbe9   : > { %v5312_v22 = vadd.f32 %v2183_v19, %v5105_v0  ;;  %v2178_v23 = vadd.f32 %v2177_v21, %v2098_v20 }
 0xbeb   : > { %v5315_v24 = vadd.f32 %v2178_v23, %v5107_v1  ;;  %vm2189_vm2 = vcmp.ge.f32.partialorder %v5312_v22, 0.0  ;;  %v2191_v25 = vmul.f32 0.1, %v5312_v22  ;;  %v2348_v23 = vld [vmem:[#allocation30 + $0x8] sm:$0xff] }
 0xbed   : > { %v2193_v26 = vsel %vm2189_vm2, %v5312_v22, %v2191_v25  ;;  %vm2188_vm3 = vcmp.ge.f32.partialorder %v5315_v24, 0.0  ;;  %v2190_v27 = vmul.f32 0.1, %v5315_v24 }
 0xbee   : > { %2202 = vrot.lane.b32.xlu1 %v2193_v26, %s4616_s1 }
 0xbef   : > { %v2192_v28 = vsel %vm2188_vm3, %v5315_v24, %v2190_v27 }
 0xbf0   : > { %2200 = vrot.lane.b32.xlu0 %v2192_v28, %s4616_s1  ;;  %s4622_s1 = smov 98  }
 0xc60   : > { %v2203_v0 = vpop.permute.xlu1 %2202 }
 0xc61   : > { %v5323_v1 = vsel %vm2206_vm4, 0.0, %v2203_v0 }
 0xc62   : > { %v2211_v29 = vsel %vm2209_vm11, %v5323_v1, 0.0  ;;  %v2201_v30 = vpop.permute.xlu0 %2200 }
 0xc63   : > { %v5327_v31 = vsel %vm2206_vm4, 0.0, %v2201_v30  ;;  %2246 = vrot.lane.b32.xlu1 %v2211_v29, %s4617_s9 }
 0xc64   : > { %v2210_v32 = vsel %vm2209_vm11, %v5327_v31, 0.0 }
 0xc65   : > { %2244 = vrot.lane.b32.xlu0 %v2210_v32, %s4617_s9  ;;  %s4623_s9 = smov 103  }
 0xc67   : > { %2240 = vrot.lane.b32.xlu1 %v2211_v29, %s4618_s0 }
 0xc69   : > { %2238 = vrot.lane.b32.xlu0 %v2210_v32, %s4618_s0 }
 0xc6b   : > { %2234 = vrot.lane.b32.xlu1 %v2211_v29, %s4619_s30 }
 0xc6d   : > { %2232 = vrot.lane.b32.xlu0 %v2210_v32, %s4619_s30  ;;  %s4624_s30 = smov 108  }
 0xc6f   : > { %2228 = vrot.lane.b32.xlu1 %v2211_v29, %s4620_s5 }
 0xc71   : > { %2226 = vrot.lane.b32.xlu0 %v2210_v32, %s4620_s5 }
 0xc73   : > { %2222 = vrot.lane.b32.xlu1 %v2211_v29, %s4610_s8 }
 0xc75   : > { %2220 = vrot.lane.b32.xlu0 %v2210_v32, %s4610_s8 }
 0xc77   : > { %2216 = vrot.lane.b32.xlu1 %v2211_v29, %s4611_s3 }
 0xc79   : > { %2214 = vrot.lane.b32.xlu0 %v2210_v32, %s4611_s3 }
 0xc7b   : > { %2257 = vperm.xlu1 %3894, %v2197_v34  }
 0xc7d   : > { %2252 = vperm.xlu0 %3893, %v2196_v35  }
 0xcd5   : > { %v2247_v36 = vpop.permute.xlu1 %2246 }
 0xcd6   : > { %3498 = vmatprep.subr.mxu0 %v2247_v36 }
 0xcd7   : > { %3499 = vmatpush3.msra.mxu0 %v2247_v36  ;;  %v2245_v37 = vpop.permute.xlu0 %2244 }
 0xcd8   : > { %3500 = vmatprep.subr.mxu0 %v2245_v37 }
 0xcd9   : > { %v2241_v38 = vpop.permute.xlu1 %2240  ;;  %3501 = vmatpush3.msra.mxu0 %v2245_v37 }
 0xcda   : > { %3502 = vmatprep.subr.mxu0 %v2241_v38 }
 0xcdb   : > { %3503 = vmatpush3.msra.mxu0 %v2241_v38  ;;  %v2239_v39 = vpop.permute.xlu0 %2238 }
 0xcdc   : > { %3504 = vmatprep.subr.mxu0 %v2239_v39 }
 0xcdd   : > { %v2235_v41 = vpop.permute.xlu1 %2234  ;;  %3505 = vmatpush3.msra.mxu0 %v2239_v39  ;;  %v2500_v39 = vld [vmem:[#allocation33] sm:$0xff] }
 0xcde   : > { %3506 = vmatprep.subr.mxu0 %v2235_v41 }
 0xcdf   : > { %3507 = vmatpush3.msra.mxu0 %v2235_v41  ;;  %v2233_v43 = vpop.permute.xlu0 %2232  ;;  %v2503_v41 = vld [vmem:[#allocation34 + $0x8] sm:$0xff] }
 0xce0   : > { %3508 = vmatprep.subr.mxu0 %v2233_v43 }
 0xce1   : > { %v2229_v44 = vpop.permute.xlu1 %2228  ;;  %3509 = vmatpush3.msra.mxu0 %v2233_v43  ;;  %v2502_v43 = vld [vmem:[#allocation34] sm:$0xff] }
 0xce2   : > { %3510 = vmatprep.subr.mxu0 %v2229_v44 }
 0xce3   : > { %3511 = vmatpush3.msra.mxu0 %v2229_v44  ;;  %v2227_v45 = vpop.permute.xlu0 %2226 }
 0xce4   : > { %3512 = vmatprep.subr.mxu0 %v2227_v45 }
 0xce5   : > { %v2223_v46 = vpop.permute.xlu1 %2222  ;;  %3513 = vmatpush3.msra.mxu0 %v2227_v45 }
 0xce6   : > { %3514 = vmatprep.subr.mxu0 %v2223_v46 }
 0xce7   : > { %3515 = vmatpush3.msra.mxu0 %v2223_v46  ;;  %v2221_v47 = vpop.permute.xlu0 %2220 }
 0xce8   : > { %3516 = vmatprep.subr.mxu0 %v2221_v47 }
 0xce9   : > { %v2217_v48 = vpop.permute.xlu1 %2216  ;;  %3517 = vmatpush3.msra.mxu0 %v2221_v47 }
 0xcea   : > { %3518 = vmatprep.subr.mxu0 %v2217_v48 }
 0xceb   : > { %3519 = vmatpush3.msra.mxu0 %v2217_v48  ;;  %v2215_v49 = vpop.permute.xlu0 %2214 }
 0xcec   : > { %3520 = vmatprep.subr.mxu0 %v2215_v49 }
 0xced   : > { %3521 = vmatpush3.msra.mxu0 %v2215_v49 }
 0xcee   : > { %3522 = vmatprep.subr.msk.mxu0 %vm2209_vm11, %v5323_v1 }
 0xcef   : > { %3523 = vmatpush3.msk.msra.mxu0 %vm2209_vm11, %v5323_v1 }
 0xcf0   : > { %3524 = vmatprep.subr.msk.mxu0 %vm2209_vm11, %v5327_v31 }
 0xcf1   : > { %3525 = vmatpush3.msk.msra.mxu0 %vm2209_vm11, %v5327_v31 }
 0xcf2   : > { %3527 = vmatmul.mubr.msk.f32.vlgmr.msra.gmra.mxu0 %vm1953_vm1, %v2195_v50 }
 0xcf3   : > { %3588 = vmatprep.mubr.msk.f32.mxu0 %vm1953_vm1, %v2500_v39 }
 0xcf6   : > { %v2258_v51 = vpop.permute.xlu1 %2257 }
 0xcf8   : > { %v2253_v4 = vpop.permute.xlu0 %2252 }
 0xdb2   : > { %v3528_v52 = vpop.f32.mrf.mxu0 }
 0xdb3   : > { %v2338_v53 = vadd.f32 %v3528_v52, %v2258_v51 }
 0xdb4   : > { %v2332_v5 = vpop.f32.mrf.mxu0 }
 0xdb5   : > { %v2344_v54 = vmul.f32 0.1, %v2338_v53  ;;  %v2333_v55 = vadd.f32 %v2332_v5, %v2253_v4  ;;  %vm2342_vm12 = vcmp.ge.f32.partialorder %v2338_v53, 0.0 }
 0xdb7   : > { %v2343_v56 = vmul.f32 0.1, %v2333_v55  ;;  %v2346_v57 = vsel %vm2342_vm12, %v2338_v53, %v2344_v54  ;;  %vm2341_vm13 = vcmp.ge.f32.partialorder %v2333_v55, 0.0  ;;  %v2501_v54 = vld [vmem:[#allocation33 + $0x8] sm:$0xff] }
 0xdb8   : > { %2355 = vrot.lane.b32.xlu1 %v2346_v57, %s4609_s7 }
 0xdb9   : > { %v2345_v58 = vsel %vm2341_vm13, %v2333_v55, %v2343_v56 }
 0xdba   : > { %2353 = vrot.lane.b32.xlu0 %v2345_v58, %s4609_s7 }
 0xe2a   : > { %v2356_v59 = vpop.permute.xlu1 %2355 }
 0xe2b   : > { %v2360_v60 = vsel %vm1393_vm9, 0.0, %v2356_v59 }
 0xe2c   : > { %v2362_v61 = vsel %vm1396_vm10, %v2360_v60, 0.0  ;;  %v2354_v62 = vpop.permute.xlu0 %2353 }
 0xe2d   : > { %v2359_v63 = vsel %vm1393_vm9, 0.0, %v2354_v62  ;;  %2397 = vrot.lane.b32.xlu1 %v2362_v61, %s4610_s8 }
 0xe2e   : > { %v2361_v2 = vsel %vm1396_vm10, %v2359_v63, 0.0 }
 0xe2f   : > { %2395 = vrot.lane.b32.xlu0 %v2361_v2, %s4610_s8 }
 0xe31   : > { %2391 = vrot.lane.b32.xlu1 %v2362_v61, %s4614_s29 }
 0xe33   : > { %2389 = vrot.lane.b32.xlu0 %v2361_v2, %s4614_s29 }
 0xe35   : > { %2385 = vrot.lane.b32.xlu1 %v2362_v61, %s4615_s26 }
 0xe37   : > { %2383 = vrot.lane.b32.xlu0 %v2361_v2, %s4615_s26 }
 0xe39   : > { %2379 = vrot.lane.b32.xlu1 %v2362_v61, %s4611_s3 }
 0xe3b   : > { %2377 = vrot.lane.b32.xlu0 %v2361_v2, %s4611_s3 }
 0xe3d   : > { %2373 = vrot.lane.b32.xlu1 %v2362_v61, %s4606_s25 }
 0xe3f   : > { %2371 = vrot.lane.b32.xlu0 %v2361_v2, %s4606_s25 }
 0xe41   : > { %2367 = vrot.lane.b32.xlu1 %v2362_v61, %s4607_s28 }
 0xe43   : > { %2365 = vrot.lane.b32.xlu0 %v2361_v2, %s4607_s28 }
 0xe45   : > { %2408 = vperm.xlu1 %3894, %v2350_v6  }
 0xe47   : > { %2403 = vperm.xlu0 %3893, %v2349_v7  }
 0xe9f   : > { %v2398_v8 = vpop.permute.xlu1 %2397 }
 0xea0   : > { %3529 = vmatprep.subr.mxu1 %v2398_v8 }
 0xea1   : > { %3530 = vmatpush3.msra.mxu1 %v2398_v8  ;;  %v2396_v9 = vpop.permute.xlu0 %2395 }
 0xea2   : > { %3531 = vmatprep.subr.mxu1 %v2396_v9 }
 0xea3   : > { %v2392_v10 = vpop.permute.xlu1 %2391  ;;  %3532 = vmatpush3.msra.mxu1 %v2396_v9 }
 0xea4   : > { %3533 = vmatprep.subr.mxu1 %v2392_v10 }
 0xea5   : > { %3534 = vmatpush3.msra.mxu1 %v2392_v10  ;;  %v2390_v11 = vpop.permute.xlu0 %2389 }
 0xea6   : > { %3535 = vmatprep.subr.mxu1 %v2390_v11 }
 0xea7   : > { %v2386_v12 = vpop.permute.xlu1 %2385  ;;  %3536 = vmatpush3.msra.mxu1 %v2390_v11  ;;  %v2653_v11 = vld [vmem:[#allocation36] sm:$0xff] }
 0xea8   : > { %3537 = vmatprep.subr.mxu1 %v2386_v12 }
 0xea9   : > { %3538 = vmatpush3.msra.mxu1 %v2386_v12  ;;  %v2384_v13 = vpop.permute.xlu0 %2383  ;;  %v1770_v12 = vld [vmem:[#allocation19] sm:$0xff] }
 0xeaa   : > { %3539 = vmatprep.subr.mxu1 %v2384_v13 }
 0xeab   : > { %v2380_v14 = vpop.permute.xlu1 %2379  ;;  %3540 = vmatpush3.msra.mxu1 %v2384_v13  ;;  %v1771_v13 = vld [vmem:[#allocation19 + $0x8] sm:$0xff] }
 0xeac   : > { %3541 = vmatprep.subr.mxu1 %v2380_v14 }
 0xead   : > { %3542 = vmatpush3.msra.mxu1 %v2380_v14  ;;  %v2378_v17 = vpop.permute.xlu0 %2377  ;;  %v2655_v14 = vld [vmem:[#allocation37] sm:$0xff] }
 0xeae   : > { %3543 = vmatprep.subr.mxu1 %v2378_v17 }
 0xeaf   : > { %v2374_v18 = vpop.permute.xlu1 %2373  ;;  %3544 = vmatpush3.msra.mxu1 %v2378_v17  ;;  %v2656_v17 = vld [vmem:[#allocation37 + $0x8] sm:$0xff] }
 0xeb0   : > { %3545 = vmatprep.subr.mxu1 %v2374_v18 }
 0xeb1   : > { %3546 = vmatpush3.msra.mxu1 %v2374_v18  ;;  %v2372_v19 = vpop.permute.xlu0 %2371 }
 0xeb2   : > { %3547 = vmatprep.subr.mxu1 %v2372_v19 }
 0xeb3   : > { %v2368_v20 = vpop.permute.xlu1 %2367  ;;  %3548 = vmatpush3.msra.mxu1 %v2372_v19 }
 0xeb4   : > { %3549 = vmatprep.subr.mxu1 %v2368_v20 }
 0xeb5   : > { %3550 = vmatpush3.msra.mxu1 %v2368_v20  ;;  %v2366_v21 = vpop.permute.xlu0 %2365 }
 0xeb6   : > { %3551 = vmatprep.subr.mxu1 %v2366_v21 }
 0xeb7   : > { %3552 = vmatpush3.msra.mxu1 %v2366_v21 }
 0xeb8   : > { %3553 = vmatprep.subr.msk.mxu1 %vm1396_vm10, %v2360_v60 }
 0xeb9   : > { %3554 = vmatpush3.msk.msra.mxu1 %vm1396_vm10, %v2360_v60 }
 0xeba   : > { %3555 = vmatprep.subr.msk.mxu1 %vm1396_vm10, %v2359_v63 }
 0xebb   : > { %3556 = vmatpush3.msk.msra.mxu1 %vm1396_vm10, %v2359_v63 }
 0xebc   : > { %3558 = vmatmul.mubr.msk.f32.vlgmr.msra.gmra.mxu1 %vm1953_vm1, %v2348_v23 }
 0xebd   : > { %3619 = vmatprep.mubr.msk.f32.mxu1 %vm1953_vm1, %v2653_v11 }
 0xec0   : > { %v2409_v25 = vpop.permute.xlu1 %2408 }
 0xec2   : > { %v2404_v28 = vpop.permute.xlu0 %2403 }
 0xf7c   : > { %v3559_v26 = vpop.f32.mrf.mxu1 }
 0xf7d   : > { %v2489_v27 = vadd.f32 %v3559_v26, %v2409_v25 }
 0xf7e   : > { %v2483_v0 = vpop.f32.mrf.mxu1 }
 0xf7f   : > { %v5372_v1 = vadd.f32 %v2489_v27, %v5312_v22  ;;  %v2484_v29 = vadd.f32 %v2483_v0, %v2404_v28 }
 0xf81   : > { %v5375_v30 = vadd.f32 %v2484_v29, %v5315_v24  ;;  %vm2495_vm14 = vcmp.ge.f32.partialorder %v5372_v1, 0.0  ;;  %v2497_v31 = vmul.f32 0.1, %v5372_v1 }
 0xf83   : > { %v2499_v32 = vsel %vm2495_vm14, %v5372_v1, %v2497_v31  ;;  %vm2494_vm15 = vcmp.ge.f32.partialorder %v5375_v30, 0.0  ;;  %v2496_v33 = vmul.f32 0.1, %v5375_v30 }
 0xf84   : > { %2508 = vrot.lane.b32.xlu1 %v2499_v32, %s4621_s27  ;;  %v2654_v32 = vld [vmem:[#allocation36 + $0x8] sm:$0xff] }
 0xf85   : > { %v2498_v34 = vsel %vm2494_vm15, %v5375_v30, %v2496_v33 }
 0xf86   : > { %2506 = vrot.lane.b32.xlu0 %v2498_v34, %s4621_s27 }
 0xff6   : > { %v2509_v22 = vpop.permute.xlu1 %2508 }
 0xff7   : > { %v5383_v24 = vsel %vm2512_vm0, 0.0, %v2509_v22 }
 0xff8   : > { %v2517_v35 = vsel %vm2515_vm5, %v5383_v24, 0.0  ;;  %v2507_v36 = vpop.permute.xlu0 %2506 }
 0xff9   : > { %v5387_v37 = vsel %vm2512_vm0, 0.0, %v2507_v36  ;;  %2552 = vrot.lane.b32.xlu1 %v2517_v35, %s4622_s1 }
 0xffa   : > { %v2516_v38 = vsel %vm2515_vm5, %v5387_v37, 0.0 }
 0xffb   : > { %2550 = vrot.lane.b32.xlu0 %v2516_v38, %s4622_s1 }
 0xffd   : > { %2546 = vrot.lane.b32.xlu1 %v2517_v35, %s4623_s9 }
 0xfff   : > { %2544 = vrot.lane.b32.xlu0 %v2516_v38, %s4623_s9 }
0x1001   : > { %2540 = vrot.lane.b32.xlu1 %v2517_v35, %s4624_s30 }
0x1003   : > { %2538 = vrot.lane.b32.xlu0 %v2516_v38, %s4624_s30 }
0x1005   : > { %2534 = vrot.lane.b32.xlu1 %v2517_v35, %s4618_s0 }
0x1007   : > { %2532 = vrot.lane.b32.xlu0 %v2516_v38, %s4618_s0 }
0x1009   : > { %2528 = vrot.lane.b32.xlu1 %v2517_v35, %s4613_s4 }
0x100b   : > { %2526 = vrot.lane.b32.xlu0 %v2516_v38, %s4613_s4 }
0x100d   : > { %2522 = vrot.lane.b32.xlu1 %v2517_v35, %s4614_s29 }
0x100f   : > { %2520 = vrot.lane.b32.xlu0 %v2516_v38, %s4614_s29 }
0x1011   : > { %2563 = vperm.xlu1 %3894, %v2503_v41  }
0x1013   : > { %2558 = vperm.xlu0 %3893, %v2502_v43  }
0x106b   : > { %v2553_v44 = vpop.permute.xlu1 %2552 }
0x106c   : > { %3560 = vmatprep.subr.mxu0 %v2553_v44 }
0x106d   : > { %3561 = vmatpush3.msra.mxu0 %v2553_v44  ;;  %v2551_v45 = vpop.permute.xlu0 %2550 }
0x106e   : > { %3562 = vmatprep.subr.mxu0 %v2551_v45 }
0x106f   : > { %v2547_v46 = vpop.permute.xlu1 %2546  ;;  %3563 = vmatpush3.msra.mxu0 %v2551_v45 }
0x1070   : > { %3564 = vmatprep.subr.mxu0 %v2547_v46 }
0x1071   : > { %3565 = vmatpush3.msra.mxu0 %v2547_v46  ;;  %v2545_v47 = vpop.permute.xlu0 %2544 }
0x1072   : > { %3566 = vmatprep.subr.mxu0 %v2545_v47 }
0x1073   : > { %v2541_v48 = vpop.permute.xlu1 %2540  ;;  %3567 = vmatpush3.msra.mxu0 %v2545_v47 }
0x1074   : > { %3568 = vmatprep.subr.mxu0 %v2541_v48 }
0x1075   : > { %3569 = vmatpush3.msra.mxu0 %v2541_v48  ;;  %v2539_v49 = vpop.permute.xlu0 %2538 }
0x1076   : > { %3570 = vmatprep.subr.mxu0 %v2539_v49 }
0x1077   : > { %v2535_v50 = vpop.permute.xlu1 %2534  ;;  %3571 = vmatpush3.msra.mxu0 %v2539_v49 }
0x1078   : > { %3572 = vmatprep.subr.mxu0 %v2535_v50 }
0x1079   : > { %3573 = vmatpush3.msra.mxu0 %v2535_v50  ;;  %v2533_v51 = vpop.permute.xlu0 %2532 }
0x107a   : > { %3574 = vmatprep.subr.mxu0 %v2533_v51 }
0x107b   : > { %v2529_v52 = vpop.permute.xlu1 %2528  ;;  %3575 = vmatpush3.msra.mxu0 %v2533_v51 }
0x107c   : > { %3576 = vmatprep.subr.mxu0 %v2529_v52 }
0x107d   : > { %3577 = vmatpush3.msra.mxu0 %v2529_v52  ;;  %v2527_v53 = vpop.permute.xlu0 %2526 }
0x107e   : > { %3578 = vmatprep.subr.mxu0 %v2527_v53 }
0x107f   : > { %v2523_v4 = vpop.permute.xlu1 %2522  ;;  %3579 = vmatpush3.msra.mxu0 %v2527_v53 }
0x1080   : > { %3580 = vmatprep.subr.mxu0 %v2523_v4 }
0x1081   : > { %3581 = vmatpush3.msra.mxu0 %v2523_v4  ;;  %v2521_v5 = vpop.permute.xlu0 %2520 }
0x1082   : > { %3582 = vmatprep.subr.mxu0 %v2521_v5 }
0x1083   : > { %3583 = vmatpush3.msra.mxu0 %v2521_v5 }
0x1084   : > { %3584 = vmatprep.subr.msk.mxu0 %vm2515_vm5, %v5383_v24 }
0x1085   : > { %3585 = vmatpush3.msk.msra.mxu0 %vm2515_vm5, %v5383_v24 }
0x1086   : > { %3586 = vmatprep.subr.msk.mxu0 %vm2515_vm5, %v5387_v37 }
0x1087   : > { %3587 = vmatpush3.msk.msra.mxu0 %vm2515_vm5, %v5387_v37 }
0x1088   : > { %3589 = vmatmul.mubr.msk.f32.vlgmr.msra.gmra.mxu0 %vm1953_vm1, %v2501_v54 }
0x108c   : > { %v2564_v55 = vpop.permute.xlu1 %2563 }
0x108e   : > { %v2559_v58 = vpop.permute.xlu0 %2558 }
0x1148   : > { %v3590_v56 = vpop.f32.mrf.mxu0 }
0x1149   : > { %v2644_v57 = vadd.f32 %v3590_v56, %v2564_v55 }
0x114a   : > { %v2638_v59 = vpop.f32.mrf.mxu0 }
0x114b   : > { %vm2648_vm6 = vcmp.ge.f32.partialorder %v2644_v57, 0.0  ;;  %v2650_v60 = vmul.f32 0.1, %v2644_v57  ;;  %v2639_v61 = vadd.f32 %v2638_v59, %v2559_v58 }
0x114d   : > { %vm2647_vm7 = vcmp.ge.f32.partialorder %v2639_v61, 0.0  ;;  %v2649_v62 = vmul.f32 0.1, %v2639_v61  ;;  %v2652_v63 = vsel %vm2648_vm6, %v2644_v57, %v2650_v60 }
0x114e   : > { %2661 = vrot.lane.b32.xlu1 %v2652_v63, %s4609_s7 }
0x114f   : > { %v2651_v2 = vsel %vm2647_vm7, %v2639_v61, %v2649_v62 }
0x1150   : > { %2659 = vrot.lane.b32.xlu0 %v2651_v2, %s4609_s7  ;;  %s5507_s7 = sld [smem:[#allocation63_spill]] }
0x11c0   : > { %v2662_v3 = vpop.permute.xlu1 %2661 }
0x11c1   : > { %v5410_v6 = vsel %vm1393_vm9, 0.0, %v2662_v3 }
0x11c2   : > { %v2668_v7 = vsel %vm1396_vm10, %v5410_v6, 0.0  ;;  %v2660_v8 = vpop.permute.xlu0 %2659 }
0x11c3   : > { %v5415_v9 = vsel %vm1393_vm9, 0.0, %v2660_v8  ;;  %2703 = vrot.lane.b32.xlu1 %v2668_v7, %s4610_s8  ;;  %vm2804_vm9 = vcmask 261120  }
0x11c4   : > { %v2667_v10 = vsel %vm1396_vm10, %v5415_v9, 0.0 }
0x11c5   : > { %2701 = vrot.lane.b32.xlu0 %v2667_v10, %s4610_s8  ;;  %s1113_s8 = scalar_lea.vmem %s5507_s7, %s3200_s6 }
0x11c7   : > { %2697 = vrot.lane.b32.xlu1 %v2668_v7, %s4614_s29 }
0x11c9   : > { %2695 = vrot.lane.b32.xlu0 %v2667_v10, %s4614_s29 }
0x11cb   : > { %2691 = vrot.lane.b32.xlu1 %v2668_v7, %s4615_s26 }
0x11cd   : > { %2689 = vrot.lane.b32.xlu0 %v2667_v10, %s4615_s26 }
0x11cf   : > { %2685 = vrot.lane.b32.xlu1 %v2668_v7, %s4611_s3 }
0x11d1   : > { %2683 = vrot.lane.b32.xlu0 %v2667_v10, %s4611_s3 }
0x11d3   : > { %2679 = vrot.lane.b32.xlu1 %v2668_v7, %s4606_s25 }
0x11d5   : > { %2677 = vrot.lane.b32.xlu0 %v2667_v10, %s4606_s25 }
0x11d7   : > { %2673 = vrot.lane.b32.xlu1 %v2668_v7, %s4607_s28 }
0x11d9   : > { %2671 = vrot.lane.b32.xlu0 %v2667_v10, %s4607_s28 }
0x11db   : > { %1800 = vperm.xlu1 %3894, %v1770_v12  }
0x11dd   : > { %1805 = vperm.xlu0 %3893, %v1771_v13  }
0x11df   : > { %2709 = vperm.xlu1 %3894, %v2655_v14  }
0x11e1   : > { %2714 = vperm.xlu0 %3893, %v2656_v17  }
0x1235   : > { %v2704_v18 = vpop.permute.xlu1 %2703 }
0x1236   : > { %3591 = vmatprep.subr.mxu1 %v2704_v18 }
0x1237   : > { %3592 = vmatpush3.msra.mxu1 %v2704_v18  ;;  %v2702_v19 = vpop.permute.xlu0 %2701 }
0x1238   : > { %3593 = vmatprep.subr.mxu1 %v2702_v19 }
0x1239   : > { %v2698_v20 = vpop.permute.xlu1 %2697  ;;  %3594 = vmatpush3.msra.mxu1 %v2702_v19 }
0x123a   : > { %3595 = vmatprep.subr.mxu1 %v2698_v20 }
0x123b   : > { %3596 = vmatpush3.msra.mxu1 %v2698_v20  ;;  %v2696_v21 = vpop.permute.xlu0 %2695 }
0x123c   : > { %3597 = vmatprep.subr.mxu1 %v2696_v21 }
0x123d   : > { %v2692_v23 = vpop.permute.xlu1 %2691  ;;  %3598 = vmatpush3.msra.mxu1 %v2696_v21 }
0x123e   : > { %3599 = vmatprep.subr.mxu1 %v2692_v23 }
0x123f   : > { %3600 = vmatpush3.msra.mxu1 %v2692_v23  ;;  %v2690_v25 = vpop.permute.xlu0 %2689 }
0x1240   : > { %3601 = vmatprep.subr.mxu1 %v2690_v25 }
0x1241   : > { %v2686_v26 = vpop.permute.xlu1 %2685  ;;  %3602 = vmatpush3.msra.mxu1 %v2690_v25 }
0x1242   : > { %3603 = vmatprep.subr.mxu1 %v2686_v26 }
0x1243   : > { %3604 = vmatpush3.msra.mxu1 %v2686_v26  ;;  %v2684_v27 = vpop.permute.xlu0 %2683 }
0x1244   : > { %3605 = vmatprep.subr.mxu1 %v2684_v27 }
0x1245   : > { %v2680_v28 = vpop.permute.xlu1 %2679  ;;  %3606 = vmatpush3.msra.mxu1 %v2684_v27 }
0x1246   : > { %3607 = vmatprep.subr.mxu1 %v2680_v28 }
0x1247   : > { %3608 = vmatpush3.msra.mxu1 %v2680_v28  ;;  %v2678_v0 = vpop.permute.xlu0 %2677 }
0x1248   : > { %3609 = vmatprep.subr.mxu1 %v2678_v0 }
0x1249   : > { %v2674_v29 = vpop.permute.xlu1 %2673  ;;  %3610 = vmatpush3.msra.mxu1 %v2678_v0 }
0x124a   : > { %3611 = vmatprep.subr.mxu1 %v2674_v29 }
0x124b   : > { %3612 = vmatpush3.msra.mxu1 %v2674_v29  ;;  %v2672_v31 = vpop.permute.xlu0 %2671 }
0x124c   : > { %3613 = vmatprep.subr.mxu1 %v2672_v31 }
0x124d   : > { %3614 = vmatpush3.msra.mxu1 %v2672_v31 }
0x124e   : > { %3615 = vmatprep.subr.msk.mxu1 %vm1396_vm10, %v5410_v6 }
0x124f   : > { %3616 = vmatpush3.msk.msra.mxu1 %vm1396_vm10, %v5410_v6 }
0x1250   : > { %3617 = vmatprep.subr.msk.mxu1 %vm1396_vm10, %v5415_v9 }
0x1251   : > { %3618 = vmatpush3.msk.msra.mxu1 %vm1396_vm10, %v5415_v9 }
0x1252   : > { %3620 = vmatmul.mubr.msk.f32.vlgmr.msra.gmra.mxu1 %vm1953_vm1, %v2654_v32 }
0x1256   : > { %v1801_v34 = vpop.permute.xlu1 %1800 }
0x1257   : > { %v1881_v36 = vadd.f32 %v5309_v16, %v1801_v34 }
0x1258   : > { %v1806_v33 = vpop.permute.xlu0 %1805 }
0x1259   : > { %v1886_v22 = vadd.f32 %v5307_v15, %v1806_v33  ;;  %v1889_v45 = vadd.f32 %v1881_v36, %v5201_v42 }
0x125a   : > { %v2710_v38 = vpop.permute.xlu1 %2709 }
0x125b   : > { %v1890_v41 = vadd.f32 %v1886_v22, %v5198_v40 }
0x125c   : > { %v2715_v24 = vpop.permute.xlu0 %2714 }
0x1312   : > { %v3621_v35 = vpop.f32.mrf.mxu1 }
0x1313   : > { %v2795_v37 = vadd.f32 %v3621_v35, %v2715_v24 }
0x1314   : > { %v2789_v39 = vpop.f32.mrf.mxu1 }
0x1315   : > { %v2799_v43 = vadd.f32 %v2795_v37, %v5372_v1  ;;  %v2790_v44 = vadd.f32 %v2789_v39, %v2710_v38 }
0x1317   : > { %v2801_v46 = vadd.f32 %v2799_v43, %v1890_v41  ;;  %v2798_v47 = vadd.f32 %v2790_v44, %v5375_v30 }
0x1319   : > { %v2803_v15 = vmul.f32 0.5, %v2801_v46  ;;  %v2800_v16 = vadd.f32 %v2798_v47, %v1889_v45 }
0x131b   : > { %2806 = vst.msk [vmem:[%s1113_s8 + $0x8] sm:$0xff] %vm2804_vm9, %v2803_v15  ;;  %v2802_v48 = vmul.f32 0.5, %v2800_v16 }
0x131d   : > { %2805 = vst.msk [vmem:[%s1113_s8] sm:$0xff] %vm2804_vm9, %v2802_v48 }
0x131e PF: > { %s5508_s3 = sld [smem:[#allocation52_spill]] }
0x1324   : > { %s48_s29 = sadd.s32 1, %s5508_s3  }
0x1325   : > { %p45_p2 = scmp.ge.s32.totalorder %s48_s29, 4  }
0x1327   :  { %47 = sbr.rel (!%p45_p2) target bundleno = 25 (0x19), region = 247 }
0x132c   :  { %2828 = vsyncpa [#allocation3], 1 }
0x132d   :  { %2830 = vsyncpa [#allocation3 + $0x1], 1 }
0x132e   :  { %2831 = vsyncpa [#allocation5], 1 }
0x132f   :  { %2832 = vsyncpa [#allocation8], 1 }
0x1330   :  { %2833 = vsyncpa [#allocation11], 1 }
0x1331   :  { %2834 = vsyncpa [#allocation14], 1 }
0x1332   :  { %2835 = vsyncpa [#allocation17], 1 }
0x1333   :  { %2836 = vsyncpa [#allocation20], 1 }
0x1334   :  { %2837 = vsyncpa [#allocation23], 1 }
0x1335   :  { %2838 = vsyncpa [#allocation26], 1 }
0x1336   :  { %2839 = vsyncpa [#allocation29], 1 }
0x1337   :  { %2840 = vsyncpa [#allocation32], 1 }
0x1338   :  { %2841 = vsyncpa [#allocation35], 1 }
0x1339   :  { %2842 = vsyncpa [#allocation38], 1 }

// kernel: _lambda_.13
= control target key start
LH: loop header
LB: loop body
LE: loop exit
PB: predicated region body
PF: predicated region fallthrough
CT: control target
= control target key end

     0   :  { %8 = vsyncpa [#allocation3], 0  ;;  %s878_s0 = inlined_call_operand.vmem [shape: f32[2,8,135], index: 0, kind: input, shape index: {}]   ;;  %s879_s1 = inlined_call_operand.hbm [shape: f32[72,56], index: 1, kind: input, shape index: {}]   ;;  %s880_s2 = inlined_call_operand.hbm [shape: f32[72,1], index: 2, kind: input, shape index: {}]   ;;  %s881_s3 = inlined_call_operand.vmem [shape: f32[2,72,129], index: 3, kind: output, shape index: {}]  }
   0x1   :  { %9 = vsyncpa [#allocation5], 0  ;;  %s745_s12 = smov 0  }
   0x2 LB: > { %s751_s13 = sadd.s32 4294967295, %s711_s12   ;;  %p567_p0 = scmp.ge.s32.totalorder %s711_s12, 1  ;;  %s711_s12 = sphi %s745_s12, %s15_s12  }
   0x3   : > { %p114_p1 = scmp.lt.s32.totalorder %s711_s12, 3  ;;  %s713_s14 = smov [#allocation2]  }
   0x4   : > { %s126_s15 = sshll.u32 %s713_s14, 4  ;;  %p619_p3 = scmp.eq.s32.totalorder %s751_s13, 0  ;;  %s127_s15 = int_to_ptr.vmem [resolvable:$true] %s126_s15 }
   0x5   : > { %p755_p2 = pnand %p567_p0, %p114_p1  ;;  %s714_s17 = smov [#allocation4]  }
   0x6   : > { %s139_s18 = sshll.u32 %s714_s17, 4  ;;  %s656_s20 = scalar_lea.vmem %s127_s15, 1152  ;;  %s140_s18 = int_to_ptr.vmem [resolvable:$true] %s139_s18 }
   0x7   : > { %p612_p4 = pneg %p755_p2  ;;  %p657_p7 = scmp.ne.s32.totalorder %s127_s15, %s656_s20 }
   0x8   : > { %p664_p10 = scmp.lt.s32.totalorder %s127_s15, %s127_s15  ;;  %p665_p11 = scmp.lt.s32.totalorder %s656_s20, %s656_s20 }
   0x9   : > { %p764_p5 = pnand %p619_p3, %p612_p4 }
   0xa   : > { %p666_p12 = por %p665_p11, %p664_p10 }
   0xb   : > { %p647_p6 = pneg %p764_p5 }
   0xd   : > { %p659_p8 = pnand %p657_p7, %p647_p6 }
   0xf   : > { %p660_p9 = pneg %p659_p8 }
  0x11   : > { %p667_p13 = pnand %p666_p12, %p660_p9 }
  0x13   : > { %670 = shalt.err (!%p667_p13)
}
  0x14   : > { %s715_s21 = smov 128   ;;  %s716_s22 = smov 8  }
  0x15   : > { %615 = dma.hbm_to_vmem [thread:$0]  (!%p764_p5), %s879_s1, 1152, %s127_s15, [#allocation3], %s715_s21, %s715_s21, %s716_s22  }
  0x16   : > { %s682_s25 = scalar_lea.vmem %s140_s18, 1152  ;;  %p690_p7 = scmp.lt.s32.totalorder %s140_s18, %s140_s18 }
  0x17   : > { %p683_p0 = scmp.ne.s32.totalorder %s140_s18, %s682_s25  ;;  %p691_p8 = scmp.lt.s32.totalorder %s682_s25, %s682_s25 }
  0x19   : > { %p685_p1 = pnand %p683_p0, %p647_p6  ;;  %p692_p10 = por %p691_p8, %p690_p7 }
  0x1b   : > { %p686_p4 = pneg %p685_p1 }
  0x1d   : > { %p693_p9 = pnand %p692_p10, %p686_p4 }
  0x1f   : > { %696 = shalt.err (!%p693_p9)
}
  0x20   : > { %618 = dma.hbm_to_vmem [thread:$0]  (!%p764_p5), %s880_s2, 1152, %s140_s18, [#allocation5], %s715_s21, %s715_s21, %s716_s22  }
  0x21   : > { %163 = sbr.rel (%p755_p2) target bundleno = 403 (0x193), region = 32 }
  0x26   : > { %702 = dma.done.wait (%p619_p3), [#allocation3], 1152  }
  0x27   : > { %704 = vsyncadd (%p619_p3), [#allocation3], 4294966144 }
  0x28   : > { %706 = dma.done.wait (%p619_p3), [#allocation5], 1152  }
  0x29   : > { %708 = vsyncadd (%p619_p3), [#allocation5], 4294966144  ;;  %p191_p6 = scmp.lt.s32.totalorder %s751_s13, 1  ;;  %s717_s5 = smov 123   ;;  %v720_v6 = vmov 0.0   ;;  %v269_v7 = vld [vmem:[#allocation4 + $0x8] sm:$0xff] }
  0x2a   : > { %s718_s6 = smov 122   ;;  %s719_s7 = smov 124   ;;  %414 = vmatprep.mubr.f32.mxu0 %v720_v6  ;;  %444 = vmatprep.mubr.f32.mxu1 %v720_v6  ;;  %v724_v8 = vmov 0   ;;  %v268_v9 = vld [vmem:[#allocation4] sm:$0xff]  ;;  %v270_v10 = vld [vmem:[#allocation4 + $0x10] sm:$0xff]  ;;  %v271_v11 = vld [vmem:[#allocation4 + $0x18] sm:$0xff] }
  0x2b   : > { %s885_s13 = smov (!%p191_p6, %s751_s13), 1  ;;  %s721_s8 = smov 125   ;;  %644 = vset.pattern.permute.xlu1 %v724_v8  ;;  %643 = vset.pattern.permute.xlu0 %v724_v8  ;;  %v272_v12 = vld [vmem:[#allocation4 + $0x20] sm:$0xff]  ;;  %v273_v13 = vld [vmem:[#allocation4 + $0x28] sm:$0xff]  ;;  %v274_v14 = vld [vmem:[#allocation4 + $0x30] sm:$0xff]  ;;  %vm264_vm2 = vcmask 998400  }
  0x2c   : > { %s588_s28 = sshll.u32 %s885_s13, 4  ;;  %s722_s9 = smov 126   ;;  %v275_v15 = vld [vmem:[#allocation4 + $0x38] sm:$0xff]  ;;  %v276_v16 = vld [vmem:[#allocation4 + $0x40] sm:$0xff]  ;;  %vm256_vm3 = vcmask 1006592   ;;  %vm248_vm4 = vcmask 1014784  }
  0x2d   : > { %s195_s4 = scalar_lea.vmem %s878_s0, %s588_s28  ;;  %s723_s10 = smov 127   ;;  %vm240_vm5 = vcmask 1022976   ;;  %vm232_vm6 = vcmask 1031168   ;;  %vm224_vm7 = vcmask 1039360   ;;  %v209_v35 = vld [vmem:[#allocation2] sm:$0xff]  ;;  %vm322_vm8 = vcmask 457728  }
  0x2e   : > { %v201_v0 = vld [vmem:[%s195_s4] sm:$0xff]  ;;  %v202_v1 = vld [vmem:[%s195_s4 + $0x8] sm:$0xff]  ;;  %v215_v38 = vld [vmem:[#allocation2 + $0x30] sm:$0xff]  ;;  %s603_s11 = smul.u32 144, %s885_s13  ;;  %vm470_vm9 = vcmask 7168  }
  0x2f   : > { %vm203_vm0 = vcmp.ge.f32.partialorder %v201_v0, 0.0  ;;  %v205_v2 = vmul.f32 0.01, %v201_v0  ;;  %v206_v3 = vmul.f32 0.01, %v202_v1  ;;  %vm204_vm1 = vcmp.ge.f32.partialorder %v202_v1, 0.0 }
  0x30   : > { %v214_v36 = vld [vmem:[#allocation2 + $0x28] sm:$0xff]  ;;  %v211_v39 = vld [vmem:[#allocation2 + $0x10] sm:$0xff]  ;;  %v216_v40 = vld [vmem:[#allocation2 + $0x38] sm:$0xff]  ;;  %s846_s16 = scalar_lea.vmem %s881_s3, %s603_s11 }
  0x31   : > { %v804_v4 = vsel %vm203_vm0, %v201_v0, %v205_v2  ;;  %v808_v5 = vsel %vm204_vm1, %v202_v1, %v206_v3  ;;  %v210_v37 = vld [vmem:[#allocation2 + $0x8] sm:$0xff]  ;;  %v212_v41 = vld [vmem:[#allocation2 + $0x18] sm:$0xff]  ;;  %v217_v42 = vld [vmem:[#allocation2 + $0x40] sm:$0xff] }
  0x32   : > { %252 = vrot.lane.b32.xlu1 %v804_v4, %s717_s5  ;;  %260 = vrot.lane.b32.xlu0 %v804_v4, %s718_s6  ;;  %v213_v43 = vld [vmem:[#allocation2 + $0x20] sm:$0xff] }
  0x36   : > { %254 = vrot.lane.b32.xlu1 %v808_v5, %s717_s5  ;;  %262 = vrot.lane.b32.xlu0 %v808_v5, %s718_s6 }
  0x3a   : > { %246 = vrot.lane.b32.xlu1 %v808_v5, %s719_s7  ;;  %244 = vrot.lane.b32.xlu0 %v804_v4, %s719_s7 }
  0x3e   : > { %238 = vrot.lane.b32.xlu1 %v808_v5, %s721_s8  ;;  %236 = vrot.lane.b32.xlu0 %v804_v4, %s721_s8 }
  0x42   : > { %230 = vrot.lane.b32.xlu1 %v808_v5, %s722_s9  ;;  %228 = vrot.lane.b32.xlu0 %v804_v4, %s722_s9 }
  0x46   : > { %222 = vrot.lane.b32.xlu1 %v808_v5, %s723_s10  ;;  %220 = vrot.lane.b32.xlu0 %v804_v4, %s723_s10 }
  0x4a   : > { %284 = vperm.xlu1 %644, %v269_v7   ;;  %279 = vperm.xlu0 %643, %v268_v9  }
  0x4e   : > { %289 = vperm.xlu1 %644, %v270_v10   ;;  %294 = vperm.xlu0 %643, %v271_v11  }
  0x52   : > { %299 = vperm.xlu1 %644, %v272_v12   ;;  %304 = vperm.xlu0 %643, %v273_v13  }
  0x56   : > { %309 = vperm.xlu1 %644, %v274_v14   ;;  %314 = vperm.xlu0 %643, %v275_v15  }
  0x5a   : > { %319 = vperm.xlu1 %644, %v276_v16  }
  0xa4   : > { %v253_v17 = vpop.permute.xlu1 %252  ;;  %v261_v18 = vpop.permute.xlu0 %260 }
  0xa8   : > { %v255_v19 = vpop.permute.xlu1 %254  ;;  %v263_v20 = vpop.permute.xlu0 %262 }
  0xa9   : > { %368 = vmatprep.subr.mxu0 %v263_v20  ;;  %589 = vmatprep.subr.mxu1 %v263_v20  ;;  %v265_v21 = vsel %vm264_vm2, %v261_v18, %v263_v20  ;;  %v257_v22 = vsel %vm256_vm3, %v253_v17, %v255_v19 }
  0xaa   : > { %369 = vmatpush1.msra.mxu0 %v265_v21  ;;  %596 = vmatpush1.msra.mxu1 %v265_v21 }
  0xab   : > { %370 = vmatprep.subr.mxu0 %v255_v19  ;;  %590 = vmatprep.subr.mxu1 %v255_v19 }
  0xac   : > { %v247_v23 = vpop.permute.xlu1 %246  ;;  %371 = vmatpush1.msra.mxu0 %v257_v22  ;;  %597 = vmatpush1.msra.mxu1 %v257_v22  ;;  %v245_v24 = vpop.permute.xlu0 %244 }
  0xad   : > { %372 = vmatprep.subr.mxu0 %v247_v23  ;;  %591 = vmatprep.subr.mxu1 %v247_v23  ;;  %v249_v25 = vsel %vm248_vm4, %v245_v24, %v247_v23 }
  0xae   : > { %373 = vmatpush1.msra.mxu0 %v249_v25  ;;  %598 = vmatpush1.msra.mxu1 %v249_v25 }
  0xb0   : > { %v239_v26 = vpop.permute.xlu1 %238  ;;  %v237_v27 = vpop.permute.xlu0 %236 }
  0xb1   : > { %374 = vmatprep.subr.mxu0 %v239_v26  ;;  %592 = vmatprep.subr.mxu1 %v239_v26  ;;  %v241_v28 = vsel %vm240_vm5, %v237_v27, %v239_v26 }
  0xb2   : > { %375 = vmatpush1.msra.mxu0 %v241_v28  ;;  %599 = vmatpush1.msra.mxu1 %v241_v28 }
  0xb4   : > { %v231_v29 = vpop.permute.xlu1 %230  ;;  %v229_v30 = vpop.permute.xlu0 %228 }
  0xb5   : > { %376 = vmatprep.subr.mxu0 %v231_v29  ;;  %593 = vmatprep.subr.mxu1 %v231_v29  ;;  %v233_v31 = vsel %vm232_vm6, %v229_v30, %v231_v29 }
  0xb6   : > { %377 = vmatpush1.msra.mxu0 %v233_v31  ;;  %600 = vmatpush1.msra.mxu1 %v233_v31 }
  0xb8   : > { %v223_v32 = vpop.permute.xlu1 %222  ;;  %v221_v33 = vpop.permute.xlu0 %220 }
  0xb9   : > { %378 = vmatprep.subr.mxu0 %v223_v32  ;;  %594 = vmatprep.subr.mxu1 %v223_v32  ;;  %v225_v34 = vsel %vm224_vm7, %v221_v33, %v223_v32 }
  0xba   : > { %379 = vmatpush1.msra.mxu0 %v225_v34  ;;  %601 = vmatpush1.msra.mxu1 %v225_v34 }
  0xbb   : > { %380 = vmatprep.subr.mxu0 %v808_v5  ;;  %595 = vmatprep.subr.mxu1 %v808_v5 }
  0xbc   : > { %381 = vmatpush1.msra.mxu0 %v804_v4  ;;  %602 = vmatpush1.msra.mxu1 %v804_v4 }
  0xbd   : > { %577 = vmatmul.mubr.msk.f32.vlgmr.msra.gmra.mxu0 %vm322_vm8, %v209_v35  ;;  %582 = vmatmul.mubr.msk.f32.vlgmr.msra.gmra.mxu1 %vm322_vm8, %v214_v36 }
  0xbe   : > { %420 = vmatprep.mubr.f32.mxu0 %v720_v6  ;;  %450 = vmatprep.mubr.f32.mxu1 %v720_v6 }
  0xc1   : > { %578 = vmatmul.mubr.msk.f32.gmra.mxu0 %vm322_vm8, %v210_v37  ;;  %583 = vmatmul.mubr.msk.f32.gmra.mxu1 %vm322_vm8, %v215_v38 }
  0xc2   : > { %426 = vmatprep.mubr.f32.mxu0 %v720_v6  ;;  %456 = vmatprep.mubr.f32.mxu1 %v720_v6 }
  0xc5   : > { %579 = vmatmul.mubr.msk.f32.gmra.mxu0 %vm322_vm8, %v211_v39  ;;  %584 = vmatmul.mubr.msk.f32.gmra.mxu1 %vm322_vm8, %v216_v40  ;;  %v285_v44 = vpop.permute.xlu1 %284  ;;  %v280_v45 = vpop.permute.xlu0 %279 }
  0xc6   : > { %432 = vmatprep.mubr.f32.mxu0 %v720_v6  ;;  %462 = vmatprep.mubr.f32.mxu1 %v720_v6 }
  0xc9   : > { %580 = vmatmul.mubr.msk.f32.gmra.mxu0 %vm322_vm8, %v212_v41  ;;  %585 = vmatmul.mubr.msk.f32.gmra.mxu1 %vm322_vm8, %v217_v42  ;;  %v290_v46 = vpop.permute.xlu1 %289  ;;  %v295_v47 = vpop.permute.xlu0 %294 }
  0xca   : > { %438 = vmatprep.mubr.f32.mxu0 %v720_v6 }
  0xcd   : > { %581 = vmatmul.mubr.msk.f32.gmra.mxu0 %vm322_vm8, %v213_v43  ;;  %v300_v48 = vpop.permute.xlu1 %299  ;;  %v305_v49 = vpop.permute.xlu0 %304 }
  0xd1   : > { %v310_v56 = vpop.permute.xlu1 %309  ;;  %v315_v3 = vpop.permute.xlu0 %314 }
  0xd5   : > { %v320_v10 = vpop.permute.xlu1 %319 }
 0x17d   : > { %v416_v50 = vpop.f32.mrf.mxu0  ;;  %v446_v51 = vpop.f32.mrf.mxu1 }
 0x17e   : > { %v417_v52 = vadd.f32 %v416_v50, %v280_v45  ;;  %v447_v53 = vadd.f32 %v446_v51, %v305_v49 }
 0x17f   : > { %v418_v54 = vpop.f32.mrf.mxu0  ;;  %v448_v55 = vpop.f32.mrf.mxu1 }
 0x180   : > { %469 = vst [vmem:[%s846_s16] sm:$0xff] %v417_v52  ;;  %v419_v57 = vadd.f32 %v418_v54, %v280_v45  ;;  %v449_v58 = vadd.f32 %v448_v55, %v305_v49  ;;  %480 = vst [vmem:[%s846_s16 + $0x50] sm:$0xff] %v447_v53 }
 0x181   : > { %v422_v59 = vpop.f32.mrf.mxu0  ;;  %v452_v60 = vpop.f32.mrf.mxu1 }
 0x182   : > { %471 = vst.msk [vmem:[%s846_s16 + $0x8] sm:$0xff] %vm470_vm9, %v419_v57  ;;  %481 = vst.msk [vmem:[%s846_s16 + $0x58] sm:$0xff] %vm470_vm9, %v449_v58  ;;  %v423_v61 = vadd.f32 %v422_v59, %v285_v44  ;;  %v453_v62 = vadd.f32 %v452_v60, %v310_v56 }
 0x183   : > { %v424_v63 = vpop.f32.mrf.mxu0  ;;  %v454_v0 = vpop.f32.mrf.mxu1 }
 0x184   : > { %472 = vst [vmem:[%s846_s16 + $0x10] sm:$0xff] %v423_v61  ;;  %482 = vst [vmem:[%s846_s16 + $0x60] sm:$0xff] %v453_v62  ;;  %v425_v1 = vadd.f32 %v424_v63, %v285_v44  ;;  %v455_v2 = vadd.f32 %v454_v0, %v310_v56 }
 0x185   : > { %v428_v4 = vpop.f32.mrf.mxu0  ;;  %v458_v5 = vpop.f32.mrf.mxu1 }
 0x186   : > { %473 = vst.msk [vmem:[%s846_s16 + $0x18] sm:$0xff] %vm470_vm9, %v425_v1  ;;  %483 = vst.msk [vmem:[%s846_s16 + $0x68] sm:$0xff] %vm470_vm9, %v455_v2  ;;  %v429_v6 = vadd.f32 %v428_v4, %v290_v46  ;;  %v459_v7 = vadd.f32 %v458_v5, %v315_v3 }
 0x187   : > { %v430_v8 = vpop.f32.mrf.mxu0  ;;  %v460_v9 = vpop.f32.mrf.mxu1 }
 0x188   : > { %474 = vst [vmem:[%s846_s16 + $0x20] sm:$0xff] %v429_v6  ;;  %484 = vst [vmem:[%s846_s16 + $0x70] sm:$0xff] %v459_v7  ;;  %v431_v11 = vadd.f32 %v430_v8, %v290_v46  ;;  %v461_v12 = vadd.f32 %v460_v9, %v315_v3 }
 0x189   : > { %v434_v13 = vpop.f32.mrf.mxu0  ;;  %v464_v14 = vpop.f32.mrf.mxu1 }
 0x18a   : > { %475 = vst.msk [vmem:[%s846_s16 + $0x28] sm:$0xff] %vm470_vm9, %v431_v11  ;;  %485 = vst.msk [vmem:[%s846_s16 + $0x78] sm:$0xff] %vm470_vm9, %v461_v12  ;;  %v435_v15 = vadd.f32 %v434_v13, %v295_v47  ;;  %v465_v16 = vadd.f32 %v464_v14, %v320_v10 }
 0x18b   : > { %v436_v17 = vpop.f32.mrf.mxu0  ;;  %v466_v18 = vpop.f32.mrf.mxu1 }
 0x18c   : > { %476 = vst [vmem:[%s846_s16 + $0x30] sm:$0xff] %v435_v15  ;;  %486 = vst [vmem:[%s846_s16 + $0x80] sm:$0xff] %v465_v16  ;;  %v437_v19 = vadd.f32 %v436_v17, %v295_v47  ;;  %v467_v20 = vadd.f32 %v466_v18, %v320_v10 }
 0x18d   : > { %v440_v21 = vpop.f32.mrf.mxu0 }
 0x18e   : > { %477 = vst.msk [vmem:[%s846_s16 + $0x38] sm:$0xff] %vm470_vm9, %v437_v19  ;;  %487 = vst.msk [vmem:[%s846_s16 + $0x88] sm:$0xff] %vm470_vm9, %v467_v20  ;;  %v441_v22 = vadd.f32 %v440_v21, %v300_v48 }
 0x18f   : > { %v442_v23 = vpop.f32.mrf.mxu0 }
 0x190   : > { %478 = vst [vmem:[%s846_s16 + $0x40] sm:$0xff] %v441_v22  ;;  %v443_v24 = vadd.f32 %v442_v23, %v300_v48 }
 0x192   : > { %479 = vst.msk [vmem:[%s846_s16 + $0x48] sm:$0xff] %vm470_vm9, %v443_v24 }
 0x193 PF: > { %s15_s12 = sadd.s32 1, %s711_s12  }
 0x194   : > { %p12_p2 = scmp.ge.s32.totalorder %s15_s12, 4  }
 0x196   :  { %14 = sbr.rel (!%p12_p2) target bundleno = 2 (0x2), region = 71 }
 0x19b   :  { %509 = vsyncpa [#allocation3], 1 }
 0x19c   :  { %511 = vsyncpa [#allocation3 + $0x1], 1 }
 0x19d   :  { %512 = vsyncpa [#allocation5], 1 }

// kernel: _lambda_.14
= control target key start
LH: loop header
LB: loop body
LE: loop exit
PB: predicated region body
PF: predicated region fallthrough
CT: control target
= control target key end

     0   :  { %s1931_s15 = smov 0   ;;  %s2650_s0 = inlined_call_operand.vmem [shape: f32[8,9,129], index: 0, kind: input, shape index: {}]   ;;  %s2651_s1 = inlined_call_operand.vmem [shape: f32[8,9,129], index: 1, kind: input, shape index: {}]   ;;  %s2652_s2 = inlined_call_operand.vmem [shape: f32[16,18], index: 2, kind: input, shape index: {}]   ;;  %s2653_s3 = inlined_call_operand.vmem [shape: f32[4,132], index: 3, kind: input, shape index: {}]   ;;  %s2654_s4 = inlined_call_operand.vmem [shape: f32[8,4,132], index: 4, kind: output, shape index: {}]  }
   0x1 LB: > { %s1723_s16 = sadd.s32 4294967295, %s1894_s15   ;;  %p1727_p0 = scmp.ge.s32.totalorder %s1894_s15, 1  ;;  %s1894_s15 = sphi %s1931_s15, %s14_s15  }
   0x2   : > { %p172_p1 = scmp.lt.s32.totalorder %s1894_s15, 9 }
   0x4   : > { %p173_p2 = pnand %p1727_p0, %p172_p1 }
   0x5   : > { %p203_p3 = scmp.lt.s32.totalorder (!%p173_p2), %s1723_s16, 7  ;;  %s1903_s28 = smov (!%p173_p2), 2  }
   0x6   : > { %176 = sbr.rel (%p173_p2) target bundleno = 608 (0x260), region = 36  ;;  %s1904_s29 = smov (!%p173_p2), 1  }
   0x7   : > { %s1905_s30 = smov (!%p173_p2), 3  }
   0xb   : > { %s2670_s16 = smov (!%p203_p3, %s1723_s16), 7  ;;  %v1896_v29 = vmov 683565275   ;;  %v1897_v31 = vmov 2475754826  }
   0xc   : > { %s1788_s17 = sshll.u32 %s2670_s16, 5  ;;  %v1898_v33 = vmov 2131351028   ;;  %v1899_v35 = vmov 2102212464   ;;  %s1790_s7 = sshll.u32 %s2670_s16, 3 }
   0xd   : > { %s1947_s20 = scalar_lea.vmem %s2651_s1, %s1788_s17  ;;  %v1900_v37 = vmov 920167782   ;;  %v1901_v45 = vmov 1326507024   ;;  %s2322_s23 = scalar_lea.vmem %s2650_s0, %s1788_s17 }
   0xe   : > { %v1950_v0 = vld [vmem:[%s1947_s20 + $0x8] sm:$0xff]  ;;  %v1953_v1 = vld [vmem:[%s1947_s20 + $0x18] sm:$0x1]  ;;  %v1960_v6 = vld [vmem:[%s1947_s20] sm:$0xff]  ;;  %s217_s10 = scalar_lea.vmem %s2654_s4, %s1790_s7 }
   0xf   : > { %v338_v2 = vand.u32 2147483647, %v1950_v0  ;;  %v341_v3 = vand.u32 2139095040, %v1950_v0  ;;  %v546_v4 = vand.u32 2147483647, %v1953_v1  ;;  %v549_v5 = vand.u32 2139095040, %v1953_v1 }
  0x10   : > { %v237_v12 = vand.u32 2139095040, %v1960_v6  ;;  %vm340_vm13 = vcmp.lt.s32.totalorder %v1950_v0, 0 }
  0x11   : > { %v342_v7 = vshrl.u32 %v341_v3, 23  ;;  %v345_v8 = vand.u32 8388607, %v338_v2  ;;  %v550_v9 = vshrl.u32 %v549_v5, 23  ;;  %v553_v10 = vand.u32 8388607, %v546_v4 }
  0x12   : > { %v238_v15 = vshrl.u32 %v237_v12, 23 }
  0x13   : > { %v1738_v11 = vadd.s32 4294967169, %v342_v7  ;;  %v1746_v13 = vadd.s32 4294967169, %v550_v9  ;;  %v346_v16 = vor.u32 8388608, %v345_v8  ;;  %v554_v17 = vor.u32 8388608, %v553_v10 }
  0x14   : > { %v1734_v19 = vadd.s32 4294967169, %v238_v15 }
  0x15   : > { %v348_v14 = vadd.s32 1, %v1738_v11  ;;  %v556_v18 = vadd.s32 1, %v1746_v13  ;;  %v1967_v24 = vshll.u32 %v346_v16, 8  ;;  %v1969_v26 = vshll.u32 %v554_v17, 8 }
  0x16   : > { %v1971_v27 = vadd.s32 1, %v1734_v19 }
  0x17   : > { %vm349_vm0 = vcmp.gt.s32.totalorder %v348_v14, 0  ;;  %vm557_vm1 = vcmp.gt.s32.totalorder %v556_v18, 0 }
  0x18   : > { %v350_v20 = vsel %vm349_vm0, %v348_v14, 0  ;;  %v558_v23 = vsel %vm557_vm1, %v556_v18, 0  ;;  %vm245_vm11 = vcmp.gt.s32.totalorder %v1971_v27, 0 }
  0x19   : > { %v351_v21 = vshrl.u32 %v350_v20, 5  ;;  %v352_v22 = vand.u32 31, %v350_v20  ;;  %v560_v25 = vand.u32 31, %v558_v23  ;;  %v1978_v39 = vshrl.u32 %v558_v23, 5 }
  0x1b   : > { %v353_v28 = vsub.s32 32, %v352_v22  ;;  %v355_v30 = vshll.u32 %v1896_v29, %v352_v22  ;;  %v358_v32 = vshll.u32 %v1897_v31, %v352_v22  ;;  %v361_v34 = vshll.u32 %v1898_v33, %v352_v22 }
  0x1c   : > { %v364_v36 = vshll.u32 %v1899_v35, %v352_v22  ;;  %v367_v38 = vshll.u32 %v1900_v37, %v352_v22  ;;  %vm370_vm2 = vcmp.lt.s32.totalorder %v351_v21, 1  ;;  %vm371_vm3 = vcmp.lt.s32.totalorder %v351_v21, 2 }
  0x1d   : > { %v354_v40 = vshrl.u32 %v1896_v29, %v353_v28  ;;  %v356_v41 = vshrl.u32 %v1897_v31, %v353_v28  ;;  %v359_v42 = vshrl.u32 %v1898_v33, %v353_v28  ;;  %v362_v43 = vshrl.u32 %v1899_v35, %v353_v28 }
  0x1e   : > { %v365_v44 = vshrl.u32 %v1900_v37, %v353_v28  ;;  %v368_v46 = vshrl.u32 %v1901_v45, %v353_v28  ;;  %vm373_vm4 = vcmp.lt.s32.totalorder %v351_v21, 4  ;;  %v561_v50 = vsub.s32 32, %v560_v25 }
  0x1f   : > { %v357_v47 = vor.u32 %v356_v41, %v355_v30  ;;  %v360_v48 = vor.u32 %v359_v42, %v358_v32  ;;  %v363_v49 = vor.u32 %v362_v43, %v361_v34  ;;  %vm372_vm5 = vcmp.lt.s32.totalorder %v351_v21, 3 }
  0x20   : > { %v366_v51 = vor.u32 %v365_v44, %v364_v36  ;;  %v369_v52 = vor.u32 %v368_v46, %v367_v38  ;;  %v563_v53 = vshll.u32 %v1896_v29, %v560_v25  ;;  %v566_v61 = vshll.u32 %v1897_v31, %v560_v25 }
  0x21   : > { %v374_v54 = vsel %vm370_vm2, %v354_v40, %v357_v47  ;;  %v375_v55 = vsel %vm373_vm4, %v363_v49, 2102212464  ;;  %v378_v56 = vsel %vm370_vm2, %v357_v47, %v360_v48  ;;  %v382_v57 = vsel %vm370_vm2, %v360_v48, %v363_v49 }
  0x22   : > { %v376_v58 = vsel %vm372_vm5, %v360_v48, %v375_v55  ;;  %v379_v59 = vsel %vm373_vm4, %v366_v51, 920167782  ;;  %v383_v60 = vsel %vm373_vm4, %v369_v52, 1326507024  ;;  %v562_v3 = vshrl.u32 %v1896_v29, %v561_v50 }
  0x23   : > { %v380_v62 = vsel %vm372_vm5, %v363_v49, %v379_v59  ;;  %v384_v63 = vsel %vm372_vm5, %v366_v51, %v383_v60  ;;  %v564_v5 = vshrl.u32 %v1897_v31, %v561_v50  ;;  %v377_v7 = vsel %vm371_vm3, %v374_v54, %v376_v58  ;;  %v2041_v58 = vld [vmem:[%s1947_s20 + $0x10] sm:$0x1] }
  0x24   : > { %v381_v8 = vsel %vm371_vm3, %v378_v56, %v380_v62  ;;  %v385_v9 = vsel %vm371_vm3, %v382_v57, %v384_v63  ;;  %v567_v10 = vshrl.u32 %v1898_v33, %v561_v50  ;;  %v569_v17 = vshll.u32 %v1898_v33, %v560_v25 }
  0x25   : > { %v1998_v11 = vmul.u32.u64.low %v1967_v24, %v385_v9  ;;  %v1999_v12 = vmul.u32.u64.high %v1967_v24, %v385_v9, %v1998_v11  ;;  %v2002_v13 = vmul.u32.u64.low %v1967_v24, %v381_v8  ;;  %v2003_v14 = vmul.u32.u64.high %v1967_v24, %v381_v8, %v2002_v13 }
  0x26   : > { %v565_v15 = vor.u32 %v564_v5, %v563_v53  ;;  %v568_v16 = vor.u32 %v567_v10, %v566_v61  ;;  %v570_v18 = vshrl.u32 %v1899_v35, %v561_v50  ;;  %v572_v19 = vshll.u32 %v1899_v35, %v560_v25 }
  0x27   : > { %v573_v20 = vshrl.u32 %v1900_v37, %v561_v50  ;;  %v575_v21 = vshll.u32 %v1900_v37, %v560_v25  ;;  %v576_v22 = vshrl.u32 %v1901_v45, %v561_v50  ;;  %v393_v23 = vmul.u32 %v1967_v24, %v377_v7 }
  0x28   : > { %v571_v28 = vor.u32 %v570_v18, %v569_v17  ;;  %vm578_vm6 = vcmp.lt.s32.totalorder %v1978_v39, 1  ;;  %vm579_vm7 = vcmp.lt.s32.totalorder %v1978_v39, 2  ;;  %vm395_vm8 = vc.u32 %v1999_v12, %v2002_v13 }
  0x29   : > { %v396_v30 = vadd.s32 1, %v2003_v14  ;;  %v574_v32 = vor.u32 %v573_v20, %v572_v19  ;;  %vm580_vm9 = vcmp.lt.s32.totalorder %v1978_v39, 3  ;;  %v577_v34 = vor.u32 %v576_v22, %v575_v21 }
  0x2a   : > { %vm581_vm10 = vcmp.lt.s32.totalorder %v1978_v39, 4  ;;  %v582_v25 = vsel %vm578_vm6, %v562_v3, %v565_v15  ;;  %v586_v36 = vsel %vm578_vm6, %v565_v15, %v568_v16  ;;  %v590_v41 = vsel %vm578_vm6, %v568_v16, %v571_v28 }
  0x2b   : > { %v397_v24 = vsel %vm395_vm8, %v396_v30, %v2003_v14  ;;  %v583_v38 = vsel %vm581_vm10, %v571_v28, 2102212464  ;;  %v587_v40 = vsel %vm581_vm10, %v574_v32, 920167782  ;;  %v591_v46 = vsel %vm581_vm10, %v577_v34, 1326507024 }
  0x2c   : > { %v398_v42 = vadd.s32 %v397_v24, %v393_v23  ;;  %v584_v43 = vsel %vm580_vm9, %v568_v16, %v583_v38  ;;  %v588_v44 = vsel %vm580_vm9, %v571_v28, %v587_v40  ;;  %v592_v49 = vsel %vm580_vm9, %v574_v32, %v591_v46 }
  0x2d   : > { %v585_v47 = vsel %vm579_vm7, %v582_v25, %v584_v43  ;;  %v589_v48 = vsel %vm579_vm7, %v586_v36, %v588_v44  ;;  %v593_v51 = vsel %vm579_vm7, %v590_v41, %v592_v49  ;;  %v246_v56 = vsel %vm245_vm11, %v1971_v27, 0 }
  0x2e   : > { %v399_v50 = vadd.s32 536870912, %v398_v42  ;;  %v2029_v52 = vmul.u32.u64.low %v1969_v26, %v589_v48  ;;  %v2030_v53 = vmul.u32.u64.high %v1969_v26, %v589_v48, %v2029_v52  ;;  %v248_v59 = vand.u32 31, %v246_v56 }
  0x2f   : > { %v2034_v54 = vmul.u32.u64.low %v1969_v26, %v593_v51  ;;  %v2035_v55 = vmul.u32.u64.high %v1969_v26, %v593_v51, %v2034_v54  ;;  %v601_v60 = vmul.u32 %v1969_v26, %v585_v47  ;;  %v234_v62 = vand.u32 2147483647, %v1960_v6 }
  0x30   : > { %v2038_v57 = vshrl.u32 %v399_v50, 30  ;;  %v604_v61 = vadd.s32 1, %v2030_v53  ;;  %v445_v63 = vand.u32 2139095040, %v2041_v58  ;;  %v249_v5 = vsub.s32 32, %v248_v59 }
  0x31   : > { %vm603_vm12 = vc.u32 %v2035_v55, %v2029_v52  ;;  %v241_v26 = vand.u32 8388607, %v234_v62  ;;  %v2053_v10 = vshrl.u32 %v246_v56, 5  ;;  %v251_v11 = vshll.u32 %v1896_v29, %v248_v59 }
  0x32   : > { %v401_v39 = vshll.u32 %v2038_v57, 30  ;;  %v605_v27 = vsel %vm603_vm12, %v604_v61, %v2030_v53  ;;  %v446_v14 = vshrl.u32 %v445_v63, 23  ;;  %v252_v16 = vshrl.u32 %v1897_v31, %v249_v5 }
  0x33   : > { %v606_v7 = vadd.s32 %v605_v27, %v601_v60  ;;  %v254_v17 = vshll.u32 %v1897_v31, %v248_v59  ;;  %v255_v18 = vshrl.u32 %v1898_v33, %v249_v5  ;;  %v257_v20 = vshll.u32 %v1898_v33, %v248_v59 }
  0x34   : > { %v402_v3 = vsub.s32 %v398_v42, %v401_v39  ;;  %v258_v21 = vshrl.u32 %v1899_v35, %v249_v5  ;;  %v260_v22 = vshll.u32 %v1899_v35, %v248_v59  ;;  %v261_v28 = vshrl.u32 %v1900_v37, %v249_v5 }
  0x35   : > { %v607_v9 = vadd.s32 536870912, %v606_v7  ;;  %v263_v30 = vshll.u32 %v1900_v37, %v248_v59  ;;  %v264_v32 = vshrl.u32 %v1901_v45, %v249_v5  ;;  %v394_v34 = vadd.s32 %v2002_v13, %v1999_v12 }
  0x36   : > { %v404_v8 = vsub.s32 0, %v402_v3  ;;  %v242_v36 = vor.u32 8388608, %v241_v26  ;;  %v424_v38 = vsub.s32 4, %v2038_v57  ;;  %v250_v40 = vshrl.u32 %v1896_v29, %v249_v5 }
  0x37   : > { %v2059_v19 = vshrl.u32 %v607_v9, 30  ;;  %v1742_v41 = vadd.s32 4294967169, %v446_v14  ;;  %v253_v43 = vor.u32 %v252_v16, %v251_v11  ;;  %v256_v44 = vor.u32 %v255_v18, %v254_v17 }
  0x38   : > { %v1739_v15 = vmin.u32 %v404_v8, %v402_v3  ;;  %v259_v46 = vor.u32 %v258_v21, %v257_v20  ;;  %v262_v47 = vor.u32 %v261_v28, %v260_v22  ;;  %v265_v48 = vor.u32 %v264_v32, %v263_v30 }
  0x39   : > { %v609_v25 = vshll.u32 %v2059_v19, 30  ;;  %vm266_vm15 = vcmp.lt.s32.totalorder %v2053_v10, 1  ;;  %vm268_vm0 = vcmp.lt.s32.totalorder %v2053_v10, 3  ;;  %vm269_vm1 = vcmp.lt.s32.totalorder %v2053_v10, 4 }
  0x3a   : > { %v406_v23 = vclz %v1739_v15  ;;  %v271_v53 = vsel %vm269_vm1, %v259_v46, 2102212464  ;;  %vm267_vm2 = vcmp.lt.s32.totalorder %v2053_v10, 2  ;;  %v270_v56 = vsel %vm266_vm15, %v250_v40, %v253_v43 }
  0x3b   : > { %v2073_v42 = vsub.s32 %v606_v7, %v609_v25  ;;  %v272_v59 = vsel %vm268_vm0, %v256_v44, %v271_v53  ;;  %v274_v61 = vsel %vm266_vm15, %v253_v43, %v256_v44  ;;  %v275_v63 = vsel %vm269_vm1, %v262_v47, 920167782 }
  0x3c   : > { %v1740_v24 = vadd.s32 4294967294, %v406_v23  ;;  %v602_v27 = vadd.s32 %v2029_v52, %v2035_v55  ;;  %v282_v7 = vshll.u32 %v242_v36, 8  ;;  %v276_v9 = vsel %vm268_vm0, %v259_v46, %v275_v63 }
  0x3d   : > { %v612_v13 = vsub.s32 0, %v2073_v42  ;;  %v278_v11 = vsel %vm266_vm15, %v256_v44, %v259_v46  ;;  %v273_v15 = vsel %vm267_vm2, %v270_v56, %v272_v59  ;;  %v279_v52 = vsel %vm269_vm1, %v265_v48, 1326507024 }
  0x3e   : > { %vm1741_vm14 = vcmp.lt.s32.totalorder %v1740_v24, 0  ;;  %v280_v17 = vsel %vm268_vm0, %v262_v47, %v279_v52  ;;  %v452_v18 = vadd.s32 1, %v1742_v41  ;;  %v442_v40 = vand.u32 2147483647, %v2041_v58 }
  0x3f   : > { %v409_v12 = vsel %vm1741_vm14, 0, %v1740_v24  ;;  %v1747_v54 = vmin.u32 %v612_v13, %v2073_v42  ;;  %v281_v20 = vsel %vm267_vm2, %v278_v11, %v280_v17  ;;  %vm2121_vm5 = vcmp.le.f32.partialorder %v338_v2, 0.7853982 }
  0x40   : > { %v410_v49 = vsub.s32 32, %v409_v12  ;;  %v411_v50 = vshll.u32 %v402_v3, %v409_v12  ;;  %v414_v51 = vsub.s32 4294967266, %v409_v12  ;;  %v425_v3 = vsel %vm340_vm13, %v424_v38, %v2038_v57 }
  0x41   : > { %v614_v5 = vclz %v1747_v54  ;;  %v277_v57 = vsel %vm267_vm2, %v274_v61, %v276_v9  ;;  %v2114_v30 = vmul.u32.u64.low %v282_v7, %v281_v20  ;;  %v2115_v32 = vmul.u32.u64.high %v282_v7, %v281_v20, %v2114_v30 }
  0x42   : > { %v412_v60 = vshrl.u32 %v394_v34, %v410_v49  ;;  %v415_v39 = vadd.s32 127, %v414_v51  ;;  %v2110_v21 = vmul.u32.u64.low %v282_v7, %v277_v57  ;;  %v2111_v22 = vmul.u32.u64.high %v282_v7, %v277_v57, %v2110_v21 }
  0x43   : > { %v1748_v14 = vadd.s32 4294967294, %v614_v5  ;;  %vm453_vm4 = vcmp.gt.s32.totalorder %v452_v18, 0  ;;  %v289_v38 = vmul.u32 %v282_v7, %v273_v15  ;;  %vm548_vm6 = vcmp.lt.s32.totalorder %v1953_v1, 0 }
  0x44   : > { %v413_v8 = vor.u32 %v412_v60, %v411_v50  ;;  %v416_v26 = vshll.u32 %v415_v39, 23  ;;  %v454_v10 = vsel %vm453_vm4, %v452_v18, 0  ;;  %v292_v46 = vadd.s32 1, %v2111_v22 }
  0x45   : > { %vm1749_vm3 = vcmp.lt.s32.totalorder %v1748_v14, 0  ;;  %vm291_vm7 = vc.u32 %v2115_v32, %v2110_v21  ;;  %v456_v48 = vand.u32 31, %v454_v10  ;;  %vm2133_vm8 = vcmp.le.f32.partialorder %v546_v4, 0.7853982 }
  0x46   : > { %v417_v55 = vor.u32 4788187, %v416_v26  ;;  %v420_v16 = vcvt.s32.f32 %v413_v8  ;;  %v617_v28 = vsel %vm1749_vm3, 0, %v1748_v14  ;;  %v293_v49 = vsel %vm291_vm7, %v292_v46, %v2111_v22 }
  0x47   : > { %v618_v34 = vsub.s32 32, %v617_v28  ;;  %v619_v25 = vshll.u32 %v2073_v42, %v617_v28  ;;  %v622_v36 = vsub.s32 4294967266, %v617_v28  ;;  %v427_v42 = vsel %vm2121_vm5, 0, %v425_v3 }
  0x48   : > { %v418_v23 = vand.u32 2147483647, %v417_v55  ;;  %v294_v51 = vadd.s32 %v293_v49, %v289_v38  ;;  %v449_v53 = vand.u32 8388607, %v442_v40  ;;  %v457_v54 = vsub.s32 32, %v456_v48 }
  0x49   : > { %v620_v43 = vshrl.u32 %v602_v27, %v618_v34  ;;  %v623_v44 = vadd.s32 127, %v622_v36  ;;  %v431_v4 = vadd.s32 3, %v427_v42  ;;  %v632_v39 = vsub.s32 4, %v2059_v19 }
  0x4a   : > { %v421_v24 = vmul.f32 %v420_v16, %v418_v23  ;;  %v295_v61 = vadd.s32 536870912, %v294_v51  ;;  %v2146_v63 = vshrl.u32 %v454_v10, 5  ;;  %v459_v27 = vshll.u32 %v1896_v29, %v456_v48 }
  0x4b   : > { %v621_v12 = vor.u32 %v620_v43, %v619_v25  ;;  %v624_v13 = vshll.u32 %v623_v44, 23  ;;  %v460_v5 = vshrl.u32 %v1897_v31, %v457_v54  ;;  %v462_v8 = vshll.u32 %v1897_v31, %v456_v48 }
  0x4c   : > { %v422_v47 = vxor.u32 2147483648, %v421_v24  ;;  %v2150_v7 = vshrl.u32 %v295_v61, 30  ;;  %v463_v26 = vshrl.u32 %v1898_v33, %v457_v54  ;;  %v465_v9 = vshll.u32 %v1898_v33, %v456_v48 }
  0x4d   : > { %v625_v59 = vor.u32 4788187, %v624_v13  ;;  %v628_v60 = vcvt.s32.f32 %v621_v12  ;;  %v466_v14 = vshrl.u32 %v1899_v35, %v457_v54  ;;  %v468_v15 = vshll.u32 %v1899_v35, %v456_v48 }
  0x4e   : > { %v423_v50 = vsel %vm340_vm13, %v422_v47, %v421_v24  ;;  %v469_v57 = vshrl.u32 %v1900_v37, %v457_v54  ;;  %v432_v52 = vand.u32 3, %v431_v4  ;;  %v297_v55 = vshll.u32 %v2150_v7, 30 }
  0x4f   : > { %v426_v56 = vsel %vm2121_vm5, %v1950_v0, %v423_v50  ;;  %v626_v3 = vand.u32 2147483647, %v625_v59  ;;  %v450_v16 = vor.u32 8388608, %v449_v53  ;;  %v471_v17 = vshll.u32 %v1900_v37, %v456_v48 }
  0x50   : > { %1848 = vcosq.f32 %v426_v56  ;;  %v633_v20 = vsel %vm548_vm6, %v632_v39, %v2059_v19  ;;  %v470_v22 = vor.u32 %v469_v57, %v468_v15  ;;  %v472_v23 = vshrl.u32 %v1901_v45, %v457_v54 }
  0x51   : > { %1850 = vsinq.f32 %v426_v56  ;;  %v629_v11 = vmul.f32 %v628_v60, %v626_v3  ;;  %v2164_v28 = vsub.s32 %v294_v51, %v297_v55  ;;  %v461_v30 = vor.u32 %v460_v5, %v459_v27 }
  0x52   : > { %v464_v34 = vor.u32 %v463_v26, %v462_v8  ;;  %vm477_vm9 = vcmp.lt.s32.totalorder %v2146_v63, 4  ;;  %v467_v36 = vor.u32 %v466_v14, %v465_v9  ;;  %v473_v24 = vor.u32 %v472_v23, %v471_v17 }
  0x53   : > { %v630_v18 = vxor.u32 2147483648, %v629_v11  ;;  %vm474_vm10 = vcmp.lt.s32.totalorder %v2146_v63, 1  ;;  %vm430_vm11 = vweird.f32 %v1950_v0  ;;  %vm433_vm12 = vcmp.lt.s32.totalorder %v432_v52, 2 }
  0x54   : > { %v300_v38 = vsub.s32 0, %v2164_v28  ;;  %vm476_vm13 = vcmp.lt.s32.totalorder %v2146_v63, 3  ;;  %v635_v10 = vsel %vm2133_vm8, 0, %v633_v20  ;;  %v458_v41 = vshrl.u32 %v1896_v29, %v457_v54 }
  0x55   : > { %v631_v25 = vsel %vm548_vm6, %v630_v18, %v629_v11  ;;  %v483_v43 = vsel %vm477_vm9, %v470_v22, 920167782  ;;  %vm475_vm14 = vcmp.lt.s32.totalorder %v2146_v63, 2  ;;  %v482_v46 = vsel %vm474_vm10, %v461_v30, %v464_v34 }
  0x56   : > { %v634_v19 = vsel %vm2133_vm8, %v1953_v1, %v631_v25  ;;  %v1735_v44 = vmin.u32 %v300_v38, %v2164_v28  ;;  %v484_v47 = vsel %vm476_vm13, %v467_v36, %v483_v43  ;;  %v486_v42 = vsel %vm474_vm10, %v464_v34, %v467_v36 }
  0x57   : > { %1852 = vcosq.f32 %v634_v19  ;;  %v487_v48 = vsel %vm477_vm9, %v473_v24, 1326507024  ;;  %v490_v2 = vshll.u32 %v450_v16, 8  ;;  %vm434_vm15 = vcmp.eq.s32.totalorder %v432_v52, 0 }
  0x58   : > { %1854 = vsinq.f32 %v634_v19  ;;  %vm437_vm0 = vcmp.eq.s32.totalorder %v432_v52, 2  ;;  %v302_v12 = vclz %v1735_v44  ;;  %v479_v13 = vsel %vm477_vm9, %v467_v36, 2102212464 }
  0x59   : > { %v639_v50 = vadd.s32 3, %v635_v10  ;;  %v290_v51 = vadd.s32 %v2110_v21, %v2115_v32  ;;  %v485_v53 = vsel %vm475_vm14, %v482_v46, %v484_v47  ;;  %v488_v54 = vsel %vm476_vm13, %v470_v22, %v487_v48 }
  0x5a   : > { %v1736_v59 = vadd.s32 4294967294, %v302_v12  ;;  %v478_v60 = vsel %vm474_vm10, %v458_v41, %v461_v30  ;;  %v489_v39 = vsel %vm475_vm14, %v486_v42, %v488_v54  ;;  %v480_v3 = vsel %vm476_vm13, %v464_v34, %v479_v13 }
  0x5b   : > { %v2205_v21 = vmul.u32.u64.low %v490_v2, %v489_v39  ;;  %v2206_v32 = vmul.u32.u64.high %v490_v2, %v489_v39, %v2205_v21  ;;  %v2209_v5 = vmul.u32.u64.low %v490_v2, %v485_v53  ;;  %v2210_v8 = vmul.u32.u64.high %v490_v2, %v485_v53, %v2209_v5 }
  0x5c   : > { %vm1737_vm1 = vcmp.lt.s32.totalorder %v1736_v59, 0  ;;  %v640_v9 = vand.u32 3, %v639_v50  ;;  %v481_v55 = vsel %vm475_vm14, %v478_v60, %v480_v3  ;;  %vm638_vm3 = vweird.f32 %v1953_v1 }
  0x5d   : > { %v1849_v49 = vpop.eup %1848  ;;  %v305_v11 = vsel %vm1737_vm1, 0, %v1736_v59  ;;  %vm499_vm2 = vc.u32 %v2206_v32, %v2209_v5  ;;  %v500_v52 = vadd.s32 1, %v2210_v8  ;;  %vm236_vm5 = vcmp.lt.s32.totalorder %v1960_v6, 0 }
  0x5e   : > { %v1851_v56 = vpop.eup %1850  ;;  %v438_v4 = vxor.u32 2147483648, %v1849_v49  ;;  %v306_v15 = vsub.s32 32, %v305_v11  ;;  %v310_v57 = vsub.s32 4294967266, %v305_v11  ;;  %v307_v17 = vshll.u32 %v2164_v28, %v305_v11 }
  0x5f   : > { %v435_v61 = vxor.u32 2147483648, %v1851_v56  ;;  %vm642_vm4 = vcmp.eq.s32.totalorder %v640_v9, 0  ;;  %v497_v63 = vmul.u32 %v490_v2, %v481_v55  ;;  %vm645_vm6 = vcmp.eq.s32.totalorder %v640_v9, 2 }
  0x60   : > { %v439_v27 = vsel %vm437_vm0, %v438_v4, %v1851_v56  ;;  %v308_v20 = vshrl.u32 %v290_v51, %v306_v15  ;;  %v311_v22 = vadd.s32 127, %v310_v57  ;;  %v320_v30 = vsub.s32 4, %v2150_v7 }
  0x61   : > { %v436_v26 = vsel %vm434_vm15, %v1849_v49, %v435_v61  ;;  %v501_v19 = vsel %vm499_vm2, %v500_v52, %v2210_v8  ;;  %vm641_vm7 = vcmp.lt.s32.totalorder %v640_v9, 2  ;;  %vm2247_vm8 = vcmp.le.f32.partialorder %v234_v62, 0.7853982 }
  0x62   : > { %v440_v14 = vsel %vm433_vm12, %v436_v26, %v439_v27  ;;  %v309_v36 = vor.u32 %v308_v20, %v307_v17  ;;  %v312_v24 = vshll.u32 %v311_v22, 23  ;;  %v2236_v47 = vadd.s32 %v501_v19, %v497_v63 }
  0x63   : > { %v441_v16 = vsel %vm430_vm11, nan, %v440_v14  ;;  %v321_v2 = vsel %vm236_vm5, %v320_v30, %v2150_v7 }
  0x64   : > { %v2222_v18 = vmul.f32 3.1415927, %v441_v16  ;;  %v1853_v23 = vpop.eup %1852  ;;  %v313_v44 = vor.u32 4788187, %v312_v24  ;;  %v316_v46 = vcvt.s32.f32 %v309_v36  ;;  %v503_v49 = vadd.s32 536870912, %v2236_v47 }
  0x65   : > { %v1855_v34 = vpop.eup %1854  ;;  %v646_v25 = vxor.u32 2147483648, %v1853_v23  ;;  %v323_v7 = vsel %vm2247_vm8, 0, %v321_v2 }
  0x66   : > { %v757_v0 = vand.u32 2147483647, %v2222_v18  ;;  %v760_v28 = vand.u32 2139095040, %v2222_v18  ;;  %v643_v38 = vxor.u32 2147483648, %v1855_v34  ;;  %v314_v13 = vand.u32 2147483647, %v313_v44 }
  0x67   : > { %v647_v43 = vsel %vm645_vm6, %v646_v25, %v1855_v34  ;;  %v2257_v39 = vshrl.u32 %v503_v49, 30  ;;  %v327_v62 = vadd.s32 3, %v323_v7 }
  0x68   : > { %v761_v10 = vshrl.u32 %v760_v28, 23  ;;  %v764_v41 = vand.u32 8388607, %v757_v0  ;;  %v644_v42 = vsel %vm642_vm4, %v1853_v23, %v643_v38  ;;  %v317_v4 = vmul.f32 %v316_v46, %v314_v13 }
  0x69   : > { %v648_v12 = vsel %vm641_vm7, %v644_v42, %v647_v43  ;;  %v505_v16 = vshll.u32 %v2257_v39, 30 }
  0x6a   : > { %v1754_v48 = vadd.s32 4294967169, %v761_v10  ;;  %v649_v50 = vsel %vm638_vm3, nan, %v648_v12  ;;  %v765_v56 = vor.u32 8388608, %v764_v41  ;;  %v318_v8 = vxor.u32 2147483648, %v317_v4 }
  0x6b   : > { %v2251_v54 = vmul.f32 3.1415927, %v649_v50 }
  0x6c   : > { %v767_v51 = vadd.s32 1, %v1754_v48  ;;  %v2259_v21 = vshll.u32 %v765_v56, 8  ;;  %v319_v13 = vsel %vm236_vm5, %v318_v8, %v317_v4  ;;  %v2295_v8 = vand.u32 3, %v327_v62 }
  0x6d   : > { %v963_v60 = vand.u32 2147483647, %v2251_v54  ;;  %v966_v1 = vand.u32 2139095040, %v2251_v54  ;;  %v322_v4 = vsel %vm2247_vm8, %v1960_v6, %v319_v13  ;;  %vm326_vm8 = vweird.f32 %v1960_v6 }
  0x6e   : > { %vm768_vm9 = vcmp.gt.s32.totalorder %v767_v51, 0  ;;  %1856 = vcosq.f32 %v322_v4  ;;  %vm333_vm4 = vcmp.eq.s32.totalorder %v2295_v8, 2  ;;  %vm330_vm5 = vcmp.eq.s32.totalorder %v2295_v8, 0 }
  0x6f   : > { %v769_v59 = vsel %vm768_vm9, %v767_v51, 0  ;;  %v967_v27 = vshrl.u32 %v966_v1, 23  ;;  %v970_v55 = vand.u32 8388607, %v963_v60  ;;  %1858 = vsinq.f32 %v322_v4 }
  0x70   : > { %v771_v61 = vand.u32 31, %v769_v59  ;;  %v770_v3 = vshrl.u32 %v769_v59, 5  ;;  %vm329_vm6 = vcmp.lt.s32.totalorder %v2295_v8, 2  ;;  %vm444_vm9 = vcmp.lt.s32.totalorder %v2041_v58, 0 }
  0x71   : > { %v1762_v25 = vadd.s32 4294967169, %v967_v27  ;;  %v971_v12 = vor.u32 8388608, %v970_v55  ;;  %v2293_v27 = vsub.s32 %v2236_v47, %v505_v16  ;;  %v498_v8 = vadd.s32 %v2209_v5, %v2206_v32 }
  0x72   : > { %v772_v26 = vsub.s32 32, %v771_v61  ;;  %v774_v9 = vshll.u32 %v1896_v29, %v771_v61  ;;  %v777_v11 = vshll.u32 %v1897_v31, %v771_v61  ;;  %v780_v14 = vshll.u32 %v1898_v33, %v771_v61 }
  0x73   : > { %v783_v15 = vshll.u32 %v1899_v35, %v771_v61  ;;  %v786_v57 = vshll.u32 %v1900_v37, %v771_v61  ;;  %vm789_vm10 = vcmp.lt.s32.totalorder %v770_v3, 1  ;;  %vm792_vm11 = vcmp.lt.s32.totalorder %v770_v3, 4 }
  0x74   : > { %v773_v17 = vshrl.u32 %v1896_v29, %v772_v26  ;;  %v775_v20 = vshrl.u32 %v1897_v31, %v772_v26  ;;  %v778_v22 = vshrl.u32 %v1898_v33, %v772_v26  ;;  %v781_v52 = vshrl.u32 %v1899_v35, %v772_v26 }
  0x75   : > { %v784_v63 = vshrl.u32 %v1900_v37, %v772_v26  ;;  %v787_v23 = vshrl.u32 %v1901_v45, %v772_v26  ;;  %vm790_vm12 = vcmp.lt.s32.totalorder %v770_v3, 2  ;;  %vm791_vm13 = vcmp.lt.s32.totalorder %v770_v3, 3 }
  0x76   : > { %v776_v28 = vor.u32 %v775_v20, %v774_v9  ;;  %v779_v30 = vor.u32 %v778_v22, %v777_v11  ;;  %v782_v34 = vor.u32 %v781_v52, %v780_v14  ;;  %v973_v42 = vadd.s32 1, %v1762_v25 }
  0x77   : > { %v785_v36 = vor.u32 %v784_v63, %v783_v15  ;;  %v788_v24 = vor.u32 %v787_v23, %v786_v57  ;;  %v2298_v11 = vshll.u32 %v971_v12, 8  ;;  %v508_v15 = vsub.s32 0, %v2293_v27 }
  0x78   : > { %v793_v19 = vsel %vm789_vm10, %v773_v17, %v776_v28  ;;  %v794_v38 = vsel %vm792_vm11, %v782_v34, 2102212464  ;;  %v797_v10 = vsel %vm789_vm10, %v776_v28, %v779_v30  ;;  %v801_v41 = vsel %vm789_vm10, %v779_v30, %v782_v34 }
  0x79   : > { %v795_v43 = vsel %vm791_vm13, %v779_v30, %v794_v38  ;;  %v798_v44 = vsel %vm792_vm11, %v785_v36, 920167782  ;;  %v802_v46 = vsel %vm792_vm11, %v788_v24, 1326507024  ;;  %vm974_vm14 = vcmp.gt.s32.totalorder %v973_v42, 0 }
  0x7a   : > { %v799_v48 = vsel %vm791_vm13, %v782_v34, %v798_v44  ;;  %v803_v2 = vsel %vm791_vm13, %v785_v36, %v802_v46  ;;  %v796_v49 = vsel %vm790_vm12, %v793_v19, %v795_v43  ;;  %v975_v61 = vsel %vm974_vm14, %v973_v42, 0 }
  0x7b   : > { %v800_v50 = vsel %vm790_vm12, %v797_v10, %v799_v48  ;;  %v804_v51 = vsel %vm790_vm12, %v801_v41, %v803_v2  ;;  %v977_v3 = vand.u32 31, %v975_v61  ;;  %v812_v26 = vmul.u32 %v2259_v21, %v796_v49 }
  0x7c   : > { %v2281_v56 = vmul.u32.u64.low %v2259_v21, %v804_v51  ;;  %v2282_v7 = vmul.u32.u64.high %v2259_v21, %v804_v51, %v2281_v56  ;;  %v2285_v59 = vmul.u32.u64.low %v2259_v21, %v800_v50  ;;  %v2286_v1 = vmul.u32.u64.high %v2259_v21, %v800_v50, %v2285_v59 }
  0x7d   : > { %v976_v9 = vshrl.u32 %v975_v61, 5  ;;  %v978_v53 = vsub.s32 32, %v977_v3  ;;  %v980_v47 = vshll.u32 %v1896_v29, %v977_v3  ;;  %v983_v57 = vshll.u32 %v1897_v31, %v977_v3  ;;  %v1857_v56 = vpop.eup %1856 }
  0x7e   : > { %vm814_vm15 = vc.u32 %v2282_v7, %v2285_v59  ;;  %v815_v14 = vadd.s32 1, %v2286_v1  ;;  %v986_v62 = vshll.u32 %v1898_v33, %v977_v3  ;;  %v989_v21 = vshll.u32 %v1899_v35, %v977_v3 }
  0x7f   : > { %v979_v16 = vshrl.u32 %v1896_v29, %v978_v53  ;;  %v981_v17 = vshrl.u32 %v1897_v31, %v978_v53  ;;  %v984_v20 = vshrl.u32 %v1898_v33, %v978_v53  ;;  %v987_v52 = vshrl.u32 %v1899_v35, %v978_v53 }
  0x80   : > { %v816_v55 = vsel %vm814_vm15, %v815_v14, %v2286_v1  ;;  %v990_v63 = vshrl.u32 %v1900_v37, %v978_v53  ;;  %v992_v23 = vshll.u32 %v1900_v37, %v977_v3  ;;  %v993_v34 = vshrl.u32 %v1901_v45, %v978_v53 }
  0x81   : > { %v817_v22 = vadd.s32 %v816_v55, %v812_v26  ;;  %v982_v28 = vor.u32 %v981_v17, %v980_v47  ;;  %v985_v30 = vor.u32 %v984_v20, %v983_v57  ;;  %vm995_vm0 = vcmp.lt.s32.totalorder %v976_v9, 1  ;;  %v1859_v26 = vpop.eup %1858  ;;  %v219_v57 = vld [vmem:[%s2322_s23 + $0x8] sm:$0xff] }
  0x82   : > { %v988_v36 = vor.u32 %v987_v52, %v986_v62  ;;  %v991_v24 = vor.u32 %v990_v63, %v989_v21  ;;  %vm996_vm1 = vcmp.lt.s32.totalorder %v976_v9, 2  ;;  %v994_v19 = vor.u32 %v993_v34, %v992_v23 }
  0x83   : > { %v818_v25 = vadd.s32 536870912, %v817_v22  ;;  %vm997_vm2 = vcmp.lt.s32.totalorder %v976_v9, 3  ;;  %vm998_vm3 = vcmp.lt.s32.totalorder %v976_v9, 4  ;;  %v999_v38 = vsel %vm995_vm0, %v979_v16, %v982_v28 }
  0x84   : > { %v1000_v41 = vsel %vm998_vm3, %v988_v36, 2102212464  ;;  %v1003_v43 = vsel %vm995_vm0, %v982_v28, %v985_v30  ;;  %v1004_v44 = vsel %vm998_vm3, %v991_v24, 920167782  ;;  %v1007_v48 = vsel %vm995_vm0, %v985_v30, %v988_v36 }
  0x85   : > { %v819_v10 = vshrl.u32 %v818_v25, 30  ;;  %v1001_v46 = vsel %vm997_vm2, %v985_v30, %v1000_v41  ;;  %v1005_v42 = vsel %vm997_vm2, %v988_v36, %v1004_v44  ;;  %v1008_v2 = vsel %vm998_vm3, %v994_v19, 1326507024 }
  0x86   : > { %v1006_v13 = vsel %vm996_vm1, %v1003_v43, %v1005_v42  ;;  %v1009_v49 = vsel %vm997_vm2, %v991_v24, %v1008_v2  ;;  %v1002_v61 = vsel %vm996_vm1, %v999_v38, %v1001_v46  ;;  %v1743_v3 = vmin.u32 %v508_v15, %v2293_v27 }
  0x87   : > { %v820_v12 = vshll.u32 %v819_v10, 30  ;;  %v2325_v50 = vmul.u32.u64.low %v2298_v11, %v1006_v13  ;;  %v2326_v51 = vmul.u32.u64.high %v2298_v11, %v1006_v13, %v2325_v50  ;;  %v1010_v4 = vsel %vm996_vm1, %v1007_v48, %v1009_v49 }
  0x88   : > { %v2336_v14 = vmul.u32.u64.low %v2298_v11, %v1010_v4  ;;  %v2337_v53 = vmul.u32.u64.high %v2298_v11, %v1010_v4, %v2336_v14  ;;  %v334_v47 = vxor.u32 2147483648, %v1857_v56  ;;  %v331_v21 = vxor.u32 2147483648, %v1859_v26 }
  0x89   : > { %v2330_v1 = vsub.s32 %v817_v22, %v820_v12  ;;  %v510_v55 = vclz %v1743_v3  ;;  %v1018_v9 = vmul.u32 %v2298_v11, %v1002_v61  ;;  %v1021_v16 = vadd.s32 1, %v2326_v51 }
  0x8a   : > { %v335_v15 = vsel %vm333_vm4, %v334_v47, %v1859_v26  ;;  %v332_v20 = vsel %vm330_vm5, %v1857_v56, %v331_v21  ;;  %v224_v52 = vmul.f32 1.442695, %v219_v57  ;;  %vm1020_vm7 = vc.u32 %v2337_v53, %v2325_v50 }
  0x8b   : > { %v823_v62 = vsub.s32 0, %v2330_v1  ;;  %v1744_v22 = vadd.s32 4294967294, %v510_v55  ;;  %v336_v63 = vsel %vm329_vm6, %v332_v20, %v335_v15  ;;  %v843_v28 = vsub.s32 4, %v819_v10 }
  0x8c   : > { %v1022_v11 = vsel %vm1020_vm7, %v1021_v16, %v2326_v51  ;;  %v528_v30 = vsub.s32 4, %v2257_v39  ;;  %vm759_vm11 = vcmp.lt.s32.totalorder %v2222_v18, 0  ;;  %v337_v36 = vsel %vm326_vm8, nan, %v336_v63 }
  0x8d   : > { %v1755_v17 = vmin.u32 %v823_v62, %v2330_v1  ;;  %v1023_v34 = vadd.s32 %v1022_v11, %v1018_v9  ;;  %vm1745_vm10 = vcmp.lt.s32.totalorder %v1744_v22, 0  ;;  %v813_v43 = vadd.s32 %v2285_v59, %v2282_v7 }
  0x8e   : > { %v513_v24 = vsel %vm1745_vm10, 0, %v1744_v22  ;;  %v844_v44 = vsel %vm759_vm11, %v843_v28, %v819_v10  ;;  %v529_v32 = vsel %vm444_vm9, %v528_v30, %v2257_v39  ;;  %v2366_v13 = vmul.f32 3.1415927, %v337_v36  ;;  %v221_v39 = vld [vmem:[%s2322_s23 + $0x18] sm:$0x1] }
  0x8f   : > { %v825_v23 = vclz %v1755_v17  ;;  %v1024_v6 = vadd.s32 536870912, %v1023_v34  ;;  %v514_v19 = vsub.s32 32, %v513_v24  ;;  %v515_v38 = vshll.u32 %v2293_v27, %v513_v24 }
  0x90   : > { %v518_v41 = vsub.s32 4294967266, %v513_v24  ;;  %vm2370_vm13 = vcmp.le.f32.partialorder %v757_v0, 0.7853982  ;;  %vm2381_vm14 = vcmp.le.f32.partialorder %v442_v40, 0.7853982  ;;  %v657_v62 = vand.u32 2139095040, %v2366_v13 }
  0x91   : > { %v1756_v25 = vadd.s32 4294967294, %v825_v23  ;;  %v1025_v46 = vshrl.u32 %v1024_v6, 30  ;;  %v516_v42 = vshrl.u32 %v498_v8, %v514_v19  ;;  %v2377_v61 = vsel %vm2370_vm13, 0, %v844_v44 }
  0x92   : > { %v519_v48 = vadd.s32 127, %v518_v41  ;;  %v531_v26 = vsel %vm2381_vm14, 0, %v529_v32  ;;  %v654_v57 = vand.u32 2147483647, %v2366_v13  ;;  %v228_v21 = vmul.f32 1.442695, %v221_v39 }
  0x93   : > { %vm1757_vm12 = vcmp.lt.s32.totalorder %v1756_v25, 0  ;;  %v1026_v59 = vshll.u32 %v1025_v46, 30  ;;  %v517_v10 = vor.u32 %v516_v42, %v515_v38  ;;  %v658_v15 = vshrl.u32 %v657_v62, 23 }
  0x94   : > { %v828_v5 = vsel %vm1757_vm12, 0, %v1756_v25  ;;  %v520_v49 = vshll.u32 %v519_v48, 23  ;;  %v1267_v20 = vadd.s32 3, %v2377_v61  ;;  %v535_v63 = vadd.s32 3, %v531_v26 }
  0x95   : > { %v829_v2 = vsub.s32 32, %v828_v5  ;;  %v830_v27 = vshll.u32 %v2330_v1, %v828_v5  ;;  %v833_v12 = vsub.s32 4294967266, %v828_v5  ;;  %v2385_v0 = vsub.s32 %v1023_v34, %v1026_v59 }
  0x96   : > { %v521_v4 = vor.u32 4788187, %v520_v49  ;;  %v524_v3 = vcvt.s32.f32 %v517_v10  ;;  %1860 = vpow2.f32 %v224_v52  ;;  %v1750_v28 = vadd.s32 4294967169, %v658_v15 }
  0x97   : > { %v831_v51 = vshrl.u32 %v813_v43, %v829_v2  ;;  %v834_v56 = vadd.s32 127, %v833_v12  ;;  %v1029_v55 = vsub.s32 0, %v2385_v0  ;;  %v661_v11 = vand.u32 8388607, %v654_v57 }
  0x98   : > { %v522_v40 = vand.u32 2147483647, %v521_v4  ;;  %1862 = vpow2.f32 %v228_v21  ;;  %v1049_v34 = vsub.s32 4, %v1025_v46  ;;  %vm965_vm15 = vcmp.lt.s32.totalorder %v2251_v54, 0 }
  0x99   : > { %v832_v14 = vor.u32 %v831_v51, %v830_v27  ;;  %v835_v47 = vshll.u32 %v834_v56, 23  ;;  %v1763_v17 = vmin.u32 %v1029_v55, %v2385_v0  ;;  %v664_v36 = vadd.s32 1, %v1750_v28 }
  0x9a   : > { %v525_v22 = vmul.f32 %v524_v3, %v522_v40  ;;  %v1019_v24 = vadd.s32 %v2325_v50, %v2337_v53  ;;  %v2399_v19 = vand.u32 3, %v1267_v20  ;;  %v2401_v52 = vand.u32 3, %v535_v63 }
  0x9b   : > { %v836_v9 = vor.u32 4788187, %v835_v47  ;;  %v839_v16 = vcvt.s32.f32 %v832_v14  ;;  %v1031_v30 = vclz %v1763_v17  ;;  %v662_v43 = vor.u32 8388608, %v661_v11 }
  0x9c   : > { %v526_v25 = vxor.u32 2147483648, %v525_v22  ;;  %vm665_vm0 = vcmp.gt.s32.totalorder %v664_v36, 0  ;;  %v2407_v44 = vsel %vm965_vm15, %v1049_v34, %v1025_v46  ;;  %vm2428_vm4 = vcmp.le.f32.partialorder %v963_v60, 0.7853982 }
  0x9d   : > { %v837_v23 = vand.u32 2147483647, %v836_v9  ;;  %v1764_v6 = vadd.s32 4294967294, %v1031_v30  ;;  %v666_v53 = vsel %vm665_vm0, %v664_v36, 0  ;;  %v2421_v59 = vshll.u32 %v662_v43, 8 }
  0x9e   : > { %v527_v41 = vsel %vm444_vm9, %v526_v25, %v525_v22  ;;  %v2414_v42 = vshrl.u32 %v666_v53, 5  ;;  %v668_v12 = vand.u32 31, %v666_v53  ;;  %vm1273_vm5 = vcmp.eq.s32.totalorder %v2399_v19, 2 }
  0x9f   : > { %v840_v8 = vmul.f32 %v839_v16, %v837_v23  ;;  %vm1765_vm1 = vcmp.lt.s32.totalorder %v1764_v6, 0  ;;  %v530_v50 = vsel %vm2381_vm14, %v2041_v58, %v527_v41  ;;  %vm541_vm6 = vcmp.eq.s32.totalorder %v2401_v52, 2 }
  0xa0   : > { %v1034_v5 = vsel %vm1765_vm1, 0, %v1764_v6  ;;  %1864 = vcosq.f32 %v530_v50  ;;  %vm686_vm2 = vcmp.lt.s32.totalorder %v2414_v42, 1  ;;  %vm687_vm3 = vcmp.lt.s32.totalorder %v2414_v42, 2 }
  0xa1   : > { %v841_v38 = vxor.u32 2147483648, %v840_v8  ;;  %v1035_v2 = vsub.s32 32, %v1034_v5  ;;  %v1036_v46 = vshll.u32 %v2385_v0, %v1034_v5  ;;  %v1039_v27 = vsub.s32 4294967266, %v1034_v5 }
  0xa2   : > { %v669_v39 = vsub.s32 32, %v668_v12  ;;  %v671_v7 = vshll.u32 %v1896_v29, %v668_v12  ;;  %v674_v51 = vshll.u32 %v1897_v31, %v668_v12  ;;  %v677_v4 = vshll.u32 %v1898_v33, %v668_v12 }
  0xa3   : > { %v842_v32 = vsel %vm759_vm11, %v841_v38, %v840_v8  ;;  %v1037_v10 = vshrl.u32 %v1019_v24, %v1035_v2  ;;  %v1040_v49 = vadd.s32 127, %v1039_v27  ;;  %v680_v3 = vshll.u32 %v1899_v35, %v668_v12  ;;  %v2438_v21 = vpop.eup %1860 }
  0xa4   : > { %v845_v48 = vsel %vm2370_vm13, %v2222_v18, %v842_v32  ;;  %v670_v26 = vshrl.u32 %v1896_v29, %v669_v39  ;;  %v672_v14 = vshrl.u32 %v1897_v31, %v669_v39  ;;  %v675_v47 = vshrl.u32 %v1898_v33, %v669_v39 }
  0xa5   : > { %1866 = vcosq.f32 %v845_v48  ;;  %v1038_v1 = vor.u32 %v1037_v10, %v1036_v46  ;;  %v1041_v0 = vshll.u32 %v1040_v49, 23  ;;  %v678_v62 = vshrl.u32 %v1899_v35, %v669_v39  ;;  %v2444_v16 = vpop.eup %1862 }
  0xa6   : > { %1868 = vsinq.f32 %v845_v48  ;;  %v681_v40 = vshrl.u32 %v1900_v37, %v669_v39  ;;  %v683_v9 = vshll.u32 %v1900_v37, %v668_v12  ;;  %vm1270_vm7 = vcmp.eq.s32.totalorder %v2399_v19, 0 }
  0xa7   : > { %1870 = vsinq.f32 %v530_v50  ;;  %v1042_v60 = vor.u32 4788187, %v1041_v0  ;;  %v1045_v55 = vcvt.s32.f32 %v1038_v1  ;;  %v673_v15 = vor.u32 %v672_v14, %v671_v7 }
  0xa8   : > { %v676_v17 = vor.u32 %v675_v47, %v674_v51  ;;  %v679_v20 = vor.u32 %v678_v62, %v677_v4  ;;  %v684_v22 = vshrl.u32 %v1901_v45, %v669_v39  ;;  %vm1269_vm8 = vcmp.lt.s32.totalorder %v2399_v19, 2 }
  0xa9   : > { %v1043_v63 = vand.u32 2147483647, %v1042_v60  ;;  %vm538_vm9 = vcmp.eq.s32.totalorder %v2401_v52, 0  ;;  %v682_v23 = vor.u32 %v681_v40, %v680_v3  ;;  %vm688_vm10 = vcmp.lt.s32.totalorder %v2414_v42, 3 }
  0xaa   : > { %vm689_vm11 = vcmp.lt.s32.totalorder %v2414_v42, 4  ;;  %vm849_vm12 = vweird.f32 %v2222_v18  ;;  %vm537_vm13 = vcmp.lt.s32.totalorder %v2401_v52, 2  ;;  %v685_v28 = vor.u32 %v684_v22, %v683_v9 }
  0xab   : > { %v690_v11 = vsel %vm686_vm2, %v670_v26, %v673_v15  ;;  %v691_v30 = vsel %vm689_vm11, %v679_v20, 2102212464  ;;  %v694_v34 = vsel %vm686_vm2, %v673_v15, %v676_v17  ;;  %v1046_v8 = vmul.f32 %v1045_v55, %v1043_v63 }
  0xac   : > { %vm534_vm14 = vweird.f32 %v2041_v58  ;;  %v692_v25 = vsel %vm688_vm10, %v676_v17, %v691_v30  ;;  %v695_v36 = vsel %vm689_vm11, %v682_v23, 920167782  ;;  %v698_v24 = vsel %vm686_vm2, %v676_v17, %v679_v20 }
  0xad   : > { %v696_v6 = vsel %vm688_vm10, %v679_v20, %v695_v36  ;;  %v699_v38 = vsel %vm689_vm11, %v685_v28, 1326507024  ;;  %v850_v41 = vand.u32 3, %v2377_v61  ;;  %v1865_v43 = vpop.eup %1864  ;;  %v1047_v50 = vxor.u32 2147483648, %v1046_v8 }
  0xae   : > { %v693_v53 = vsel %vm687_vm3, %v690_v11, %v692_v25  ;;  %v697_v32 = vsel %vm687_vm3, %v694_v34, %v696_v6  ;;  %v700_v5 = vsel %vm688_vm10, %v682_v23, %v699_v38  ;;  %v1902_v48 = vmov 0.0  }
  0xaf   : > { %1583 = vmatprep.mubr.f32.mxu0 %v1902_v48  ;;  %1589 = vmatprep.mubr.f32.mxu1 %v1902_v48  ;;  %v542_v2 = vxor.u32 2147483648, %v1865_v43  ;;  %v701_v46 = vsel %vm687_vm3, %v698_v24, %v700_v5  ;;  %v2475_v61 = vmul.u32.u64.low %v2421_v59, %v697_v32  ;;  %v2476_v27 = vmul.u32.u64.high %v2421_v59, %v697_v32, %v2475_v61 }
  0xb0   : > { %v1048_v10 = vsel %vm965_vm15, %v1047_v50, %v1046_v8  ;;  %v1052_v49 = vsel %vm2428_vm4, 0, %v2407_v44  ;;  %v2485_v39 = vmul.u32.u64.low %v2421_v59, %v701_v46  ;;  %v2486_v7 = vmul.u32.u64.high %v2421_v59, %v701_v46, %v2485_v39 }
  0xb1   : > { %v1051_v1 = vsel %vm2428_vm4, %v2251_v54, %v1048_v10  ;;  %vm851_vm0 = vcmp.lt.s32.totalorder %v850_v41, 2  ;;  %vm852_vm1 = vcmp.eq.s32.totalorder %v850_v41, 0  ;;  %v709_v3 = vmul.u32 %v2421_v59, %v693_v53 }
  0xb2   : > { %v1867_v12 = vpop.eup %1866  ;;  %1872 = vcosq.f32 %v1051_v1  ;;  %vm855_vm15 = vcmp.eq.s32.totalorder %v850_v41, 2  ;;  %v1475_v47 = vadd.s32 3, %v1052_v49  ;;  %vm711_vm2 = vc.u32 %v2486_v7, %v2475_v61 }
  0xb3   : > { %v1869_v51 = vpop.eup %1868  ;;  %v856_v42 = vxor.u32 2147483648, %v1867_v12  ;;  %1874 = vsinq.f32 %v1051_v1  ;;  %v712_v62 = vadd.s32 1, %v2476_v27  ;;  %v2527_v25 = vand.u32 3, %v1052_v49 }
  0xb4   : > { %v1871_v0 = vpop.eup %1870  ;;  %v853_v4 = vxor.u32 2147483648, %v1869_v51  ;;  %v1476_v34 = vand.u32 3, %v1475_v47  ;;  %vm1494_vm10 = vcmask 1040384   ;;  %vm1514_vm11 = vcmask 1041408  }
  0xb5   : > { %v1275_v44 = vsel %vm1273_vm5, %v856_v42, %v1869_v51  ;;  %v539_v26 = vxor.u32 2147483648, %v1871_v0  ;;  %v543_v14 = vsel %vm541_vm6, %v542_v2, %v1871_v0  ;;  %v857_v40 = vsel %vm855_vm15, %v856_v42, %v1869_v51 }
  0xb6   : > { %v1272_v56 = vsel %vm1270_vm7, %v1867_v12, %v853_v4  ;;  %v854_v55 = vsel %vm852_vm1, %v1867_v12, %v853_v4  ;;  %v713_v17 = vsel %vm711_vm2, %v712_v62, %v2476_v27  ;;  %vm1481_vm3 = vcmp.eq.s32.totalorder %v1476_v34, 2 }
  0xb7   : > { %v1276_v59 = vsel %vm1269_vm8, %v1272_v56, %v1275_v44  ;;  %v540_v60 = vsel %vm538_vm9, %v1865_v43, %v539_v26  ;;  %v858_v20 = vsel %vm851_vm0, %v854_v55, %v857_v40  ;;  %v714_v63 = vadd.s32 %v713_v17, %v709_v3 }
  0xb8   : > { %v1277_v9 = vsel %vm849_vm12, nan, %v1276_v59  ;;  %v544_v15 = vsel %vm537_vm13, %v540_v60, %v543_v14  ;;  %v859_v23 = vsel %vm849_vm12, nan, %v858_v20  ;;  %vm1061_vm4 = vcmp.eq.s32.totalorder %v2527_v25, 2 }
  0xb9   : > { %v2513_v22 = vmul.f32 %v2438_v21, %v1277_v9  ;;  %v545_v19 = vsel %vm534_vm14, nan, %v544_v15  ;;  %v2522_v11 = vmul.f32 %v2438_v21, %v859_v23  ;;  %v715_v52 = vadd.s32 536870912, %v714_v63 }
  0xba   : > { %v2519_v28 = vmul.f32 3.1415927, %v545_v19  ;;  %vm1477_vm5 = vcmp.lt.s32.totalorder %v1476_v34, 2  ;;  %vm1478_vm6 = vcmp.eq.s32.totalorder %v1476_v34, 0  ;;  %vm1058_vm7 = vcmp.eq.s32.totalorder %v2527_v25, 0 }
  0xbb   : > { %v2525_v8 = vshrl.u32 %v715_v52, 30  ;;  %vm1055_vm8 = vweird.f32 %v2251_v54  ;;  %v1496_v51 = vrot.slane %v2513_v22, 7  ;;  %vm1057_vm15 = vcmp.lt.s32.totalorder %v2527_v25, 2 }
  0xbc   : > { %v863_v30 = vand.u32 2139095040, %v2519_v28  ;;  %v860_v24 = vand.u32 2147483647, %v2519_v28 }
  0xbd   : > { %v717_v58 = vshll.u32 %v2525_v8, 30 }
  0xbe   : > { %v864_v36 = vshrl.u32 %v863_v30, 23  ;;  %v867_v32 = vand.u32 8388607, %v860_v24 }
  0xbf   : > { %v1873_v6 = vpop.eup %1872  ;;  %v2531_v38 = vsub.s32 %v714_v63, %v717_v58 }
  0xc0   : > { %v1758_v18 = vadd.s32 4294967169, %v864_v36  ;;  %v1875_v21 = vpop.eup %1874  ;;  %v1062_v41 = vxor.u32 2147483648, %v1873_v6  ;;  %v868_v1 = vor.u32 8388608, %v867_v32 }
  0xc1   : > { %v1059_v50 = vxor.u32 2147483648, %v1875_v21  ;;  %v720_v53 = vsub.s32 0, %v2531_v38 }
  0xc2   : > { %v870_v43 = vadd.s32 1, %v1758_v18  ;;  %v1483_v5 = vsel %vm1481_vm3, %v1062_v41, %v1875_v21  ;;  %v2539_v48 = vsel %vm1061_vm4, %v1062_v41, %v1875_v21  ;;  %v908_v34 = vshll.u32 %v868_v1, 8 }
  0xc3   : > { %v1480_v2 = vsel %vm1478_vm6, %v1873_v6, %v1059_v50  ;;  %v1751_v46 = vmin.u32 %v720_v53, %v2531_v38  ;;  %v1060_v49 = vsel %vm1058_vm7, %v1873_v6, %v1059_v50  ;;  %v710_v41 = vadd.s32 %v2475_v61, %v2486_v7 }
  0xc4   : > { %vm871_vm9 = vcmp.gt.s32.totalorder %v870_v43, 0  ;;  %v1484_v12 = vsel %vm1477_vm5, %v1480_v2, %v1483_v5  ;;  %vm656_vm3 = vcmp.lt.s32.totalorder %v2366_v13, 0  ;;  %vm2593_vm4 = vcmp.le.f32.partialorder %v654_v57, 0.7853982 }
  0xc5   : > { %v872_v27 = vsel %vm871_vm9, %v870_v43, 0  ;;  %v1485_v39 = vsel %vm1055_vm8, nan, %v1484_v12  ;;  %v722_v42 = vclz %v1751_v46  ;;  %v740_v57 = vsub.s32 4, %v2525_v8 }
  0xc6   : > { %v874_v10 = vand.u32 31, %v872_v27  ;;  %v1489_v0 = vmul.f32 %v2444_v16, %v1485_v39  ;;  %v873_v14 = vshrl.u32 %v872_v27, 5  ;;  %vm862_vm6 = vcmp.lt.s32.totalorder %v2519_v28, 0 }
  0xc7   : > { %v1752_v26 = vadd.s32 4294967294, %v722_v42  ;;  %vm861_vm7 = vcmp.le.f32.partialorder %v860_v24, 0.7853982 }
  0xc8   : > { %v875_v4 = vsub.s32 32, %v874_v10  ;;  %v877_v3 = vshll.u32 %v1896_v29, %v874_v10  ;;  %v880_v44 = vshll.u32 %v1897_v31, %v874_v10  ;;  %v883_v56 = vshll.u32 %v1898_v33, %v874_v10 }
  0xc9   : > { %v886_v47 = vshll.u32 %v1899_v35, %v874_v10  ;;  %v1499_v62 = vrot.slane %v1489_v0, 7  ;;  %v889_v55 = vshll.u32 %v1900_v37, %v874_v10  ;;  %vm1753_vm12 = vcmp.lt.s32.totalorder %v1752_v26, 0 }
  0xca   : > { %v878_v59 = vshrl.u32 %v1897_v31, %v875_v4  ;;  %v881_v60 = vshrl.u32 %v1898_v33, %v875_v4  ;;  %v884_v40 = vshrl.u32 %v1899_v35, %v875_v4  ;;  %v887_v9 = vshrl.u32 %v1900_v37, %v875_v4 }
  0xcb   : > { %v890_v15 = vshrl.u32 %v1901_v45, %v875_v4  ;;  %v1500_v17 = vsel %vm1494_vm10, %v1496_v51, %v1499_v62  ;;  %v725_v20 = vsel %vm1753_vm12, 0, %v1752_v26  ;;  %v876_v31 = vshrl.u32 %v1896_v29, %v875_v4 }
  0xcc   : > { %v879_v19 = vor.u32 %v878_v59, %v877_v3  ;;  %v882_v63 = vor.u32 %v881_v60, %v880_v44  ;;  %1782 = vmatprep.subr.msk.mxu0 %vm1514_vm11, %v1500_v17  ;;  %1791 = vmatprep.subr.msk.mxu1 %vm1514_vm11, %v1500_v17  ;;  %v885_v33 = vor.u32 %v884_v40, %v883_v56  ;;  %vm892_vm13 = vcmp.lt.s32.totalorder %v873_v14, 1 }
  0xcd   : > { %v888_v23 = vor.u32 %v887_v9, %v886_v47  ;;  %v891_v35 = vor.u32 %v890_v15, %v889_v55  ;;  %v730_v37 = vsub.s32 4294967266, %v725_v20  ;;  %vm893_vm14 = vcmp.lt.s32.totalorder %v873_v14, 2 }
  0xce   : > { %vm894_vm0 = vcmp.lt.s32.totalorder %v873_v14, 3  ;;  %vm895_vm1 = vcmp.lt.s32.totalorder %v873_v14, 4  ;;  %v900_v52 = vsel %vm892_vm13, %v879_v19, %v882_v63  ;;  %v896_v36 = vsel %vm892_vm13, %v876_v31, %v879_v19 }
  0xcf   : > { %v897_v45 = vsel %vm895_vm1, %v885_v33, 2102212464  ;;  %v901_v30 = vsel %vm895_vm1, %v888_v23, 920167782  ;;  %v904_v29 = vsel %vm892_vm13, %v882_v63, %v885_v33  ;;  %v905_v21 = vsel %vm895_vm1, %v891_v35, 1326507024 }
  0xd0   : > { %v898_v58 = vsel %vm894_vm0, %v882_v63, %v897_v45  ;;  %v902_v18 = vsel %vm894_vm0, %v885_v33, %v901_v30  ;;  %v726_v43 = vsub.s32 32, %v725_v20  ;;  %v731_v50 = vadd.s32 127, %v730_v37  ;;  %v218_v30 = vld [vmem:[%s2322_s23] sm:$0xff] }
  0xd1   : > { %v903_v6 = vsel %vm893_vm14, %v900_v52, %v902_v18  ;;  %v906_v53 = vsel %vm894_vm0, %v888_v23, %v905_v21  ;;  %v899_v32 = vsel %vm893_vm14, %v896_v36, %v898_v58  ;;  %v1064_v10 = vsel %vm1057_vm15, %v1060_v49, %v2539_v48 }
  0xd2   : > { %v907_v5 = vsel %vm893_vm14, %v904_v29, %v906_v53  ;;  %v2571_v2 = vmul.u32.u64.low %v908_v34, %v903_v6  ;;  %v2572_v46 = vmul.u32.u64.high %v908_v34, %v903_v6, %v2571_v2  ;;  %v727_v25 = vshll.u32 %v2531_v38, %v725_v20 }
  0xd3   : > { %v2574_v27 = vmul.u32.u64.low %v908_v34, %v907_v5  ;;  %v2575_v12 = vmul.u32.u64.high %v908_v34, %v907_v5, %v2574_v27  ;;  %v1065_v61 = vsel %vm1055_vm8, nan, %v1064_v10  ;;  %v728_v7 = vshrl.u32 %v710_v41, %v726_v43  ;;  %v220_v41 = vld [vmem:[%s2322_s23 + $0x10] sm:$0x1] }
  0xd4   : > { %v732_v39 = vshll.u32 %v731_v50, 23  ;;  %v915_v42 = vmul.u32 %v908_v34, %v899_v32  ;;  %v1069_v1 = vmul.f32 %v2444_v16, %v1065_v61  ;;  %v918_v0 = vadd.s32 1, %v2572_v46 }
  0xd5   : > { %vm917_vm2 = vc.u32 %v2575_v12, %v2571_v2  ;;  %v729_v38 = vor.u32 %v728_v7, %v727_v25  ;;  %v916_v9 = vadd.s32 %v2571_v2, %v2575_v12  ;;  %v741_v37 = vsel %vm656_vm3, %v740_v57, %v2525_v8 }
  0xd6   : > { %v2587_v4 = vsel %vm1494_vm10, %v1069_v1, %v1496_v51  ;;  %v919_v48 = vsel %vm917_vm2, %v918_v0, %v2572_v46  ;;  %v733_v49 = vor.u32 4788187, %v732_v39  ;;  %v743_v36 = vsel %vm2593_vm4, 0, %v741_v37 }
  0xd7   : > { %v920_v54 = vadd.s32 %v919_v48, %v915_v42  ;;  %v736_v26 = vcvt.s32.f32 %v729_v38  ;;  %v222_v18 = vmul.f32 1.442695, %v218_v30  ;;  %v1163_v21 = vadd.s32 3, %v743_v36 }
  0xd8   : > { %v734_v44 = vand.u32 2147483647, %v733_v49  ;;  %v226_v5 = vmul.f32 1.442695, %v220_v41  ;;  %v747_v61 = vand.u32 3, %v743_v36  ;;  %vm746_vm13 = vweird.f32 %v2366_v13 }
  0xd9   : > { %v921_v3 = vadd.s32 536870912, %v920_v54  ;;  %v1164_v2 = vand.u32 3, %v1163_v21  ;;  %vm952_vm14 = vweird.f32 %v2519_v28 }
  0xda   : > { %v737_v16 = vmul.f32 %v736_v26, %v734_v44  ;;  %vm752_vm0 = vcmp.eq.s32.totalorder %v747_v61, 2  ;;  %vm749_vm2 = vcmp.eq.s32.totalorder %v747_v61, 0 }
  0xdb   : > { %v922_v14 = vshrl.u32 %v921_v3, 30  ;;  %vm1166_vm8 = vcmp.eq.s32.totalorder %v1164_v2, 0  ;;  %vm1169_vm9 = vcmp.eq.s32.totalorder %v1164_v2, 2  ;;  %vm1165_vm12 = vcmp.lt.s32.totalorder %v1164_v2, 2 }
  0xdc   : > { %v738_v59 = vxor.u32 2147483648, %v737_v16 }
  0xdd   : > { %v923_v56 = vshll.u32 %v922_v14, 30  ;;  %v946_v6 = vsub.s32 4, %v922_v14 }
  0xde   : > { %v739_v55 = vsel %vm656_vm3, %v738_v59, %v737_v16 }
  0xdf   : > { %v924_v47 = vsub.s32 %v920_v54, %v923_v56  ;;  %v742_v15 = vsel %vm2593_vm4, %v2366_v13, %v739_v55  ;;  %v947_v50 = vsel %vm862_vm6, %v946_v6, %v922_v14  ;;  %v1505_v13 = vld [vmem:[%s2652_s2] sm:$0xff] }
  0xe0   : > { %1876 = vcosq.f32 %v742_v15  ;;  %v949_v46 = vsel %vm861_vm7, 0, %v947_v50 }
  0xe1   : > { %v926_v62 = vsub.s32 0, %v924_v47  ;;  %1878 = vsinq.f32 %v742_v15  ;;  %v1371_v24 = vadd.s32 3, %v949_v46  ;;  %v953_v39 = vand.u32 3, %v949_v46 }
  0xe2   : > { %1880 = vpow2.f32 %v222_v18 }
  0xe3   : > { %v1759_v60 = vmin.u32 %v926_v62, %v924_v47  ;;  %v1372_v7 = vand.u32 3, %v1371_v24  ;;  %vm958_vm15 = vcmp.eq.s32.totalorder %v953_v39, 2  ;;  %vm955_vm4 = vcmp.eq.s32.totalorder %v953_v39, 0 }
  0xe5   : > { %v928_v22 = vclz %v1759_v60  ;;  %vm1377_vm1 = vcmp.eq.s32.totalorder %v1372_v7, 2  ;;  %vm1374_vm3 = vcmp.eq.s32.totalorder %v1372_v7, 0 }
  0xe7   : > { %v1760_v40 = vadd.s32 4294967294, %v928_v22 }
  0xe9   : > { %vm1761_vm5 = vcmp.lt.s32.totalorder %v1760_v40, 0 }
  0xea   : > { %v931_v17 = vsel %vm1761_vm5, 0, %v1760_v40  ;;  %vm748_vm5 = vcmp.lt.s32.totalorder %v747_v61, 2 }
  0xeb   : > { %v932_v20 = vsub.s32 32, %v931_v17  ;;  %v933_v19 = vshll.u32 %v924_v47, %v931_v17  ;;  %v936_v63 = vsub.s32 4294967266, %v931_v17 }
  0xed   : > { %v934_v31 = vshrl.u32 %v916_v9, %v932_v20  ;;  %v937_v33 = vadd.s32 127, %v936_v63  ;;  %v1877_v8 = vpop.eup %1876 }
  0xee   : > { %v1879_v32 = vpop.eup %1878  ;;  %v753_v12 = vxor.u32 2147483648, %v1877_v8 }
  0xef   : > { %v935_v23 = vor.u32 %v934_v31, %v933_v19  ;;  %v938_v35 = vshll.u32 %v937_v33, 23  ;;  %v750_v27 = vxor.u32 2147483648, %v1879_v32  ;;  %v1881_v1 = vpop.eup %1880 }
  0xf0   : > { %v1171_v25 = vsel %vm1169_vm9, %v753_v12, %v1879_v32  ;;  %v754_v3 = vsel %vm752_vm0, %v753_v12, %v1879_v32  ;;  %vm1626_vm9 = vcmask 23552  }
  0xf1   : > { %v939_v45 = vor.u32 4788187, %v938_v35  ;;  %v942_v52 = vcvt.s32.f32 %v935_v23  ;;  %v1168_v10 = vsel %vm1166_vm8, %v1877_v8, %v750_v27  ;;  %v751_v56 = vsel %vm749_vm2, %v1877_v8, %v750_v27  ;;  %v1642_v8 = vld [vmem:[%s2653_s3] sm:$0xff] }
  0xf2   : > { %v1172_v42 = vsel %vm1165_vm12, %v1168_v10, %v1171_v25  ;;  %v755_v55 = vsel %vm748_vm5, %v751_v56, %v754_v3  ;;  %vm1507_vm8 = vcmask 146432   ;;  %v1644_v46 = vcombine.high %v1642_v8, %v1642_v8 }
  0xf3   : > { %v940_v34 = vand.u32 2147483647, %v939_v45  ;;  %v1173_v48 = vsel %vm746_vm13, nan, %v1172_v42  ;;  %v756_v20 = vsel %vm746_vm13, nan, %v755_v55  ;;  %vm1652_vm12 = vcmask 1043456  }
  0xf4   : > { %v1486_v26 = vmul.f32 %v1881_v1, %v1173_v48  ;;  %v1066_v57 = vmul.f32 %v1881_v1, %v756_v20  ;;  %vm1653_vm13 = vcmask 31748  }
  0xf5   : > { %v943_v58 = vmul.f32 %v942_v52, %v940_v34 }
  0xf6   : > { %v1495_v9 = vrot.slane %v1486_v26, 7 }
  0xf7   : > { %v944_v29 = vxor.u32 2147483648, %v943_v58 }
  0xf9   : > { %v945_v43 = vsel %vm862_vm6, %v944_v29, %v943_v58  ;;  %vm1373_vm6 = vcmp.lt.s32.totalorder %v1372_v7, 2 }
  0xfa   : > { %v948_v53 = vsel %vm861_vm7, %v2519_v28, %v945_v43  ;;  %vm954_vm7 = vcmp.lt.s32.totalorder %v953_v39, 2  ;;  %v1506_v28 = vld [vmem:[%s2652_s2 + $0x8] sm:$0xff] }
  0xfb   : > { %1882 = vcosq.f32 %v948_v53 }
  0xfc   : > { %1884 = vsinq.f32 %v948_v53 }
  0xfd   : > { %1886 = vpow2.f32 %v226_v5 }
 0x108   : > { %v1883_v0 = vpop.eup %1882 }
 0x109   : > { %v1885_v38 = vpop.eup %1884  ;;  %v959_v49 = vxor.u32 2147483648, %v1883_v0 }
 0x10a   : > { %v956_v54 = vxor.u32 2147483648, %v1885_v38  ;;  %v1887_v16 = vpop.eup %1886 }
 0x10b   : > { %v1379_v44 = vsel %vm1377_vm1, %v959_v49, %v1885_v38  ;;  %v960_v14 = vsel %vm958_vm15, %v959_v49, %v1885_v38 }
 0x10c   : > { %v1376_v47 = vsel %vm1374_vm3, %v1883_v0, %v956_v54  ;;  %v957_v62 = vsel %vm955_vm4, %v1883_v0, %v956_v54 }
 0x10d   : > { %v1380_v59 = vsel %vm1373_vm6, %v1376_v47, %v1379_v44  ;;  %v961_v60 = vsel %vm954_vm7, %v957_v62, %v960_v14 }
 0x10e   : > { %v1381_v22 = vsel %vm952_vm14, nan, %v1380_v59  ;;  %v962_v51 = vsel %vm952_vm14, nan, %v961_v60  ;;  %vm1654_vm14 = vmor %vm1653_vm13, %vm1652_vm12 }
 0x10f   : > { %v1488_v40 = vmul.f32 %v1887_v16, %v1381_v22  ;;  %v1068_v15 = vmul.f32 %v1887_v16, %v962_v51 }
 0x111   : > { %v1497_v17 = vrot.slane %v1488_v40, 7  ;;  %v1503_v63 = vsel %vm1494_vm10, %v1068_v15, %v1495_v9 }
 0x113   : > { %v1498_v19 = vsel %vm1494_vm10, %v1495_v9, %v1497_v17  ;;  %vm1596_vm10 = vcmask 7168  }
 0x114   : > { %1783 = vmatpush1.msk.msra.mxu0 %vm1514_vm11, %v1498_v19  ;;  %1794 = vmatpush1.msk.msra.mxu1 %vm1514_vm11, %v1498_v19  ;;  %vm1612_vm11 = vcmask 15360  }
 0x115   : > { %1547 = vmatprep.subr.mxu0 %v2587_v4  ;;  %1792 = vmatprep.subr.mxu1 %v2587_v4 }
 0x116   : > { %1548 = vmatpush1.msra.mxu0 %v1503_v63  ;;  %1795 = vmatpush1.msra.mxu1 %v1503_v63 }
 0x117   : > { %1549 = vmatprep.subr.mxu0 %v2522_v11  ;;  %1793 = vmatprep.subr.mxu1 %v2522_v11 }
 0x118   : > { %1550 = vmatpush1.msra.mxu0 %v1066_v57  ;;  %1796 = vmatpush1.msra.mxu1 %v1066_v57 }
 0x119   : > { %1784 = vmatmul.mubr.msk.f32.vlgmr.msra.gmra.mxu0 %vm1507_vm8, %v1505_v13  ;;  %1785 = vmatmul.mubr.msk.f32.vlgmr.msra.gmra.mxu1 %vm1507_vm8, %v1506_v28 }
 0x1d9   : > { %v1585_v4 = vpop.f32.mrf.mxu0  ;;  %v1591_v31 = vpop.f32.mrf.mxu1 }
 0x1da   : > { %1618 = vrot.lane.b32.xlu1 %v1591_v31, %s1903_s28  ;;  %v1602_v33 = vrot.slane %v1585_v4, 4  ;;  %v1630_v52 = vrot.slane %v1591_v31, 4 }
 0x1db   : > { %v1587_v23 = vpop.f32.mrf.mxu0  ;;  %v1593_v35 = vpop.f32.mrf.mxu1 }
 0x1dc   : > { %1604 = vrot.lane.b32.xlu0 %v1602_v33, %s1904_s29  ;;  %v1603_v37 = vrot.slane %v1587_v23, 4  ;;  %v1631_v45 = vrot.slane %v1593_v35, 4  ;;  %v1597_v41 = vsel %vm1596_vm10, %v1587_v23, 0.0 }
 0x1de   : > { %1620 = vrot.lane.b32.xlu1 %v1593_v35, %s1903_s28 }
 0x1e0   : > { %1606 = vrot.lane.b32.xlu0 %v1603_v37, %s1904_s29 }
 0x1e2   : > { %1634 = vrot.lane.b32.xlu1 %v1631_v45, %s1905_s30 }
 0x1e4   : > { %1632 = vrot.lane.b32.xlu0 %v1630_v52, %s1905_s30 }
 0x24c   : > { %v1619_v11 = vpop.permute.xlu1 %1618 }
 0x24d   : > { %v1625_v6 = vsel %vm1612_vm11, 0.0, %v1619_v11 }
 0x24e   : > { %v1605_v30 = vpop.permute.xlu0 %1604 }
 0x24f   : > { %v1611_v34 = vsel %vm1596_vm10, 0.0, %v1605_v30 }
 0x250   : > { %v1621_v36 = vpop.permute.xlu1 %1620  ;;  %v1614_v58 = vadd.f32 %v1611_v34, %v1585_v4 }
 0x251   : > { %v1622_v29 = vsel %vm1612_vm11, %v1619_v11, %v1621_v36 }
 0x252   : > { %v1607_v18 = vpop.permute.xlu0 %1606  ;;  %v1627_v53 = vsel %vm1626_vm9, %v1622_v29, 0.0  ;;  %v1628_v5 = vadd.f32 %v1625_v6, %v1614_v58 }
 0x253   : > { %v1608_v21 = vsel %vm1596_vm10, %v1605_v30, %v1607_v18 }
 0x254   : > { %v1613_v43 = vsel %vm1612_vm11, %v1608_v21, 0.0  ;;  %v1635_v32 = vpop.permute.xlu1 %1634 }
 0x255   : > { %v1615_v50 = vadd.f32 %v1613_v43, %v1597_v41 }
 0x256   : > { %v1633_v2 = vpop.permute.xlu0 %1632 }
 0x257   : > { %v1629_v27 = vadd.f32 %v1627_v53, %v1615_v50  ;;  %v1636_v12 = vsel %vm1626_vm9, %v1633_v2, %v1635_v32  ;;  %v1639_v24 = vsel %vm1626_vm9, 0.0, %v1633_v2 }
 0x258   : > { %v1640_v10 = vadd.f32 %v1639_v24, %v1628_v5 }
 0x259   : > { %v1641_v25 = vadd.f32 %v1636_v12, %v1629_v27 }
 0x25a   : > { %v1646_v61 = vmul.f32 %v1642_v8, %v1640_v10 }
 0x25b   : > { %v1647_v7 = vmul.f32 %v1644_v46, %v1641_v25 }
 0x25d   : > { %v1650_v39 = vcombine.low %v1646_v61, %v1647_v7 }
 0x25f   : > { %1655 = vst.msk [vmem:[%s217_s10] sm:$0xff] %vm1654_vm14, %v1650_v39 }
 0x260 PF: > { %s14_s15 = sadd.s32 1, %s1894_s15  }
 0x261   : > { %p11_p4 = scmp.ge.s32.totalorder %s14_s15, 10  }
 0x263   :  { %13 = sbr.rel (!%p11_p4) target bundleno = 1 (0x1), region = 69 }

// kernel: _lambda_.12
= control target key start
LH: loop header
LB: loop body
LE: loop exit
PB: predicated region body
PF: predicated region fallthrough
CT: control target
= control target key end

     0   :  { %s4823_s0 = inlined_call_operand.vmem [shape: f32[2,8,128], index: 0, kind: input, shape index: {}]   ;;  %s4824_s1 = inlined_call_operand.hbm [shape: f32[8,24], index: 1, kind: input, shape index: {}]   ;;  %s4825_s2 = inlined_call_operand.hbm [shape: f32[8,1], index: 2, kind: input, shape index: {}]   ;;  %s4826_s3 = inlined_call_operand.hbm [shape: f32[8,24], index: 3, kind: input, shape index: {}]   ;;  %s4827_s4 = inlined_call_operand.hbm [shape: f32[8,1], index: 4, kind: input, shape index: {}]   ;;  %s4828_s5 = inlined_call_operand.hbm [shape: f32[8,24], index: 5, kind: input, shape index: {}]   ;;  %s4829_s6 = inlined_call_operand.hbm [shape: f32[8,1], index: 6, kind: input, shape index: {}]   ;;  %s4830_s7 = inlined_call_operand.hbm [shape: f32[8,24], index: 7, kind: input, shape index: {}]   ;;  %s4831_s8 = inlined_call_operand.hbm [shape: f32[8,1], index: 8, kind: input, shape index: {}]   ;;  %s4832_s9 = inlined_call_operand.hbm [shape: f32[8,24], index: 9, kind: input, shape index: {}]   ;;  %s4833_s10 = inlined_call_operand.hbm [shape: f32[8,1], index: 10, kind: input, shape index: {}]   ;;  %s4834_s11 = inlined_call_operand.hbm [shape: f32[8,24], index: 11, kind: input, shape index: {}]   ;;  %s4835_s12 = inlined_call_operand.hbm [shape: f32[8,1], index: 12, kind: input, shape index: {}]   ;;  %s4836_s13 = inlined_call_operand.hbm [shape: f32[8,56], index: 13, kind: input, shape index: {}]   ;;  %s4837_s14 = inlined_call_operand.hbm [shape: f32[8,1], index: 14, kind: input, shape index: {}]   ;;  %s4838_s15 = inlined_call_operand.hbm [shape: f32[8,56], index: 15, kind: input, shape index: {}]   ;;  %s4839_s16 = inlined_call_operand.hbm [shape: f32[8,1], index: 16, kind: input, shape index: {}]   ;;  %s4840_s17 = inlined_call_operand.hbm [shape: f32[8,56], index: 17, kind: input, shape index: {}]   ;;  %s4841_s18 = inlined_call_operand.hbm [shape: f32[8,1], index: 18, kind: input, shape index: {}]   ;;  %s4842_s19 = inlined_call_operand.hbm [shape: f32[8,56], index: 19, kind: input, shape index: {}]   ;;  %s4843_s20 = inlined_call_operand.hbm [shape: f32[8,1], index: 20, kind: input, shape index: {}]   ;;  %s4844_s21 = inlined_call_operand.hbm [shape: f32[8,56], index: 21, kind: input, shape index: {}]   ;;  %s4845_s22 = inlined_call_operand.hbm [shape: f32[8,1], index: 22, kind: input, shape index: {}]   ;;  %s4846_s23 = inlined_call_operand.hbm [shape: f32[8,56], index: 23, kind: input, shape index: {}]   ;;  %s4847_s24 = inlined_call_operand.hbm [shape: f32[8,1], index: 24, kind: input, shape index: {}]   ;;  %s4848_s25 = inlined_call_operand.vmem [shape: f32[2,8,128], index: 25, kind: output, shape index: {}]  }
   0x1   :  { %4852 = sst [smem:[#allocation53_spill]] %s4823_s0 }
   0x2   :  { %4853 = sst [smem:[#allocation54_spill]] %s4824_s1 }
   0x3   :  { %4854 = sst [smem:[#allocation55_spill]] %s4825_s2 }
   0x4   :  { %4855 = sst [smem:[#allocation56_spill]] %s4826_s3 }
   0x5   :  { %4856 = sst [smem:[#allocation57_spill]] %s4827_s4 }
   0x6   :  { %4857 = sst [smem:[#allocation58_spill]] %s4828_s5 }
   0x7   :  { %4858 = sst [smem:[#allocation59_spill]] %s4829_s6 }
   0x8   :  { %4859 = sst [smem:[#allocation60_spill]] %s4830_s7 }
   0x9   :  { %4860 = sst [smem:[#allocation61_spill]] %s4831_s8 }
   0xa   :  { %4861 = sst [smem:[#allocation62_spill]] %s4832_s9 }
   0xb   :  { %30 = vsyncpa [#allocation3], 0 }
   0xc   :  { %31 = vsyncpa [#allocation5], 0 }
   0xd   :  { %32 = vsyncpa [#allocation8], 0 }
   0xe   :  { %33 = vsyncpa [#allocation11], 0 }
   0xf   :  { %34 = vsyncpa [#allocation14], 0 }
  0x10   :  { %35 = vsyncpa [#allocation17], 0 }
  0x11   :  { %36 = vsyncpa [#allocation20], 0 }
  0x12   :  { %37 = vsyncpa [#allocation23], 0 }
  0x13   :  { %38 = vsyncpa [#allocation26], 0 }
  0x14   :  { %39 = vsyncpa [#allocation29], 0 }
  0x15   :  { %40 = vsyncpa [#allocation32], 0 }
  0x16   :  { %41 = vsyncpa [#allocation35], 0 }
  0x17   :  { %42 = vsyncpa [#allocation38], 0  ;;  %s4206_s29 = smov 0  }
  0x18 LB: > { %4862 = sst [smem:[#allocation52_spill]] %s4028_s29  ;;  %s4030_s2 = smov [#allocation4]   ;;  %s4028_s29 = sphi %s4206_s29, %s48_s29  }
  0x19   : > { %s633_s6 = sshll.u32 %s4030_s2, 4  ;;  %s4212_s30 = sadd.s32 4294967295, %s4028_s29   ;;  %s634_s6 = int_to_ptr.vmem [resolvable:$true] %s633_s6 }
  0x1a   : > { %p2754_p0 = scmp.ge.s32.totalorder %s4028_s29, 1  ;;  %p609_p1 = scmp.lt.s32.totalorder %s4028_s29, 3 }
  0x1b   : > { %p4849_p2 = scmp.eq.s32.totalorder %s4212_s30, 0  ;;  %s4031_s3 = smov [#allocation7]  }
  0x1c   : > { %p4217_p3 = pnand %p2754_p0, %p609_p1  ;;  %s655_s26 = sshll.u32 %s4031_s3, 4  ;;  %s656_s26 = int_to_ptr.vmem [resolvable:$true] %s655_s26 }
  0x1d   : > { %s4032_s1 = smov [#allocation10]   ;;  %s4033_s4 = smov [#allocation13]  }
  0x1e   : > { %s4863_s7 = scalar_select %p4217_p3, 1, 0 }
  0x1f   : > { %p3169_p4 = pneg %p4217_p3  ;;  %s677_s8 = sshll.u32 %s4032_s1, 4  ;;  %s4229_s8 = int_to_ptr.vmem [resolvable:$true] %s677_s8 }
  0x20   : > { %s699_s28 = sshll.u32 %s4033_s4, 4  ;;  %s3357_s5 = scalar_lea.vmem %s634_s6, 128  ;;  %s4231_s28 = int_to_ptr.vmem [resolvable:$true] %s699_s28 }
  0x21   : > { %p4225_p5 = pnand %p4849_p2, %p3169_p4  ;;  %p3358_p7 = scmp.ne.s32.totalorder %s634_s6, %s3357_s5 }
  0x22   : > { %p3365_p10 = scmp.lt.s32.totalorder %s634_s6, %s634_s6  ;;  %p3366_p11 = scmp.lt.s32.totalorder %s3357_s5, %s3357_s5 }
  0x23   : > { %p4235_p6 = pneg %p4225_p5 }
  0x24   : > { %p3367_p12 = por %p3366_p11, %p3365_p10 }
  0x25   : > { %p3360_p8 = pnand %p3358_p7, %p4235_p6 }
  0x27   : > { %p3361_p9 = pneg %p3360_p8 }
  0x29   : > { %p3368_p13 = pnand %p3367_p12, %p3361_p9 }
  0x2b   : > { %3371 = shalt.err (!%p3368_p13)
}
  0x2c   : > { %s4866_s3 = sld [smem:[#allocation55_spill]]  ;;  %s3383_s1 = scalar_lea.vmem %s656_s26, 128 }
  0x2d   : > { %p3384_p0 = scmp.ne.s32.totalorder %s656_s26, %s3383_s1  ;;  %p3391_p2 = scmp.lt.s32.totalorder %s656_s26, %s656_s26 }
  0x2e   : > { %p3392_p7 = scmp.lt.s32.totalorder %s3383_s1, %s3383_s1 }
  0x2f   : > { %p3386_p1 = pnand %p3384_p0, %p4235_p6 }
  0x30   : > { %p3393_p8 = por %p3392_p7, %p3391_p2 }
  0x31   : > { %p3387_p4 = pneg %p3386_p1 }
  0x32   : > { %3175 = dma.hbm_to_vmem [thread:$0]  (!%p4225_p5), %s4866_s3, 128, %s634_s6, [#allocation5]  }
  0x33   : > { %p3394_p3 = pnand %p3393_p8, %p3387_p4 }
  0x35   : > { %3397 = shalt.err (!%p3394_p3)
}
  0x36   : > { %s4867_s29 = sld [smem:[#allocation57_spill]]  ;;  %s3409_s6 = scalar_lea.vmem %s4229_s8, 128 }
  0x37   : > { %p3410_p9 = scmp.ne.s32.totalorder %s4229_s8, %s3409_s6  ;;  %p3417_p12 = scmp.lt.s32.totalorder %s4229_s8, %s4229_s8 }
  0x38   : > { %p3418_p2 = scmp.lt.s32.totalorder %s3409_s6, %s3409_s6 }
  0x39   : > { %p3412_p10 = pnand %p3410_p9, %p4235_p6 }
  0x3a   : > { %p3419_p13 = por %p3418_p2, %p3417_p12 }
  0x3b   : > { %p3413_p11 = pneg %p3412_p10 }
  0x3c   : > { %3181 = dma.hbm_to_vmem [thread:$0]  (!%p4225_p5), %s4867_s29, 128, %s656_s26, [#allocation8]  }
  0x3d   : > { %p3420_p3 = pnand %p3419_p13, %p3413_p11 }
  0x3f   : > { %3423 = shalt.err (!%p3420_p3)
}
  0x40   : > { %s4868_s3 = sld [smem:[#allocation59_spill]]  ;;  %s3435_s29 = scalar_lea.vmem %s4231_s28, 128 }
  0x41   : > { %p3436_p0 = scmp.ne.s32.totalorder %s4231_s28, %s3435_s29  ;;  %p3443_p7 = scmp.lt.s32.totalorder %s4231_s28, %s4231_s28 }
  0x42   : > { %p3444_p8 = scmp.lt.s32.totalorder %s3435_s29, %s3435_s29 }
  0x43   : > { %p3438_p1 = pnand %p3436_p0, %p4235_p6 }
  0x44   : > { %p3445_p9 = por %p3444_p8, %p3443_p7 }
  0x45   : > { %p3439_p4 = pneg %p3438_p1 }
  0x46   : > { %3187 = dma.hbm_to_vmem [thread:$0]  (!%p4225_p5), %s4868_s3, 128, %s4229_s8, [#allocation11]  }
  0x47   : > { %p3446_p10 = pnand %p3445_p9, %p3439_p4 }
  0x49   : > { %3449 = shalt.err (!%p3446_p10)
}
  0x4a   : > { %s4869_s4 = sld [smem:[#allocation61_spill]]  ;;  %s4034_s8 = smov [#allocation16]  }
  0x4b   : > { %s721_s5 = sshll.u32 %s4034_s8, 4  ;;  %s4035_s6 = smov [#allocation19]   ;;  %s722_s5 = int_to_ptr.vmem [resolvable:$true] %s721_s5 }
  0x4c   : > { %s743_s0 = sshll.u32 %s4035_s6, 4  ;;  %s3461_s2 = scalar_lea.vmem %s722_s5, 128  ;;  %s744_s0 = int_to_ptr.vmem [resolvable:$true] %s743_s0 }
  0x4d   : > { %p3462_p11 = scmp.ne.s32.totalorder %s722_s5, %s3461_s2  ;;  %p3469_p13 = scmp.lt.s32.totalorder %s722_s5, %s722_s5 }
  0x4e   : > { %p3470_p3 = scmp.lt.s32.totalorder %s3461_s2, %s3461_s2 }
  0x4f   : > { %p3464_p12 = pnand %p3462_p11, %p4235_p6 }
  0x50   : > { %3193 = dma.hbm_to_vmem [thread:$0]  (!%p4225_p5), %s4869_s4, 128, %s4231_s28, [#allocation14]  }
  0x51   : > { %p3465_p2 = pneg %p3464_p12  ;;  %p3471_p0 = por %p3470_p3, %p3469_p13 }
  0x53   : > { %p3472_p1 = pnand %p3471_p0, %p3465_p2 }
  0x55   : > { %3475 = shalt.err (!%p3472_p1)
}
  0x56   : > { %3199 = dma.hbm_to_vmem [thread:$0]  (!%p4225_p5), %s4833_s10, 128, %s722_s5, [#allocation17]  }
  0x57   : > { %s3487_s28 = scalar_lea.vmem %s744_s0, 128  ;;  %p3495_p9 = scmp.lt.s32.totalorder %s744_s0, %s744_s0 }
  0x58   : > { %p3488_p4 = scmp.ne.s32.totalorder %s744_s0, %s3487_s28  ;;  %p3496_p10 = scmp.lt.s32.totalorder %s3487_s28, %s3487_s28 }
  0x5a   : > { %p3490_p7 = pnand %p3488_p4, %p4235_p6  ;;  %p3497_p11 = por %p3496_p10, %p3495_p9 }
  0x5c   : > { %p3491_p8 = pneg %p3490_p7 }
  0x5e   : > { %p3498_p12 = pnand %p3497_p11, %p3491_p8 }
  0x60   : > { %3501 = shalt.err (!%p3498_p12)
}
  0x61   : > { %3205 = dma.hbm_to_vmem [thread:$0]  (!%p4225_p5), %s4835_s12, 128, %s744_s0, [#allocation20]  }
  0x62   : > { %s4036_s4 = smov [#allocation22]   ;;  %s4037_s5 = smov [#allocation25]  }
  0x63   : > { %s765_s8 = sshll.u32 %s4036_s4, 4  ;;  %s787_s6 = sshll.u32 %s4037_s5, 4  ;;  %s766_s8 = int_to_ptr.vmem [resolvable:$true] %s765_s8  ;;  %s788_s6 = int_to_ptr.vmem [resolvable:$true] %s787_s6 }
  0x64   : > { %s3513_s2 = scalar_lea.vmem %s766_s8, 128  ;;  %p3521_p0 = scmp.lt.s32.totalorder %s766_s8, %s766_s8 }
  0x65   : > { %p3514_p2 = scmp.ne.s32.totalorder %s766_s8, %s3513_s2  ;;  %p3522_p1 = scmp.lt.s32.totalorder %s3513_s2, %s3513_s2 }
  0x67   : > { %p3516_p13 = pnand %p3514_p2, %p4235_p6  ;;  %p3523_p4 = por %p3522_p1, %p3521_p0 }
  0x69   : > { %p3517_p3 = pneg %p3516_p13 }
  0x6b   : > { %p3524_p7 = pnand %p3523_p4, %p3517_p3 }
  0x6d   : > { %3527 = shalt.err (!%p3524_p7)
}
  0x6e   : > { %3211 = dma.hbm_to_vmem [thread:$0]  (!%p4225_p5), %s4837_s14, 128, %s766_s8, [#allocation23]  }
  0x6f   : > { %s3539_s0 = scalar_lea.vmem %s788_s6, 128  ;;  %p3547_p11 = scmp.lt.s32.totalorder %s788_s6, %s788_s6 }
  0x70   : > { %p3540_p8 = scmp.ne.s32.totalorder %s788_s6, %s3539_s0  ;;  %p3548_p12 = scmp.lt.s32.totalorder %s3539_s0, %s3539_s0 }
  0x72   : > { %p3542_p9 = pnand %p3540_p8, %p4235_p6  ;;  %p3549_p2 = por %p3548_p12, %p3547_p11 }
  0x74   : > { %p3543_p10 = pneg %p3542_p9 }
  0x76   : > { %p3550_p13 = pnand %p3549_p2, %p3543_p10 }
  0x78   : > { %3553 = shalt.err (!%p3550_p13)
}
  0x79   : > { %3217 = dma.hbm_to_vmem [thread:$0]  (!%p4225_p5), %s4839_s16, 128, %s788_s6, [#allocation26]  }
  0x7a   : > { %s4038_s1 = smov [#allocation28]   ;;  %s4039_s8 = smov [#allocation31]  }
  0x7b   : > { %s809_s4 = sshll.u32 %s4038_s1, 4  ;;  %s831_s5 = sshll.u32 %s4039_s8, 4  ;;  %s810_s4 = int_to_ptr.vmem [resolvable:$true] %s809_s4  ;;  %s832_s5 = int_to_ptr.vmem [resolvable:$true] %s831_s5 }
  0x7c   : > { %s3565_s2 = scalar_lea.vmem %s810_s4, 128  ;;  %p3573_p4 = scmp.lt.s32.totalorder %s810_s4, %s810_s4 }
  0x7d   : > { %p3566_p3 = scmp.ne.s32.totalorder %s810_s4, %s3565_s2  ;;  %p3574_p7 = scmp.lt.s32.totalorder %s3565_s2, %s3565_s2 }
  0x7f   : > { %p3568_p0 = pnand %p3566_p3, %p4235_p6  ;;  %p3575_p8 = por %p3574_p7, %p3573_p4 }
  0x81   : > { %p3569_p1 = pneg %p3568_p0 }
  0x83   : > { %p3576_p9 = pnand %p3575_p8, %p3569_p1 }
  0x85   : > { %3579 = shalt.err (!%p3576_p9)
}
  0x86   : > { %3223 = dma.hbm_to_vmem [thread:$0]  (!%p4225_p5), %s4841_s18, 128, %s810_s4, [#allocation29]  }
  0x87   : > { %s3591_s6 = scalar_lea.vmem %s832_s5, 128  ;;  %p3599_p2 = scmp.lt.s32.totalorder %s832_s5, %s832_s5 }
  0x88   : > { %p3592_p10 = scmp.ne.s32.totalorder %s832_s5, %s3591_s6  ;;  %p3600_p13 = scmp.lt.s32.totalorder %s3591_s6, %s3591_s6 }
  0x8a   : > { %p3594_p11 = pnand %p3592_p10, %p4235_p6  ;;  %p3601_p3 = por %p3600_p13, %p3599_p2 }
  0x8c   : > { %p3595_p12 = pneg %p3594_p11 }
  0x8e   : > { %p3602_p0 = pnand %p3601_p3, %p3595_p12 }
  0x90   : > { %3605 = shalt.err (!%p3602_p0)
}
  0x91   : > { %3229 = dma.hbm_to_vmem [thread:$0]  (!%p4225_p5), %s4843_s20, 128, %s832_s5, [#allocation32]  }
  0x92   : > { %s4040_s26 = smov [#allocation34]   ;;  %s4041_s4 = smov [#allocation2]  }
  0x93   : > { %s853_s1 = sshll.u32 %s4040_s26, 4  ;;  %s622_s8 = sshll.u32 %s4041_s4, 4  ;;  %s854_s1 = int_to_ptr.vmem [resolvable:$true] %s853_s1  ;;  %s623_s8 = int_to_ptr.vmem [resolvable:$true] %s622_s8 }
  0x94   : > { %s3617_s2 = scalar_lea.vmem %s854_s1, 128  ;;  %p3625_p8 = scmp.lt.s32.totalorder %s854_s1, %s854_s1 }
  0x95   : > { %p3618_p1 = scmp.ne.s32.totalorder %s854_s1, %s3617_s2  ;;  %p3626_p9 = scmp.lt.s32.totalorder %s3617_s2, %s3617_s2 }
  0x97   : > { %p3620_p4 = pnand %p3618_p1, %p4235_p6  ;;  %p3627_p10 = por %p3626_p9, %p3625_p8 }
  0x99   : > { %p3621_p7 = pneg %p3620_p4 }
  0x9b   : > { %p3628_p11 = pnand %p3627_p10, %p3621_p7 }
  0x9d   : > { %3631 = shalt.err (!%p3628_p11)
}
  0x9e   : > { %3235 = dma.hbm_to_vmem [thread:$0]  (!%p4225_p5), %s4845_s22, 128, %s854_s1, [#allocation35]  }
  0x9f   : > { %s3643_s5 = scalar_lea.vmem %s623_s8, 128  ;;  %p3651_p3 = scmp.lt.s32.totalorder %s623_s8, %s623_s8 }
  0xa0   : > { %p3644_p12 = scmp.ne.s32.totalorder %s623_s8, %s3643_s5  ;;  %p3652_p0 = scmp.lt.s32.totalorder %s3643_s5, %s3643_s5 }
  0xa2   : > { %p3646_p2 = pnand %p3644_p12, %p4235_p6  ;;  %p3653_p1 = por %p3652_p0, %p3651_p3 }
  0xa4   : > { %p3647_p13 = pneg %p3646_p2 }
  0xa6   : > { %p3654_p4 = pnand %p3653_p1, %p3647_p13 }
  0xa8   : > { %3657 = shalt.err (!%p3654_p4)
}
  0xa9   : > { %s4870_s28 = sld [smem:[#allocation54_spill]]  ;;  %s4042_s26 = smov [#allocation6]  }
  0xaa   : > { %s644_s1 = sshll.u32 %s4042_s26, 4  ;;  %s4043_s4 = smov [#allocation9]   ;;  %s645_s1 = int_to_ptr.vmem [resolvable:$true] %s644_s1 }
  0xab   : > { %s666_s2 = sshll.u32 %s4043_s4, 4  ;;  %s3669_s3 = scalar_lea.vmem %s645_s1, 128  ;;  %s667_s2 = int_to_ptr.vmem [resolvable:$true] %s666_s2 }
  0xac   : > { %p3670_p7 = scmp.ne.s32.totalorder %s645_s1, %s3669_s3  ;;  %p3677_p10 = scmp.lt.s32.totalorder %s645_s1, %s645_s1 }
  0xad   : > { %p3678_p11 = scmp.lt.s32.totalorder %s3669_s3, %s3669_s3 }
  0xae   : > { %p3672_p8 = pnand %p3670_p7, %p4235_p6 }
  0xaf   : > { %3172 = dma.hbm_to_vmem [thread:$0]  (!%p4225_p5), %s4870_s28, 128, %s623_s8, [#allocation3]  }
  0xb0   : > { %p3673_p9 = pneg %p3672_p8  ;;  %p3679_p12 = por %p3678_p11, %p3677_p10 }
  0xb2   : > { %p3680_p2 = pnand %p3679_p12, %p3673_p9 }
  0xb4   : > { %3683 = shalt.err (!%p3680_p2)
}
  0xb5   : > { %s4871_s8 = sld [smem:[#allocation56_spill]]  ;;  %s3695_s6 = scalar_lea.vmem %s667_s2, 128 }
  0xb6   : > { %p3696_p13 = scmp.ne.s32.totalorder %s667_s2, %s3695_s6  ;;  %p3703_p1 = scmp.lt.s32.totalorder %s667_s2, %s667_s2 }
  0xb7   : > { %p3704_p4 = scmp.lt.s32.totalorder %s3695_s6, %s3695_s6 }
  0xb8   : > { %p3698_p3 = pnand %p3696_p13, %p4235_p6 }
  0xb9   : > { %p3705_p7 = por %p3704_p4, %p3703_p1 }
  0xba   : > { %p3699_p0 = pneg %p3698_p3 }
  0xbb   : > { %3178 = dma.hbm_to_vmem [thread:$0]  (!%p4225_p5), %s4871_s8, 128, %s645_s1, [#allocation5]  }
  0xbc   : > { %p3706_p8 = pnand %p3705_p7, %p3699_p0 }
  0xbe   : > { %3709 = shalt.err (!%p3706_p8)
}
  0xbf   : > { %s4872_s26 = sld [smem:[#allocation58_spill]]  ;;  %s4044_s4 = smov [#allocation12]  }
  0xc0   : > { %s688_s1 = sshll.u32 %s4044_s4, 4  ;;  %s4045_s3 = smov [#allocation15]   ;;  %s689_s1 = int_to_ptr.vmem [resolvable:$true] %s688_s1 }
  0xc1   : > { %s710_s29 = sshll.u32 %s4045_s3, 4  ;;  %s3721_s5 = scalar_lea.vmem %s689_s1, 128  ;;  %s711_s29 = int_to_ptr.vmem [resolvable:$true] %s710_s29 }
  0xc2   : > { %p3722_p9 = scmp.ne.s32.totalorder %s689_s1, %s3721_s5  ;;  %p3729_p12 = scmp.lt.s32.totalorder %s689_s1, %s689_s1 }
  0xc3   : > { %p3730_p2 = scmp.lt.s32.totalorder %s3721_s5, %s3721_s5 }
  0xc4   : > { %p3724_p10 = pnand %p3722_p9, %p4235_p6 }
  0xc5   : > { %3184 = dma.hbm_to_vmem [thread:$0]  (!%p4225_p5), %s4872_s26, 128, %s667_s2, [#allocation8]  }
  0xc6   : > { %p3725_p11 = pneg %p3724_p10  ;;  %p3731_p13 = por %p3730_p2, %p3729_p12 }
  0xc8   : > { %p3732_p3 = pnand %p3731_p13, %p3725_p11 }
  0xca   : > { %3735 = shalt.err (!%p3732_p3)
}
  0xcb   : > { %s4873_s2 = sld [smem:[#allocation60_spill]]  ;;  %s3747_s0 = scalar_lea.vmem %s711_s29, 128 }
  0xcc   : > { %p3748_p0 = scmp.ne.s32.totalorder %s711_s29, %s3747_s0  ;;  %p3755_p7 = scmp.lt.s32.totalorder %s711_s29, %s711_s29 }
  0xcd   : > { %p3756_p8 = scmp.lt.s32.totalorder %s3747_s0, %s3747_s0 }
  0xce   : > { %p3750_p1 = pnand %p3748_p0, %p4235_p6 }
  0xcf   : > { %p3757_p9 = por %p3756_p8, %p3755_p7 }
  0xd0   : > { %p3751_p4 = pneg %p3750_p1 }
  0xd1   : > { %3190 = dma.hbm_to_vmem [thread:$0]  (!%p4225_p5), %s4873_s2, 128, %s689_s1, [#allocation11]  }
  0xd2   : > { %p3758_p10 = pnand %p3757_p9, %p3751_p4 }
  0xd4   : > { %3761 = shalt.err (!%p3758_p10)
}
  0xd5   : > { %s4874_s4 = sld [smem:[#allocation62_spill]]  ;;  %s4046_s3 = smov [#allocation18]  }
  0xd6   : > { %s732_s1 = sshll.u32 %s4046_s3, 4  ;;  %s4047_s5 = smov [#allocation21]   ;;  %s733_s1 = int_to_ptr.vmem [resolvable:$true] %s732_s1 }
  0xd7   : > { %s754_s8 = sshll.u32 %s4047_s5, 4  ;;  %s3773_s6 = scalar_lea.vmem %s733_s1, 128  ;;  %s755_s8 = int_to_ptr.vmem [resolvable:$true] %s754_s8 }
  0xd8   : > { %p3774_p11 = scmp.ne.s32.totalorder %s733_s1, %s3773_s6  ;;  %p3781_p13 = scmp.lt.s32.totalorder %s733_s1, %s733_s1 }
  0xd9   : > { %p3782_p3 = scmp.lt.s32.totalorder %s3773_s6, %s3773_s6 }
  0xda   : > { %p3776_p12 = pnand %p3774_p11, %p4235_p6 }
  0xdb   : > { %3196 = dma.hbm_to_vmem [thread:$0]  (!%p4225_p5), %s4874_s4, 128, %s711_s29, [#allocation14]  }
  0xdc   : > { %p3777_p2 = pneg %p3776_p12  ;;  %p3783_p0 = por %p3782_p3, %p3781_p13 }
  0xde   : > { %p3784_p1 = pnand %p3783_p0, %p3777_p2 }
  0xe0   : > { %3787 = shalt.err (!%p3784_p1)
}
  0xe1   : > { %3202 = dma.hbm_to_vmem [thread:$0]  (!%p4225_p5), %s4834_s11, 128, %s733_s1, [#allocation17]  }
  0xe2   : > { %s3799_s29 = scalar_lea.vmem %s755_s8, 128  ;;  %p3807_p9 = scmp.lt.s32.totalorder %s755_s8, %s755_s8 }
  0xe3   : > { %p3800_p4 = scmp.ne.s32.totalorder %s755_s8, %s3799_s29  ;;  %p3808_p10 = scmp.lt.s32.totalorder %s3799_s29, %s3799_s29 }
  0xe5   : > { %p3802_p7 = pnand %p3800_p4, %p4235_p6  ;;  %p3809_p11 = por %p3808_p10, %p3807_p9 }
  0xe7   : > { %p3803_p8 = pneg %p3802_p7 }
  0xe9   : > { %p3810_p12 = pnand %p3809_p11, %p3803_p8 }
  0xeb   : > { %3813 = shalt.err (!%p3810_p12)
}
  0xec   : > { %3208 = dma.hbm_to_vmem [thread:$0]  (!%p4225_p5), %s4836_s13, 128, %s755_s8, [#allocation20]  }
  0xed   : > { %s4048_s4 = smov [#allocation24]   ;;  %s4049_s1 = smov [#allocation27]  }
  0xee   : > { %s776_s3 = sshll.u32 %s4048_s4, 4  ;;  %s798_s5 = sshll.u32 %s4049_s1, 4  ;;  %s777_s3 = int_to_ptr.vmem [resolvable:$true] %s776_s3  ;;  %s799_s5 = int_to_ptr.vmem [resolvable:$true] %s798_s5 }
  0xef   : > { %s3825_s6 = scalar_lea.vmem %s777_s3, 128  ;;  %p3833_p0 = scmp.lt.s32.totalorder %s777_s3, %s777_s3 }
  0xf0   : > { %p3826_p2 = scmp.ne.s32.totalorder %s777_s3, %s3825_s6  ;;  %p3834_p1 = scmp.lt.s32.totalorder %s3825_s6, %s3825_s6 }
  0xf2   : > { %p3828_p13 = pnand %p3826_p2, %p4235_p6  ;;  %p3835_p4 = por %p3834_p1, %p3833_p0 }
  0xf4   : > { %p3829_p3 = pneg %p3828_p13 }
  0xf6   : > { %p3836_p7 = pnand %p3835_p4, %p3829_p3 }
  0xf8   : > { %3839 = shalt.err (!%p3836_p7)
}
  0xf9   : > { %3214 = dma.hbm_to_vmem [thread:$0]  (!%p4225_p5), %s4838_s15, 128, %s777_s3, [#allocation23]  }
  0xfa   : > { %s3851_s8 = scalar_lea.vmem %s799_s5, 128  ;;  %p3859_p11 = scmp.lt.s32.totalorder %s799_s5, %s799_s5 }
  0xfb   : > { %p3852_p8 = scmp.ne.s32.totalorder %s799_s5, %s3851_s8  ;;  %p3860_p12 = scmp.lt.s32.totalorder %s3851_s8, %s3851_s8 }
  0xfd   : > { %p3854_p9 = pnand %p3852_p8, %p4235_p6  ;;  %p3861_p2 = por %p3860_p12, %p3859_p11 }
  0xff   : > { %p3855_p10 = pneg %p3854_p9 }
 0x101   : > { %p3862_p13 = pnand %p3861_p2, %p3855_p10 }
 0x103   : > { %3865 = shalt.err (!%p3862_p13)
}
 0x104   : > { %3220 = dma.hbm_to_vmem [thread:$0]  (!%p4225_p5), %s4840_s17, 128, %s799_s5, [#allocation26]  }
 0x105   : > { %s4050_s26 = smov [#allocation30]   ;;  %s4051_s3 = smov [#allocation33]  }
 0x106   : > { %s820_s4 = sshll.u32 %s4050_s26, 4  ;;  %s842_s1 = sshll.u32 %s4051_s3, 4  ;;  %s821_s4 = int_to_ptr.vmem [resolvable:$true] %s820_s4  ;;  %s843_s1 = int_to_ptr.vmem [resolvable:$true] %s842_s1 }
 0x107   : > { %s3877_s6 = scalar_lea.vmem %s821_s4, 128  ;;  %p3885_p4 = scmp.lt.s32.totalorder %s821_s4, %s821_s4 }
 0x108   : > { %p3878_p3 = scmp.ne.s32.totalorder %s821_s4, %s3877_s6  ;;  %p3886_p7 = scmp.lt.s32.totalorder %s3877_s6, %s3877_s6 }
 0x10a   : > { %p3880_p0 = pnand %p3878_p3, %p4235_p6  ;;  %p3887_p8 = por %p3886_p7, %p3885_p4 }
 0x10c   : > { %p3881_p1 = pneg %p3880_p0 }
 0x10e   : > { %p3888_p9 = pnand %p3887_p8, %p3881_p1 }
 0x110   : > { %3891 = shalt.err (!%p3888_p9)
}
 0x111   : > { %3226 = dma.hbm_to_vmem [thread:$0]  (!%p4225_p5), %s4842_s19, 128, %s821_s4, [#allocation29]  }
 0x112   : > { %s3903_s5 = scalar_lea.vmem %s843_s1, 128  ;;  %p3911_p2 = scmp.lt.s32.totalorder %s843_s1, %s843_s1 }
 0x113   : > { %p3904_p10 = scmp.ne.s32.totalorder %s843_s1, %s3903_s5  ;;  %p3912_p13 = scmp.lt.s32.totalorder %s3903_s5, %s3903_s5 }
 0x115   : > { %p3906_p11 = pnand %p3904_p10, %p4235_p6  ;;  %p3913_p3 = por %p3912_p13, %p3911_p2 }
 0x117   : > { %p3907_p12 = pneg %p3906_p11 }
 0x119   : > { %p3914_p0 = pnand %p3913_p3, %p3907_p12 }
 0x11b   : > { %3917 = shalt.err (!%p3914_p0)
}
 0x11c   : > { %3232 = dma.hbm_to_vmem [thread:$0]  (!%p4225_p5), %s4844_s21, 128, %s843_s1, [#allocation32]  }
 0x11d   : > { %s4052_s28 = smov [#allocation36]   ;;  %s4053_s4 = smov [#allocation37]  }
 0x11e   : > { %s864_s26 = sshll.u32 %s4052_s28, 4  ;;  %s875_s3 = sshll.u32 %s4053_s4, 4  ;;  %s865_s26 = int_to_ptr.vmem [resolvable:$true] %s864_s26  ;;  %s876_s3 = int_to_ptr.vmem [resolvable:$true] %s875_s3 }
 0x11f   : > { %s3929_s6 = scalar_lea.vmem %s865_s26, 128  ;;  %p3937_p8 = scmp.lt.s32.totalorder %s865_s26, %s865_s26 }
 0x120   : > { %p3930_p1 = scmp.ne.s32.totalorder %s865_s26, %s3929_s6  ;;  %p3938_p9 = scmp.lt.s32.totalorder %s3929_s6, %s3929_s6 }
 0x122   : > { %p3932_p4 = pnand %p3930_p1, %p4235_p6  ;;  %p3939_p10 = por %p3938_p9, %p3937_p8 }
 0x124   : > { %p3933_p7 = pneg %p3932_p4 }
 0x126   : > { %p3940_p11 = pnand %p3939_p10, %p3933_p7 }
 0x128   : > { %3943 = shalt.err (!%p3940_p11)
}
 0x129   : > { %3238 = dma.hbm_to_vmem [thread:$0]  (!%p4225_p5), %s4846_s23, 128, %s865_s26, [#allocation35]  }
 0x12a   : > { %s3955_s1 = scalar_lea.vmem %s876_s3, 128  ;;  %p3963_p3 = scmp.lt.s32.totalorder %s876_s3, %s876_s3 }
 0x12b   : > { %p3956_p12 = scmp.ne.s32.totalorder %s876_s3, %s3955_s1  ;;  %p3964_p0 = scmp.lt.s32.totalorder %s3955_s1, %s3955_s1 }
 0x12d   : > { %p3958_p2 = pnand %p3956_p12, %p4235_p6  ;;  %p3965_p1 = por %p3964_p0, %p3963_p3 }
 0x12f   : > { %p3959_p13 = pneg %p3958_p2 }
 0x131   : > { %p3966_p4 = pnand %p3965_p1, %p3959_p13 }
 0x133   : > { %3969 = shalt.err (!%p3966_p4)
}
 0x134   : > { %3241 = dma.hbm_to_vmem [thread:$0]  (!%p4225_p5), %s4847_s24, 128, %s876_s3, [#allocation38]  }
 0x135   : > { %p4875_p7 = scmp.ne.s32.totalorder %s4863_s7, 0 }
 0x136   : > { %p4876_p8 = scmp.eq.s32.totalorder (!%p4875_p7), %s4212_s30, 0 }
 0x137   : > { %895 = sbr.rel (%p4875_p7) target bundleno = 4843 (0x12eb), region = 120 }
 0x13c   : > { %3975 = dma.done.wait (%p4876_p8), [#allocation3], 128   ;;  %p4877_p6 = pmov %p4876_p8 }
 0x13e   : > { %3977 = vsyncadd (%p4877_p6), [#allocation3], 4294967168  ;;  %p4878_p9 = pmov %p4877_p6 }
 0x13f   : > { %p4879_p10 = pmov %p4877_p6 }
 0x140   : > { %3979 = dma.done.wait (%p4878_p9), [#allocation5], 256  }
 0x141   : > { %3981 = vsyncadd (%p4879_p10), [#allocation5], 4294967040  ;;  %p4880_p11 = pmov %p4877_p6 }
 0x142   : > { %p4881_p5 = pmov %p4877_p6 }
 0x143   : > { %3983 = dma.done.wait (%p4880_p11), [#allocation8], 256  }
 0x144   : > { %3985 = vsyncadd (%p4881_p5), [#allocation8], 4294967040  ;;  %p4882_p12 = pmov %p4881_p5 }
 0x145   : > { %p4883_p2 = pmov %p4881_p5 }
 0x146   : > { %3987 = dma.done.wait (%p4882_p12), [#allocation11], 256  }
 0x147   : > { %3989 = vsyncadd (%p4883_p2), [#allocation11], 4294967040  ;;  %p4884_p13 = pmov %p4883_p2 }
 0x148   : > { %p4885_p3 = pmov %p4883_p2 }
 0x149   : > { %3991 = dma.done.wait (%p4884_p13), [#allocation14], 256  }
 0x14a   : > { %3993 = vsyncadd (%p4885_p3), [#allocation14], 4294967040  ;;  %p4886_p0 = pmov %p4883_p2 }
 0x14c   : > { %3995 = dma.done.wait (%p4886_p0), [#allocation17], 256   ;;  %p4887_p1 = pmov %p4886_p0 }
 0x14d   : > { %p4888_p4 = pmov %p4886_p0 }
 0x14e   : > { %3997 = vsyncadd (%p4887_p1), [#allocation17], 4294967040 }
 0x14f   : > { %3999 = dma.done.wait (%p4888_p4), [#allocation20], 256   ;;  %p4889_p7 = pmov %p4886_p0 }
 0x150   : > { %p4890_p8 = pmov %p4886_p0 }
 0x151   : > { %4001 = vsyncadd (%p4889_p7), [#allocation20], 4294967040 }
 0x152   : > { %4003 = dma.done.wait (%p4890_p8), [#allocation23], 256   ;;  %p4891_p6 = pmov %p4886_p0 }
 0x153   : > { %p4892_p9 = pmov %p4886_p0 }
 0x154   : > { %4005 = vsyncadd (%p4891_p6), [#allocation23], 4294967040 }
 0x155   : > { %4007 = dma.done.wait (%p4892_p9), [#allocation26], 256   ;;  %p4893_p10 = pmov %p4886_p0 }
 0x156   : > { %p4894_p11 = pmov %p4886_p0 }
 0x157   : > { %4009 = vsyncadd (%p4893_p10), [#allocation26], 4294967040 }
 0x158   : > { %4011 = dma.done.wait (%p4894_p11), [#allocation29], 256   ;;  %p4895_p5 = pmov %p4886_p0 }
 0x159   : > { %p4896_p12 = pmov %p4886_p0 }
 0x15a   : > { %4013 = vsyncadd (%p4895_p5), [#allocation29], 4294967040 }
 0x15b   : > { %4015 = dma.done.wait (%p4896_p12), [#allocation32], 256   ;;  %p4897_p2 = pmov %p4886_p0 }
 0x15c   : > { %p4898_p13 = pmov %p4886_p0 }
 0x15d   : > { %4017 = vsyncadd (%p4897_p2), [#allocation32], 4294967040 }
 0x15e   : > { %4019 = dma.done.wait (%p4898_p13), [#allocation35], 256   ;;  %p4899_p3 = pmov %p4886_p0 }
 0x160   : > { %4021 = vsyncadd (%p4899_p3), [#allocation35], 4294967040 }
 0x161   : > { %4023 = dma.done.wait (%p4886_p0), [#allocation38], 128   ;;  %p4900_p1 = pmov %p4886_p0 }
 0x162   : > { %p1053_p4 = scmp.lt.s32.totalorder %s4212_s30, 1  ;;  %s4901_s29 = sld [smem:[#allocation53_spill]]  ;;  %v4055_v3 = vmov 0.0   ;;  %vm4056_vm1 = vmmov 0   ;;  %vm1071_vm2 = vcmask 7168   ;;  %v4057_v4 = vmov 0  }
 0x163   : > { %4025 = vsyncadd (%p4900_p1), [#allocation38], 4294967168  ;;  %s4054_s26 = smov 1   ;;  %2917 = vmatprep.subr.mxu0 %v4055_v3  ;;  %2926 = vmatprep.subr.mxu1 %v4055_v3  ;;  %s4058_s4 = smov 126   ;;  %v1066_v8 = vld [vmem:[#allocation4] sm:$0xff]  ;;  %vm1087_vm3 = vcmask 1031168  }
 0x164   : > { %s4908_s30 = smov (!%p1053_p4, %s4212_s30), 1  ;;  %2923 = vmatprep.mubr.msk.f32.mxu0 %vm4056_vm1, %v4055_v3  ;;  %2932 = vmatprep.mubr.msk.f32.mxu1 %vm4056_vm1, %v4055_v3  ;;  %s4059_s3 = smov 127   ;;  %vm1080_vm4 = vcmask 1039360   ;;  %vm4506_vm5 = vmneg %vm1071_vm2  ;;  %v1065_v16 = vld [vmem:[#allocation2] sm:$0xff]  ;;  %vm1095_vm6 = vcmask 195584   ;;  %v1173_v26 = vld [vmem:[#allocation7] sm:$0xff] }
 0x165   : > { %s2805_s7 = sshll.u32 %s4908_s30, 3  ;;  %3344 = vset.pattern.permute.xlu1 %v4057_v4  ;;  %3345 = vset.pattern.permute.xlu0 %v4057_v4  ;;  %v1172_v33 = vld [vmem:[#allocation6] sm:$0xff]  ;;  %s4060_s6 = smov 3   ;;  %vm1282_vm9 = vcmask 23552   ;;  %v1277_v44 = vld [vmem:[#allocation10] sm:$0xff]  ;;  %vm1298_vm10 = vcmask 998400  }
 0x166   : > { %s4061_s2 = smov 122   ;;  %s4062_s0 = smov 125   ;;  %vm1291_vm11 = vcmask 1022976   ;;  %vm4551_vm12 = vmneg %vm1282_vm9  ;;  %v1276_v52 = vld [vmem:[#allocation9] sm:$0xff]  ;;  %v1383_v62 = vld [vmem:[#allocation13] sm:$0xff]  ;;  %vm1492_vm15 = vcmask 39936  }
 0x167   : > { %s4063_s1 = smov 123   ;;  %s4064_s5 = smov 5  }
 0x168   : > { %s1056_s28 = scalar_lea.vmem %s4901_s29, %s2805_s7  ;;  %s4065_s8 = smov 118  }
 0x169   : > { %v4481_v0 = vld [vmem:[%s1056_s28] sm:$0xff]  ;;  %s4066_s27 = smov 124   ;;  %s4067_s9 = smov 9  }
 0x16a   : > { %vm1062_vm0 = vcmp.ge.f32.partialorder %v4481_v0, 0.0  ;;  %v1063_v1 = vmul.f32 0.1, %v4481_v0  ;;  %s4068_s29 = smov 110   ;;  %s4069_s28 = smov 113  }
 0x16c   : > { %v4486_v2 = vsel %vm1062_vm0, %v4481_v0, %v1063_v1  ;;  %vm1508_vm0 = vcmask 965632  }
 0x16d   : > { %1068 = vrot.lane.b32.xlu0 %v4486_v2, %s4054_s26 }
 0x1df   : > { %v1069_v5 = vpop.permute.xlu0 %1068 }
 0x1e0   : > { %v1073_v6 = vsel %vm1071_vm2, %v1069_v5, 0.0  ;;  %v1072_v7 = vsel %vm1071_vm2, 0.0, %v1069_v5 }
 0x1e1   : > { %1085 = vrot.lane.b32.xlu1 %v1073_v6, %s4058_s4  ;;  %1083 = vrot.lane.b32.xlu0 %v1072_v7, %s4058_s4 }
 0x1e5   : > { %1076 = vrot.lane.b32.xlu1 %v1072_v7, %s4059_s3  ;;  %1078 = vrot.lane.b32.xlu0 %v1073_v6, %s4059_s3 }
 0x1e9   : > { %1092 = vperm.xlu1 %3344, %v1066_v8   ;;  %v1382_v8 = vld [vmem:[#allocation12] sm:$0xff] }
 0x253   : > { %v1086_v9 = vpop.permute.xlu1 %1085  ;;  %v1084_v10 = vpop.permute.xlu0 %1083 }
 0x254   : > { %v1088_v11 = vsel %vm1087_vm3, %v1084_v10, %v1086_v9 }
 0x255   : > { %2918 = vmatpush3.msra.mxu0 %v1088_v11 }
 0x256   : > { %2919 = vmatprep.subr.mxu0 %v4055_v3 }
 0x257   : > { %v1077_v12 = vpop.permute.xlu1 %1076  ;;  %v1079_v13 = vpop.permute.xlu0 %1078 }
 0x258   : > { %v1081_v14 = vsel %vm1080_vm4, %v1077_v12, %v1079_v13 }
 0x259   : > { %2920 = vmatpush3.msra.mxu0 %v1081_v14 }
 0x25a   : > { %2921 = vmatprep.subr.mxu0 %v4055_v3 }
 0x25b   : > { %2922 = vmatpush3.msk.msra.mxu0 %vm4506_vm5, %v1069_v5 }
 0x25c   : > { %2924 = vmatmul.mubr.msk.f32.vlgmr.msra.gmra.mxu0 %vm1095_vm6, %v1065_v16  ;;  %2935 = vmatprep.subr.mxu0 %v4055_v3 }
 0x25d   : > { %2941 = vmatprep.mubr.msk.f32.mxu0 %vm4056_vm1, %v4055_v3 }
 0x264   : > { %v1093_v17 = vpop.permute.xlu1 %1092 }
 0x31c   : > { %v1165_v18 = vpop.f32.mrf.mxu0 }
 0x31d   : > { %v1166_v19 = vadd.f32 %v1165_v18, %v1093_v17 }
 0x31e   : > { %v2925_v20 = vpop.f32.mrf.mxu0 }
 0x31f   : > { %v1170_v21 = vmul.f32 0.1, %v1166_v19  ;;  %vm1169_vm7 = vcmp.ge.f32.partialorder %v1166_v19, 0.0 }
 0x321   : > { %v1171_v22 = vsel %vm1169_vm7, %v1166_v19, %v1170_v21  ;;  %vm1501_vm7 = vcmask 1006592  }
 0x322   : > { %1175 = vrot.lane.b32.xlu0 %v1171_v22, %s4054_s26  ;;  %v1694_v22 = vld [vmem:[#allocation22] sm:$0xff] }
 0x394   : > { %v1176_v23 = vpop.permute.xlu0 %1175 }
 0x395   : > { %v1179_v24 = vsel %vm1071_vm2, %v1176_v23, 0.0  ;;  %v1178_v25 = vsel %vm1071_vm2, 0.0, %v1176_v23 }
 0x396   : > { %1190 = vrot.lane.b32.xlu0 %v1179_v24, %s4058_s4  ;;  %1188 = vrot.lane.b32.xlu1 %v1178_v25, %s4058_s4 }
 0x39a   : > { %1184 = vrot.lane.b32.xlu0 %v1179_v24, %s4059_s3  ;;  %1182 = vrot.lane.b32.xlu1 %v1178_v25, %s4059_s3 }
 0x39e   : > { %1196 = vperm.xlu1 %3344, %v1173_v26  }
 0x408   : > { %v1191_v27 = vpop.permute.xlu0 %1190  ;;  %v1189_v28 = vpop.permute.xlu1 %1188 }
 0x409   : > { %v1192_v29 = vsel %vm1087_vm3, %v1189_v28, %v1191_v27 }
 0x40a   : > { %2927 = vmatpush3.msra.mxu1 %v1192_v29 }
 0x40b   : > { %2928 = vmatprep.subr.mxu1 %v4055_v3 }
 0x40c   : > { %v1185_v30 = vpop.permute.xlu0 %1184  ;;  %v1183_v31 = vpop.permute.xlu1 %1182 }
 0x40d   : > { %v1186_v32 = vsel %vm1080_vm4, %v1183_v31, %v1185_v30 }
 0x40e   : > { %2929 = vmatpush3.msra.mxu1 %v1186_v32 }
 0x40f   : > { %2930 = vmatprep.subr.mxu1 %v4055_v3 }
 0x410   : > { %2931 = vmatpush3.msk.msra.mxu1 %vm4506_vm5, %v1176_v23  ;;  %v1487_v23 = vld [vmem:[#allocation16] sm:$0xff] }
 0x411   : > { %2933 = vmatmul.mubr.msk.f32.vlgmr.msra.gmra.mxu1 %vm1095_vm6, %v1172_v33  ;;  %2944 = vmatprep.subr.mxu1 %v4055_v3 }
 0x412   : > { %2950 = vmatprep.mubr.msk.f32.mxu1 %vm4056_vm1, %v4055_v3 }
 0x419   : > { %v1197_v34 = vpop.permute.xlu1 %1196 }
 0x4d1   : > { %v1268_v35 = vpop.f32.mrf.mxu1 }
 0x4d2   : > { %v1269_v36 = vadd.f32 %v1268_v35, %v1197_v34  ;;  %v1486_v34 = vld [vmem:[#allocation15] sm:$0xff] }
 0x4d3   : > { %v2934_v37 = vpop.f32.mrf.mxu1 }
 0x4d4   : > { %v4535_v38 = vadd.f32 %v1269_v36, %v4481_v0 }
 0x4d6   : > { %vm1273_vm8 = vcmp.ge.f32.partialorder %v4535_v38, 0.0  ;;  %v1274_v39 = vmul.f32 0.1, %v4535_v38 }
 0x4d8   : > { %v1275_v40 = vsel %vm1273_vm8, %v4535_v38, %v1274_v39  ;;  %vm2819_vm8 = vmneg %vm1492_vm15 }
 0x4d9   : > { %1279 = vrot.lane.b32.xlu0 %v1275_v40, %s4060_s6 }
 0x54b   : > { %v1280_v41 = vpop.permute.xlu0 %1279 }
 0x54c   : > { %v1284_v42 = vsel %vm1282_vm9, %v1280_v41, 0.0  ;;  %v1283_v43 = vsel %vm1282_vm9, 0.0, %v1280_v41 }
 0x54d   : > { %1296 = vrot.lane.b32.xlu0 %v1284_v42, %s4061_s2  ;;  %1294 = vrot.lane.b32.xlu1 %v1283_v43, %s4061_s2 }
 0x551   : > { %1289 = vrot.lane.b32.xlu0 %v1284_v42, %s4062_s0  ;;  %1287 = vrot.lane.b32.xlu1 %v1283_v43, %s4062_s0 }
 0x555   : > { %1303 = vperm.xlu1 %3344, %v1277_v44  }
 0x5bf   : > { %v1297_v45 = vpop.permute.xlu0 %1296  ;;  %v1295_v46 = vpop.permute.xlu1 %1294 }
 0x5c0   : > { %v1299_v47 = vsel %vm1298_vm10, %v1295_v46, %v1297_v45 }
 0x5c1   : > { %2936 = vmatpush3.msra.mxu0 %v1299_v47 }
 0x5c2   : > { %2937 = vmatprep.subr.mxu0 %v4055_v3 }
 0x5c3   : > { %v1290_v48 = vpop.permute.xlu0 %1289  ;;  %v1288_v49 = vpop.permute.xlu1 %1287 }
 0x5c4   : > { %v1292_v50 = vsel %vm1291_vm11, %v1288_v49, %v1290_v48  ;;  %v1693_v49 = vld [vmem:[#allocation21] sm:$0xff] }
 0x5c5   : > { %2938 = vmatpush3.msra.mxu0 %v1292_v50 }
 0x5c6   : > { %2939 = vmatprep.subr.mxu0 %v4055_v3 }
 0x5c7   : > { %2940 = vmatpush3.msk.msra.mxu0 %vm4551_vm12, %v1280_v41 }
 0x5c8   : > { %2942 = vmatmul.mubr.msk.f32.vlgmr.msra.gmra.mxu0 %vm1095_vm6, %v1276_v52  ;;  %2953 = vmatprep.subr.mxu0 %v4055_v3 }
 0x5c9   : > { %2959 = vmatprep.mubr.msk.f32.mxu0 %vm4056_vm1, %v4055_v3 }
 0x5d0   : > { %v1304_v53 = vpop.permute.xlu1 %1303 }
 0x688   : > { %v1375_v54 = vpop.f32.mrf.mxu0 }
 0x689   : > { %v1376_v55 = vadd.f32 %v1375_v54, %v1304_v53 }
 0x68a   : > { %v2943_v56 = vpop.f32.mrf.mxu0 }
 0x68b   : > { %v1380_v57 = vmul.f32 0.1, %v1376_v55  ;;  %vm1379_vm13 = vcmp.ge.f32.partialorder %v1376_v55, 0.0 }
 0x68d   : > { %v1381_v58 = vsel %vm1379_vm13, %v1376_v55, %v1380_v57  ;;  %vm1724_vm13 = vcmask 1014784  }
 0x68e   : > { %1385 = vrot.lane.b32.xlu0 %v1381_v58, %s4054_s26 }
 0x700   : > { %v1386_v59 = vpop.permute.xlu0 %1385 }
 0x701   : > { %v1389_v60 = vsel %vm1071_vm2, %v1386_v59, 0.0  ;;  %v1388_v61 = vsel %vm1071_vm2, 0.0, %v1386_v59 }
 0x702   : > { %1400 = vrot.lane.b32.xlu0 %v1389_v60, %s4058_s4  ;;  %1398 = vrot.lane.b32.xlu1 %v1388_v61, %s4058_s4 }
 0x706   : > { %1394 = vrot.lane.b32.xlu0 %v1389_v60, %s4059_s3  ;;  %1392 = vrot.lane.b32.xlu1 %v1388_v61, %s4059_s3 }
 0x70a   : > { %1406 = vperm.xlu1 %3344, %v1383_v62  }
 0x70e   : > { %1695 = vrot.lane.b32.xlu1 %v4486_v2, %s4060_s6 }
 0x774   : > { %v1401_v63 = vpop.permute.xlu0 %1400  ;;  %v1399_v1 = vpop.permute.xlu1 %1398 }
 0x775   : > { %v1402_v4 = vsel %vm1087_vm3, %v1399_v1, %v1401_v63 }
 0x776   : > { %2945 = vmatpush3.msra.mxu1 %v1402_v4 }
 0x777   : > { %2946 = vmatprep.subr.mxu1 %v4055_v3 }
 0x778   : > { %v1395_v5 = vpop.permute.xlu0 %1394  ;;  %v1393_v6 = vpop.permute.xlu1 %1392 }
 0x779   : > { %v1396_v7 = vsel %vm1080_vm4, %v1393_v6, %v1395_v5 }
 0x77a   : > { %2947 = vmatpush3.msra.mxu1 %v1396_v7 }
 0x77b   : > { %2948 = vmatprep.subr.mxu1 %v4055_v3 }
 0x77c   : > { %2949 = vmatpush3.msk.msra.mxu1 %vm4506_vm5, %v1386_v59 }
 0x77d   : > { %2951 = vmatmul.mubr.msk.f32.vlgmr.msra.gmra.mxu1 %vm1095_vm6, %v1382_v8  ;;  %2962 = vmatprep.subr.mxu1 %v4055_v3  ;;  %v1822_v8 = vld [vmem:[#allocation25] sm:$0xff] }
 0x77e   : > { %2968 = vmatprep.mubr.msk.f32.mxu1 %vm4056_vm1, %v4055_v3 }
 0x785   : > { %v1407_v2 = vpop.permute.xlu1 %1406 }
 0x789   : > { %v4581_v9 = vpop.permute.xlu1 %1695 }
 0x78a   : > { %v1699_v10 = vsel %vm1282_vm9, %v4581_v9, 0.0  ;;  %v1698_v18 = vsel %vm1282_vm9, 0.0, %v4581_v9 }
 0x78b   : > { %1735 = vrot.lane.b32.xlu1 %v1699_v10, %s4061_s2 }
 0x78f   : > { %1729 = vrot.lane.b32.xlu1 %v1699_v10, %s4063_s1 }
 0x7fd   : > { %v1736_v24 = vpop.permute.xlu1 %1735 }
 0x801   : > { %v1730_v26 = vpop.permute.xlu1 %1729 }
 0x83d   : > { %v1478_v11 = vpop.f32.mrf.mxu1 }
 0x83e   : > { %v1479_v12 = vadd.f32 %v1478_v11, %v1407_v2 }
 0x83f   : > { %v2952_v13 = vpop.f32.mrf.mxu1 }
 0x840   : > { %v4588_v14 = vadd.f32 %v1479_v12, %v4535_v38 }
 0x842   : > { %vm1483_vm14 = vcmp.ge.f32.partialorder %v4588_v14, 0.0  ;;  %v1484_v16 = vmul.f32 0.1, %v4588_v14 }
 0x844   : > { %v1485_v17 = vsel %vm1483_vm14, %v4588_v14, %v1484_v16  ;;  %vm1744_vm14 = vcmask 457728   ;;  %v1592_v16 = vld [vmem:[#allocation18] sm:$0xff] }
 0x845   : > { %1489 = vrot.lane.b32.xlu0 %v1485_v17, %s4064_s5  ;;  %s4071_s5 = smov 119  }
 0x849   : > { %1733 = vrot.lane.b32.xlu0 %v1698_v18, %s4061_s2 }
 0x84d   : > { %1727 = vrot.lane.b32.xlu0 %v1698_v18, %s4063_s1 }
 0x8b7   : > { %v1490_v19 = vpop.permute.xlu0 %1489 }
 0x8b8   : > { %v1494_v20 = vsel %vm1492_vm15, %v1490_v19, 0.0  ;;  %v1493_v21 = vsel %vm1492_vm15, 0.0, %v1490_v19 }
 0x8b9   : > { %1506 = vrot.lane.b32.xlu1 %v1494_v20, %s4065_s8  ;;  %1504 = vrot.lane.b32.xlu0 %v1493_v21, %s4065_s8 }
 0x8bb   : > { %v1734_v25 = vpop.permute.xlu0 %1733 }
 0x8bc   : > { %v1737_v37 = vsel %vm1298_vm10, %v1734_v25, %v1736_v24 }
 0x8bd   : > { %1499 = vrot.lane.b32.xlu1 %v1494_v20, %s4063_s1  ;;  %1497 = vrot.lane.b32.xlu0 %v1493_v21, %s4063_s1 }
 0x8bf   : > { %v1728_v27 = vpop.permute.xlu0 %1727 }
 0x8c0   : > { %v1731_v38 = vsel %vm1501_vm7, %v1728_v27, %v1730_v26 }
 0x8c1   : > { %1722 = vrot.lane.b32.xlu1 %v1699_v10, %s4066_s27  ;;  %1720 = vrot.lane.b32.xlu0 %v1698_v18, %s4066_s27 }
 0x8c5   : > { %1716 = vrot.lane.b32.xlu1 %v1699_v10, %s4062_s0  ;;  %1714 = vrot.lane.b32.xlu0 %v1698_v18, %s4062_s0 }
 0x8c9   : > { %1710 = vrot.lane.b32.xlu1 %v1699_v10, %s4058_s4  ;;  %1708 = vrot.lane.b32.xlu0 %v1698_v18, %s4058_s4 }
 0x8cd   : > { %1704 = vrot.lane.b32.xlu1 %v1699_v10, %s4059_s3  ;;  %1702 = vrot.lane.b32.xlu0 %v1698_v18, %s4059_s3 }
 0x8d1   : > { %1741 = vperm.xlu1 %3344, %v1694_v22   ;;  %1513 = vperm.xlu0 %3345, %v1487_v23  }
 0x92b   : > { %v1507_v28 = vpop.permute.xlu1 %1506  ;;  %v1505_v29 = vpop.permute.xlu0 %1504 }
 0x92c   : > { %v1509_v30 = vsel %vm1508_vm0, %v1505_v29, %v1507_v28 }
 0x92d   : > { %2954 = vmatpush3.msra.mxu0 %v1509_v30 }
 0x92e   : > { %2955 = vmatprep.subr.mxu0 %v4055_v3 }
 0x92f   : > { %v1500_v31 = vpop.permute.xlu1 %1499  ;;  %v1498_v32 = vpop.permute.xlu0 %1497 }
 0x930   : > { %v1502_v33 = vsel %vm1501_vm7, %v1498_v32, %v1500_v31 }
 0x931   : > { %2956 = vmatpush3.msra.mxu0 %v1502_v33 }
 0x932   : > { %2957 = vmatprep.subr.mxu0 %v4055_v3 }
 0x933   : > { %v1723_v35 = vpop.permute.xlu1 %1722  ;;  %2958 = vmatpush3.msk.msra.mxu0 %vm2819_vm8, %v1490_v19  ;;  %v1721_v36 = vpop.permute.xlu0 %1720 }
 0x934   : > { %2960 = vmatmul.mubr.msk.f32.vlgmr.msra.gmra.mxu0 %vm1095_vm6, %v1486_v34  ;;  %2971 = vmatprep.subr.mxu0 %v4055_v3  ;;  %v1725_v41 = vsel %vm1724_vm13, %v1721_v36, %v1723_v35  ;;  %v1821_v34 = vld [vmem:[#allocation24] sm:$0xff] }
 0x935   : > { %2972 = vmatpush3.msra.mxu0 %v1737_v37  ;;  %2985 = vmatprep.mubr.msk.f32.mxu0 %vm4056_vm1, %v4055_v3 }
 0x936   : > { %2973 = vmatprep.subr.mxu0 %v4055_v3 }
 0x937   : > { %v1717_v39 = vpop.permute.xlu1 %1716  ;;  %2974 = vmatpush3.msra.mxu0 %v1731_v38  ;;  %v1715_v40 = vpop.permute.xlu0 %1714 }
 0x938   : > { %2975 = vmatprep.subr.mxu0 %v4055_v3  ;;  %v1718_v42 = vsel %vm1291_vm11, %v1715_v40, %v1717_v39 }
 0x939   : > { %2976 = vmatpush3.msra.mxu0 %v1725_v41 }
 0x93a   : > { %2977 = vmatprep.subr.mxu0 %v4055_v3 }
 0x93b   : > { %v1711_v43 = vpop.permute.xlu1 %1710  ;;  %2978 = vmatpush3.msra.mxu0 %v1718_v42  ;;  %v1709_v44 = vpop.permute.xlu0 %1708 }
 0x93c   : > { %v1712_v45 = vsel %vm1087_vm3, %v1709_v44, %v1711_v43  ;;  %2979 = vmatprep.subr.mxu0 %v4055_v3 }
 0x93d   : > { %2980 = vmatpush3.msra.mxu0 %v1712_v45 }
 0x93e   : > { %2981 = vmatprep.subr.mxu0 %v4055_v3 }
 0x93f   : > { %v1705_v46 = vpop.permute.xlu1 %1704  ;;  %v1703_v47 = vpop.permute.xlu0 %1702 }
 0x940   : > { %v1706_v48 = vsel %vm1080_vm4, %v1703_v47, %v1705_v46 }
 0x941   : > { %2982 = vmatpush3.msra.mxu0 %v1706_v48 }
 0x942   : > { %2983 = vmatprep.subr.mxu0 %v4055_v3 }
 0x943   : > { %2984 = vmatpush3.msk.msra.mxu0 %vm4551_vm12, %v4581_v9 }
 0x944   : > { %2986 = vmatmul.mubr.msk.f32.vlgmr.msra.gmra.mxu0 %vm1744_vm14, %v1693_v49  ;;  %3005 = vmatprep.subr.mxu0 %v4055_v3 }
 0x945   : > { %3019 = vmatprep.mubr.msk.f32.mxu0 %vm4056_vm1, %v4055_v3 }
 0x94c   : > { %v1514_v50 = vpop.permute.xlu0 %1513  ;;  %v1742_v57 = vpop.permute.xlu1 %1741 }
 0x9f4   : > { %v1585_v52 = vpop.f32.mrf.mxu0 }
 0x9f5   : > { %v1586_v53 = vadd.f32 %v1585_v52, %v1514_v50 }
 0x9f6   : > { %v2961_v54 = vpop.f32.mrf.mxu0 }
 0x9f7   : > { %v1590_v55 = vmul.f32 0.1, %v1586_v53  ;;  %vm1589_vm15 = vcmp.ge.f32.partialorder %v1586_v53, 0.0 }
 0x9f9   : > { %v1591_v56 = vsel %vm1589_vm15, %v1586_v53, %v1590_v55  ;;  %vm1990_vm15 = vcmask 924672  }
 0x9fa   : > { %1595 = vrot.lane.b32.xlu1 %v1591_v56, %s4054_s26  ;;  %s4070_s26 = smov 116  }
 0xa04   : > { %v1814_v58 = vpop.f32.mrf.mxu0 }
 0xa05   : > { %v1815_v59 = vadd.f32 %v1814_v58, %v1742_v57 }
 0xa06   : > { %v2987_v60 = vpop.f32.mrf.mxu0 }
 0xa07   : > { %v1819_v61 = vmul.f32 0.1, %v1815_v59  ;;  %vm1818_vm8 = vcmp.ge.f32.partialorder %v1815_v59, 0.0 }
 0xa09   : > { %v1820_v62 = vsel %vm1818_vm8, %v1815_v59, %v1819_v61  ;;  %vm1983_vm8 = vcmask 949248  }
 0xa0a   : > { %1824 = vrot.lane.b32.xlu0 %v1820_v62, %s4060_s6 }
 0xa6c   : > { %v1596_v63 = vpop.permute.xlu1 %1595 }
 0xa6d   : > { %v1598_v1 = vsel %vm1071_vm2, 0.0, %v1596_v63  ;;  %v1599_v4 = vsel %vm1071_vm2, %v1596_v63, 0.0 }
 0xa6e   : > { %1608 = vrot.lane.b32.xlu1 %v1598_v1, %s4058_s4  ;;  %1610 = vrot.lane.b32.xlu0 %v1599_v4, %s4058_s4 }
 0xa72   : > { %1602 = vrot.lane.b32.xlu1 %v1598_v1, %s4059_s3  ;;  %1604 = vrot.lane.b32.xlu0 %v1599_v4, %s4059_s3 }
 0xa7c   : > { %v4647_v5 = vpop.permute.xlu0 %1824 }
 0xa7d   : > { %v1827_v6 = vsel %vm1282_vm9, 0.0, %v4647_v5  ;;  %v1828_v7 = vsel %vm1282_vm9, %v4647_v5, 0.0 }
 0xa7e   : > { %1863 = vrot.lane.b32.xlu0 %v1828_v7, %s4061_s2  ;;  %1861 = vrot.lane.b32.xlu1 %v1827_v6, %s4061_s2 }
 0xa82   : > { %1857 = vrot.lane.b32.xlu0 %v1828_v7, %s4063_s1  ;;  %1855 = vrot.lane.b32.xlu1 %v1827_v6, %s4063_s1 }
 0xa86   : > { %1851 = vrot.lane.b32.xlu0 %v1828_v7, %s4066_s27  ;;  %1849 = vrot.lane.b32.xlu1 %v1827_v6, %s4066_s27 }
 0xa8a   : > { %1845 = vrot.lane.b32.xlu0 %v1828_v7, %s4062_s0  ;;  %1843 = vrot.lane.b32.xlu1 %v1827_v6, %s4062_s0 }
 0xa8e   : > { %1839 = vrot.lane.b32.xlu0 %v1828_v7, %s4058_s4  ;;  %1837 = vrot.lane.b32.xlu1 %v1827_v6, %s4058_s4 }
 0xa92   : > { %1833 = vrot.lane.b32.xlu0 %v1828_v7, %s4059_s3  ;;  %1831 = vrot.lane.b32.xlu1 %v1827_v6, %s4059_s3 }
 0xa96   : > { %1869 = vperm.xlu1 %3344, %v1822_v8  }
 0xae0   : > { %v1609_v2 = vpop.permute.xlu1 %1608  ;;  %v1611_v9 = vpop.permute.xlu0 %1610 }
 0xae1   : > { %v1612_v10 = vsel %vm1087_vm3, %v1609_v2, %v1611_v9 }
 0xae2   : > { %2963 = vmatpush3.msra.mxu1 %v1612_v10 }
 0xae3   : > { %2964 = vmatprep.subr.mxu1 %v4055_v3 }
 0xae4   : > { %v1603_v11 = vpop.permute.xlu1 %1602  ;;  %v1605_v12 = vpop.permute.xlu0 %1604 }
 0xae5   : > { %v1606_v13 = vsel %vm1080_vm4, %v1603_v11, %v1605_v12 }
 0xae6   : > { %2965 = vmatpush3.msra.mxu1 %v1606_v13 }
 0xae7   : > { %2966 = vmatprep.subr.mxu1 %v4055_v3 }
 0xae8   : > { %2967 = vmatpush3.msk.msra.mxu1 %vm4506_vm5, %v1596_v63  ;;  %vm1955_vm5 = vcmask 72704  }
 0xae9   : > { %2988 = vmatprep.subr.mxu1 %v4055_v3  ;;  %2969 = vmatmul.mubr.msk.f32.vlgmr.msra.gmra.mxu1 %vm1095_vm6, %v1592_v16  ;;  %vm1997_vm6 = vcmask 900096   ;;  %v2082_v16 = vld [vmem:[#allocation31] sm:$0xff] }
 0xaea   : > { %3002 = vmatprep.mubr.msk.f32.mxu1 %vm4056_vm1, %v4055_v3 }
 0xaf0   : > { %v1862_v17 = vpop.permute.xlu1 %1861  ;;  %v1864_v18 = vpop.permute.xlu0 %1863 }
 0xaf1   : > { %v1865_v19 = vsel %vm1298_vm10, %v1862_v17, %v1864_v18 }
 0xaf2   : > { %2989 = vmatpush3.msra.mxu1 %v1865_v19 }
 0xaf3   : > { %2990 = vmatprep.subr.mxu1 %v4055_v3 }
 0xaf4   : > { %v1856_v20 = vpop.permute.xlu1 %1855  ;;  %v1858_v21 = vpop.permute.xlu0 %1857 }
 0xaf5   : > { %v1859_v22 = vsel %vm1501_vm7, %v1856_v20, %v1858_v21 }
 0xaf6   : > { %2991 = vmatpush3.msra.mxu1 %v1859_v22 }
 0xaf7   : > { %2992 = vmatprep.subr.mxu1 %v4055_v3 }
 0xaf8   : > { %v1850_v15 = vpop.permute.xlu1 %1849  ;;  %v1852_v23 = vpop.permute.xlu0 %1851 }
 0xaf9   : > { %v1853_v24 = vsel %vm1724_vm13, %v1850_v15, %v1852_v23 }
 0xafa   : > { %2993 = vmatpush3.msra.mxu1 %v1853_v24 }
 0xafb   : > { %2994 = vmatprep.subr.mxu1 %v4055_v3 }
 0xafc   : > { %v1844_v25 = vpop.permute.xlu1 %1843  ;;  %v1846_v26 = vpop.permute.xlu0 %1845 }
 0xafd   : > { %v1847_v27 = vsel %vm1291_vm11, %v1844_v25, %v1846_v26 }
 0xafe   : > { %2995 = vmatpush3.msra.mxu1 %v1847_v27 }
 0xaff   : > { %2996 = vmatprep.subr.mxu1 %v4055_v3 }
 0xb00   : > { %v1838_v28 = vpop.permute.xlu1 %1837  ;;  %v1840_v29 = vpop.permute.xlu0 %1839 }
 0xb01   : > { %v1841_v30 = vsel %vm1087_vm3, %v1838_v28, %v1840_v29 }
 0xb02   : > { %2997 = vmatpush3.msra.mxu1 %v1841_v30 }
 0xb03   : > { %2998 = vmatprep.subr.mxu1 %v4055_v3 }
 0xb04   : > { %v1832_v31 = vpop.permute.xlu1 %1831  ;;  %v1834_v32 = vpop.permute.xlu0 %1833 }
 0xb05   : > { %v1835_v33 = vsel %vm1080_vm4, %v1832_v31, %v1834_v32 }
 0xb06   : > { %2999 = vmatpush3.msra.mxu1 %v1835_v33 }
 0xb07   : > { %3000 = vmatprep.subr.mxu1 %v4055_v3 }
 0xb08   : > { %3001 = vmatpush3.msk.msra.mxu1 %vm4551_vm12, %v4647_v5  ;;  %v1949_v5 = vld [vmem:[#allocation27] sm:$0xff] }
 0xb09   : > { %3003 = vmatmul.mubr.msk.f32.vlgmr.msra.gmra.mxu1 %vm1744_vm14, %v1821_v34  ;;  %3022 = vmatprep.subr.mxu1 %v4055_v3  ;;  %v2081_v34 = vld [vmem:[#allocation30] sm:$0xff] }
 0xb0a   : > { %3036 = vmatprep.mubr.msk.f32.mxu1 %vm4056_vm1, %v4055_v3 }
 0xb11   : > { %v1870_v37 = vpop.permute.xlu1 %1869 }
 0xba9   : > { %v4694_v35 = vpop.f32.mrf.mxu1 }
 0xbab   : > { %v2970_v36 = vpop.f32.mrf.mxu1 }
 0xbc9   : > { %v1941_v38 = vpop.f32.mrf.mxu1 }
 0xbca   : > { %v1942_v39 = vadd.f32 %v1941_v38, %v1870_v37 }
 0xbcb   : > { %v3004_v40 = vpop.f32.mrf.mxu1 }
 0xbcc   : > { %v4697_v41 = vadd.f32 %v1942_v39, %v4481_v0  ;;  %v1950_v0 = vld [vmem:[#allocation28] sm:$0xff] }
 0xbce   : > { %vm1946_vm2 = vcmp.ge.f32.partialorder %v4697_v41, 0.0  ;;  %v1947_v42 = vmul.f32 0.1, %v4697_v41 }
 0xbd0   : > { %v1948_v43 = vsel %vm1946_vm2, %v4697_v41, %v1947_v42  ;;  %vm1976_vm2 = vcmask 973824  }
 0xbd1   : > { %1952 = vrot.lane.b32.xlu0 %v1948_v43, %s4067_s9  ;;  %s4072_s9 = smov 15  }
 0xc43   : > { %v1953_v44 = vpop.permute.xlu0 %1952 }
 0xc44   : > { %v1956_v45 = vsel %vm1955_vm5, 0.0, %v1953_v44  ;;  %v1957_v46 = vsel %vm1955_vm5, %v1953_v44, 0.0 }
 0xc45   : > { %1995 = vrot.lane.b32.xlu0 %v1957_v46, %s4068_s29  ;;  %1993 = vrot.lane.b32.xlu1 %v1956_v45, %s4068_s29  ;;  %s4073_s29 = smov 98  }
 0xc49   : > { %1988 = vrot.lane.b32.xlu0 %v1957_v46, %s4069_s28  ;;  %1986 = vrot.lane.b32.xlu1 %v1956_v45, %s4069_s28 }
 0xc4d   : > { %1981 = vrot.lane.b32.xlu0 %v1957_v46, %s4070_s26  ;;  %1979 = vrot.lane.b32.xlu1 %v1956_v45, %s4070_s26  ;;  %s4074_s26 = smov 103  }
 0xc51   : > { %1974 = vrot.lane.b32.xlu0 %v1957_v46, %s4071_s5  ;;  %1972 = vrot.lane.b32.xlu1 %v1956_v45, %s4071_s5  ;;  %s4075_s5 = smov 108  }
 0xc55   : > { %1968 = vrot.lane.b32.xlu0 %v1957_v46, %s4061_s2  ;;  %1966 = vrot.lane.b32.xlu1 %v1956_v45, %s4061_s2 }
 0xc59   : > { %1962 = vrot.lane.b32.xlu0 %v1957_v46, %s4062_s0  ;;  %1960 = vrot.lane.b32.xlu1 %v1956_v45, %s4062_s0 }
 0xc5d   : > { %2002 = vperm.xlu1 %3344, %v1950_v0  }
 0xcb7   : > { %v1996_v47 = vpop.permute.xlu0 %1995  ;;  %v1994_v48 = vpop.permute.xlu1 %1993 }
 0xcb8   : > { %v1998_v49 = vsel %vm1997_vm6, %v1994_v48, %v1996_v47  ;;  %vm2831_vm6 = vmneg %vm1955_vm5 }
 0xcb9   : > { %3006 = vmatpush3.msra.mxu0 %v1998_v49 }
 0xcba   : > { %3007 = vmatprep.subr.mxu0 %v4055_v3 }
 0xcbb   : > { %v1989_v50 = vpop.permute.xlu0 %1988  ;;  %v1987_v52 = vpop.permute.xlu1 %1986 }
 0xcbc   : > { %v1991_v53 = vsel %vm1990_vm15, %v1987_v52, %v1989_v50 }
 0xcbd   : > { %3008 = vmatpush3.msra.mxu0 %v1991_v53 }
 0xcbe   : > { %3009 = vmatprep.subr.mxu0 %v4055_v3 }
 0xcbf   : > { %v1982_v54 = vpop.permute.xlu0 %1981  ;;  %v1980_v55 = vpop.permute.xlu1 %1979 }
 0xcc0   : > { %v1984_v56 = vsel %vm1983_vm8, %v1980_v55, %v1982_v54 }
 0xcc1   : > { %3010 = vmatpush3.msra.mxu0 %v1984_v56 }
 0xcc2   : > { %3011 = vmatprep.subr.mxu0 %v4055_v3 }
 0xcc3   : > { %v1975_v57 = vpop.permute.xlu0 %1974  ;;  %v1973_v58 = vpop.permute.xlu1 %1972 }
 0xcc4   : > { %v1977_v59 = vsel %vm1976_vm2, %v1973_v58, %v1975_v57  ;;  %vm2215_vm2 = vcmask 121856  }
 0xcc5   : > { %3012 = vmatpush3.msra.mxu0 %v1977_v59 }
 0xcc6   : > { %3013 = vmatprep.subr.mxu0 %v4055_v3 }
 0xcc7   : > { %v1969_v60 = vpop.permute.xlu0 %1968  ;;  %v1967_v61 = vpop.permute.xlu1 %1966 }
 0xcc8   : > { %v1970_v62 = vsel %vm1298_vm10, %v1967_v61, %v1969_v60 }
 0xcc9   : > { %3014 = vmatpush3.msra.mxu0 %v1970_v62 }
 0xcca   : > { %3015 = vmatprep.subr.mxu0 %v4055_v3 }
 0xccb   : > { %v1963_v63 = vpop.permute.xlu0 %1962  ;;  %v1961_v1 = vpop.permute.xlu1 %1960 }
 0xccc   : > { %v1964_v4 = vsel %vm1291_vm11, %v1961_v1, %v1963_v63 }
 0xccd   : > { %3016 = vmatpush3.msra.mxu0 %v1964_v4  ;;  %v2209_v4 = vld [vmem:[#allocation33] sm:$0xff] }
 0xcce   : > { %3017 = vmatprep.subr.mxu0 %v4055_v3 }
 0xccf   : > { %3018 = vmatpush3.msk.msra.mxu0 %vm2831_vm6, %v1953_v44  ;;  %vm2249_vm6 = vcmask 842752  }
 0xcd0   : > { %3020 = vmatmul.mubr.msk.f32.vlgmr.msra.gmra.mxu0 %vm1744_vm14, %v1949_v5  ;;  %3039 = vmatprep.subr.mxu0 %v4055_v3 }
 0xcd1   : > { %3053 = vmatprep.mubr.msk.f32.mxu0 %vm4056_vm1, %v4055_v3 }
 0xcd8   : > { %v2003_v6 = vpop.permute.xlu1 %2002 }
 0xd90   : > { %v2074_v7 = vpop.f32.mrf.mxu0 }
 0xd91   : > { %v2075_v8 = vadd.f32 %v2074_v7, %v2003_v6 }
 0xd92   : > { %v3021_v2 = vpop.f32.mrf.mxu0 }
 0xd93   : > { %v2079_v9 = vmul.f32 0.1, %v2075_v8  ;;  %vm2078_vm8 = vcmp.ge.f32.partialorder %v2075_v8, 0.0 }
 0xd95   : > { %v2080_v10 = vsel %vm2078_vm8, %v2075_v8, %v2079_v9  ;;  %vm2242_vm8 = vcmask 883712  }
 0xd96   : > { %2084 = vrot.lane.b32.xlu0 %v2080_v10, %s4060_s6 }
 0xe08   : > { %v2085_v11 = vpop.permute.xlu0 %2084 }
 0xe09   : > { %v2087_v12 = vsel %vm1282_vm9, 0.0, %v2085_v11  ;;  %v2088_v13 = vsel %vm1282_vm9, %v2085_v11, 0.0 }
 0xe0a   : > { %2123 = vrot.lane.b32.xlu0 %v2088_v13, %s4061_s2  ;;  %2121 = vrot.lane.b32.xlu1 %v2087_v12, %s4061_s2 }
 0xe0e   : > { %2117 = vrot.lane.b32.xlu0 %v2088_v13, %s4063_s1  ;;  %2115 = vrot.lane.b32.xlu1 %v2087_v12, %s4063_s1 }
 0xe12   : > { %2111 = vrot.lane.b32.xlu0 %v2088_v13, %s4066_s27  ;;  %2109 = vrot.lane.b32.xlu1 %v2087_v12, %s4066_s27 }
 0xe16   : > { %2105 = vrot.lane.b32.xlu0 %v2088_v13, %s4062_s0  ;;  %2103 = vrot.lane.b32.xlu1 %v2087_v12, %s4062_s0 }
 0xe1a   : > { %2099 = vrot.lane.b32.xlu0 %v2088_v13, %s4058_s4  ;;  %2097 = vrot.lane.b32.xlu1 %v2087_v12, %s4058_s4 }
 0xe1e   : > { %2093 = vrot.lane.b32.xlu0 %v2088_v13, %s4059_s3  ;;  %2091 = vrot.lane.b32.xlu1 %v2087_v12, %s4059_s3  ;;  %v2341_v13 = vld [vmem:[#allocation37] sm:$0xff] }
 0xe22   : > { %2129 = vperm.xlu1 %3344, %v2082_v16   ;;  %v1593_v16 = vld [vmem:[#allocation19] sm:$0xff] }
 0xe7c   : > { %v2124_v17 = vpop.permute.xlu0 %2123  ;;  %v2122_v18 = vpop.permute.xlu1 %2121 }
 0xe7d   : > { %v2125_v19 = vsel %vm1298_vm10, %v2122_v18, %v2124_v17 }
 0xe7e   : > { %3023 = vmatpush3.msra.mxu1 %v2125_v19 }
 0xe7f   : > { %3024 = vmatprep.subr.mxu1 %v4055_v3 }
 0xe80   : > { %v2118_v20 = vpop.permute.xlu0 %2117  ;;  %v2116_v21 = vpop.permute.xlu1 %2115 }
 0xe81   : > { %v2119_v22 = vsel %vm1501_vm7, %v2116_v21, %v2118_v20 }
 0xe82   : > { %3025 = vmatpush3.msra.mxu1 %v2119_v22 }
 0xe83   : > { %3026 = vmatprep.subr.mxu1 %v4055_v3 }
 0xe84   : > { %v2112_v15 = vpop.permute.xlu0 %2111  ;;  %v2110_v23 = vpop.permute.xlu1 %2109 }
 0xe85   : > { %v2113_v24 = vsel %vm1724_vm13, %v2110_v23, %v2112_v15 }
 0xe86   : > { %3027 = vmatpush3.msra.mxu1 %v2113_v24 }
 0xe87   : > { %3028 = vmatprep.subr.mxu1 %v4055_v3 }
 0xe88   : > { %v2106_v25 = vpop.permute.xlu0 %2105  ;;  %v2104_v26 = vpop.permute.xlu1 %2103 }
 0xe89   : > { %v2107_v27 = vsel %vm1291_vm11, %v2104_v26, %v2106_v25 }
 0xe8a   : > { %3029 = vmatpush3.msra.mxu1 %v2107_v27 }
 0xe8b   : > { %3030 = vmatprep.subr.mxu1 %v4055_v3 }
 0xe8c   : > { %v2100_v28 = vpop.permute.xlu0 %2099  ;;  %v2098_v29 = vpop.permute.xlu1 %2097 }
 0xe8d   : > { %v2101_v30 = vsel %vm1087_vm3, %v2098_v29, %v2100_v28 }
 0xe8e   : > { %3031 = vmatpush3.msra.mxu1 %v2101_v30 }
 0xe8f   : > { %3032 = vmatprep.subr.mxu1 %v4055_v3 }
 0xe90   : > { %v2094_v31 = vpop.permute.xlu0 %2093  ;;  %v2092_v32 = vpop.permute.xlu1 %2091 }
 0xe91   : > { %v2095_v33 = vsel %vm1080_vm4, %v2092_v32, %v2094_v31 }
 0xe92   : > { %3033 = vmatpush3.msra.mxu1 %v2095_v33 }
 0xe93   : > { %3034 = vmatprep.subr.mxu1 %v4055_v3 }
 0xe94   : > { %3035 = vmatpush3.msk.msra.mxu1 %vm4551_vm12, %v2085_v11 }
 0xe95   : > { %3037 = vmatmul.mubr.msk.f32.vlgmr.msra.gmra.mxu1 %vm1744_vm14, %v2081_v34  ;;  %3056 = vmatprep.subr.mxu1 %v4055_v3  ;;  %v2340_v34 = vld [vmem:[#allocation36] sm:$0xff] }
 0xe96   : > { %3070 = vmatprep.mubr.msk.f32.mxu1 %vm4056_vm1, %v4055_v3  ;;  %vm2256_vm1 = vcmask 801792  }
 0xe9d   : > { %v2130_v36 = vpop.permute.xlu1 %2129 }
 0xf55   : > { %v2201_v37 = vpop.f32.mrf.mxu1 }
 0xf56   : > { %v2202_v38 = vadd.f32 %v2201_v37, %v2130_v36 }
 0xf57   : > { %v3038_v39 = vpop.f32.mrf.mxu1 }
 0xf58   : > { %v4758_v40 = vadd.f32 %v2202_v38, %v4697_v41  ;;  %v2210_v41 = vld [vmem:[#allocation34] sm:$0xff] }
 0xf5a   : > { %vm2206_vm5 = vcmp.ge.f32.partialorder %v4758_v40, 0.0  ;;  %v2207_v42 = vmul.f32 0.1, %v4758_v40 }
 0xf5c   : > { %v2208_v43 = vsel %vm2206_vm5, %v4758_v40, %v2207_v42  ;;  %vm2837_vm5 = vmneg %vm2215_vm2 }
 0xf5d   : > { %2212 = vrot.lane.b32.xlu0 %v2208_v43, %s4072_s9 }
 0xfcf   : > { %v2213_v44 = vpop.permute.xlu0 %2212 }
 0xfd0   : > { %v2216_v45 = vsel %vm2215_vm2, 0.0, %v2213_v44  ;;  %v2217_v46 = vsel %vm2215_vm2, %v2213_v44, 0.0 }
 0xfd1   : > { %2254 = vrot.lane.b32.xlu0 %v2217_v46, %s4073_s29  ;;  %2252 = vrot.lane.b32.xlu1 %v2216_v45, %s4073_s29 }
 0xfd5   : > { %2247 = vrot.lane.b32.xlu0 %v2217_v46, %s4074_s26  ;;  %2245 = vrot.lane.b32.xlu1 %v2216_v45, %s4074_s26 }
 0xfd9   : > { %2240 = vrot.lane.b32.xlu0 %v2217_v46, %s4075_s5  ;;  %2238 = vrot.lane.b32.xlu1 %v2216_v45, %s4075_s5 }
 0xfdd   : > { %2234 = vrot.lane.b32.xlu0 %v2217_v46, %s4069_s28  ;;  %2232 = vrot.lane.b32.xlu1 %v2216_v45, %s4069_s28 }
 0xfe1   : > { %2228 = vrot.lane.b32.xlu0 %v2217_v46, %s4065_s8  ;;  %2226 = vrot.lane.b32.xlu1 %v2216_v45, %s4065_s8 }
 0xfe5   : > { %2222 = vrot.lane.b32.xlu0 %v2217_v46, %s4063_s1  ;;  %2220 = vrot.lane.b32.xlu1 %v2216_v45, %s4063_s1 }
 0xfe9   : > { %2261 = vperm.xlu1 %3344, %v2210_v41  }
0x1043   : > { %v2255_v0 = vpop.permute.xlu0 %2254  ;;  %v2253_v47 = vpop.permute.xlu1 %2252 }
0x1044   : > { %v2257_v48 = vsel %vm2256_vm1, %v2253_v47, %v2255_v0 }
0x1045   : > { %3040 = vmatpush3.msra.mxu0 %v2257_v48 }
0x1046   : > { %3041 = vmatprep.subr.mxu0 %v4055_v3 }
0x1047   : > { %v2248_v49 = vpop.permute.xlu0 %2247  ;;  %v2246_v50 = vpop.permute.xlu1 %2245 }
0x1048   : > { %v2250_v52 = vsel %vm2249_vm6, %v2246_v50, %v2248_v49 }
0x1049   : > { %3042 = vmatpush3.msra.mxu0 %v2250_v52 }
0x104a   : > { %3043 = vmatprep.subr.mxu0 %v4055_v3 }
0x104b   : > { %v2241_v53 = vpop.permute.xlu0 %2240  ;;  %v2239_v54 = vpop.permute.xlu1 %2238 }
0x104c   : > { %v2243_v55 = vsel %vm2242_vm8, %v2239_v54, %v2241_v53 }
0x104d   : > { %3044 = vmatpush3.msra.mxu0 %v2243_v55 }
0x104e   : > { %3045 = vmatprep.subr.mxu0 %v4055_v3 }
0x104f   : > { %v2235_v56 = vpop.permute.xlu0 %2234  ;;  %v2233_v57 = vpop.permute.xlu1 %2232 }
0x1050   : > { %v2236_v58 = vsel %vm1990_vm15, %v2233_v57, %v2235_v56 }
0x1051   : > { %3046 = vmatpush3.msra.mxu0 %v2236_v58 }
0x1052   : > { %3047 = vmatprep.subr.mxu0 %v4055_v3 }
0x1053   : > { %v2229_v59 = vpop.permute.xlu0 %2228  ;;  %v2227_v60 = vpop.permute.xlu1 %2226 }
0x1054   : > { %v2230_v61 = vsel %vm1508_vm0, %v2227_v60, %v2229_v59 }
0x1055   : > { %3048 = vmatpush3.msra.mxu0 %v2230_v61 }
0x1056   : > { %3049 = vmatprep.subr.mxu0 %v4055_v3 }
0x1057   : > { %v2223_v62 = vpop.permute.xlu0 %2222  ;;  %v2221_v63 = vpop.permute.xlu1 %2220 }
0x1058   : > { %v2224_v1 = vsel %vm1501_vm7, %v2221_v63, %v2223_v62 }
0x1059   : > { %3050 = vmatpush3.msra.mxu0 %v2224_v1 }
0x105a   : > { %3051 = vmatprep.subr.mxu0 %v4055_v3 }
0x105b   : > { %3052 = vmatpush3.msk.msra.mxu0 %vm2837_vm5, %v2213_v44 }
0x105c   : > { %3054 = vmatmul.mubr.msk.f32.vlgmr.msra.gmra.mxu0 %vm1744_vm14, %v2209_v4 }
0x1064   : > { %v2262_v5 = vpop.permute.xlu1 %2261 }
0x111c   : > { %v2333_v6 = vpop.f32.mrf.mxu0 }
0x111d   : > { %v2334_v7 = vadd.f32 %v2333_v6, %v2262_v5 }
0x111e   : > { %v3055_v8 = vpop.f32.mrf.mxu0 }
0x111f   : > { %vm2337_vm0 = vcmp.ge.f32.partialorder %v2334_v7, 0.0  ;;  %v2338_v2 = vmul.f32 0.1, %v2334_v7 }
0x1121   : > { %v2339_v9 = vsel %vm2337_vm0, %v2334_v7, %v2338_v2 }
0x1122   : > { %2343 = vrot.lane.b32.xlu0 %v2339_v9, %s4060_s6  ;;  %s1060_s6 = scalar_lea.vmem %s4848_s25, %s2805_s7 }
0x1194   : > { %v2344_v10 = vpop.permute.xlu0 %2343 }
0x1195   : > { %v2346_v11 = vsel %vm1282_vm9, 0.0, %v2344_v10  ;;  %v2347_v12 = vsel %vm1282_vm9, %v2344_v10, 0.0 }
0x1196   : > { %2382 = vrot.lane.b32.xlu0 %v2347_v12, %s4061_s2  ;;  %2380 = vrot.lane.b32.xlu1 %v2346_v11, %s4061_s2 }
0x119a   : > { %2376 = vrot.lane.b32.xlu0 %v2347_v12, %s4063_s1  ;;  %2374 = vrot.lane.b32.xlu1 %v2346_v11, %s4063_s1 }
0x119e   : > { %2370 = vrot.lane.b32.xlu0 %v2347_v12, %s4066_s27  ;;  %2368 = vrot.lane.b32.xlu1 %v2346_v11, %s4066_s27 }
0x11a2   : > { %2364 = vrot.lane.b32.xlu0 %v2347_v12, %s4062_s0  ;;  %2362 = vrot.lane.b32.xlu1 %v2346_v11, %s4062_s0 }
0x11a6   : > { %2358 = vrot.lane.b32.xlu0 %v2347_v12, %s4058_s4  ;;  %2356 = vrot.lane.b32.xlu1 %v2346_v11, %s4058_s4 }
0x11aa   : > { %2352 = vrot.lane.b32.xlu0 %v2347_v12, %s4059_s3  ;;  %2350 = vrot.lane.b32.xlu1 %v2346_v11, %s4059_s3 }
0x11ae   : > { %2388 = vperm.xlu0 %3345, %v2341_v13   ;;  %1616 = vperm.xlu1 %3344, %v1593_v16  }
0x1208   : > { %v2383_v17 = vpop.permute.xlu0 %2382  ;;  %v2381_v18 = vpop.permute.xlu1 %2380 }
0x1209   : > { %v2384_v19 = vsel %vm1298_vm10, %v2381_v18, %v2383_v17 }
0x120a   : > { %3057 = vmatpush3.msra.mxu1 %v2384_v19 }
0x120b   : > { %3058 = vmatprep.subr.mxu1 %v4055_v3 }
0x120c   : > { %v2377_v20 = vpop.permute.xlu0 %2376  ;;  %v2375_v21 = vpop.permute.xlu1 %2374 }
0x120d   : > { %v2378_v22 = vsel %vm1501_vm7, %v2375_v21, %v2377_v20 }
0x120e   : > { %3059 = vmatpush3.msra.mxu1 %v2378_v22 }
0x120f   : > { %3060 = vmatprep.subr.mxu1 %v4055_v3 }
0x1210   : > { %v2371_v15 = vpop.permute.xlu0 %2370  ;;  %v2369_v23 = vpop.permute.xlu1 %2368 }
0x1211   : > { %v2372_v24 = vsel %vm1724_vm13, %v2369_v23, %v2371_v15 }
0x1212   : > { %3061 = vmatpush3.msra.mxu1 %v2372_v24 }
0x1213   : > { %3062 = vmatprep.subr.mxu1 %v4055_v3 }
0x1214   : > { %v2365_v25 = vpop.permute.xlu0 %2364  ;;  %v2363_v26 = vpop.permute.xlu1 %2362 }
0x1215   : > { %v2366_v27 = vsel %vm1291_vm11, %v2363_v26, %v2365_v25 }
0x1216   : > { %3063 = vmatpush3.msra.mxu1 %v2366_v27 }
0x1217   : > { %3064 = vmatprep.subr.mxu1 %v4055_v3 }
0x1218   : > { %v2359_v28 = vpop.permute.xlu0 %2358  ;;  %v2357_v29 = vpop.permute.xlu1 %2356 }
0x1219   : > { %v2360_v30 = vsel %vm1087_vm3, %v2357_v29, %v2359_v28 }
0x121a   : > { %3065 = vmatpush3.msra.mxu1 %v2360_v30 }
0x121b   : > { %3066 = vmatprep.subr.mxu1 %v4055_v3 }
0x121c   : > { %v2353_v31 = vpop.permute.xlu0 %2352  ;;  %v2351_v32 = vpop.permute.xlu1 %2350 }
0x121d   : > { %v2354_v33 = vsel %vm1080_vm4, %v2351_v32, %v2353_v31 }
0x121e   : > { %3067 = vmatpush3.msra.mxu1 %v2354_v33 }
0x121f   : > { %3068 = vmatprep.subr.mxu1 %v4055_v3 }
0x1220   : > { %3069 = vmatpush3.msk.msra.mxu1 %vm4551_vm12, %v2344_v10 }
0x1221   : > { %3071 = vmatmul.mubr.msk.f32.vlgmr.msra.gmra.mxu1 %vm1744_vm14, %v2340_v34 }
0x1229   : > { %v1617_v36 = vpop.permute.xlu1 %1616  ;;  %v2389_v38 = vpop.permute.xlu0 %2388 }
0x122a   : > { %v1689_v37 = vadd.f32 %v4694_v35, %v1617_v36 }
0x122c   : > { %v1692_v44 = vadd.f32 %v1689_v37, %v4588_v14 }
0x12e1   : > { %v2460_v39 = vpop.f32.mrf.mxu1 }
0x12e2   : > { %v2461_v42 = vadd.f32 %v2460_v39, %v2389_v38 }
0x12e3   : > { %v3072_v43 = vpop.f32.mrf.mxu1 }
0x12e4   : > { %v2464_v45 = vadd.f32 %v2461_v42, %v4758_v40 }
0x12e6   : > { %v2465_v46 = vadd.f32 %v2464_v45, %v1692_v44 }
0x12e8   : > { %v2466_v3 = vmul.f32 0.5, %v2465_v46 }
0x12ea   : > { %2467 = vst [vmem:[%s1060_s6] sm:$0xff] %v2466_v3 }
0x12eb PF: > { %s4906_s2 = sld [smem:[#allocation52_spill]] }
0x12f1   : > { %s48_s29 = sadd.s32 1, %s4906_s2  }
0x12f2   : > { %p45_p7 = scmp.ge.s32.totalorder %s48_s29, 4  }
0x12f4   :  { %47 = sbr.rel (!%p45_p7) target bundleno = 24 (0x18), region = 247 }
0x12f9   :  { %2487 = vsyncpa [#allocation3], 1 }
0x12fa   :  { %2489 = vsyncpa [#allocation3 + $0x1], 1 }
0x12fb   :  { %2490 = vsyncpa [#allocation5], 1 }
0x12fc   :  { %2491 = vsyncpa [#allocation8], 1 }
0x12fd   :  { %2492 = vsyncpa [#allocation11], 1 }
0x12fe   :  { %2493 = vsyncpa [#allocation14], 1 }
0x12ff   :  { %2494 = vsyncpa [#allocation17], 1 }
0x1300   :  { %2495 = vsyncpa [#allocation20], 1 }
0x1301   :  { %2496 = vsyncpa [#allocation23], 1 }
0x1302   :  { %2497 = vsyncpa [#allocation26], 1 }
0x1303   :  { %2498 = vsyncpa [#allocation29], 1 }
0x1304   :  { %2499 = vsyncpa [#allocation32], 1 }
0x1305   :  { %2500 = vsyncpa [#allocation35], 1 }
0x1306   :  { %2501 = vsyncpa [#allocation38], 1 }

// kernel: _lambda_.15
= control target key start
LH: loop header
LB: loop body
LE: loop exit
PB: predicated region body
PF: predicated region fallthrough
CT: control target
= control target key end

     0   :  { %s769_s9 = smov 0   ;;  %s995_s0 = inlined_call_operand.vmem [shape: f32[2,4,527], index: 0, kind: input, shape index: {}]   ;;  %s996_s1 = inlined_call_operand.vmem [shape: f32[4,64], index: 1, kind: input, shape index: {}]   ;;  %s997_s2 = inlined_call_operand.vmem [shape: f32[2,4,512], index: 2, kind: output, shape index: {}]  }
   0x1 LB: > { %s687_s10 = sadd.s32 4294967295, %s736_s9   ;;  %p691_p0 = scmp.ge.s32.totalorder %s736_s9, 1  ;;  %s736_s9 = sphi %s769_s9, %s12_s9  }
   0x2   : > { %p112_p1 = scmp.lt.s32.totalorder %s736_s9, 3 }
   0x4   : > { %p113_p2 = pnand %p691_p0, %p112_p1 }
   0x5   : > { %p134_p3 = scmp.lt.s32.totalorder (!%p113_p2), %s687_s10, 1  ;;  %s738_s15 = smov (!%p113_p2), 114  }
   0x6   : > { %116 = sbr.rel (%p113_p2) target bundleno = 480 (0x1e0), region = 28  ;;  %s739_s16 = smov (!%p113_p2), 113  }
   0x7   : > { %s740_s17 = smov (!%p113_p2), 116   ;;  %s741_s18 = smov (!%p113_p2), 115  }
   0x8   : > { %s742_s19 = smov (!%p113_p2), 118   ;;  %s743_s20 = smov (!%p113_p2), 117  }
   0x9   : > { %s744_s21 = smov (!%p113_p2), 120   ;;  %s745_s22 = smov (!%p113_p2), 119  }
   0xa   : > { %s746_s23 = smov (!%p113_p2), 122   ;;  %s747_s24 = smov (!%p113_p2), 121  }
   0xb   : > { %s999_s10 = smov (!%p134_p3, %s687_s10), 1  ;;  %s748_s25 = smov 124   ;;  %vm434_vm0 = vcmask 924672   ;;  %vm443_vm1 = vcmask 1043456   ;;  %vm415_vm2 = vcmask 932864   ;;  %v752_v32 = vmov 0.0  }
   0xc   : > { %s700_s11 = smul.u32 20, %s999_s10  ;;  %s749_s26 = smov 123   ;;  %615 = vmatprep.mubr.f32.mxu1 %v752_v32  ;;  %544 = vmatprep.mubr.f32.mxu0 %v752_v32  ;;  %vm377_vm3 = vcmask 949248   ;;  %vm396_vm4 = vcmask 941056   ;;  %vm339_vm5 = vcmask 965632   ;;  %vm358_vm6 = vcmask 957440  }
   0xd   : > { %s750_s27 = smov 126   ;;  %s751_s28 = smov 125   ;;  %vm301_vm7 = vcmask 982016   ;;  %vm320_vm8 = vcmask 973824   ;;  %vm263_vm9 = vcmask 998400   ;;  %vm282_vm10 = vcmask 990208  }
   0xe   : > { %s138_s14 = scalar_lea.vmem %s995_s0, %s700_s11  ;;  %s753_s29 = smov 127   ;;  %vm225_vm11 = vcmask 1014784   ;;  %vm244_vm12 = vcmask 1006592   ;;  %vm187_vm13 = vcmask 1031168   ;;  %vm206_vm14 = vcmask 1022976  }
   0xf   : > { %v783_v0 = vld [vmem:[%s138_s14 + $0x10] sm:$0xf]  ;;  %v785_v1 = vld [vmem:[%s138_s14 + $0x8] sm:$0xff]  ;;  %v793_v3 = vld [vmem:[%s138_s14] sm:$0xff]  ;;  %vm168_vm15 = vcmask 1039360   ;;  %s699_s4 = sshll.u32 %s999_s10, 4 }
  0x10   : > { %413 = vrot.lane.b32.xlu1 %v783_v0, %s738_s15  ;;  %409 = vrot.lane.b32.xlu0 %v785_v1, %s738_s15  ;;  %v791_v2 = vcombine.high %v785_v1, %v785_v1  ;;  %v799_v4 = vcombine.low %v785_v1, %v785_v1  ;;  %v803_v5 = vcombine.high %v793_v3, %v793_v3  ;;  %s143_s7 = scalar_lea.vmem %s997_s2, %s699_s4 }
  0x11   : > { %v809_v6 = vcombine.low %v783_v0, %v783_v0  ;;  %v815_v7 = vcombine.low %v793_v3, %v793_v3 }
  0x14   : > { %411 = vrot.lane.b32.xlu1 %v791_v2, %s738_s15  ;;  %426 = vrot.lane.b32.xlu0 %v793_v3, %s739_s16 }
  0x18   : > { %428 = vrot.lane.b32.xlu1 %v799_v4, %s739_s16  ;;  %407 = vrot.lane.b32.xlu0 %v803_v5, %s738_s15 }
  0x1c   : > { %432 = vrot.lane.b32.xlu1 %v809_v6, %s739_s16  ;;  %430 = vrot.lane.b32.xlu0 %v785_v1, %s739_s16 }
  0x20   : > { %424 = vrot.lane.b32.xlu1 %v815_v7, %s739_s16  ;;  %405 = vrot.lane.b32.xlu0 %v793_v3, %s738_s15 }
  0x24   : > { %371 = vrot.lane.b32.xlu1 %v785_v1, %s740_s17  ;;  %369 = vrot.lane.b32.xlu0 %v803_v5, %s740_s17 }
  0x28   : > { %375 = vrot.lane.b32.xlu1 %v783_v0, %s740_s17  ;;  %373 = vrot.lane.b32.xlu0 %v791_v2, %s740_s17 }
  0x2c   : > { %390 = vrot.lane.b32.xlu1 %v799_v4, %s741_s18  ;;  %388 = vrot.lane.b32.xlu0 %v793_v3, %s741_s18 }
  0x30   : > { %394 = vrot.lane.b32.xlu1 %v809_v6, %s741_s18  ;;  %392 = vrot.lane.b32.xlu0 %v785_v1, %s741_s18 }
  0x34   : > { %386 = vrot.lane.b32.xlu1 %v815_v7, %s741_s18  ;;  %367 = vrot.lane.b32.xlu0 %v793_v3, %s740_s17 }
  0x38   : > { %333 = vrot.lane.b32.xlu1 %v785_v1, %s742_s19  ;;  %331 = vrot.lane.b32.xlu0 %v803_v5, %s742_s19 }
  0x3c   : > { %337 = vrot.lane.b32.xlu1 %v783_v0, %s742_s19  ;;  %335 = vrot.lane.b32.xlu0 %v791_v2, %s742_s19 }
  0x40   : > { %352 = vrot.lane.b32.xlu1 %v799_v4, %s743_s20  ;;  %350 = vrot.lane.b32.xlu0 %v793_v3, %s743_s20 }
  0x44   : > { %356 = vrot.lane.b32.xlu1 %v809_v6, %s743_s20  ;;  %354 = vrot.lane.b32.xlu0 %v785_v1, %s743_s20 }
  0x48   : > { %348 = vrot.lane.b32.xlu1 %v815_v7, %s743_s20  ;;  %329 = vrot.lane.b32.xlu0 %v793_v3, %s742_s19 }
  0x4c   : > { %295 = vrot.lane.b32.xlu1 %v785_v1, %s744_s21  ;;  %293 = vrot.lane.b32.xlu0 %v803_v5, %s744_s21 }
  0x50   : > { %299 = vrot.lane.b32.xlu1 %v783_v0, %s744_s21  ;;  %297 = vrot.lane.b32.xlu0 %v791_v2, %s744_s21 }
  0x54   : > { %314 = vrot.lane.b32.xlu1 %v799_v4, %s745_s22  ;;  %312 = vrot.lane.b32.xlu0 %v793_v3, %s745_s22 }
  0x58   : > { %318 = vrot.lane.b32.xlu1 %v809_v6, %s745_s22  ;;  %316 = vrot.lane.b32.xlu0 %v785_v1, %s745_s22 }
  0x5c   : > { %310 = vrot.lane.b32.xlu1 %v815_v7, %s745_s22  ;;  %291 = vrot.lane.b32.xlu0 %v793_v3, %s744_s21 }
  0x60   : > { %257 = vrot.lane.b32.xlu1 %v785_v1, %s746_s23  ;;  %255 = vrot.lane.b32.xlu0 %v803_v5, %s746_s23 }
  0x64   : > { %261 = vrot.lane.b32.xlu1 %v783_v0, %s746_s23  ;;  %259 = vrot.lane.b32.xlu0 %v791_v2, %s746_s23 }
  0x68   : > { %276 = vrot.lane.b32.xlu1 %v799_v4, %s747_s24  ;;  %274 = vrot.lane.b32.xlu0 %v793_v3, %s747_s24 }
  0x6c   : > { %280 = vrot.lane.b32.xlu1 %v809_v6, %s747_s24  ;;  %278 = vrot.lane.b32.xlu0 %v785_v1, %s747_s24 }
  0x70   : > { %272 = vrot.lane.b32.xlu1 %v815_v7, %s747_s24  ;;  %253 = vrot.lane.b32.xlu0 %v793_v3, %s746_s23 }
  0x74   : > { %219 = vrot.lane.b32.xlu1 %v785_v1, %s748_s25  ;;  %217 = vrot.lane.b32.xlu0 %v803_v5, %s748_s25 }
  0x78   : > { %223 = vrot.lane.b32.xlu1 %v783_v0, %s748_s25  ;;  %221 = vrot.lane.b32.xlu0 %v791_v2, %s748_s25 }
  0x7c   : > { %238 = vrot.lane.b32.xlu1 %v799_v4, %s749_s26  ;;  %236 = vrot.lane.b32.xlu0 %v793_v3, %s749_s26 }
  0x80   : > { %242 = vrot.lane.b32.xlu1 %v809_v6, %s749_s26  ;;  %240 = vrot.lane.b32.xlu0 %v785_v1, %s749_s26 }
  0x82   : > { %v414_v8 = vpop.permute.xlu1 %413  ;;  %v410_v9 = vpop.permute.xlu0 %409 }
  0x84   : > { %234 = vrot.lane.b32.xlu1 %v815_v7, %s749_s26  ;;  %215 = vrot.lane.b32.xlu0 %v793_v3, %s748_s25 }
  0x86   : > { %v412_v10 = vpop.permute.xlu1 %411  ;;  %v427_v11 = vpop.permute.xlu0 %426 }
  0x87   : > { %v418_v19 = vsel %vm415_vm2, %v410_v9, %v412_v10  ;;  %v419_v20 = vsel %vm415_vm2, %v412_v10, %v414_v8 }
  0x88   : > { %181 = vrot.lane.b32.xlu1 %v785_v1, %s750_s27  ;;  %179 = vrot.lane.b32.xlu0 %v803_v5, %s750_s27 }
  0x8a   : > { %v429_v12 = vpop.permute.xlu1 %428  ;;  %v408_v13 = vpop.permute.xlu0 %407 }
  0x8b   : > { %v436_v14 = vsel %vm434_vm0, %v427_v11, %v429_v12  ;;  %v417_v15 = vsel %vm415_vm2, %v408_v13, %v410_v9 }
  0x8c   : > { %185 = vrot.lane.b32.xlu1 %v783_v0, %s750_s27  ;;  %183 = vrot.lane.b32.xlu0 %v791_v2, %s750_s27  ;;  %v473_v16 = vsel %vm443_vm1, %v417_v15, %v436_v14 }
  0x8d   : > { %496 = vmatprep.subr.mxu0 %v473_v16 }
  0x8e   : > { %v433_v17 = vpop.permute.xlu1 %432  ;;  %v431_v18 = vpop.permute.xlu0 %430 }
  0x8f   : > { %v437_v21 = vsel %vm434_vm0, %v429_v12, %v431_v18  ;;  %v438_v22 = vsel %vm434_vm0, %v431_v18, %v433_v17 }
  0x90   : > { %200 = vrot.lane.b32.xlu1 %v799_v4, %s751_s28  ;;  %198 = vrot.lane.b32.xlu0 %v793_v3, %s751_s28  ;;  %v475_v23 = vsel %vm443_vm1, %v419_v20, %v438_v22  ;;  %v474_v24 = vsel %vm443_vm1, %v418_v19, %v437_v21 }
  0x91   : > { %567 = vmatprep.subr.mxu1 %v475_v23 }
  0x92   : > { %v425_v25 = vpop.permute.xlu1 %424  ;;  %568 = vmatpush1.msra.mxu1 %v474_v24  ;;  %v406_v26 = vpop.permute.xlu0 %405 }
  0x93   : > { %v435_v27 = vsel %vm434_vm0, %v425_v25, %v427_v11  ;;  %v416_v28 = vsel %vm415_vm2, %v406_v26, %v408_v13  ;;  %vm476_vm0 = vcmask 523264  }
  0x94   : > { %204 = vrot.lane.b32.xlu1 %v809_v6, %s751_s28  ;;  %202 = vrot.lane.b32.xlu0 %v785_v1, %s751_s28  ;;  %v472_v29 = vsel %vm443_vm1, %v416_v28, %v435_v27 }
  0x95   : > { %497 = vmatpush1.msra.mxu0 %v472_v29 }
  0x96   : > { %v372_v30 = vpop.permute.xlu1 %371  ;;  %v370_v31 = vpop.permute.xlu0 %369 }
  0x97   : > { %v379_v37 = vsel %vm377_vm3, %v370_v31, %v372_v30 }
  0x98   : > { %196 = vrot.lane.b32.xlu1 %v815_v7, %s751_s28  ;;  %177 = vrot.lane.b32.xlu0 %v793_v3, %s750_s27 }
  0x9a   : > { %v376_v33 = vpop.permute.xlu1 %375  ;;  %v374_v34 = vpop.permute.xlu0 %373 }
  0x9b   : > { %v380_v42 = vsel %vm377_vm3, %v372_v30, %v374_v34  ;;  %v381_v43 = vsel %vm377_vm3, %v374_v34, %v376_v33 }
  0x9c   : > { %162 = vrot.lane.b32.xlu1 %v799_v4, %s753_s29  ;;  %160 = vrot.lane.b32.xlu0 %v793_v3, %s753_s29 }
  0x9e   : > { %v391_v35 = vpop.permute.xlu1 %390  ;;  %v389_v36 = vpop.permute.xlu0 %388 }
  0x9f   : > { %v398_v38 = vsel %vm396_vm4, %v389_v36, %v391_v35 }
  0xa0   : > { %166 = vrot.lane.b32.xlu1 %v809_v6, %s753_s29  ;;  %164 = vrot.lane.b32.xlu0 %v785_v1, %s753_s29  ;;  %v469_v39 = vsel %vm443_vm1, %v379_v37, %v398_v38 }
  0xa1   : > { %498 = vmatprep.subr.mxu0 %v469_v39 }
  0xa2   : > { %v395_v40 = vpop.permute.xlu1 %394  ;;  %v393_v41 = vpop.permute.xlu0 %392 }
  0xa3   : > { %v399_v44 = vsel %vm396_vm4, %v391_v35, %v393_v41  ;;  %v400_v45 = vsel %vm396_vm4, %v393_v41, %v395_v40 }
  0xa4   : > { %158 = vrot.lane.b32.xlu0 %v815_v7, %s753_s29  ;;  %v471_v46 = vsel %vm443_vm1, %v381_v43, %v400_v45  ;;  %v470_v47 = vsel %vm443_vm1, %v380_v42, %v399_v44 }
  0xa5   : > { %569 = vmatprep.subr.mxu1 %v471_v46 }
  0xa6   : > { %v387_v48 = vpop.permute.xlu1 %386  ;;  %570 = vmatpush1.msra.mxu1 %v470_v47  ;;  %v368_v49 = vpop.permute.xlu0 %367 }
  0xa7   : > { %v397_v50 = vsel %vm396_vm4, %v387_v48, %v389_v36  ;;  %v378_v51 = vsel %vm377_vm3, %v368_v49, %v370_v31 }
  0xa8   : > { %v468_v52 = vsel %vm443_vm1, %v378_v51, %v397_v50 }
  0xa9   : > { %499 = vmatpush1.msra.mxu0 %v468_v52 }
  0xaa   : > { %v334_v53 = vpop.permute.xlu1 %333  ;;  %v332_v54 = vpop.permute.xlu0 %331 }
  0xab   : > { %v341_v59 = vsel %vm339_vm5, %v332_v54, %v334_v53 }
  0xae   : > { %v338_v55 = vpop.permute.xlu1 %337  ;;  %v336_v56 = vpop.permute.xlu0 %335 }
  0xaf   : > { %v342_v0 = vsel %vm339_vm5, %v334_v53, %v336_v56  ;;  %v343_v4 = vsel %vm339_vm5, %v336_v56, %v338_v55 }
  0xb2   : > { %v353_v57 = vpop.permute.xlu1 %352  ;;  %v351_v58 = vpop.permute.xlu0 %350 }
  0xb3   : > { %v360_v60 = vsel %vm358_vm6, %v351_v58, %v353_v57 }
  0xb4   : > { %v465_v61 = vsel %vm443_vm1, %v341_v59, %v360_v60 }
  0xb5   : > { %500 = vmatprep.subr.mxu0 %v465_v61 }
  0xb6   : > { %v357_v62 = vpop.permute.xlu1 %356  ;;  %v355_v63 = vpop.permute.xlu0 %354 }
  0xb7   : > { %v361_v6 = vsel %vm358_vm6, %v353_v57, %v355_v63  ;;  %v362_v7 = vsel %vm358_vm6, %v355_v63, %v357_v62 }
  0xb8   : > { %v467_v8 = vsel %vm443_vm1, %v343_v4, %v362_v7  ;;  %v466_v9 = vsel %vm443_vm1, %v342_v0, %v361_v6 }
  0xb9   : > { %571 = vmatprep.subr.mxu1 %v467_v8 }
  0xba   : > { %v349_v10 = vpop.permute.xlu1 %348  ;;  %572 = vmatpush1.msra.mxu1 %v466_v9  ;;  %v330_v11 = vpop.permute.xlu0 %329 }
  0xbb   : > { %v359_v12 = vsel %vm358_vm6, %v349_v10, %v351_v58  ;;  %v340_v13 = vsel %vm339_vm5, %v330_v11, %v332_v54 }
  0xbc   : > { %v464_v14 = vsel %vm443_vm1, %v340_v13, %v359_v12 }
  0xbd   : > { %501 = vmatpush1.msra.mxu0 %v464_v14 }
  0xbe   : > { %v296_v15 = vpop.permute.xlu1 %295  ;;  %v294_v16 = vpop.permute.xlu0 %293 }
  0xbf   : > { %v303_v21 = vsel %vm301_vm7, %v294_v16, %v296_v15 }
  0xc2   : > { %v300_v17 = vpop.permute.xlu1 %299  ;;  %v298_v18 = vpop.permute.xlu0 %297 }
  0xc3   : > { %v304_v26 = vsel %vm301_vm7, %v296_v15, %v298_v18  ;;  %v305_v27 = vsel %vm301_vm7, %v298_v18, %v300_v17 }
  0xc6   : > { %v315_v19 = vpop.permute.xlu1 %314  ;;  %v313_v20 = vpop.permute.xlu0 %312 }
  0xc7   : > { %v322_v22 = vsel %vm320_vm8, %v313_v20, %v315_v19 }
  0xc8   : > { %v461_v23 = vsel %vm443_vm1, %v303_v21, %v322_v22 }
  0xc9   : > { %502 = vmatprep.subr.mxu0 %v461_v23 }
  0xca   : > { %v319_v24 = vpop.permute.xlu1 %318  ;;  %v317_v25 = vpop.permute.xlu0 %316 }
  0xcb   : > { %v323_v28 = vsel %vm320_vm8, %v315_v19, %v317_v25  ;;  %v324_v29 = vsel %vm320_vm8, %v317_v25, %v319_v24 }
  0xcc   : > { %v463_v30 = vsel %vm443_vm1, %v305_v27, %v324_v29  ;;  %v462_v31 = vsel %vm443_vm1, %v304_v26, %v323_v28 }
  0xcd   : > { %573 = vmatprep.subr.mxu1 %v463_v30 }
  0xce   : > { %v311_v32 = vpop.permute.xlu1 %310  ;;  %574 = vmatpush1.msra.mxu1 %v462_v31  ;;  %v292_v33 = vpop.permute.xlu0 %291 }
  0xcf   : > { %v321_v34 = vsel %vm320_vm8, %v311_v32, %v313_v20  ;;  %v302_v35 = vsel %vm301_vm7, %v292_v33, %v294_v16 }
  0xd0   : > { %v460_v36 = vsel %vm443_vm1, %v302_v35, %v321_v34 }
  0xd1   : > { %503 = vmatpush1.msra.mxu0 %v460_v36 }
  0xd2   : > { %v258_v37 = vpop.permute.xlu1 %257  ;;  %v256_v38 = vpop.permute.xlu0 %255 }
  0xd3   : > { %v265_v43 = vsel %vm263_vm9, %v256_v38, %v258_v37 }
  0xd6   : > { %v262_v39 = vpop.permute.xlu1 %261  ;;  %v260_v40 = vpop.permute.xlu0 %259 }
  0xd7   : > { %v266_v48 = vsel %vm263_vm9, %v258_v37, %v260_v40  ;;  %v267_v49 = vsel %vm263_vm9, %v260_v40, %v262_v39 }
  0xda   : > { %v277_v41 = vpop.permute.xlu1 %276  ;;  %v275_v42 = vpop.permute.xlu0 %274 }
  0xdb   : > { %v284_v44 = vsel %vm282_vm10, %v275_v42, %v277_v41 }
  0xdc   : > { %v457_v45 = vsel %vm443_vm1, %v265_v43, %v284_v44 }
  0xdd   : > { %504 = vmatprep.subr.mxu0 %v457_v45 }
  0xde   : > { %v281_v46 = vpop.permute.xlu1 %280  ;;  %v279_v47 = vpop.permute.xlu0 %278 }
  0xdf   : > { %v285_v50 = vsel %vm282_vm10, %v277_v41, %v279_v47  ;;  %v286_v51 = vsel %vm282_vm10, %v279_v47, %v281_v46 }
  0xe0   : > { %v459_v52 = vsel %vm443_vm1, %v267_v49, %v286_v51  ;;  %v458_v53 = vsel %vm443_vm1, %v266_v48, %v285_v50 }
  0xe1   : > { %575 = vmatprep.subr.mxu1 %v459_v52 }
  0xe2   : > { %v273_v54 = vpop.permute.xlu1 %272  ;;  %576 = vmatpush1.msra.mxu1 %v458_v53  ;;  %v254_v55 = vpop.permute.xlu0 %253  ;;  %v147_v53 = vld [vmem:[%s996_s1] sm:$0xf] }
  0xe3   : > { %v283_v56 = vsel %vm282_vm10, %v273_v54, %v275_v42  ;;  %v264_v57 = vsel %vm263_vm9, %v254_v55, %v256_v38 }
  0xe4   : > { %v456_v58 = vsel %vm443_vm1, %v264_v57, %v283_v56 }
  0xe5   : > { %505 = vmatpush1.msra.mxu0 %v456_v58 }
  0xe6   : > { %v220_v59 = vpop.permute.xlu1 %219  ;;  %v218_v60 = vpop.permute.xlu0 %217 }
  0xe7   : > { %v227_v4 = vsel %vm225_vm11, %v218_v60, %v220_v59 }
  0xea   : > { %v224_v61 = vpop.permute.xlu1 %223  ;;  %v222_v62 = vpop.permute.xlu0 %221 }
  0xeb   : > { %v228_v10 = vsel %vm225_vm11, %v220_v59, %v222_v62  ;;  %v229_v11 = vsel %vm225_vm11, %v222_v62, %v224_v61 }
  0xee   : > { %v239_v63 = vpop.permute.xlu1 %238  ;;  %v237_v0 = vpop.permute.xlu0 %236 }
  0xef   : > { %v246_v6 = vsel %vm244_vm12, %v237_v0, %v239_v63 }
  0xf0   : > { %v453_v7 = vsel %vm443_vm1, %v227_v4, %v246_v6 }
  0xf1   : > { %506 = vmatprep.subr.mxu0 %v453_v7 }
  0xf2   : > { %v243_v8 = vpop.permute.xlu1 %242  ;;  %v241_v9 = vpop.permute.xlu0 %240 }
  0xf3   : > { %v247_v12 = vsel %vm244_vm12, %v239_v63, %v241_v9  ;;  %v248_v13 = vsel %vm244_vm12, %v241_v9, %v243_v8 }
  0xf4   : > { %v455_v14 = vsel %vm443_vm1, %v229_v11, %v248_v13  ;;  %v454_v15 = vsel %vm443_vm1, %v228_v10, %v247_v12 }
  0xf5   : > { %577 = vmatprep.subr.mxu1 %v455_v14 }
  0xf6   : > { %v235_v16 = vpop.permute.xlu1 %234  ;;  %578 = vmatpush1.msra.mxu1 %v454_v15  ;;  %v216_v17 = vpop.permute.xlu0 %215 }
  0xf7   : > { %v245_v18 = vsel %vm244_vm12, %v235_v16, %v237_v0  ;;  %v226_v19 = vsel %vm225_vm11, %v216_v17, %v218_v60 }
  0xf8   : > { %v452_v20 = vsel %vm443_vm1, %v226_v19, %v245_v18 }
  0xf9   : > { %507 = vmatpush1.msra.mxu0 %v452_v20 }
  0xfa   : > { %v182_v21 = vpop.permute.xlu1 %181  ;;  %v180_v22 = vpop.permute.xlu0 %179 }
  0xfb   : > { %v189_v27 = vsel %vm187_vm13, %v180_v22, %v182_v21 }
  0xfe   : > { %v186_v23 = vpop.permute.xlu1 %185  ;;  %v184_v24 = vpop.permute.xlu0 %183 }
  0xff   : > { %v190_v32 = vsel %vm187_vm13, %v182_v21, %v184_v24  ;;  %v191_v33 = vsel %vm187_vm13, %v184_v24, %v186_v23 }
 0x102   : > { %v201_v25 = vpop.permute.xlu1 %200  ;;  %v199_v26 = vpop.permute.xlu0 %198 }
 0x103   : > { %v208_v28 = vsel %vm206_vm14, %v199_v26, %v201_v25 }
 0x104   : > { %v449_v29 = vsel %vm443_vm1, %v189_v27, %v208_v28 }
 0x105   : > { %508 = vmatprep.subr.mxu0 %v449_v29 }
 0x106   : > { %v205_v30 = vpop.permute.xlu1 %204  ;;  %v203_v31 = vpop.permute.xlu0 %202 }
 0x107   : > { %v209_v34 = vsel %vm206_vm14, %v201_v25, %v203_v31  ;;  %v210_v35 = vsel %vm206_vm14, %v203_v31, %v205_v30 }
 0x108   : > { %v451_v36 = vsel %vm443_vm1, %v191_v33, %v210_v35  ;;  %v450_v37 = vsel %vm443_vm1, %v190_v32, %v209_v34 }
 0x109   : > { %579 = vmatprep.subr.mxu1 %v451_v36 }
 0x10a   : > { %v197_v38 = vpop.permute.xlu1 %196  ;;  %580 = vmatpush1.msra.mxu1 %v450_v37  ;;  %v178_v39 = vpop.permute.xlu0 %177 }
 0x10b   : > { %v207_v40 = vsel %vm206_vm14, %v197_v38, %v199_v26  ;;  %v188_v41 = vsel %vm187_vm13, %v178_v39, %v180_v22 }
 0x10c   : > { %v448_v42 = vsel %vm443_vm1, %v188_v41, %v207_v40 }
 0x10d   : > { %509 = vmatpush1.msra.mxu0 %v448_v42 }
 0x10e   : > { %v163_v43 = vpop.permute.xlu1 %162  ;;  %v161_v44 = vpop.permute.xlu0 %160 }
 0x10f   : > { %v170_v45 = vsel %vm168_vm15, %v161_v44, %v163_v43 }
 0x110   : > { %v445_v46 = vsel %vm443_vm1, %v803_v5, %v170_v45 }
 0x111   : > { %510 = vmatprep.subr.mxu0 %v445_v46 }
 0x112   : > { %v167_v47 = vpop.permute.xlu1 %166  ;;  %v165_v48 = vpop.permute.xlu0 %164 }
 0x113   : > { %v171_v49 = vsel %vm168_vm15, %v163_v43, %v165_v48  ;;  %v172_v50 = vsel %vm168_vm15, %v165_v48, %v167_v47 }
 0x114   : > { %v447_v51 = vsel %vm443_vm1, %v791_v2, %v172_v50  ;;  %v446_v52 = vsel %vm443_vm1, %v785_v1, %v171_v49 }
 0x115   : > { %581 = vmatprep.subr.mxu1 %v447_v51 }
 0x116   : > { %582 = vmatpush1.msra.mxu1 %v446_v52  ;;  %v159_v5 = vpop.permute.xlu0 %158 }
 0x117   : > { %v169_v54 = vsel %vm168_vm15, %v159_v5, %v161_v44  ;;  %696 = vmatmul.mubr.msk.f32.vlgmr.msra.gmra.mxu1 %vm476_vm0, %v147_v53 }
 0x118   : > { %v444_v55 = vsel %vm443_vm1, %v793_v3, %v169_v54 }
 0x119   : > { %511 = vmatpush1.msra.mxu0 %v444_v55 }
 0x11a   : > { %695 = vmatmul.mubr.msk.f32.vlgmr.msra.gmra.mxu0 %vm476_vm0, %v147_v53 }
 0x1d7   : > { %v617_v2 = vpop.f32.mrf.mxu1 }
 0x1d9   : > { %v619_v1 = vpop.f32.mrf.mxu1 }
 0x1da   : > { %v546_v56 = vpop.f32.mrf.mxu0  ;;  %v627_v57 = vcombine.low %v617_v2, %v619_v1 }
 0x1dc   : > { %631 = vst [vmem:[%s143_s7 + $0x8] sm:$0xff] %v627_v57  ;;  %v548_v58 = vpop.f32.mrf.mxu0 }
 0x1dd   : > { %v626_v59 = vcombine.low %v546_v56, %v548_v58 }
 0x1df   : > { %630 = vst [vmem:[%s143_s7] sm:$0xff] %v626_v59 }
 0x1e0 PF: > { %s12_s9 = sadd.s32 1, %s736_s9  }
 0x1e1   : > { %p9_p4 = scmp.ge.s32.totalorder %s12_s9, 4  }
 0x1e3   :  { %11 = sbr.rel (!%p9_p4) target bundleno = 1 (0x1), region = 58 }

</bundles_post_ra>
